<compile_context>
chip_gen: v6e
topology: v6e:2x2x1
jax: 0.10.0
libtpu: 0.0.40
codegen_flags: <defaults>
</compile_context>

<pallas_src>
import functools

import jax
import jax.numpy as jnp
from jax import lax
from jax.experimental import pallas as pl
from jax.experimental.pallas import tpu as pltpu


def _leaky_relu(v):
    return jnp.where(v > 0, v, 0.1 * v)


# TODO(synk): the bilinear upsample (F.interpolate) stays as plain-JAX gather
# glue in the wrapper; the conv stack (the hot path) is done in the kernel.
def bilinear_resize_nchw(x, out_h, out_w):
    """F.interpolate(mode='bilinear', align_corners=False) semantics, NCHW."""
    _, _, in_h, in_w = x.shape

    def coords(out_size, in_size):
        scale = in_size / out_size
        src = (jnp.arange(out_size, dtype=jnp.float32) + 0.5) * scale - 0.5
        src = jnp.maximum(src, 0.0)
        i0 = jnp.minimum(jnp.floor(src).astype(jnp.int32), in_size - 1)
        i1 = jnp.minimum(i0 + 1, in_size - 1)
        w = src - i0.astype(jnp.float32)
        return i0, i1, w

    y0, y1, wy = coords(out_h, in_h)
    x0, x1, wx = coords(out_w, in_w)
    rows = (x[:, :, y0, :] * (1.0 - wy)[None, None, :, None]
            + x[:, :, y1, :] * wy[None, None, :, None])
    out = (rows[:, :, :, x0] * (1.0 - wx)[None, None, None, :]
           + rows[:, :, :, x1] * wx[None, None, None, :])
    return out


def _upsample_conv_kernel(xpad_ref, w1_ref, b1_ref, w2_ref, b2_ref,
                          w3_ref, b3_ref, out_ref, h1pad, h2pad, *, H, W):
    # xpad_ref : (1, H+2, Wp, 4) f32  zero-padded cat[f1, f2, x_up] (NHWC),
    #            Wp = round_up(W+2, 8)
    # w*_ref   : (9*Cin, Cout) bf16   folded 3x3 taps, row = tap*Cin + ci
    # b*_ref   : (1, Cout) f32
    # out_ref  : (1, H*W, 2) f32
    # h1pad/h2pad : (H+2, Wp, 64/32) f32 persistent VMEM scratch (zero halo)
    Hp = H + 2
    Wp = xpad_ref.shape[2]
    c1 = h1pad.shape[-1]
    c2 = h2pad.shape[-1]

    def conv3x3(src, w_fused, bias):
        # src: (Hp, Wp, Cin) zero-padded activation value.  One wide bf16 MXU
        # matmul on the im2col patches instead of 9 narrow per-tap matmuls.
        cin = src.shape[-1]
        windows = [src[dy:dy + H, dx:dx + W, :].reshape(H * W, cin)
                   for dy in range(3) for dx in range(3)]
        patches = jnp.concatenate(windows, axis=-1).astype(jnp.bfloat16)
        return jnp.dot(patches, w_fused,
                       preferred_element_type=jnp.float32) + bias

    # Keep only the 1-pixel zero halo of the persistent scratch valid; the
    # interior is fully overwritten below, and the alignment columns >= W+2
    # are never read by the conv windows.  Border-only zeroing runs every step
    # (cheap) so the kernel stays correct even if the batch grid axis is
    # sharded across TensorCores.
    h1pad[0:1, :, :] = jnp.zeros((1, Wp, c1), jnp.float32)
    h1pad[H + 1:H + 2, :, :] = jnp.zeros((1, Wp, c1), jnp.float32)
    h1pad[:, 0:1, :] = jnp.zeros((Hp, 1, c1), jnp.float32)
    h1pad[:, W + 1:W + 2, :] = jnp.zeros((Hp, 1, c1), jnp.float32)
    h2pad[0:1, :, :] = jnp.zeros((1, Wp, c2), jnp.float32)
    h2pad[H + 1:H + 2, :, :] = jnp.zeros((1, Wp, c2), jnp.float32)
    h2pad[:, 0:1, :] = jnp.zeros((Hp, 1, c2), jnp.float32)
    h2pad[:, W + 1:W + 2, :] = jnp.zeros((Hp, 1, c2), jnp.float32)

    xpad = xpad_ref[0]                                           # (Hp, Wp, 4)

    # conv1 (4 -> 64) + LeakyReLU, write into the zero-haloed scratch.
    a1 = _leaky_relu(conv3x3(xpad, w1_ref[...], b1_ref[...]))    # (H*W, 64)
    h1pad[1:H + 1, 1:W + 1, :] = a1.reshape(H, W, c1)

    # conv2 (64 -> 32) + LeakyReLU.
    a2 = _leaky_relu(conv3x3(h1pad[...], w2_ref[...], b2_ref[...]))  # (H*W, 32)
    h2pad[1:H + 1, 1:W + 1, :] = a2.reshape(H, W, c2)

    # conv3 (32 -> 2) + residual add of the upsampled flow; the flow is
    # channels 2:4 of xpad, so no second copy is shipped to the kernel.
    a3 = conv3x3(h2pad[...], w3_ref[...], b3_ref[...])           # (H*W, 2)
    flow = xpad[1:H + 1, 1:W + 1, 2:4].reshape(H * W, 2)
    out_ref[0] = flow + a3
    # TODO(synk): for production resolutions, emit a channel-major (2, H*W)
    # block here (lane-dense stores) and tile spatially over rows with a
    # 1-row halo so activations fit v7x's 64 MiB VMEM and both v7x
    # TensorCores stay busy.


def upsample_apply(params, f1, f2, x, size):
    """Equivalent of Upsample.forward(f1, f2, x, size). Inputs/outputs NCHW."""
    w1, b1, w2, b2, w3, b3 = params          # w*: (9, Cin, Cout), b*: (1, Cout)
    H, W = size
    B = f1.shape[0]

    xi = bilinear_resize_nchw(x, H, W)                    # (B, 2, H, W)
    block = jnp.concatenate([f1, f2, xi], axis=1)         # (B, 4, H, W)
    block_nhwc = jnp.transpose(block, (0, 2, 3, 1))       # (B, H, W, 4)

    # 1-px conv halo + round padded width up to a multiple of 8 sublanes.
    Wp = ((W + 2 + 7) // 8) * 8
    xpad = jnp.pad(block_nhwc, ((0, 0), (1, 1), (1, Wp - W - 1), (0, 0)))

    def fold(w):      # (9, Cin, Cout) -> (9*Cin, Cout), bf16 for the MXU
        return w.reshape(w.shape[0] * w.shape[1], w.shape[2]).astype(jnp.bfloat16)

    w1f, w2f, w3f = fold(w1), fold(w2), fold(w3)
    b1f = b1.astype(jnp.float32)
    b2f = b2.astype(jnp.float32)
    b3f = b3.astype(jnp.float32)
    c1, c2 = w1.shape[-1], w2.shape[-1]

    kernel = functools.partial(_upsample_conv_kernel, H=H, W=W)

    grid_spec = pltpu.PrefetchScalarGridSpec(
        num_scalar_prefetch=0,
        grid=(B,),
        in_specs=[
            pl.BlockSpec((1, H + 2, Wp, 4), lambda b: (b, 0, 0, 0)),
            pl.BlockSpec(w1f.shape, lambda b: (0, 0)),
            pl.BlockSpec(b1f.shape, lambda b: (0, 0)),
            pl.BlockSpec(w2f.shape, lambda b: (0, 0)),
            pl.BlockSpec(b2f.shape, lambda b: (0, 0)),
            pl.BlockSpec(w3f.shape, lambda b: (0, 0)),
            pl.BlockSpec(b3f.shape, lambda b: (0, 0)),
        ],
        out_specs=pl.BlockSpec((1, H * W, 2), lambda b: (b, 0, 0)),
        scratch_shapes=[
            pltpu.VMEM((H + 2, Wp, c1), jnp.float32),
            pltpu.VMEM((H + 2, Wp, c2), jnp.float32),
        ],
    )

    out_flat = pl.pallas_call(
        kernel,
        out_shape=jax.ShapeDtypeStruct((B, H * W, 2), jnp.float32),
        grid_spec=grid_spec,
        compiler_params=pltpu.CompilerParams(
            dimension_semantics=("parallel",)),
    )(xpad, w1f, b1f, w2f, b2f, w3f, b3f)

    # TODO(synk): at small H*W, fold several images into one grid step to
    # amortize the ~0.35us/step pipeline overhead.
    return out_flat.reshape(B, H, W, 2).transpose(0, 3, 1, 2)   # NCHW


def reference_forward(params, f1, f2, x, size):
    """Pure-JAX reference (XLA conv) for correctness checking."""
    w1, b1, w2, b2, w3, b3 = params
    H, W = size
    xi = bilinear_resize_nchw(x, H, W)
    z = jnp.transpose(jnp.concatenate([f1, f2, xi], axis=1), (0, 2, 3, 1))

    def conv(z, w, b):
        w_hwio = w.reshape(3, 3, w.shape[1], w.shape[2])
        y = lax.conv_general_dilated(z, w_hwio, (1, 1), 'SAME',
                                     dimension_numbers=('NHWC', 'HWIO', 'NHWC'))
        return y + b.reshape(1, 1, 1, -1)

    h = _leaky_relu(conv(z, w1, b1))
    h = _leaky_relu(conv(h, w2, b2))
    y = conv(h, w3, b3)
    return xi + jnp.transpose(y, (0, 3, 1, 2))


if __name__ == "__main__":
    key = jax.random.PRNGKey(0)
    kf1, kf2, kx, kw1, kb1, kw2, kb2, kw3, kb3 = jax.random.split(key, 9)

    B, H, W = 2, 16, 16
    f1 = jax.random.normal(kf1, (B, 1, H, W), jnp.float32)
    f2 = jax.random.normal(kf2, (B, 1, H, W), jnp.float32)
    x = jax.random.normal(kx, (B, 2, H // 2, W // 2), jnp.float32)   # coarse flow

    # Deterministic synthetic parameters (taps stored as (9, Cin, Cout)).
    params = (
        0.10 * jax.random.normal(kw1, (9, 4, 64), jnp.float32),
        0.05 * jax.random.normal(kb1, (1, 64), jnp.float32),
        0.05 * jax.random.normal(kw2, (9, 64, 32), jnp.float32),
        0.05 * jax.random.normal(kb2, (1, 32), jnp.float32),
        0.05 * jax.random.normal(kw3, (9, 32, 2), jnp.float32),
        0.05 * jax.random.normal(kb3, (1, 2), jnp.float32),
    )

    out = jax.block_until_ready(upsample_apply(params, f1, f2, x, (H, W)))
    ref = jax.block_until_ready(reference_forward(params, f1, f2, x, (H, W)))

    assert out.shape == (B, 2, H, W), out.shape
    err = float(jnp.max(jnp.abs(out - ref)))
    assert err < 5e-2, f"max abs err {err}"
    print("KERNEL_OK")
</pallas_src>

<mosaic_0001>
module attributes {stable_mosaic.version = 11 : i64} {
  func.func @_upsample_conv_kernel(%arg0: i32, %arg1: memref<1x18x24x4xf32, #tpu.memory_space<vmem>>, %arg2: memref<36x64xbf16, #tpu.memory_space<vmem>>, %arg3: memref<1x64xf32, #tpu.memory_space<vmem>>, %arg4: memref<576x32xbf16, #tpu.memory_space<vmem>>, %arg5: memref<1x32xf32, #tpu.memory_space<vmem>>, %arg6: memref<288x2xbf16, #tpu.memory_space<vmem>>, %arg7: memref<1x2xf32, #tpu.memory_space<vmem>>, %arg8: memref<1x256x2xf32, #tpu.memory_space<vmem>>, %arg9: memref<18x24x64xf32, #tpu.memory_space<vmem>>, %arg10: memref<18x24x32xf32, #tpu.memory_space<vmem>>) attributes {dimension_semantics = [#tpu.dimension_semantics<parallel>], iteration_bounds = array<i64: 2>, scalar_prefetch = 0 : i64, scratch_operands = 2 : i64, tpu.core_type = #tpu.core_type<tc>, window_params = [{transform_indices = @transform_0, window_bounds = array<i64: 1, 18, 24, 4>}, {pipeline_mode = #tpu.pipeline_mode<synchronous>, transform_indices = @transform_1, window_bounds = array<i64: 36, 64>}, {pipeline_mode = #tpu.pipeline_mode<synchronous>, transform_indices = @transform_2, window_bounds = array<i64: 1, 64>}, {pipeline_mode = #tpu.pipeline_mode<synchronous>, transform_indices = @transform_3, window_bounds = array<i64: 576, 32>}, {pipeline_mode = #tpu.pipeline_mode<synchronous>, transform_indices = @transform_4, window_bounds = array<i64: 1, 32>}, {pipeline_mode = #tpu.pipeline_mode<synchronous>, transform_indices = @transform_5, window_bounds = array<i64: 288, 2>}, {pipeline_mode = #tpu.pipeline_mode<synchronous>, transform_indices = @transform_6, window_bounds = array<i64: 1, 2>}, {transform_indices = @transform_7, window_bounds = array<i64: 1, 256, 2>}]} {
    %cst = arith.constant 0.000000e+00 : f32
    %0 = vector.broadcast %cst : f32 to vector<1x24x64xf32>
    %c0 = arith.constant 0 : index
    %c0_0 = arith.constant 0 : index
    %c0_1 = arith.constant 0 : index
    %1 = vector.load %arg9[%c0, %c0_0, %c0_1] : memref<18x24x64xf32, #tpu.memory_space<vmem>>, vector<1x24x64xf32>
    tpu.vector_store %arg9[%c0, %c0_0, %c0_1], %0 {strides = array<i32>} : memref<18x24x64xf32, #tpu.memory_space<vmem>>, vector<1x24x64xf32>,
    %cst_2 = arith.constant 0.000000e+00 : f32
    %2 = vector.broadcast %cst_2 : f32 to vector<1x24x64xf32>
    %c17 = arith.constant 17 : index
    %c0_3 = arith.constant 0 : index
    %c0_4 = arith.constant 0 : index
    %3 = vector.load %arg9[%c17, %c0_3, %c0_4] : memref<18x24x64xf32, #tpu.memory_space<vmem>>, vector<1x24x64xf32>
    tpu.vector_store %arg9[%c17, %c0_3, %c0_4], %2 {strides = array<i32>} : memref<18x24x64xf32, #tpu.memory_space<vmem>>, vector<1x24x64xf32>,
    %cst_5 = arith.constant 0.000000e+00 : f32
    %4 = vector.broadcast %cst_5 : f32 to vector<18x1x64xf32>
    %c0_6 = arith.constant 0 : index
    %c0_7 = arith.constant 0 : index
    %c0_8 = arith.constant 0 : index
    %5 = vector.load %arg9[%c0_6, %c0_7, %c0_8] : memref<18x24x64xf32, #tpu.memory_space<vmem>>, vector<18x1x64xf32>
    tpu.vector_store %arg9[%c0_6, %c0_7, %c0_8], %4 {strides = array<i32>} : memref<18x24x64xf32, #tpu.memory_space<vmem>>, vector<18x1x64xf32>,
    %cst_9 = arith.constant 0.000000e+00 : f32
    %6 = vector.broadcast %cst_9 : f32 to vector<18x1x64xf32>
    %c0_10 = arith.constant 0 : index
    %c17_11 = arith.constant 17 : index
    %c0_12 = arith.constant 0 : index
    %7 = vector.load %arg9[%c0_10, %c17_11, %c0_12] : memref<18x24x64xf32, #tpu.memory_space<vmem>>, vector<18x1x64xf32>
    tpu.vector_store %arg9[%c0_10, %c17_11, %c0_12], %6 {strides = array<i32>} : memref<18x24x64xf32, #tpu.memory_space<vmem>>, vector<18x1x64xf32>,
    %cst_13 = arith.constant 0.000000e+00 : f32
    %8 = vector.broadcast %cst_13 : f32 to vector<1x24x32xf32>
    %c0_14 = arith.constant 0 : index
    %c0_15 = arith.constant 0 : index
    %c0_16 = arith.constant 0 : index
    %9 = vector.load %arg10[%c0_14, %c0_15, %c0_16] : memref<18x24x32xf32, #tpu.memory_space<vmem>>, vector<1x24x32xf32>
    tpu.vector_store %arg10[%c0_14, %c0_15, %c0_16], %8 {strides = array<i32>} : memref<18x24x32xf32, #tpu.memory_space<vmem>>, vector<1x24x32xf32>,
    %cst_17 = arith.constant 0.000000e+00 : f32
    %10 = vector.broadcast %cst_17 : f32 to vector<1x24x32xf32>
    %c17_18 = arith.constant 17 : index
    %c0_19 = arith.constant 0 : index
    %c0_20 = arith.constant 0 : index
    %11 = vector.load %arg10[%c17_18, %c0_19, %c0_20] : memref<18x24x32xf32, #tpu.memory_space<vmem>>, vector<1x24x32xf32>
    tpu.vector_store %arg10[%c17_18, %c0_19, %c0_20], %10 {strides = array<i32>} : memref<18x24x32xf32, #tpu.memory_space<vmem>>, vector<1x24x32xf32>,
    %cst_21 = arith.constant 0.000000e+00 : f32
    %12 = vector.broadcast %cst_21 : f32 to vector<18x1x32xf32>
    %c0_22 = arith.constant 0 : index
    %c0_23 = arith.constant 0 : index
    %c0_24 = arith.constant 0 : index
    %13 = vector.load %arg10[%c0_22, %c0_23, %c0_24] : memref<18x24x32xf32, #tpu.memory_space<vmem>>, vector<18x1x32xf32>
    tpu.vector_store %arg10[%c0_22, %c0_23, %c0_24], %12 {strides = array<i32>} : memref<18x24x32xf32, #tpu.memory_space<vmem>>, vector<18x1x32xf32>,
    %cst_25 = arith.constant 0.000000e+00 : f32
    %14 = vector.broadcast %cst_25 : f32 to vector<18x1x32xf32>
    %c0_26 = arith.constant 0 : index
    %c17_27 = arith.constant 17 : index
    %c0_28 = arith.constant 0 : index
    %15 = vector.load %arg10[%c0_26, %c17_27, %c0_28] : memref<18x24x32xf32, #tpu.memory_space<vmem>>, vector<18x1x32xf32>
    tpu.vector_store %arg10[%c0_26, %c17_27, %c0_28], %14 {strides = array<i32>} : memref<18x24x32xf32, #tpu.memory_space<vmem>>, vector<18x1x32xf32>,
    %c0_29 = arith.constant 0 : index
    %c0_30 = arith.constant 0 : index
    %c0_31 = arith.constant 0 : index
    %c0_32 = arith.constant 0 : index
    %16 = vector.load %arg1[%c0_29, %c0_30, %c0_31, %c0_32] : memref<1x18x24x4xf32, #tpu.memory_space<vmem>>, vector<1x18x24x4xf32>
    %17 = vector.shape_cast %16 : vector<1x18x24x4xf32> to vector<18x24x4xf32>
    %c0_33 = arith.constant 0 : index
    %c0_34 = arith.constant 0 : index
    %18 = vector.load %arg2[%c0_33, %c0_34] : memref<36x64xbf16, #tpu.memory_space<vmem>>, vector<36x64xbf16>
    %c0_35 = arith.constant 0 : index
    %c0_36 = arith.constant 0 : index
    %19 = vector.load %arg3[%c0_35, %c0_36] : memref<1x64xf32, #tpu.memory_space<vmem>>, vector<1x64xf32>
    %20 = vector.extract_strided_slice %17 {offsets = [0, 0, 0], sizes = [16, 16, 4], strides = [1, 1, 1]} : vector<18x24x4xf32> to vector<16x16x4xf32>
    %21 = vector.shape_cast %20 : vector<16x16x4xf32> to vector<256x4xf32>
    %22 = vector.extract_strided_slice %17 {offsets = [0, 1, 0], sizes = [16, 16, 4], strides = [1, 1, 1]} : vector<18x24x4xf32> to vector<16x16x4xf32>
    %23 = vector.shape_cast %22 : vector<16x16x4xf32> to vector<256x4xf32>
    %24 = vector.extract_strided_slice %17 {offsets = [0, 2, 0], sizes = [16, 16, 4], strides = [1, 1, 1]} : vector<18x24x4xf32> to vector<16x16x4xf32>
    %25 = vector.shape_cast %24 : vector<16x16x4xf32> to vector<256x4xf32>
    %26 = vector.extract_strided_slice %17 {offsets = [1, 0, 0], sizes = [16, 16, 4], strides = [1, 1, 1]} : vector<18x24x4xf32> to vector<16x16x4xf32>
    %27 = vector.shape_cast %26 : vector<16x16x4xf32> to vector<256x4xf32>
    %28 = vector.extract_strided_slice %17 {offsets = [1, 1, 0], sizes = [16, 16, 4], strides = [1, 1, 1]} : vector<18x24x4xf32> to vector<16x16x4xf32>
    %29 = vector.shape_cast %28 : vector<16x16x4xf32> to vector<256x4xf32>
    %30 = vector.extract_strided_slice %17 {offsets = [1, 2, 0], sizes = [16, 16, 4], strides = [1, 1, 1]} : vector<18x24x4xf32> to vector<16x16x4xf32>
    %31 = vector.shape_cast %30 : vector<16x16x4xf32> to vector<256x4xf32>
    %32 = vector.extract_strided_slice %17 {offsets = [2, 0, 0], sizes = [16, 16, 4], strides = [1, 1, 1]} : vector<18x24x4xf32> to vector<16x16x4xf32>
    %33 = vector.shape_cast %32 : vector<16x16x4xf32> to vector<256x4xf32>
    %34 = vector.extract_strided_slice %17 {offsets = [2, 1, 0], sizes = [16, 16, 4], strides = [1, 1, 1]} : vector<18x24x4xf32> to vector<16x16x4xf32>
    %35 = vector.shape_cast %34 : vector<16x16x4xf32> to vector<256x4xf32>
    %36 = vector.extract_strided_slice %17 {offsets = [2, 2, 0], sizes = [16, 16, 4], strides = [1, 1, 1]} : vector<18x24x4xf32> to vector<16x16x4xf32>
    %37 = vector.shape_cast %36 : vector<16x16x4xf32> to vector<256x4xf32>
    %38 = tpu.concatenate %21, %23, %25, %27, %29, %31, %33, %35, %37 in 1 : vector<256x4xf32>, vector<256x4xf32>, vector<256x4xf32>, vector<256x4xf32>, vector<256x4xf32>, vector<256x4xf32>, vector<256x4xf32>, vector<256x4xf32>, vector<256x4xf32> -> vector<256x36xf32>
    %39 = arith.truncf %38 : vector<256x36xf32> to vector<256x36xbf16>
    %cst_37 = arith.constant dense<0.000000e+00> : vector<256x64xf32>
    %40 = tpu.matmul %39, %18, %cst_37 {dimension_numbers = #tpu.dot_dimension_numbers<[1], [0], [0], [1], [0, 0, 1, 1], [], []>} : vector<256x36xbf16>, vector<36x64xbf16>, vector<256x64xf32> -> vector<256x64xf32>
    %41 = vector.broadcast %19 : vector<1x64xf32> to vector<256x64xf32>
    %42 = arith.addf %40, %41 : vector<256x64xf32>
    %cst_38 = arith.constant 0.000000e+00 : f32
    %43 = vector.broadcast %cst_38 : f32 to vector<256x64xf32>
    %44 = arith.cmpf ogt, %42, %43 : vector<256x64xf32>
    %cst_39 = arith.constant 1.000000e-01 : f32
    %45 = vector.broadcast %cst_39 : f32 to vector<256x64xf32>
    %46 = arith.mulf %45, %42 : vector<256x64xf32>
    %47 = arith.select %44, %42, %46 : vector<256x64xi1>, vector<256x64xf32>
    %48 = vector.shape_cast %47 : vector<256x64xf32> to vector<16x16x64xf32>
    %c1 = arith.constant 1 : index
    %c1_40 = arith.constant 1 : index
    %c0_41 = arith.constant 0 : index
    %49 = vector.load %arg9[%c1, %c1_40, %c0_41] : memref<18x24x64xf32, #tpu.memory_space<vmem>>, vector<16x16x64xf32>
    tpu.vector_store %arg9[%c1, %c1_40, %c0_41], %48 {strides = array<i32>} : memref<18x24x64xf32, #tpu.memory_space<vmem>>, vector<16x16x64xf32>,
    %c0_42 = arith.constant 0 : index
    %c0_43 = arith.constant 0 : index
    %c0_44 = arith.constant 0 : index
    %50 = vector.load %arg9[%c0_42, %c0_43, %c0_44] : memref<18x24x64xf32, #tpu.memory_space<vmem>>, vector<18x24x64xf32>
    %c0_45 = arith.constant 0 : index
    %c0_46 = arith.constant 0 : index
    %51 = vector.load %arg4[%c0_45, %c0_46] : memref<576x32xbf16, #tpu.memory_space<vmem>>, vector<576x32xbf16>
    %c0_47 = arith.constant 0 : index
    %c0_48 = arith.constant 0 : index
    %52 = vector.load %arg5[%c0_47, %c0_48] : memref<1x32xf32, #tpu.memory_space<vmem>>, vector<1x32xf32>
    %53 = vector.extract_strided_slice %50 {offsets = [0, 0, 0], sizes = [16, 16, 64], strides = [1, 1, 1]} : vector<18x24x64xf32> to vector<16x16x64xf32>
    %54 = vector.shape_cast %53 : vector<16x16x64xf32> to vector<256x64xf32>
    %55 = vector.extract_strided_slice %50 {offsets = [0, 1, 0], sizes = [16, 16, 64], strides = [1, 1, 1]} : vector<18x24x64xf32> to vector<16x16x64xf32>
    %56 = vector.shape_cast %55 : vector<16x16x64xf32> to vector<256x64xf32>
    %57 = vector.extract_strided_slice %50 {offsets = [0, 2, 0], sizes = [16, 16, 64], strides = [1, 1, 1]} : vector<18x24x64xf32> to vector<16x16x64xf32>
    %58 = vector.shape_cast %57 : vector<16x16x64xf32> to vector<256x64xf32>
    %59 = vector.extract_strided_slice %50 {offsets = [1, 0, 0], sizes = [16, 16, 64], strides = [1, 1, 1]} : vector<18x24x64xf32> to vector<16x16x64xf32>
    %60 = vector.shape_cast %59 : vector<16x16x64xf32> to vector<256x64xf32>
    %61 = vector.extract_strided_slice %50 {offsets = [1, 1, 0], sizes = [16, 16, 64], strides = [1, 1, 1]} : vector<18x24x64xf32> to vector<16x16x64xf32>
    %62 = vector.shape_cast %61 : vector<16x16x64xf32> to vector<256x64xf32>
    %63 = vector.extract_strided_slice %50 {offsets = [1, 2, 0], sizes = [16, 16, 64], strides = [1, 1, 1]} : vector<18x24x64xf32> to vector<16x16x64xf32>
    %64 = vector.shape_cast %63 : vector<16x16x64xf32> to vector<256x64xf32>
    %65 = vector.extract_strided_slice %50 {offsets = [2, 0, 0], sizes = [16, 16, 64], strides = [1, 1, 1]} : vector<18x24x64xf32> to vector<16x16x64xf32>
    %66 = vector.shape_cast %65 : vector<16x16x64xf32> to vector<256x64xf32>
    %67 = vector.extract_strided_slice %50 {offsets = [2, 1, 0], sizes = [16, 16, 64], strides = [1, 1, 1]} : vector<18x24x64xf32> to vector<16x16x64xf32>
    %68 = vector.shape_cast %67 : vector<16x16x64xf32> to vector<256x64xf32>
    %69 = vector.extract_strided_slice %50 {offsets = [2, 2, 0], sizes = [16, 16, 64], strides = [1, 1, 1]} : vector<18x24x64xf32> to vector<16x16x64xf32>
    %70 = vector.shape_cast %69 : vector<16x16x64xf32> to vector<256x64xf32>
    %71 = tpu.concatenate %54, %56, %58, %60, %62, %64, %66, %68, %70 in 1 : vector<256x64xf32>, vector<256x64xf32>, vector<256x64xf32>, vector<256x64xf32>, vector<256x64xf32>, vector<256x64xf32>, vector<256x64xf32>, vector<256x64xf32>, vector<256x64xf32> -> vector<256x576xf32>
    %72 = arith.truncf %71 : vector<256x576xf32> to vector<256x576xbf16>
    %cst_49 = arith.constant dense<0.000000e+00> : vector<256x32xf32>
    %73 = tpu.matmul %72, %51, %cst_49 {dimension_numbers = #tpu.dot_dimension_numbers<[1], [0], [0], [1], [0, 0, 1, 1], [], []>} : vector<256x576xbf16>, vector<576x32xbf16>, vector<256x32xf32> -> vector<256x32xf32>
    %74 = vector.broadcast %52 : vector<1x32xf32> to vector<256x32xf32>
    %75 = arith.addf %73, %74 : vector<256x32xf32>
    %cst_50 = arith.constant 0.000000e+00 : f32
    %76 = vector.broadcast %cst_50 : f32 to vector<256x32xf32>
    %77 = arith.cmpf ogt, %75, %76 : vector<256x32xf32>
    %cst_51 = arith.constant 1.000000e-01 : f32
    %78 = vector.broadcast %cst_51 : f32 to vector<256x32xf32>
    %79 = arith.mulf %78, %75 : vector<256x32xf32>
    %80 = arith.select %77, %75, %79 : vector<256x32xi1>, vector<256x32xf32>
    %81 = vector.shape_cast %80 : vector<256x32xf32> to vector<16x16x32xf32>
    %c1_52 = arith.constant 1 : index
    %c1_53 = arith.constant 1 : index
    %c0_54 = arith.constant 0 : index
    %82 = vector.load %arg10[%c1_52, %c1_53, %c0_54] : memref<18x24x32xf32, #tpu.memory_space<vmem>>, vector<16x16x32xf32>
    tpu.vector_store %arg10[%c1_52, %c1_53, %c0_54], %81 {strides = array<i32>} : memref<18x24x32xf32, #tpu.memory_space<vmem>>, vector<16x16x32xf32>,
    %c0_55 = arith.constant 0 : index
    %c0_56 = arith.constant 0 : index
    %c0_57 = arith.constant 0 : index
    %83 = vector.load %arg10[%c0_55, %c0_56, %c0_57] : memref<18x24x32xf32, #tpu.memory_space<vmem>>, vector<18x24x32xf32>
    %c0_58 = arith.constant 0 : index
    %c0_59 = arith.constant 0 : index
    %84 = vector.load %arg6[%c0_58, %c0_59] : memref<288x2xbf16, #tpu.memory_space<vmem>>, vector<288x2xbf16>
    %c0_60 = arith.constant 0 : index
    %c0_61 = arith.constant 0 : index
    %85 = vector.load %arg7[%c0_60, %c0_61] : memref<1x2xf32, #tpu.memory_space<vmem>>, vector<1x2xf32>
    %86 = vector.extract_strided_slice %83 {offsets = [0, 0, 0], sizes = [16, 16, 32], strides = [1, 1, 1]} : vector<18x24x32xf32> to vector<16x16x32xf32>
    %87 = vector.shape_cast %86 : vector<16x16x32xf32> to vector<256x32xf32>
    %88 = vector.extract_strided_slice %83 {offsets = [0, 1, 0], sizes = [16, 16, 32], strides = [1, 1, 1]} : vector<18x24x32xf32> to vector<16x16x32xf32>
    %89 = vector.shape_cast %88 : vector<16x16x32xf32> to vector<256x32xf32>
    %90 = vector.extract_strided_slice %83 {offsets = [0, 2, 0], sizes = [16, 16, 32], strides = [1, 1, 1]} : vector<18x24x32xf32> to vector<16x16x32xf32>
    %91 = vector.shape_cast %90 : vector<16x16x32xf32> to vector<256x32xf32>
    %92 = vector.extract_strided_slice %83 {offsets = [1, 0, 0], sizes = [16, 16, 32], strides = [1, 1, 1]} : vector<18x24x32xf32> to vector<16x16x32xf32>
    %93 = vector.shape_cast %92 : vector<16x16x32xf32> to vector<256x32xf32>
    %94 = vector.extract_strided_slice %83 {offsets = [1, 1, 0], sizes = [16, 16, 32], strides = [1, 1, 1]} : vector<18x24x32xf32> to vector<16x16x32xf32>
    %95 = vector.shape_cast %94 : vector<16x16x32xf32> to vector<256x32xf32>
    %96 = vector.extract_strided_slice %83 {offsets = [1, 2, 0], sizes = [16, 16, 32], strides = [1, 1, 1]} : vector<18x24x32xf32> to vector<16x16x32xf32>
    %97 = vector.shape_cast %96 : vector<16x16x32xf32> to vector<256x32xf32>
    %98 = vector.extract_strided_slice %83 {offsets = [2, 0, 0], sizes = [16, 16, 32], strides = [1, 1, 1]} : vector<18x24x32xf32> to vector<16x16x32xf32>
    %99 = vector.shape_cast %98 : vector<16x16x32xf32> to vector<256x32xf32>
    %100 = vector.extract_strided_slice %83 {offsets = [2, 1, 0], sizes = [16, 16, 32], strides = [1, 1, 1]} : vector<18x24x32xf32> to vector<16x16x32xf32>
    %101 = vector.shape_cast %100 : vector<16x16x32xf32> to vector<256x32xf32>
    %102 = vector.extract_strided_slice %83 {offsets = [2, 2, 0], sizes = [16, 16, 32], strides = [1, 1, 1]} : vector<18x24x32xf32> to vector<16x16x32xf32>
    %103 = vector.shape_cast %102 : vector<16x16x32xf32> to vector<256x32xf32>
    %104 = tpu.concatenate %87, %89, %91, %93, %95, %97, %99, %101, %103 in 1 : vector<256x32xf32>, vector<256x32xf32>, vector<256x32xf32>, vector<256x32xf32>, vector<256x32xf32>, vector<256x32xf32>, vector<256x32xf32>, vector<256x32xf32>, vector<256x32xf32> -> vector<256x288xf32>
    %105 = arith.truncf %104 : vector<256x288xf32> to vector<256x288xbf16>
    %cst_62 = arith.constant dense<0.000000e+00> : vector<256x2xf32>
    %106 = tpu.matmul %105, %84, %cst_62 {dimension_numbers = #tpu.dot_dimension_numbers<[1], [0], [0], [1], [0, 0, 1, 1], [], []>} : vector<256x288xbf16>, vector<288x2xbf16>, vector<256x2xf32> -> vector<256x2xf32>
    %107 = vector.broadcast %85 : vector<1x2xf32> to vector<256x2xf32>
    %108 = arith.addf %106, %107 : vector<256x2xf32>
    %109 = vector.extract_strided_slice %17 {offsets = [1, 1, 2], sizes = [16, 16, 2], strides = [1, 1, 1]} : vector<18x24x4xf32> to vector<16x16x2xf32>
    %110 = vector.shape_cast %109 : vector<16x16x2xf32> to vector<256x2xf32>
    %111 = arith.addf %110, %108 : vector<256x2xf32>
    %c0_63 = arith.constant 0 : index
    %c0_64 = arith.constant 0 : index
    %c0_65 = arith.constant 0 : index
    %112 = vector.load %arg8[%c0_63, %c0_64, %c0_65] : memref<1x256x2xf32, #tpu.memory_space<vmem>>, vector<1x256x2xf32>
    %113 = vector.shape_cast %112 : vector<1x256x2xf32> to vector<256x2xf32>
    %114 = vector.shape_cast %111 : vector<256x2xf32> to vector<1x256x2xf32>
    tpu.vector_store %arg8[%c0_63, %c0_64, %c0_65], %114 {strides = array<i32>} : memref<1x256x2xf32, #tpu.memory_space<vmem>>, vector<1x256x2xf32>,
    return
  }
  func.func @transform_0(%arg0: i32) -> (i32, i32, i32, i32) {
    %c0_i32 = arith.constant 0 : i32
    %c0_i32_0 = arith.constant 0 : i32
    %c0_i32_1 = arith.constant 0 : i32
    %c0_i32_2 = arith.constant 0 : i32
    return %arg0, %c0_i32, %c0_i32_0, %c0_i32_1 : i32, i32, i32, i32
  }
  func.func @transform_1(%arg0: i32) -> (i32, i32) {
    %c0_i32 = arith.constant 0 : i32
    %c0_i32_0 = arith.constant 0 : i32
    %c0_i32_1 = arith.constant 0 : i32
    return %c0_i32, %c0_i32_0 : i32, i32
  }
  func.func @transform_2(%arg0: i32) -> (i32, i32) {
    %c0_i32 = arith.constant 0 : i32
    %c0_i32_0 = arith.constant 0 : i32
    %c0_i32_1 = arith.constant 0 : i32
    return %c0_i32, %c0_i32_0 : i32, i32
  }
  func.func @transform_3(%arg0: i32) -> (i32, i32) {
    %c0_i32 = arith.constant 0 : i32
    %c0_i32_0 = arith.constant 0 : i32
    %c0_i32_1 = arith.constant 0 : i32
    return %c0_i32, %c0_i32_0 : i32, i32
  }
  func.func @transform_4(%arg0: i32) -> (i32, i32) {
    %c0_i32 = arith.constant 0 : i32
    %c0_i32_0 = arith.constant 0 : i32
    %c0_i32_1 = arith.constant 0 : i32
    return %c0_i32, %c0_i32_0 : i32, i32
  }
  func.func @transform_5(%arg0: i32) -> (i32, i32) {
    %c0_i32 = arith.constant 0 : i32
    %c0_i32_0 = arith.constant 0 : i32
    %c0_i32_1 = arith.constant 0 : i32
    return %c0_i32, %c0_i32_0 : i32, i32
  }
  func.func @transform_6(%arg0: i32) -> (i32, i32) {
    %c0_i32 = arith.constant 0 : i32
    %c0_i32_0 = arith.constant 0 : i32
    %c0_i32_1 = arith.constant 0 : i32
    return %c0_i32, %c0_i32_0 : i32, i32
  }
  func.func @transform_7(%arg0: i32) -> (i32, i32, i32) {
    %c0_i32 = arith.constant 0 : i32
    %c0_i32_0 = arith.constant 0 : i32
    %c0_i32_1 = arith.constant 0 : i32
    return %arg0, %c0_i32, %c0_i32_0 : i32, i32, i32
  }
}

</mosaic_0001>

<bundles_post_ra>
// kernel: tpu_custom_call.1
= control target key start
LH: loop header
LB: loop body
LE: loop exit
PB: predicated region body
PF: predicated region fallthrough
CT: control target
= control target key end

     0   :  { %s8161_s24 = smov 0   ;;  %s12108_s0 = inlined_call_operand.vmem [shape: f32[2,18,24,4], index: 0, kind: input, shape index: {}]   ;;  %s12109_s1 = inlined_call_operand.vmem [shape: bf16[36,64], index: 1, kind: input, shape index: {}]   ;;  %s12110_s2 = inlined_call_operand.vmem [shape: f32[1,64], index: 2, kind: input, shape index: {}]   ;;  %s12111_s3 = inlined_call_operand.vmem [shape: bf16[576,32], index: 3, kind: input, shape index: {}]   ;;  %s12112_s4 = inlined_call_operand.vmem [shape: f32[1,32], index: 4, kind: input, shape index: {}]   ;;  %s12113_s5 = inlined_call_operand.vmem [shape: bf16[288,2], index: 5, kind: input, shape index: {}]   ;;  %s12114_s6 = inlined_call_operand.vmem [shape: f32[1,2], index: 6, kind: input, shape index: {}]   ;;  %s12115_s7 = inlined_call_operand.vmem [shape: f32[2,256,2], index: 7, kind: output, shape index: {}]  }
   0x1 LB: > { %s5952_s25 = sadd.s32 4294967295, %s8106_s24   ;;  %p5956_p0 = scmp.ge.s32.totalorder %s8106_s24, 1  ;;  %s8106_s24 = sphi %s8161_s24, %s17_s24  }
   0x2   : > { %p237_p1 = scmp.lt.s32.totalorder %s8106_s24, 3 }
   0x4   : > { %p238_p2 = pnand %p5956_p0, %p237_p1 }
   0x6   : > { %241 = sbr.rel (%p238_p2) target bundleno = 1708 (0x6ac), region = 48 }
   0xb   : > { %p269_p3 = scmp.lt.s32.totalorder %s5952_s25, 1  ;;  %vm478_vm0 = vcmask 1046528   ;;  %vm559_vm1 = vcmask 1045504   ;;  %s8108_s30 = smov 4   ;;  %vm1783_vm2 = vcmask 1041408   ;;  %vm1434_vm3 = vcmask 31744  }
   0xc   : > { %s8109_s8 = smov 8   ;;  %s8110_s9 = smov 12   ;;  %vm1467_vm4 = vcmask 64512   ;;  %vm1500_vm5 = vcmask 97280   ;;  %vm1533_vm6 = vcmask 130048   ;;  %vm1566_vm7 = vcmask 162816  }
   0xd   : > { %s12365_s25 = smov (!%p269_p3, %s5952_s25), 1  ;;  %s8111_s10 = smov 16   ;;  %vm1599_vm8 = vcmask 195584   ;;  %vm1632_vm9 = vcmask 228352   ;;  %vm325_vm10 = vcmask 261120   ;;  %vm1734_vm11 = vcmask 293888  }
   0xe   : > { %s6586_s26 = smul.u32 432, %s12365_s25  ;;  %s8112_s11 = smov 20   ;;  %vm280_vm12 = vcmask 523264   ;;  %vm288_vm13 = vcmask 516096  }
   0xf   : > { %s8113_s12 = smov 24   ;;  %s8114_s13 = smov 28  }
  0x10   : > { %s8175_s29 = scalar_lea.vmem %s12108_s0, %s6586_s26  ;;  %s8115_s16 = smov 32  }
  0x11   : > { %v8178_v0 = vld [vmem:[%s8175_s29 + $0x30] sm:$0xff]  ;;  %v8181_v1 = vld [vmem:[%s8175_s29 + $0x38] sm:$0xff]  ;;  %v8184_v2 = vld [vmem:[%s8175_s29 + $0x40] sm:$0xff]  ;;  %s8117_s21 = smov 64   ;;  %s8119_s28 = smov 2  }
  0x12   : > { %v489_v3 = vrot.slane %v8178_v0, 1  ;;  %v490_v4 = vrot.slane %v8181_v1, 1  ;;  %v492_v5 = vrot.slane %v8184_v2, 1  ;;  %v8190_v6 = vld [vmem:[%s8175_s29] sm:$0xff]  ;;  %v8193_v7 = vld [vmem:[%s8175_s29 + $0x8] sm:$0xff]  ;;  %v8196_v8 = vld [vmem:[%s8175_s29 + $0x10] sm:$0xff] }
  0x13   : > { %v479_v9 = vrot.slane %v8190_v6, 1  ;;  %v480_v10 = vrot.slane %v8193_v7, 1  ;;  %v482_v11 = vrot.slane %v8196_v8, 1  ;;  %v563_v12 = vrot.slane %v8196_v8, 2  ;;  %v8203_v13 = vld [vmem:[%s8175_s29 + $0x48] sm:$0xff]  ;;  %v8206_v14 = vld [vmem:[%s8175_s29 + $0x50] sm:$0xff] }
  0x14   : > { %v8209_v15 = vsel %vm478_vm0, %v489_v3, %v490_v4  ;;  %v8212_v16 = vsel %vm478_vm0, %v490_v4, %v492_v5  ;;  %v8215_v17 = vld [vmem:[%s8175_s29 + $0x58] sm:$0xff]  ;;  %v494_v18 = vrot.slane %v8203_v13, 1  ;;  %v495_v19 = vrot.slane %v8206_v14, 1  ;;  %v8223_v21 = vld [vmem:[%s8175_s29 + $0x20] sm:$0xff]  ;;  %v8233_v26 = vld [vmem:[%s8175_s29 + $0x28] sm:$0xff] }
  0x15   : > { %12197 = vst [vmem:[#allocation4_spill] sm:$0xff] %v8209_v15  ;;  %12198 = vst [vmem:[#allocation5_spill] sm:$0xff] %v8212_v16  ;;  %v8220_v20 = vld [vmem:[%s8175_s29 + $0x18] sm:$0xff]  ;;  %v8227_v22 = vpack.i.bf16 %v8212_v16, %v8209_v15  ;;  %v481_v23 = vsel %vm478_vm0, %v479_v9, %v480_v10  ;;  %v483_v24 = vsel %vm478_vm0, %v480_v10, %v482_v11  ;;  %v497_v25 = vrot.slane %v8215_v17, 1  ;;  %v8239_v28 = vld [vmem:[%s8175_s29 + $0x80] sm:$0xff] }
  0x16   : > { %v8236_v27 = vld [vmem:[%s8175_s29 + $0x78] sm:$0xff]  ;;  %v6608_v29 = vpack.i.bf16 %v483_v24, %v481_v23  ;;  %v8242_v30 = vsel %vm478_vm0, %v494_v18, %v495_v19  ;;  %v484_v31 = vrot.slane %v8220_v20, 1  ;;  %v485_v32 = vrot.slane %v8223_v21, 1  ;;  %v8247_v33 = vld [vmem:[%s8175_s29 + $0x88] sm:$0xff]  ;;  %v8250_v34 = vld [vmem:[%s8175_s29 + $0x60] sm:$0xff] }
  0x17   : > { %12199 = vst [vmem:[#allocation6_spill] sm:$0xff] %v8242_v30  ;;  %v8253_v35 = vld [vmem:[%s8175_s29 + $0x68] sm:$0xff]  ;;  %6619 = vrot.lane.b32.xlu1 %v8227_v22, %s8108_s30  ;;  %v8258_v36 = vsel %vm478_vm0, %v495_v19, %v497_v25  ;;  %v487_v37 = vrot.slane %v8233_v26, 1  ;;  %v504_v38 = vrot.slane %v8236_v27, 1  ;;  %v505_v39 = vrot.slane %v8239_v28, 1  ;;  %v8264_v40 = vld [vmem:[%s8175_s29 + $0x70] sm:$0xff] }
  0x18   : > { %12200 = vst [vmem:[#allocation7_spill] sm:$0xff] %v8258_v36  ;;  %v8267_v41 = vld [vmem:[%s8175_s29 + $0xa8] sm:$0xff]  ;;  %v8270_v42 = vld [vmem:[%s8175_s29 + $0xb0] sm:$0xff]  ;;  %6609 = vrot.lane.b32.xlu0 %v6608_v29, %s8108_s30  ;;  %v8275_v43 = vpack.i.bf16 %v8258_v36, %v8242_v30  ;;  %v8278_v44 = vsel %vm478_vm0, %v484_v31, %v485_v32  ;;  %v507_v45 = vrot.slane %v8247_v33, 1  ;;  %v499_v46 = vrot.slane %v8250_v34, 1  ;;  %v8283_v47 = vld [vmem:[%s8175_s29 + $0xb8] sm:$0xff] }
  0x19   : > { %12201 = vst [vmem:[#allocation8_spill] sm:$0xff] %v8278_v44  ;;  %v8286_v48 = vsel %vm478_vm0, %v485_v32, %v487_v37  ;;  %v8289_v49 = vsel %vm478_vm0, %v504_v38, %v505_v39  ;;  %v500_v50 = vrot.slane %v8253_v35, 1  ;;  %v502_v51 = vrot.slane %v8264_v40, 1  ;;  %v8294_v52 = vld [vmem:[%s8175_s29 + $0x90] sm:$0xff]  ;;  %v8297_v53 = vld [vmem:[%s8175_s29 + $0x98] sm:$0xff]  ;;  %v8307_v58 = vld [vmem:[%s8175_s29 + $0xa0] sm:$0xff] }
  0x1a   : > { %12202 = vst [vmem:[#allocation9_spill] sm:$0xff] %v8286_v48  ;;  %12203 = vst [vmem:[#allocation10_spill] sm:$0xff] %v8289_v49  ;;  %v6613_v54 = vpack.i.bf16 %v8286_v48, %v8278_v44  ;;  %v8302_v55 = vsel %vm478_vm0, %v505_v39, %v507_v45  ;;  %v514_v56 = vrot.slane %v8267_v41, 1  ;;  %v515_v57 = vrot.slane %v8270_v42, 1 }
  0x1b   : > { %12204 = vst [vmem:[#allocation11_spill] sm:$0xff] %v8302_v55  ;;  %6624 = vrot.lane.b32.xlu1 %v8275_v43, %s8108_s30  ;;  %v8313_v59 = vpack.i.bf16 %v8302_v55, %v8289_v49  ;;  %v8316_v60 = vsel %vm478_vm0, %v499_v46, %v500_v50  ;;  %v8319_v61 = vsel %vm478_vm0, %v500_v50, %v502_v51  ;;  %v517_v62 = vrot.slane %v8283_v47, 1 }
  0x1c   : > { %12205 = vst [vmem:[#allocation12_spill] sm:$0xff] %v8316_v60  ;;  %12206 = vst [vmem:[#allocation13_spill] sm:$0xff] %v8319_v61  ;;  %6614 = vrot.lane.b32.xlu0 %v6613_v54, %s8108_s30  ;;  %v8325_v63 = vpack.i.bf16 %v8319_v61, %v8316_v60  ;;  %v8328_v3 = vsel %vm478_vm0, %v514_v56, %v515_v57  ;;  %v509_v4 = vrot.slane %v8294_v52, 1  ;;  %v510_v5 = vrot.slane %v8297_v53, 1 }
  0x1d   : > { %12207 = vst [vmem:[#allocation14_spill] sm:$0xff] %v8328_v3  ;;  %v8333_v9 = vsel %vm478_vm0, %v515_v57, %v517_v62  ;;  %v512_v10 = vrot.slane %v8307_v58, 1  ;;  %v565_v11 = vrot.slane %v8220_v20, 2  ;;  %v566_v18 = vrot.slane %v8223_v21, 2 }
  0x1e   : > { %12208 = vst [vmem:[#allocation15_spill] sm:$0xff] %v8333_v9  ;;  %v8339_v19 = vsel %vm478_vm0, %v509_v4, %v510_v5  ;;  %v568_v23 = vrot.slane %v8233_v26, 2  ;;  %v560_v24 = vrot.slane %v8190_v6, 2  ;;  %v8347_v25 = vpack.i.bf16 %v8333_v9, %v8328_v3 }
  0x1f   : > { %12209 = vst [vmem:[#allocation16_spill] sm:$0xff] %v8339_v19  ;;  %6634 = vrot.lane.b32.xlu1 %v8313_v59, %s8108_s30  ;;  %v8350_v29 = vsel %vm478_vm0, %v510_v5, %v512_v10  ;;  %v561_v31 = vrot.slane %v8193_v7, 2  ;;  %v567_v32 = vsel %vm559_vm1, %v565_v11, %v566_v18  ;;  %v6663_v50 = vpack.i.bf16 %v8181_v1, %v8178_v0 }
  0x20   : > { %12210 = vst [vmem:[#allocation17_spill] sm:$0xff] %v8350_v29  ;;  %6629 = vrot.lane.b32.xlu0 %v8325_v63, %s8108_s30  ;;  %v8357_v26 = vpack.i.bf16 %v8350_v29, %v8339_v19  ;;  %v569_v37 = vsel %vm559_vm1, %v566_v18, %v568_v23  ;;  %v570_v51 = vrot.slane %v8178_v0, 2  ;;  %v6658_v8 = vpack.i.bf16 %v8223_v21, %v8220_v20 }
  0x21   : > { %v562_v38 = vsel %vm559_vm1, %v560_v24, %v561_v31  ;;  %v564_v39 = vsel %vm559_vm1, %v561_v31, %v563_v12  ;;  %v6653_v45 = vpack.i.bf16 %v569_v37, %v567_v32  ;;  %v571_v12 = vrot.slane %v8181_v1, 2  ;;  %v7980_v31 = vld [vmem:[%s12109_s1] sm:$0xff]  }
  0x22   : > { %v6648_v46 = vpack.i.bf16 %v564_v39, %v562_v38  ;;  %v573_v56 = vrot.slane %v8184_v2, 2  ;;  %v6693_v1 = vpack.i.bf16 %v8206_v14, %v8203_v13  ;;  %v575_v2 = vrot.slane %v8203_v13, 2 }
  0x23   : > { %6644 = vrot.lane.b32.xlu1 %v8347_v25, %s8108_s30  ;;  %v572_v57 = vsel %vm559_vm1, %v570_v51, %v571_v12  ;;  %v576_v4 = vrot.slane %v8206_v14, 2  ;;  %v578_v5 = vrot.slane %v8215_v17, 2  ;;  %v7978_v14 = vld [vmem:[%s12109_s1 + $0x10] ss:$0 sps:$4 sm:$0x33]   ;;  %v7979_v17 = vld [vmem:[%s12109_s1 + $0x8] sm:$0xff]   ;;  %v6763_v32 = vpack.i.bf16 %v8239_v28, %v8236_v27 }
  0x24   : > { %6639 = vrot.lane.b32.xlu0 %v8357_v26, %s8108_s30  ;;  %v574_v62 = vsel %vm559_vm1, %v571_v12, %v573_v56  ;;  %6584 = vmatprep.subr.msk.bf16.mxu0 %vm1783_vm2, %v7978_v14  ;;  %v1785_v11 = vsel %vm1783_vm2, %v7978_v14, 0  ;;  %v580_v18 = vrot.slane %v8250_v34, 2  ;;  %v581_v23 = vrot.slane %v8253_v35, 2 }
  0x25   : > { %v6683_v0 = vpack.i.bf16 %v574_v62, %v572_v57  ;;  %v579_v10 = vsel %vm559_vm1, %v576_v4, %v578_v5  ;;  %6585 = vmatprep.subr.msk.bf16.mxu1 %vm1783_vm2, %v7978_v14  ;;  %6465 = vmatpush3.bf16.msra.mxu0 %v1785_v11  ;;  %v583_v24 = vrot.slane %v8264_v40, 2  ;;  %v585_v37 = vrot.slane %v8236_v27, 2  ;;  %v395_v62 = vld [vmem:[%s8175_s29 + $0xc8] sm:$0xff] }
  0x26   : > { %6466 = vmatprep.subr.bf16.mxu0 %v7979_v17  ;;  %6581 = vmatpush3.bf16.msra.mxu1 %v1785_v11  ;;  %v586_v38 = vrot.slane %v8239_v28, 2  ;;  %v588_v39 = vrot.slane %v8247_v33, 2  ;;  %v6803_v27 = vpack.i.bf16 %v8297_v53, %v8294_v52  ;;  %v590_v28 = vrot.slane %v8294_v52, 2  ;;  %v397_v11 = vld [vmem:[%s8175_s29 + $0xd8] sm:$0xff] }
  0x27   : > { %6654 = vrot.lane.b32.xlu1 %v6653_v45, %s8109_s8  ;;  %6579 = vmatprep.subr.bf16.mxu1 %v7979_v17  ;;  %v591_v33 = vrot.slane %v8297_v53, 2  ;;  %v6833_v52 = vpack.i.bf16 %v8270_v42, %v8267_v41  ;;  %v595_v53 = vrot.slane %v8267_v41, 2  ;;  %v598_v12 = vrot.slane %v8283_v47, 2  ;;  %v394_v41 = vld [vmem:[%s8175_s29 + $0xc0] sm:$0xff] }
  0x28   : > { %6649 = vrot.lane.b32.xlu0 %v6648_v46, %s8109_s8  ;;  %v519_v47 = vrot.slane %v394_v41, 1 }
  0x29   : > { %6467 = vmatpush3.bf16.msra.mxu0 %v7979_v17 }
  0x2a   : > { %6468 = vmatprep.subr.bf16.mxu0 %v7980_v31  ;;  %6582 = vmatpush3.bf16.msra.mxu1 %v7979_v17 }
  0x2b   : > { %6664 = vrot.lane.b32.xlu1 %v6663_v50, %s8110_s9  ;;  %6580 = vmatprep.subr.bf16.mxu1 %v7980_v31 }
  0x2c   : > { %6659 = vrot.lane.b32.xlu0 %v6658_v8, %s8110_s9 }
  0x2d   : > { %6469 = vmatpush3.bf16.msra.mxu0 %v7980_v31 }
  0x2e   : > { %6583 = vmatpush3.bf16.msra.mxu1 %v7980_v31 }
  0x2f   : > { %6674 = vrot.lane.b32.xlu1 %v8227_v22, %s8111_s10 }
  0x30   : > { %6669 = vrot.lane.b32.xlu0 %v6613_v54, %s8111_s10  ;;  %v577_v54 = vsel %vm559_vm1, %v575_v2, %v576_v4  ;;  %v6873_v2 = vpack.i.bf16 %v395_v62, %v394_v41  ;;  %v600_v4 = vrot.slane %v394_v41, 2 }
  0x31   : > { %v6713_v13 = vpack.i.bf16 %v579_v10, %v577_v54  ;;  %v601_v54 = vrot.slane %v395_v62, 2 }
  0x33   : > { %6684 = vrot.lane.b32.xlu1 %v6683_v0, %s8112_s11  ;;  %v602_v14 = vsel %vm559_vm1, %v600_v4, %v601_v54 }
  0x34   : > { %6679 = vrot.lane.b32.xlu0 %v6653_v45, %s8112_s11  ;;  %v589_v45 = vsel %vm559_vm1, %v586_v38, %v588_v39 }
  0x37   : > { %6694 = vrot.lane.b32.xlu1 %v6693_v1, %s8113_s12 }
  0x38   : > { %6689 = vrot.lane.b32.xlu0 %v6663_v50, %s8113_s12  ;;  %v593_v50 = vrot.slane %v8307_v58, 2  ;;  %v596_v58 = vrot.slane %v8270_v42, 2  ;;  %v396_v42 = vld [vmem:[%s8175_s29 + $0xd0] sm:$0xff] }
  0x39   : > { %v603_v10 = vrot.slane %v396_v42, 2 }
  0x3a   : > { %v594_v51 = vsel %vm559_vm1, %v591_v33, %v593_v50  ;;  %v599_v56 = vsel %vm559_vm1, %v596_v58, %v598_v12 }
  0x3b   : > { %6704 = vrot.lane.b32.xlu1 %v8275_v43, %s8114_s13  ;;  %v604_v17 = vsel %vm559_vm1, %v601_v54, %v603_v10  ;;  %v403_v54 = vld [vmem:[%s8175_s29 + $0x108] sm:$0xff]  ;;  %v404_v10 = vld [vmem:[%s8175_s29 + $0x110] sm:$0xff] }
  0x3c   : > { %6699 = vrot.lane.b32.xlu0 %v8227_v22, %s8114_s13  ;;  %v6733_v22 = vpack.i.bf16 %v8253_v35, %v8250_v34  ;;  %v582_v34 = vsel %vm559_vm1, %v580_v18, %v581_v23  ;;  %v584_v35 = vsel %vm559_vm1, %v581_v23, %v583_v24  ;;  %v399_v18 = vld [vmem:[%s8175_s29 + $0xe8] sm:$0xff]  ;;  %v6893_v23 = vpack.i.bf16 %v604_v17, %v602_v14 }
  0x3d   : > { %v6753_v40 = vpack.i.bf16 %v584_v35, %v582_v34  ;;  %v524_v24 = vrot.slane %v397_v11, 1  ;;  %v527_v34 = vrot.slane %v399_v18, 1  ;;  %v608_v39 = vrot.slane %v399_v18, 2 }
  0x3f   : > { %6714 = vrot.lane.b32.xlu1 %v6713_v13, %s8115_s16 }
  0x40   : > { %6709 = vrot.lane.b32.xlu0 %v6683_v0, %s8115_s16 }
  0x43   : > { %6724 = vrot.lane.b32.xlu1 %v6713_v13, %s8109_s8 }
  0x44   : > { %6719 = vrot.lane.b32.xlu0 %v6683_v0, %s8109_s8  ;;  %v520_v0 = vrot.slane %v395_v62, 1 }
  0x47   : > { %6734 = vrot.lane.b32.xlu1 %v6733_v22, %s8110_s9 }
  0x48   : > { %6729 = vrot.lane.b32.xlu0 %v6693_v1, %s8110_s9  ;;  %v522_v1 = vrot.slane %v396_v42, 1 }
  0x4a   : > { %v8484_v5 = vsel %vm478_vm0, %v520_v0, %v522_v1 }
  0x4b   : > { %6744 = vrot.lane.b32.xlu1 %v8325_v63, %s8111_s10  ;;  %12212 = vst [vmem:[#allocation19_spill] sm:$0xff] %v8484_v5 }
  0x4c   : > { %6739 = vrot.lane.b32.xlu0 %v8275_v43, %s8111_s10  ;;  %v587_v43 = vsel %vm559_vm1, %v585_v37, %v586_v38 }
  0x4d   : > { %v6783_v46 = vpack.i.bf16 %v589_v45, %v587_v43 }
  0x4f   : > { %6754 = vrot.lane.b32.xlu1 %v6753_v40, %s8112_s11 }
  0x50   : > { %6749 = vrot.lane.b32.xlu0 %v6713_v13, %s8112_s11 }
  0x53   : > { %6764 = vrot.lane.b32.xlu1 %v6763_v32, %s8113_s12 }
  0x54   : > { %6759 = vrot.lane.b32.xlu0 %v6733_v22, %s8113_s12  ;;  %v398_v22 = vld [vmem:[%s8175_s29 + $0xe0] sm:$0xff] }
  0x55   : > { %v525_v31 = vrot.slane %v398_v22, 1  ;;  %v6903_v35 = vpack.i.bf16 %v398_v22, %v397_v11  ;;  %v606_v38 = vrot.slane %v398_v22, 2 }
  0x57   : > { %6774 = vrot.lane.b32.xlu1 %v8313_v59, %s8114_s13  ;;  %v8504_v37 = vsel %vm478_vm0, %v525_v31, %v527_v34  ;;  %v615_v34 = vrot.slane %v403_v54, 2 }
  0x58   : > { %6769 = vrot.lane.b32.xlu0 %v8325_v63, %s8114_s13  ;;  %v592_v63 = vsel %vm559_vm1, %v590_v28, %v591_v33  ;;  %12214 = vst [vmem:[#allocation21_spill] sm:$0xff] %v8504_v37 }
  0x59   : > { %v6823_v8 = vpack.i.bf16 %v594_v51, %v592_v63 }
  0x5b   : > { %6784 = vrot.lane.b32.xlu1 %v6783_v46, %s8115_s16 }
  0x5c   : > { %6779 = vrot.lane.b32.xlu0 %v6753_v40, %s8115_s16 }
  0x5f   : > { %6794 = vrot.lane.b32.xlu1 %v6783_v46, %s8109_s8 }
  0x60   : > { %6789 = vrot.lane.b32.xlu0 %v6753_v40, %s8109_s8  ;;  %v605_v40 = vrot.slane %v397_v11, 2 }
  0x63   : > { %6804 = vrot.lane.b32.xlu1 %v6803_v27, %s8110_s9 }
  0x64   : > { %6799 = vrot.lane.b32.xlu0 %v6763_v32, %s8110_s9  ;;  %v8501_v32 = vsel %vm478_vm0, %v524_v24, %v525_v31  ;;  %v534_v24 = vrot.slane %v403_v54, 1 }
  0x65   : > { %12213 = vst [vmem:[#allocation20_spill] sm:$0xff] %v8501_v32  ;;  %v6913_v45 = vpack.i.bf16 %v8504_v37, %v8501_v32 }
  0x67   : > { %6814 = vrot.lane.b32.xlu1 %v8357_v26, %s8111_s10 }
  0x68   : > { %6809 = vrot.lane.b32.xlu0 %v8313_v59, %s8111_s10  ;;  %v597_v59 = vsel %vm559_vm1, %v595_v53, %v596_v58  ;;  %v402_v53 = vld [vmem:[%s8175_s29 + $0x100] sm:$0xff] }
  0x69   : > { %v6853_v57 = vpack.i.bf16 %v599_v56, %v597_v59  ;;  %v613_v4 = vrot.slane %v402_v53, 2 }
  0x6b   : > { %6824 = vrot.lane.b32.xlu1 %v6823_v8, %s8112_s11 }
  0x6c   : > { %6819 = vrot.lane.b32.xlu0 %v6783_v46, %s8112_s11  ;;  %v607_v46 = vsel %vm559_vm1, %v605_v40, %v606_v38  ;;  %v616_v40 = vrot.slane %v404_v10, 2 }
  0x6f   : > { %6834 = vrot.lane.b32.xlu1 %v6833_v52, %s8113_s12 }
  0x70   : > { %6829 = vrot.lane.b32.xlu0 %v6803_v27, %s8113_s12  ;;  %v609_v27 = vsel %vm559_vm1, %v606_v38, %v608_v39 }
  0x71   : > { %v8521_v50 = vpack.i.bf16 %v609_v27, %v607_v46 }
  0x73   : > { %6844 = vrot.lane.b32.xlu1 %v8347_v25, %s8114_s13 }
  0x74   : > { %6839 = vrot.lane.b32.xlu0 %v8357_v26, %s8114_s13  ;;  %v8481_v26 = vsel %vm478_vm0, %v519_v47, %v520_v0 }
  0x75   : > { %12211 = vst [vmem:[#allocation18_spill] sm:$0xff] %v8481_v26  ;;  %v6883_v13 = vpack.i.bf16 %v8484_v5, %v8481_v26 }
  0x77   : > { %6854 = vrot.lane.b32.xlu1 %v6853_v57, %s8115_s16 }
  0x78   : > { %6849 = vrot.lane.b32.xlu0 %v6823_v8, %s8115_s16 }
  0x7b   : > { %6864 = vrot.lane.b32.xlu1 %v6853_v57, %s8109_s8 }
  0x7c   : > { %6859 = vrot.lane.b32.xlu0 %v6823_v8, %s8109_s8  ;;  %v400_v8 = vld [vmem:[%s8175_s29 + $0xf0] sm:$0xff] }
  0x7d   : > { %v529_v59 = vrot.slane %v400_v8, 1  ;;  %v610_v42 = vrot.slane %v400_v8, 2 }
  0x7f   : > { %6874 = vrot.lane.b32.xlu1 %v6873_v2, %s8110_s9 }
  0x80   : > { %6869 = vrot.lane.b32.xlu0 %v6833_v52, %s8110_s9  ;;  %v401_v52 = vld [vmem:[%s8175_s29 + $0xf8] sm:$0xff] }
  0x81   : > { %v530_v56 = vrot.slane %v401_v52, 1  ;;  %v611_v47 = vrot.slane %v401_v52, 2  ;;  %v8546_v0 = vpack.i.bf16 %v401_v52, %v400_v8  ;;  %v8577_v8 = vpack.i.bf16 %v404_v10, %v403_v54 }
  0x83   : > { %6884 = vrot.lane.b32.xlu1 %v6883_v13, %s8111_s10  ;;  %v8549_v1 = vsel %vm478_vm0, %v529_v59, %v530_v56  ;;  %v612_v22 = vsel %vm559_vm1, %v610_v42, %v611_v47  ;;  %v614_v18 = vsel %vm559_vm1, %v611_v47, %v613_v4 }
  0x84   : > { %6879 = vrot.lane.b32.xlu0 %v8347_v25, %s8111_s10  ;;  %12215 = vst [vmem:[#allocation22_spill] sm:$0xff] %v8549_v1  ;;  %v8575_v27 = vpack.i.bf16 %v614_v18, %v612_v22 }
  0x87   : > { %6894 = vrot.lane.b32.xlu1 %v6893_v23, %s8112_s11 }
  0x88   : > { %6889 = vrot.lane.b32.xlu0 %v6853_v57, %s8112_s11  ;;  %v532_v57 = vrot.slane %v402_v53, 1 }
  0x89   : > { %v8506_v43 = vpop.permute.xlu1 %6619 }
  0x8a   : > { %v8508_v25 = vpop.permute.xlu0 %6609 }
  0x8b   : > { %6904 = vrot.lane.b32.xlu1 %v6903_v35, %s8113_s12  ;;  %v6612_v42 = vunpack.i.h.bf16 %v8508_v25  ;;  %v6611_v47 = vunpack.i.l.bf16 %v8508_v25 }
  0x8c   : > { %6899 = vrot.lane.b32.xlu0 %v6873_v2, %s8113_s12  ;;  %v8552_v2 = vsel %vm478_vm0, %v530_v56, %v532_v57  ;;  %v617_v56 = vsel %vm559_vm1, %v615_v34, %v616_v40 }
  0x8d   : > { %v8516_v28 = vpop.permute.xlu1 %6624  ;;  %12216 = vst [vmem:[#allocation23_spill] sm:$0xff] %v8552_v2  ;;  %v8564_v11 = vpack.i.bf16 %v8552_v2, %v8549_v1  ;;  %v1435_v34 = vsel %vm1434_vm3, %v8190_v6, %v6611_v47 }
  0x8e   : > { %v8518_v33 = vpop.permute.xlu0 %6614 }
  0x8f   : > { %6914 = vrot.lane.b32.xlu1 %v6913_v45, %s8114_s13  ;;  %v6617_v53 = vunpack.i.h.bf16 %v8518_v33  ;;  %v6616_v59 = vunpack.i.l.bf16 %v8518_v33 }
  0x90   : > { %6909 = vrot.lane.b32.xlu0 %v6883_v13, %s8114_s13 }
  0x91   : > { %v8524_v63 = vpop.permute.xlu1 %6634 }
  0x92   : > { %v8526_v51 = vpop.permute.xlu0 %6629 }
  0x93   : > { %6924 = vrot.lane.b32.xlu1 %v8521_v50, %s8115_s16 }
  0x94   : > { %6919 = vrot.lane.b32.xlu0 %v6893_v23, %s8115_s16 }
  0x95   : > { %v8534_v58 = vpop.permute.xlu1 %6644 }
  0x96   : > { %v8536_v12 = vpop.permute.xlu0 %6639 }
  0x97   : > { %6934 = vrot.lane.b32.xlu1 %v6913_v45, %s8108_s30 }
  0x98   : > { %6929 = vrot.lane.b32.xlu0 %v6883_v13, %s8108_s30  ;;  %v405_v13 = vld [vmem:[%s8175_s29 + $0x118] sm:$0xff] }
  0x99   : > { %v8540_v41 = vpop.permute.xlu1 %6654  ;;  %v537_v31 = vrot.slane %v405_v13, 1  ;;  %v618_v38 = vrot.slane %v405_v13, 2 }
  0x9a   : > { %v8542_v62 = vpop.permute.xlu0 %6649  ;;  %v6657_v4 = vunpack.i.h.bf16 %v8540_v41  ;;  %v6656_v54 = vunpack.i.l.bf16 %v8540_v41 }
  0x9b   : > { %6944 = vrot.lane.b32.xlu1 %v8521_v50, %s8109_s8  ;;  %v619_v57 = vsel %vm559_vm1, %v616_v40, %v618_v38  ;;  %v6652_v13 = vunpack.i.h.bf16 %v8542_v62  ;;  %v6651_v33 = vunpack.i.l.bf16 %v8542_v62  ;;  %v1437_v62 = vsel %vm1434_vm3, %v8220_v20, %v6616_v59 }
  0x9c   : > { %6939 = vrot.lane.b32.xlu0 %v6893_v23, %s8109_s8  ;;  %v535_v23 = vrot.slane %v404_v10, 1  ;;  %v8606_v41 = vpack.i.bf16 %v619_v57, %v617_v56  ;;  %v1470_v40 = vsel %vm1467_vm4, %v1437_v62, %v6656_v54 }
  0x9d   : > { %v8558_v14 = vpop.permute.xlu1 %6664  ;;  %v1468_v20 = vsel %vm1467_vm4, %v1435_v34, %v6651_v33 }
  0x9e   : > { %v8560_v17 = vpop.permute.xlu0 %6659  ;;  %v8585_v52 = vsel %vm478_vm0, %v535_v23, %v537_v31  ;;  %v6667_v18 = vunpack.i.h.bf16 %v8558_v14  ;;  %v6666_v25 = vunpack.i.l.bf16 %v8558_v14  ;;  %v1436_v14 = vsel %vm1434_vm3, %v8193_v7, %v6612_v42 }
  0x9f   : > { %6954 = vrot.lane.b32.xlu1 %v8546_v0, %s8110_s9  ;;  %12218 = vst [vmem:[#allocation25_spill] sm:$0xff] %v8585_v52  ;;  %v6661_v31 = vunpack.i.l.bf16 %v8560_v17 }
  0xa0   : > { %6949 = vrot.lane.b32.xlu0 %v6903_v35, %s8110_s9  ;;  %v8582_v35 = vsel %vm478_vm0, %v534_v24, %v535_v23  ;;  %v1438_v24 = vsel %vm1434_vm3, %v8223_v21, %v6617_v53  ;;  %v6662_v23 = vunpack.i.h.bf16 %v8560_v17  ;;  %v1469_v17 = vsel %vm1467_vm4, %v1436_v14, %v6652_v13 }
  0xa1   : > { %v8571_v39 = vpop.permute.xlu1 %6674  ;;  %12217 = vst [vmem:[#allocation24_spill] sm:$0xff] %v8582_v35  ;;  %v1471_v21 = vsel %vm1467_vm4, %v1438_v24, %v6657_v4  ;;  %v1503_v7 = vsel %vm1500_vm5, %v1470_v40, %v6666_v25  ;;  %v1501_v42 = vsel %vm1500_vm5, %v1468_v20, %v6661_v31 }
  0xa2   : > { %v8573_v46 = vpop.permute.xlu0 %6669  ;;  %v6677_v53 = vunpack.i.h.bf16 %v8571_v39  ;;  %v1504_v56 = vsel %vm1500_vm5, %v1471_v21, %v6667_v18  ;;  %v1502_v47 = vsel %vm1500_vm5, %v1469_v17, %v6662_v23 }
  0xa3   : > { %6964 = vrot.lane.b32.xlu1 %v8564_v11, %s8111_s10  ;;  %v6672_v6 = vunpack.i.h.bf16 %v8573_v46  ;;  %v6671_v57 = vunpack.i.l.bf16 %v8573_v46 }
  0xa4   : > { %6959 = vrot.lane.b32.xlu0 %v6913_v45, %s8111_s10  ;;  %v8600_v45 = vpack.i.bf16 %v8585_v52, %v8582_v35  ;;  %v1537_v46 = vsel %vm1533_vm6, %v1504_v56, %v6677_v53 }
  0xa5   : > { %v6685_v10 = vpop.permute.xlu1 %6684  ;;  %v1534_v31 = vsel %vm1533_vm6, %v1501_v42, %v6671_v57  ;;  %v1535_v23 = vsel %vm1533_vm6, %v1502_v47, %v6672_v6 }
  0xa6   : > { %v6680_v22 = vpop.permute.xlu0 %6679  ;;  %v6687_v4 = vunpack.i.h.bf16 %v6685_v10  ;;  %v6686_v54 = vunpack.i.l.bf16 %v6685_v10 }
  0xa7   : > { %6974 = vrot.lane.b32.xlu1 %v8575_v27, %s8112_s11  ;;  %v6681_v13 = vunpack.i.l.bf16 %v6680_v22 }
  0xa8   : > { %6969 = vrot.lane.b32.xlu0 %v8521_v50, %s8112_s11  ;;  %v6676_v50 = vunpack.i.l.bf16 %v8571_v39  ;;  %v6682_v39 = vunpack.i.h.bf16 %v6680_v22  ;;  %v1570_v22 = vsel %vm1566_vm7, %v1537_v46, %v6687_v4 }
  0xa9   : > { %v6695_v38 = vpop.permute.xlu1 %6694  ;;  %v1567_v20 = vsel %vm1566_vm7, %v1534_v31, %v6681_v13 }
  0xaa   : > { %v6690_v59 = vpop.permute.xlu0 %6689  ;;  %v6697_v33 = vunpack.i.h.bf16 %v6695_v38  ;;  %v6696_v18 = vunpack.i.l.bf16 %v6695_v38  ;;  %v1536_v24 = vsel %vm1533_vm6, %v1503_v7, %v6676_v50  ;;  %v1568_v17 = vsel %vm1566_vm7, %v1535_v23, %v6682_v39  ;;  %v406_v39 = vld [vmem:[%s8175_s29 + $0x120] sm:$0xff] }
  0xab   : > { %6984 = vrot.lane.b32.xlu1 %v8577_v8, %s8113_s12  ;;  %v6692_v62 = vunpack.i.h.bf16 %v6690_v59  ;;  %v6691_v14 = vunpack.i.l.bf16 %v6690_v59 }
  0xac   : > { %6979 = vrot.lane.b32.xlu0 %v8546_v0, %s8113_s12  ;;  %v1569_v0 = vsel %vm1566_vm7, %v1536_v24, %v6686_v54  ;;  %v1603_v50 = vsel %vm1599_vm8, %v1570_v22, %v6697_v33  ;;  %v408_v33 = vld [vmem:[%s8175_s29 + $0x130] sm:$0xff] }
  0xad   : > { %v6705_v25 = vpop.permute.xlu1 %6704  ;;  %v1602_v53 = vsel %vm1599_vm8, %v1569_v0, %v6696_v18  ;;  %v1600_v57 = vsel %vm1599_vm8, %v1567_v20, %v6691_v14  ;;  %v1601_v42 = vsel %vm1599_vm8, %v1568_v17, %v6692_v62  ;;  %v407_v18 = vld [vmem:[%s8175_s29 + $0x128] sm:$0xff]  ;;  %v539_v0 = vrot.slane %v406_v39, 1 }
  0xae   : > { %v6700_v34 = vpop.permute.xlu0 %6699  ;;  %v6707_v10 = vunpack.i.h.bf16 %v6705_v25  ;;  %v6706_v40 = vunpack.i.l.bf16 %v6705_v25  ;;  %v540_v22 = vrot.slane %v407_v18, 1  ;;  %v542_v20 = vrot.slane %v408_v33, 1 }
  0xaf   : > { %6994 = vrot.lane.b32.xlu1 %v8600_v45, %s8114_s13  ;;  %v6702_v21 = vunpack.i.h.bf16 %v6700_v34  ;;  %v6701_v38 = vunpack.i.l.bf16 %v6700_v34  ;;  %v623_v17 = vrot.slane %v408_v33, 2 }
  0xb0   : > { %6989 = vrot.lane.b32.xlu0 %v8564_v11, %s8114_s13  ;;  %v1635_v47 = vsel %vm1632_vm9, %v1602_v53, %v6706_v40  ;;  %v1636_v4 = vsel %vm1632_vm9, %v1603_v50, %v6707_v10  ;;  %v409_v53 = vld [vmem:[%s8175_s29 + $0x138] sm:$0xff]  ;;  %v410_v50 = vld [vmem:[%s8175_s29 + $0x140] sm:$0xff] }
  0xb1   : > { %v6715_v59 = vpop.permute.xlu1 %6714  ;;  %v1633_v46 = vsel %vm1632_vm9, %v1600_v57, %v6701_v38  ;;  %v1634_v62 = vsel %vm1632_vm9, %v1601_v42, %v6702_v21  ;;  %v620_v21 = vrot.slane %v406_v39, 2  ;;  %v621_v38 = vrot.slane %v407_v18, 2 }
  0xb2   : > { %v6717_v7 = vunpack.i.h.bf16 %v6715_v59  ;;  %v6716_v56 = vunpack.i.l.bf16 %v6715_v59  ;;  %v6710_v6 = vpop.permute.xlu0 %6709  ;;  %v411_v59 = vld [vmem:[%s8175_s29 + $0x148] sm:$0xff]  ;;  %v8687_v57 = vsel %vm478_vm0, %v539_v0, %v540_v22  ;;  %v8690_v42 = vsel %vm478_vm0, %v540_v22, %v542_v20 }
  0xb3   : > { %v6712_v54 = vunpack.i.h.bf16 %v6710_v6  ;;  %v6711_v13 = vunpack.i.l.bf16 %v6710_v6  ;;  %7004 = vrot.lane.b32.xlu1 %v8606_v41, %s8115_s16  ;;  %v8684_v6 = vpack.i.bf16 %v407_v18, %v406_v39  ;;  %12219 = vst [vmem:[#allocation26_spill] sm:$0xff] %v8687_v57  ;;  %12220 = vst [vmem:[#allocation27_spill] sm:$0xff] %v8690_v42  ;;  %v625_v39 = vrot.slane %v409_v53, 2 }
  0xb4   : > { %v1667_v25 = vsel %vm325_vm10, %v1635_v47, %v6716_v56  ;;  %v1668_v24 = vsel %vm325_vm10, %v1636_v4, %v6717_v7  ;;  %6999 = vrot.lane.b32.xlu0 %v8575_v27, %s8115_s16  ;;  %v544_v47 = vrot.slane %v409_v53, 1  ;;  %v545_v4 = vrot.slane %v410_v50, 1 }
  0xb5   : > { %v8665_v14 = vpop.permute.xlu1 %6724  ;;  %v1665_v34 = vsel %vm325_vm10, %v1633_v46, %v6711_v13  ;;  %v1666_v31 = vsel %vm325_vm10, %v1634_v62, %v6712_v54  ;;  %v1698_v23 = vpack.c.bf16 %v1668_v24, %v1667_v25  ;;  %v547_v54 = vrot.slane %v411_v59, 1 }
  0xb6   : > { %v8669_v10 = vpop.permute.xlu0 %6719  ;;  %v1697_v40 = vpack.c.bf16 %v1666_v31, %v1665_v34  ;;  %v624_v13 = vsel %vm559_vm1, %v621_v38, %v623_v17  ;;  %v626_v18 = vrot.slane %v410_v50, 2  ;;  %v628_v33 = vrot.slane %v411_v59, 2 }
  0xb7   : > { %7014 = vrot.lane.b32.xlu1 %v8600_v45, %s8108_s30  ;;  %v8702_v46 = vpack.i.bf16 %v410_v50, %v409_v53  ;;  %v8708_v62 = vpack.i.bf16 %v8690_v42, %v8687_v57  ;;  %v8716_v31 = vsel %vm478_vm0, %v545_v4, %v547_v54  ;;  %v6622_v20 = vunpack.i.h.bf16 %v8506_v43  ;;  %v8036_v54 = vld [vmem:[%s8175_s29 + $0x48] sm:$0xff] }
  0xb8   : > { %7009 = vrot.lane.b32.xlu0 %v8564_v11, %s8108_s30  ;;  %6470 = vmatprep.mubr.msk.bf16.mxu0 %vm1734_vm11, %v1697_v40  ;;  %v622_v11 = vsel %vm559_vm1, %v620_v21, %v621_v38  ;;  %12222 = vst [vmem:[#allocation29_spill] sm:$0xff] %v8716_v31  ;;  %v6626_v40 = vunpack.i.l.bf16 %v8516_v28  ;;  %v627_v0 = vsel %vm559_vm1, %v625_v39, %v626_v18  ;;  %v6621_v21 = vunpack.i.l.bf16 %v8506_v43 }
  0xb9   : > { %6471 = vmatmul.mubr.msk.bf16.vlgmr.msra.gmra.mxu0 %vm1734_vm11, %v1698_v23  ;;  %v8680_v7 = vpop.permute.xlu1 %6734  ;;  %v8710_v34 = vpack.i.bf16 %v624_v13, %v622_v11  ;;  %v6627_v23 = vunpack.i.h.bf16 %v8516_v28  ;;  %v629_v22 = vsel %vm559_vm1, %v626_v18, %v628_v33  ;;  %v6727_v38 = vunpack.i.h.bf16 %v8665_v14  ;;  %v8037_v18 = vld [vmem:[%s8175_s29 + $0x38] sm:$0xff]  ;;  %v8038_v33 = vld [vmem:[%s8175_s29 + $0x30] sm:$0xff] }
  0xba   : > { %v8682_v56 = vpop.permute.xlu0 %6729  ;;  %v6726_v17 = vunpack.i.l.bf16 %v8665_v14  ;;  %v6722_v28 = vunpack.i.h.bf16 %v8669_v10  ;;  %v6737_v11 = vunpack.i.h.bf16 %v8680_v7  ;;  %v6736_v43 = vunpack.i.l.bf16 %v8680_v7 }
  0xbb   : > { %7024 = vrot.lane.b32.xlu1 %v8606_v41, %s8109_s8  ;;  %v8738_v14 = vpack.i.bf16 %v629_v22, %v627_v0  ;;  %v6732_v13 = vunpack.i.h.bf16 %v8682_v56  ;;  %v6731_v39 = vunpack.i.l.bf16 %v8682_v56  ;;  %v1440_v7 = vsel %vm1434_vm3, %v8037_v18, %v6622_v20 }
  0xbc   : > { %7019 = vrot.lane.b32.xlu0 %v8575_v27, %s8109_s8  ;;  %v8713_v27 = vsel %vm478_vm0, %v544_v47, %v545_v4  ;;  %v8035_v47 = vld [vmem:[%s8175_s29 + $0x50] sm:$0xff]  ;;  %v1439_v0 = vsel %vm1434_vm3, %v8038_v33, %v6621_v21 }
  0xbd   : > { %v8698_v25 = vpop.permute.xlu1 %6744  ;;  %12221 = vst [vmem:[#allocation28_spill] sm:$0xff] %v8713_v27  ;;  %v8732_v59 = vpack.i.bf16 %v8716_v31, %v8713_v27  ;;  %v1442_v4 = vsel %vm1434_vm3, %v8035_v47, %v6627_v23 }
  0xbe   : > { %v8700_v24 = vpop.permute.xlu0 %6739  ;;  %v1475_v22 = vsel %vm1467_vm4, %v1442_v4, %v6727_v38  ;;  %v6747_v56 = vunpack.i.h.bf16 %v8698_v25  ;;  %v6746_v31 = vunpack.i.l.bf16 %v8698_v25 }
  0xbf   : > { %7034 = vrot.lane.b32.xlu1 %v8684_v6, %s8110_s9  ;;  %v1508_v20 = vsel %vm1500_vm5, %v1475_v22, %v6737_v11  ;;  %v6742_v21 = vunpack.i.h.bf16 %v8700_v24  ;;  %v6741_v38 = vunpack.i.l.bf16 %v8700_v24 }
  0xc0   : > { %7029 = vrot.lane.b32.xlu0 %v8577_v8, %s8110_s9  ;;  %v6721_v8 = vunpack.i.l.bf16 %v8669_v10  ;;  %v1441_v10 = vsel %vm1434_vm3, %v8036_v54, %v6626_v40  ;;  %v1473_v40 = vsel %vm1467_vm4, %v1440_v7, %v6722_v28  ;;  %v1541_v24 = vsel %vm1533_vm6, %v1508_v20, %v6747_v56 }
  0xc1   : > { %v6755_v53 = vpop.permute.xlu1 %6754  ;;  %v1474_v23 = vsel %vm1467_vm4, %v1441_v10, %v6726_v17  ;;  %v1506_v28 = vsel %vm1500_vm5, %v1473_v40, %v6732_v13 }
  0xc2   : > { %v6750_v50 = vpop.permute.xlu0 %6749  ;;  %v1472_v54 = vsel %vm1467_vm4, %v1439_v0, %v6721_v8  ;;  %v1507_v27 = vsel %vm1500_vm5, %v1474_v23, %v6736_v43  ;;  %v6757_v8 = vunpack.i.h.bf16 %v6755_v53  ;;  %v6756_v4 = vunpack.i.l.bf16 %v6755_v53 }
  0xc3   : > { %7044 = vrot.lane.b32.xlu1 %v8708_v62, %s8111_s10  ;;  %v1505_v17 = vsel %vm1500_vm5, %v1472_v54, %v6731_v39  ;;  %v6752_v25 = vunpack.i.h.bf16 %v6750_v50  ;;  %v6751_v43 = vunpack.i.l.bf16 %v6750_v50  ;;  %v1540_v7 = vsel %vm1533_vm6, %v1507_v27, %v6746_v31 }
  0xc4   : > { %7039 = vrot.lane.b32.xlu0 %v8600_v45, %s8111_s10  ;;  %v1538_v39 = vsel %vm1533_vm6, %v1505_v17, %v6741_v38  ;;  %v1539_v13 = vsel %vm1533_vm6, %v1506_v28, %v6742_v21  ;;  %v1574_v50 = vsel %vm1566_vm7, %v1541_v24, %v6757_v8 }
  0xc5   : > { %v6765_v47 = vpop.permute.xlu1 %6764  ;;  %v1571_v31 = vsel %vm1566_vm7, %v1538_v39, %v6751_v43  ;;  %v1572_v40 = vsel %vm1566_vm7, %v1539_v13, %v6752_v25  ;;  %v412_v25 = vld [vmem:[%s8175_s29 + $0x150] sm:$0xff] }
  0xc6   : > { %v6760_v45 = vpop.permute.xlu0 %6759  ;;  %v6767_v10 = vunpack.i.h.bf16 %v6765_v47  ;;  %v6766_v11 = vunpack.i.l.bf16 %v6765_v47 }
  0xc7   : > { %7054 = vrot.lane.b32.xlu1 %v8710_v34, %s8112_s11  ;;  %v6762_v33 = vunpack.i.h.bf16 %v6760_v45  ;;  %v6761_v0 = vunpack.i.l.bf16 %v6760_v45 }
  0xc8   : > { %7049 = vrot.lane.b32.xlu0 %v8606_v41, %s8112_s11  ;;  %v1573_v41 = vsel %vm1566_vm7, %v1540_v7, %v6756_v4  ;;  %v1607_v56 = vsel %vm1599_vm8, %v1574_v50, %v6767_v10  ;;  %v414_v10 = vld [vmem:[%s8175_s29 + $0x160] sm:$0xff] }
  0xc9   : > { %v6775_v18 = vpop.permute.xlu1 %6774  ;;  %v1606_v54 = vsel %vm1599_vm8, %v1573_v41, %v6766_v11  ;;  %v1604_v20 = vsel %vm1599_vm8, %v1571_v31, %v6761_v0  ;;  %v1605_v21 = vsel %vm1599_vm8, %v1572_v40, %v6762_v33  ;;  %v413_v11 = vld [vmem:[%s8175_s29 + $0x158] sm:$0xff]  ;;  %v549_v41 = vrot.slane %v412_v25, 1  ;;  %v416_v31 = vld [vmem:[%s8175_s29 + $0x170] sm:$0xff] }
  0xca   : > { %v6770_v22 = vpop.permute.xlu0 %6769  ;;  %v6777_v53 = vunpack.i.h.bf16 %v6775_v18  ;;  %v6776_v23 = vunpack.i.l.bf16 %v6775_v18  ;;  %v550_v50 = vrot.slane %v413_v11, 1  ;;  %v417_v40 = vld [vmem:[%s8175_s29 + $0x178] sm:$0xff] }
  0xcb   : > { %7064 = vrot.lane.b32.xlu1 %v8702_v46, %s8113_s12  ;;  %v6772_v47 = vunpack.i.h.bf16 %v6770_v22  ;;  %v6771_v27 = vunpack.i.l.bf16 %v6770_v22 }
  0xcc   : > { %7059 = vrot.lane.b32.xlu0 %v8684_v6, %s8113_s12  ;;  %v1639_v6 = vsel %vm1632_vm9, %v1606_v54, %v6776_v23  ;;  %v1640_v8 = vsel %vm1632_vm9, %v1607_v56, %v6777_v53  ;;  %v630_v54 = vrot.slane %v412_v25, 2  ;;  %v631_v56 = vrot.slane %v413_v11, 2 }
  0xcd   : > { %v6785_v45 = vpop.permute.xlu1 %6784  ;;  %v1637_v18 = vsel %vm1632_vm9, %v1604_v20, %v6771_v27  ;;  %v1638_v7 = vsel %vm1632_vm9, %v1605_v21, %v6772_v47  ;;  %v552_v47 = vrot.slane %v414_v10, 1  ;;  %v415_v27 = vld [vmem:[%s8175_s29 + $0x168] sm:$0xff] }
  0xce   : > { %v6787_v38 = vunpack.i.h.bf16 %v6785_v45  ;;  %v6786_v17 = vunpack.i.l.bf16 %v6785_v45  ;;  %v6780_v28 = vpop.permute.xlu0 %6779  ;;  %v633_v45 = vrot.slane %v414_v10, 2  ;;  %v554_v21 = vrot.slane %v415_v27, 1 }
  0xcf   : > { %v6782_v4 = vunpack.i.h.bf16 %v6780_v28  ;;  %v6781_v43 = vunpack.i.l.bf16 %v6780_v28  ;;  %7074 = vrot.lane.b32.xlu1 %v8732_v59, %s8114_s13 }
  0xd0   : > { %v1671_v24 = vsel %vm325_vm10, %v1639_v6, %v6786_v17  ;;  %v1672_v33 = vsel %vm325_vm10, %v1640_v8, %v6787_v38  ;;  %7069 = vrot.lane.b32.xlu0 %v8708_v62, %s8114_s13  ;;  %v555_v38 = vrot.slane %v416_v31, 1  ;;  %v557_v17 = vrot.slane %v417_v40, 1 }
  0xd1   : > { %v1669_v0 = vsel %vm325_vm10, %v1637_v18, %v6781_v43  ;;  %v1670_v22 = vsel %vm325_vm10, %v1638_v7, %v6782_v4  ;;  %v8799_v39 = vpop.permute.xlu1 %6794  ;;  %v1700_v13 = vpack.c.bf16 %v1672_v33, %v1671_v24  ;;  %v8817_v6 = vsel %vm478_vm0, %v549_v41, %v550_v50 }
  0xd2   : > { %v8801_v53 = vpop.permute.xlu0 %6789  ;;  %v1699_v23 = vpack.c.bf16 %v1670_v22, %v1669_v0  ;;  %12223 = vst [vmem:[#allocation30_spill] sm:$0xff] %v8817_v6  ;;  %v8820_v8 = vsel %vm478_vm0, %v550_v50, %v552_v47  ;;  %v8826_v4 = vpack.i.bf16 %v413_v11, %v412_v25  ;;  %v632_v43 = vsel %vm559_vm1, %v630_v54, %v631_v56  ;;  %v8859_v47 = vld [vmem:[%s8175_s29 + $0x180] sm:$0xff] }
  0xd3   : > { %7084 = vrot.lane.b32.xlu1 %v8738_v14, %s8115_s16  ;;  %12224 = vst [vmem:[#allocation31_spill] sm:$0xff] %v8820_v8  ;;  %v634_v10 = vsel %vm559_vm1, %v631_v56, %v633_v45  ;;  %v8834_v7 = vpack.i.bf16 %v8820_v8, %v8817_v6  ;;  %v8837_v24 = vsel %vm478_vm0, %v554_v21, %v555_v38  ;;  %v635_v25 = vrot.slane %v415_v27, 2  ;;  %v8042_v6 = vld [vmem:[%s8175_s29 + $0x60] sm:$0xff] }
  0xd4   : > { %7079 = vrot.lane.b32.xlu0 %v8710_v34, %s8115_s16  ;;  %6474 = vmatprep.mubr.msk.bf16.mxu0 %vm1734_vm11, %v1699_v23  ;;  %12225 = vst [vmem:[#allocation32_spill] sm:$0xff] %v8837_v24  ;;  %v8840_v33 = vsel %vm478_vm0, %v555_v38, %v557_v17  ;;  %v636_v11 = vrot.slane %v416_v31, 2  ;;  %v638_v0 = vrot.slane %v417_v40, 2  ;;  %v8846_v22 = vpack.i.bf16 %v634_v10, %v632_v43  ;;  %v8862_v40 = vld [vmem:[%s8175_s29 + $0x188] sm:$0xff]  ;;  %v8039_v10 = vld [vmem:[%s8175_s29 + $0x80] sm:$0xff] }
  0xd5   : > { %6475 = vmatmul.mubr.msk.bf16.gmra.mxu0 %vm1734_vm11, %v1700_v13  ;;  %v8812_v20 = vpop.permute.xlu1 %6804  ;;  %12226 = vst [vmem:[#allocation33_spill] sm:$0xff] %v8840_v33  ;;  %v8848_v13 = vpack.i.bf16 %v416_v31, %v415_v27  ;;  %v6637_v23 = vunpack.i.h.bf16 %v8524_v63  ;;  %v6636_v41 = vunpack.i.l.bf16 %v8524_v63  ;;  %v8856_v50 = vpack.i.bf16 %v8840_v33, %v8837_v24 }
  0xd6   : > { %v8814_v28 = vpop.permute.xlu0 %6799  ;;  %v6632_v54 = vunpack.i.h.bf16 %v8526_v51  ;;  %v6631_v27 = vunpack.i.l.bf16 %v8526_v51  ;;  %v6797_v31 = vunpack.i.h.bf16 %v8799_v39  ;;  %v6796_v63 = vunpack.i.l.bf16 %v8799_v39 }
  0xd7   : > { %7094 = vrot.lane.b32.xlu1 %v8732_v59, %s8108_s30  ;;  %v6791_v45 = vunpack.i.l.bf16 %v8801_v53  ;;  %v8871_v38 = vsel %vm559_vm1, %v635_v25, %v636_v11  ;;  %v8874_v17 = vsel %vm559_vm1, %v636_v11, %v638_v0  ;;  %v6807_v51 = vunpack.i.h.bf16 %v8812_v20  ;;  %v8040_v25 = vld [vmem:[%s8175_s29 + $0x78] sm:$0xff] }
  0xd8   : > { %7089 = vrot.lane.b32.xlu0 %v8708_v62, %s8108_s30  ;;  %v6806_v43 = vunpack.i.l.bf16 %v8812_v20  ;;  %v1446_v33 = vsel %vm1434_vm3, %v8039_v10, %v6637_v23  ;;  %v1445_v24 = vsel %vm1434_vm3, %v8040_v25, %v6636_v41  ;;  %v6802_v11 = vunpack.i.h.bf16 %v8814_v28  ;;  %v8041_v20 = vld [vmem:[%s8175_s29 + $0x68] sm:$0xff] }
  0xd9   : > { %v8830_v18 = vpop.permute.xlu1 %6814  ;;  %v6801_v0 = vunpack.i.l.bf16 %v8814_v28  ;;  %v1444_v8 = vsel %vm1434_vm3, %v8041_v20, %v6632_v54  ;;  %v1443_v39 = vsel %vm1434_vm3, %v8042_v6, %v6631_v27  ;;  %v1478_v23 = vsel %vm1467_vm4, %v1445_v24, %v6796_v63 }
  0xda   : > { %v8842_v62 = vpop.permute.xlu0 %6809  ;;  %v1476_v41 = vsel %vm1467_vm4, %v1443_v39, %v6791_v45  ;;  %v6817_v28 = vunpack.i.h.bf16 %v8830_v18  ;;  %v6816_v42 = vunpack.i.l.bf16 %v8830_v18  ;;  %v1511_v57 = vsel %vm1500_vm5, %v1478_v23, %v6806_v43 }
  0xdb   : > { %7104 = vrot.lane.b32.xlu1 %v8738_v14, %s8109_s8  ;;  %v6812_v6 = vunpack.i.h.bf16 %v8842_v62  ;;  %v1509_v24 = vsel %vm1500_vm5, %v1476_v41, %v6801_v0 }
  0xdc   : > { %7099 = vrot.lane.b32.xlu0 %v8710_v34, %s8109_s8  ;;  %v6792_v34 = vunpack.i.h.bf16 %v8801_v53  ;;  %v1479_v53 = vsel %vm1467_vm4, %v1446_v33, %v6797_v31  ;;  %v6811_v33 = vunpack.i.l.bf16 %v8842_v62  ;;  %v1544_v43 = vsel %vm1533_vm6, %v1511_v57, %v6816_v42 }
  0xdd   : > { %v6825_v56 = vpop.permute.xlu1 %6824  ;;  %v1512_v54 = vsel %vm1500_vm5, %v1479_v53, %v6807_v51 }
  0xde   : > { %v6820_v21 = vpop.permute.xlu0 %6819  ;;  %v1477_v25 = vsel %vm1467_vm4, %v1444_v8, %v6792_v34  ;;  %v6827_v27 = vunpack.i.h.bf16 %v6825_v56  ;;  %v6826_v31 = vunpack.i.l.bf16 %v6825_v56  ;;  %v1545_v62 = vsel %vm1533_vm6, %v1512_v54, %v6817_v28 }
  0xdf   : > { %7114 = vrot.lane.b32.xlu1 %v8826_v4, %s8110_s9  ;;  %v1510_v8 = vsel %vm1500_vm5, %v1477_v25, %v6802_v11  ;;  %v6822_v18 = vunpack.i.h.bf16 %v6820_v21  ;;  %v6821_v63 = vunpack.i.l.bf16 %v6820_v21  ;;  %v1542_v0 = vsel %vm1533_vm6, %v1509_v24, %v6811_v33 }
  0xe0   : > { %7109 = vrot.lane.b32.xlu0 %v8702_v46, %s8110_s9  ;;  %v1543_v11 = vsel %vm1533_vm6, %v1510_v8, %v6812_v6  ;;  %v1578_v21 = vsel %vm1566_vm7, %v1545_v62, %v6827_v27  ;;  %v420_v27 = vld [vmem:[%s8175_s29 + $0x190] sm:$0xff] }
  0xe1   : > { %v6835_v10 = vpop.permute.xlu1 %6834  ;;  %v1576_v41 = vsel %vm1566_vm7, %v1543_v11, %v6822_v18 }
  0xe2   : > { %v6830_v46 = vpop.permute.xlu0 %6829  ;;  %v6837_v34 = vunpack.i.h.bf16 %v6835_v10  ;;  %v6836_v45 = vunpack.i.l.bf16 %v6835_v10  ;;  %v1575_v10 = vsel %vm1566_vm7, %v1542_v0, %v6821_v63  ;;  %v646_v0 = vrot.slane %v420_v27, 1 }
  0xe3   : > { %7124 = vrot.lane.b32.xlu1 %v8834_v7, %s8111_s10  ;;  %v6832_v39 = vunpack.i.h.bf16 %v6830_v46  ;;  %v6831_v53 = vunpack.i.l.bf16 %v6830_v46 }
  0xe4   : > { %7119 = vrot.lane.b32.xlu0 %v8732_v59, %s8111_s10  ;;  %v1577_v59 = vsel %vm1566_vm7, %v1544_v43, %v6826_v31  ;;  %v1611_v28 = vsel %vm1599_vm8, %v1578_v21, %v6837_v34  ;;  %v651_v21 = vrot.slane %v420_v27, 2 }
  0xe5   : > { %v6845_v51 = vpop.permute.xlu1 %6844  ;;  %v1610_v25 = vsel %vm1599_vm8, %v1577_v59, %v6836_v45  ;;  %v1608_v54 = vsel %vm1599_vm8, %v1575_v10, %v6831_v53  ;;  %v1609_v6 = vsel %vm1599_vm8, %v1576_v41, %v6832_v39  ;;  %v649_v59 = vrot.slane %v8862_v40, 2 }
  0xe6   : > { %v6840_v20 = vpop.permute.xlu0 %6839  ;;  %v6847_v56 = vunpack.i.h.bf16 %v6845_v51  ;;  %v6846_v23 = vunpack.i.l.bf16 %v6845_v51  ;;  %v12227_v10 = vrot.slane %v8862_v40, 1  ;;  %v12228_v41 = vrot.slane %v8859_v47, 1 }
  0xe7   : > { %7134 = vrot.lane.b32.xlu1 %v8846_v22, %s8112_s11  ;;  %v6842_v57 = vunpack.i.h.bf16 %v6840_v20  ;;  %v6841_v42 = vunpack.i.l.bf16 %v6840_v20 }
  0xe8   : > { %7129 = vrot.lane.b32.xlu0 %v8738_v14, %s8112_s11  ;;  %v1643_v31 = vsel %vm1632_vm9, %v1610_v25, %v6846_v23  ;;  %v1644_v14 = vsel %vm1632_vm9, %v1611_v28, %v6847_v56  ;;  %v648_v23 = vrot.slane %v8859_v47, 2  ;;  %v8962_v25 = vsel %vm478_vm0, %v12228_v41, %v12227_v10 }
  0xe9   : > { %v6855_v46 = vpop.permute.xlu1 %6854  ;;  %v1641_v18 = vsel %vm1632_vm9, %v1608_v54, %v6841_v42  ;;  %v1642_v34 = vsel %vm1632_vm9, %v1609_v6, %v6842_v57  ;;  %12229 = vst [vmem:[#allocation34_spill] sm:$0xff] %v8962_v25  ;;  %v8974_v54 = vld [vmem:[%s8175_s29 + $0x198] sm:$0xff]  ;;  %v8977_v6 = vld [vmem:[%s8175_s29 + $0x1a0] sm:$0xff] }
  0xea   : > { %v6857_v33 = vunpack.i.h.bf16 %v6855_v46  ;;  %v6856_v24 = vunpack.i.l.bf16 %v6855_v46  ;;  %v6850_v8 = vpop.permute.xlu0 %6849  ;;  %v650_v28 = vsel %vm559_vm1, %v648_v23, %v649_v59  ;;  %v652_v46 = vsel %vm559_vm1, %v649_v59, %v651_v21 }
  0xeb   : > { %v6852_v63 = vunpack.i.h.bf16 %v6850_v8  ;;  %v6851_v51 = vunpack.i.l.bf16 %v6850_v8  ;;  %7144 = vrot.lane.b32.xlu1 %v8848_v13, %s8113_s12 }
  0xec   : > { %v1675_v45 = vsel %vm325_vm10, %v1643_v31, %v6856_v24  ;;  %v1676_v43 = vsel %vm325_vm10, %v1644_v14, %v6857_v33  ;;  %7139 = vrot.lane.b32.xlu0 %v8826_v4, %s8113_s12  ;;  %v8949_v4 = vpack.i.bf16 %v8874_v17, %v8871_v38  ;;  %v12230_v38 = vmov %v12227_v10  ;;  %v8980_v33 = vld [vmem:[%s8175_s29 + $0x1a8] sm:$0xff] }
  0xed   : > { %v1673_v62 = vsel %vm325_vm10, %v1641_v18, %v6851_v51  ;;  %v1674_v39 = vsel %vm325_vm10, %v1642_v34, %v6852_v63  ;;  %v8939_v53 = vpop.permute.xlu1 %6864  ;;  %v1702_v20 = vpack.c.bf16 %v1676_v43, %v1675_v45  ;;  %v8967_v17 = vsel %vm478_vm0, %v12230_v38, %v646_v0  ;;  %v8044_v38 = vld [vmem:[%s8175_s29 + $0xa8] sm:$0xff] }
  0xee   : > { %v8941_v11 = vpop.permute.xlu0 %6859  ;;  %v1701_v56 = vpack.c.bf16 %v1674_v39, %v1673_v62  ;;  %12231 = vst [vmem:[#allocation35_spill] sm:$0xff] %v8967_v17  ;;  %v8986_v24 = vpack.i.bf16 %v8862_v40, %v8859_v47  ;;  %v8992_v27 = vpack.i.bf16 %v8967_v17, %v8962_v25  ;;  %v8994_v31 = vpack.i.bf16 %v652_v46, %v650_v28  ;;  %v8045_v28 = vld [vmem:[%s8175_s29 + $0x98] sm:$0xff] }
  0xef   : > { %7154 = vrot.lane.b32.xlu1 %v8856_v50, %s8114_s13  ;;  %v657_v63 = vrot.slane %v8977_v6, 1  ;;  %v656_v51 = vrot.slane %v8974_v54, 1  ;;  %v659_v18 = vrot.slane %v8980_v33, 1  ;;  %v6647_v34 = vunpack.i.h.bf16 %v8534_v58 }
  0xf0   : > { %7149 = vrot.lane.b32.xlu0 %v8834_v7, %s8114_s13  ;;  %6478 = vmatprep.mubr.msk.bf16.mxu0 %vm1734_vm11, %v1701_v56  ;;  %v6646_v47 = vunpack.i.l.bf16 %v8534_v58  ;;  %v6642_v40 = vunpack.i.h.bf16 %v8536_v12  ;;  %v7223_v45 = vpack.i.bf16 %v8977_v6, %v8974_v54  ;;  %v6641_v43 = vunpack.i.l.bf16 %v8536_v12  ;;  %v8046_v12 = vld [vmem:[%s8175_s29 + $0x90] sm:$0xff] }
  0xf1   : > { %6479 = vmatmul.mubr.msk.bf16.gmra.mxu0 %vm1734_vm11, %v1702_v20  ;;  %v6875_v57 = vpop.permute.xlu1 %6874  ;;  %v6867_v62 = vunpack.i.h.bf16 %v8939_v53  ;;  %v662_v58 = vrot.slane %v8977_v6, 2  ;;  %v6866_v39 = vunpack.i.l.bf16 %v8939_v53  ;;  %v6862_v20 = vunpack.i.h.bf16 %v8941_v11  ;;  %v8043_v53 = vld [vmem:[%s8175_s29 + $0xb0] sm:$0xff] }
  0xf2   : > { %v8955_v42 = vpop.permute.xlu0 %6869  ;;  %v6861_v0 = vunpack.i.l.bf16 %v8941_v11  ;;  %v6877_v23 = vunpack.i.h.bf16 %v6875_v57  ;;  %v6876_v59 = vunpack.i.l.bf16 %v6875_v57  ;;  %v9025_v10 = vsel %vm478_vm0, %v657_v63, %v659_v18 }
  0xf3   : > { %7164 = vrot.lane.b32.xlu1 %v8949_v4, %s8115_s16  ;;  %v1450_v41 = vsel %vm1434_vm3, %v8043_v53, %v6647_v34  ;;  %v1449_v11 = vsel %vm1434_vm3, %v8044_v38, %v6646_v47  ;;  %v1448_v46 = vsel %vm1434_vm3, %v8045_v28, %v6642_v40  ;;  %v664_v57 = vrot.slane %v8980_v33, 2 }
  0xf4   : > { %7159 = vrot.lane.b32.xlu0 %v8846_v22, %s8115_s16  ;;  %v6872_v18 = vunpack.i.h.bf16 %v8955_v42  ;;  %v6871_v34 = vunpack.i.l.bf16 %v8955_v42  ;;  %v1482_v47 = vsel %vm1467_vm4, %v1449_v11, %v6866_v39  ;;  %v1481_v53 = vsel %vm1467_vm4, %v1448_v46, %v6862_v20 }
  0xf5   : > { %v8988_v8 = vpop.permute.xlu1 %6884  ;;  %v12124_v11 = vmov 0.0  }
  0xf6   : > { %v8996_v14 = vpop.permute.xlu0 %6879  ;;  %v6887_v42 = vunpack.i.h.bf16 %v8988_v8  ;;  %281 = vst.msk [vmem:[#allocation2] sm:$0xff] %vm280_vm12, %v12124_v11  ;;  %282 = vst.msk [vmem:[#allocation2 + $0x8] sm:$0xff] %vm280_vm12, %v12124_v11 }
  0xf7   : > { %7174 = vrot.lane.b32.xlu1 %v8856_v50, %s8108_s30  ;;  %v6882_v39 = vunpack.i.h.bf16 %v8996_v14  ;;  %283 = vst.msk [vmem:[#allocation2 + $0x10] sm:$0xff] %vm280_vm12, %v12124_v11  ;;  %285 = vst.msk [vmem:[#allocation2 + $0x198] sm:$0xff] %vm280_vm12, %v12124_v11 }
  0xf8   : > { %7169 = vrot.lane.b32.xlu0 %v8834_v7, %s8108_s30  ;;  %v9022_v7 = vsel %vm478_vm0, %v656_v51, %v657_v63  ;;  %v1447_v51 = vsel %vm1434_vm3, %v8046_v12, %v6641_v43  ;;  %v1483_v63 = vsel %vm1467_vm4, %v1450_v41, %v6867_v62  ;;  %v9049_v43 = vsel %vm1500_vm5, %v1482_v47, %v6876_v59  ;;  %s8120_s30 = smov 126  }
  0xf9   : > { %v9016_v56 = vpop.permute.xlu1 %6894  ;;  %v1480_v40 = vsel %vm1467_vm4, %v1447_v51, %v6861_v0  ;;  %v9052_v62 = vsel %vm1500_vm5, %v1483_v63, %v6877_v23  ;;  %v6886_v12 = vunpack.i.l.bf16 %v8988_v8  ;;  %v6881_v0 = vunpack.i.l.bf16 %v8996_v14  ;;  %286 = vst.msk [vmem:[#allocation2 + $0x1a0] sm:$0xff] %vm280_vm12, %v12124_v11  ;;  %287 = vst.msk [vmem:[#allocation2 + $0x1a8] sm:$0xff] %vm280_vm12, %v12124_v11 }
  0xfa   : > { %v9019_v21 = vpop.permute.xlu0 %6889  ;;  %v9063_v20 = vsel %vm1500_vm5, %v1480_v40, %v6871_v34  ;;  %v9066_v23 = vsel %vm1500_vm5, %v1481_v53, %v6872_v18  ;;  %v6897_v59 = vunpack.i.h.bf16 %v9016_v56  ;;  %v6896_v41 = vunpack.i.l.bf16 %v9016_v56  ;;  %290 = vst.msk [vmem:[#allocation2 + $0x18] sm:$0x1] %vm288_vm13, %v12124_v11  ;;  %291 = vst.msk [vmem:[#allocation2 + $0x30] sm:$0x1] %vm288_vm13, %v12124_v11 }
  0xfb   : > { %7184 = vrot.lane.b32.xlu1 %v8949_v4, %s8109_s8  ;;  %292 = vst.msk [vmem:[#allocation2 + $0x48] sm:$0x1] %vm288_vm13, %v12124_v11  ;;  %293 = vst.msk [vmem:[#allocation2 + $0x60] sm:$0x1] %vm288_vm13, %v12124_v11  ;;  %v6891_v28 = vunpack.i.l.bf16 %v9019_v21  ;;  %v1549_v18 = vsel %vm1533_vm6, %v9052_v62, %v6887_v42  ;;  %v1546_v53 = vsel %vm1533_vm6, %v9063_v20, %v6881_v0 }
  0xfc   : > { %7179 = vrot.lane.b32.xlu0 %v8846_v22, %s8109_s8  ;;  %294 = vst.msk [vmem:[#allocation2 + $0x78] sm:$0x1] %vm288_vm13, %v12124_v11  ;;  %295 = vst.msk [vmem:[#allocation2 + $0x90] sm:$0x1] %vm288_vm13, %v12124_v11  ;;  %v1582_v42 = vsel %vm1566_vm7, %v1549_v18, %v6897_v59 }
  0xfd   : > { %v9046_v38 = vpop.permute.xlu1 %6904  ;;  %296 = vst.msk [vmem:[#allocation2 + $0xa8] sm:$0x1] %vm288_vm13, %v12124_v11  ;;  %297 = vst.msk [vmem:[#allocation2 + $0xc0] sm:$0x1] %vm288_vm13, %v12124_v11  ;;  %v1579_v14 = vsel %vm1566_vm7, %v1546_v53, %v6891_v28 }
  0xfe   : > { %v9056_v22 = vpop.permute.xlu0 %6899  ;;  %298 = vst.msk [vmem:[#allocation2 + $0xd8] sm:$0x1] %vm288_vm13, %v12124_v11  ;;  %299 = vst.msk [vmem:[#allocation2 + $0xf0] sm:$0x1] %vm288_vm13, %v12124_v11  ;;  %v6907_v46 = vunpack.i.h.bf16 %v9046_v38  ;;  %v6906_v51 = vunpack.i.l.bf16 %v9046_v38  ;;  %v1547_v38 = vsel %vm1533_vm6, %v9066_v23, %v6882_v39 }
  0xff   : > { %7194 = vrot.lane.b32.xlu1 %v8986_v24, %s8110_s9  ;;  %300 = vst.msk [vmem:[#allocation2 + $0x108] sm:$0x1] %vm288_vm13, %v12124_v11  ;;  %301 = vst.msk [vmem:[#allocation2 + $0x120] sm:$0x1] %vm288_vm13, %v12124_v11  ;;  %v6902_v34 = vunpack.i.h.bf16 %v9056_v22  ;;  %v6901_v47 = vunpack.i.l.bf16 %v9056_v22 }
 0x100   : > { %7189 = vrot.lane.b32.xlu0 %v8848_v13, %s8110_s9  ;;  %302 = vst.msk [vmem:[#allocation2 + $0x138] sm:$0x1] %vm288_vm13, %v12124_v11  ;;  %303 = vst.msk [vmem:[#allocation2 + $0x150] sm:$0x1] %vm288_vm13, %v12124_v11  ;;  %v6892_v13 = vunpack.i.h.bf16 %v9019_v21  ;;  %v1548_v21 = vsel %vm1533_vm6, %v9049_v43, %v6886_v12  ;;  %v1615_v20 = vsel %vm1599_vm8, %v1582_v42, %v6907_v46  ;;  %s8118_s9 = smov 96  }
 0x101   : > { %304 = vst.msk [vmem:[#allocation2 + $0x168] sm:$0x1] %vm288_vm13, %v12124_v11  ;;  %305 = vst.msk [vmem:[#allocation2 + $0x180] sm:$0x1] %vm288_vm13, %v12124_v11  ;;  %v6915_v63 = vpop.permute.xlu1 %6914  ;;  %v1581_v62 = vsel %vm1566_vm7, %v1548_v21, %v6896_v41  ;;  %v1612_v41 = vsel %vm1599_vm8, %v1579_v14, %v6901_v47 }
 0x102   : > { %308 = vst.msk [vmem:[#allocation2 + $0x29] sm:$0x1] %vm288_vm13, %v12124_v11  ;;  %309 = vst.msk [vmem:[#allocation2 + $0x41] sm:$0x1] %vm288_vm13, %v12124_v11  ;;  %v6910_v40 = vpop.permute.xlu0 %6909  ;;  %v6917_v43 = vunpack.i.h.bf16 %v6915_v63  ;;  %v6916_v8 = vunpack.i.l.bf16 %v6915_v63  ;;  %v1580_v39 = vsel %vm1566_vm7, %v1547_v38, %v6892_v13  ;;  %v1614_v0 = vsel %vm1599_vm8, %v1581_v62, %v6906_v51  ;;  %v2078_v62 = vld [vmem:[#allocation2 + $0x8] sm:$0xff] }
 0x103   : > { %310 = vst.msk [vmem:[#allocation2 + $0x59] sm:$0x1] %vm288_vm13, %v12124_v11  ;;  %311 = vst.msk [vmem:[#allocation2 + $0x71] sm:$0x1] %vm288_vm13, %v12124_v11  ;;  %7204 = vrot.lane.b32.xlu1 %v8992_v27, %s8111_s10  ;;  %v6912_v12 = vunpack.i.h.bf16 %v6910_v40  ;;  %v6911_v22 = vunpack.i.l.bf16 %v6910_v40  ;;  %v1613_v56 = vsel %vm1599_vm8, %v1580_v39, %v6902_v34 }
 0x104   : > { %312 = vst.msk [vmem:[#allocation2 + $0x89] sm:$0x1] %vm288_vm13, %v12124_v11  ;;  %313 = vst.msk [vmem:[#allocation2 + $0xa1] sm:$0x1] %vm288_vm13, %v12124_v11  ;;  %7199 = vrot.lane.b32.xlu0 %v8856_v50, %s8111_s10  ;;  %v1647_v18 = vsel %vm1632_vm9, %v1614_v0, %v6916_v8  ;;  %v1648_v50 = vsel %vm1632_vm9, %v1615_v20, %v6917_v43  ;;  %v2253_v20 = vrot.slane %v2078_v62, 1  ;;  %v8049_v62 = vld [vmem:[%s8175_s29 + $0xc8] sm:$0xff] }
 0x105   : > { %314 = vst.msk [vmem:[#allocation2 + $0xb9] sm:$0x1] %vm288_vm13, %v12124_v11  ;;  %315 = vst.msk [vmem:[#allocation2 + $0xd1] sm:$0x1] %vm288_vm13, %v12124_v11  ;;  %v6925_v23 = vpop.permute.xlu1 %6924  ;;  %v1645_v13 = vsel %vm1632_vm9, %v1612_v41, %v6911_v22  ;;  %v1646_v46 = vsel %vm1632_vm9, %v1613_v56, %v6912_v12  ;;  %v7233_v12 = vpack.i.bf16 %v9025_v10, %v9022_v7 }
 0x106   : > { %316 = vst.msk [vmem:[#allocation2 + $0xe9] sm:$0x1] %vm288_vm13, %v12124_v11  ;;  %317 = vst.msk [vmem:[#allocation2 + $0x101] sm:$0x1] %vm288_vm13, %v12124_v11  ;;  %v6927_v63 = vunpack.i.h.bf16 %v6925_v23  ;;  %v6926_v59 = vunpack.i.l.bf16 %v6925_v23  ;;  %v6920_v21 = vpop.permute.xlu0 %6919 }
 0x107   : > { %318 = vst.msk [vmem:[#allocation2 + $0x119] sm:$0x1] %vm288_vm13, %v12124_v11  ;;  %319 = vst.msk [vmem:[#allocation2 + $0x131] sm:$0x1] %vm288_vm13, %v12124_v11  ;;  %v6922_v40 = vunpack.i.h.bf16 %v6920_v21  ;;  %v6921_v28 = vunpack.i.l.bf16 %v6920_v21  ;;  %7214 = vrot.lane.b32.xlu1 %v8994_v31, %s8112_s11 }
 0x108   : > { %320 = vst.msk [vmem:[#allocation2 + $0x149] sm:$0x1] %vm288_vm13, %v12124_v11  ;;  %321 = vst.msk [vmem:[#allocation2 + $0x161] sm:$0x1] %vm288_vm13, %v12124_v11  ;;  %v1679_v51 = vsel %vm325_vm10, %v1647_v18, %v6926_v59  ;;  %v1680_v34 = vsel %vm325_vm10, %v1648_v50, %v6927_v63  ;;  %7209 = vrot.lane.b32.xlu0 %v8949_v4, %s8112_s11  ;;  %v12232_v4 = vrot.slane %v8974_v54, 2 }
 0x109   : > { %322 = vst.msk [vmem:[#allocation2 + $0x179] sm:$0x1] %vm288_vm13, %v12124_v11  ;;  %323 = vst.msk [vmem:[#allocation2 + $0x191] sm:$0x1] %vm288_vm13, %v12124_v11  ;;  %v1677_v47 = vsel %vm325_vm10, %v1645_v13, %v6921_v28  ;;  %v1678_v53 = vsel %vm325_vm10, %v1646_v46, %v6922_v40  ;;  %v6935_v38 = vpop.permute.xlu1 %6934  ;;  %v1704_v43 = vpack.c.bf16 %v1680_v34, %v1679_v51  ;;  %v8047_v34 = vld [vmem:[%s8175_s29 + $0xe0] sm:$0xff] }
 0x10a   : > { %326 = vst.msk [vmem:[#allocation3] sm:$0xff] %vm325_vm10, %v12124_v11  ;;  %327 = vst.msk [vmem:[#allocation3 + $0x8] sm:$0xff] %vm325_vm10, %v12124_v11  ;;  %v6930_v14 = vpop.permute.xlu0 %6929  ;;  %v1703_v22 = vpack.c.bf16 %v1678_v53, %v1677_v47  ;;  %v663_v39 = vsel %vm559_vm1, %v12232_v4, %v662_v58  ;;  %v6936_v63 = vunpack.i.l.bf16 %v6935_v38  ;;  %v8048_v53 = vld [vmem:[%s8175_s29 + $0xd8] sm:$0xff] }
 0x10b   : > { %328 = vst.msk [vmem:[#allocation3 + $0x10] sm:$0xff] %vm325_vm10, %v12124_v11  ;;  %330 = vst.msk [vmem:[#allocation3 + $0x198] sm:$0xff] %vm325_vm10, %v12124_v11  ;;  %7224 = vrot.lane.b32.xlu1 %v7223_v45, %s8113_s12  ;;  %v665_v45 = vsel %vm559_vm1, %v662_v58, %v664_v57  ;;  %v6932_v59 = vunpack.i.h.bf16 %v6930_v14  ;;  %v6931_v21 = vunpack.i.l.bf16 %v6930_v14  ;;  %v8050_v14 = vld [vmem:[%s8175_s29 + $0xc0] sm:$0xff] }
 0x10c   : > { %331 = vst.msk [vmem:[#allocation3 + $0x1a0] sm:$0xff] %vm325_vm10, %v12124_v11  ;;  %332 = vst.msk [vmem:[#allocation3 + $0x1a8] sm:$0xff] %vm325_vm10, %v12124_v11  ;;  %7219 = vrot.lane.b32.xlu0 %v8986_v24, %s8113_s12  ;;  %6482 = vmatprep.mubr.msk.bf16.mxu0 %vm1734_vm11, %v1703_v22  ;;  %v7243_v23 = vpack.i.bf16 %v665_v45, %v663_v39 }
 0x10d   : > { %289 = vst.msk [vmem:[#allocation2] sm:$0x1] %vm288_vm13, %v12124_v11  ;;  %307 = vst.msk [vmem:[#allocation2 + $0x11] sm:$0x1] %vm288_vm13, %v12124_v11  ;;  %6483 = vmatmul.mubr.msk.bf16.gmra.mxu0 %vm1734_vm11, %v1704_v43  ;;  %v6945_v10 = vpop.permute.xlu1 %6944  ;;  %v1453_v43 = vsel %vm1434_vm3, %v8048_v53, %v6936_v63  ;;  %v1451_v22 = vsel %vm1434_vm3, %v8050_v14, %v6931_v21 }
 0x10e   : > { %306 = vst.msk [vmem:[#allocation2 + $0x198] sm:$0x1] %vm288_vm13, %v12124_v11  ;;  %324 = vst.msk [vmem:[#allocation2 + $0x1a9] sm:$0x1] %vm288_vm13, %v12124_v11  ;;  %v6940_v54 = vpop.permute.xlu0 %6939  ;;  %v6947_v18 = vunpack.i.h.bf16 %v6945_v10  ;;  %v6946_v50 = vunpack.i.l.bf16 %v6945_v10 }
 0x10f   : > { %7234 = vrot.lane.b32.xlu1 %v7233_v12, %s8114_s13  ;;  %v6942_v28 = vunpack.i.h.bf16 %v6940_v54  ;;  %v6941_v13 = vunpack.i.l.bf16 %v6940_v54 }
 0x110   : > { %7229 = vrot.lane.b32.xlu0 %v8992_v27, %s8114_s13  ;;  %v6937_v27 = vunpack.i.h.bf16 %v6935_v38  ;;  %v1486_v12 = vsel %vm1467_vm4, %v1453_v43, %v6946_v50 }
 0x111   : > { %v6955_v6 = vpop.permute.xlu1 %6954  ;;  %v1484_v45 = vsel %vm1467_vm4, %v1451_v22, %v6941_v13 }
 0x112   : > { %v6950_v41 = vpop.permute.xlu0 %6949  ;;  %v6956_v51 = vunpack.i.l.bf16 %v6955_v6  ;;  %v1454_v47 = vsel %vm1434_vm3, %v8047_v34, %v6937_v27 }
 0x113   : > { %7244 = vrot.lane.b32.xlu1 %v7243_v23, %s8115_s16  ;;  %v6951_v38 = vunpack.i.l.bf16 %v6950_v41  ;;  %v1487_v4 = vsel %vm1467_vm4, %v1454_v47, %v6947_v18 }
 0x114   : > { %v2077_v8 = vld [vmem:[#allocation2] sm:$0xff]  ;;  %v2079_v42 = vld [vmem:[#allocation2 + $0x10] sm:$0xff]  ;;  %7239 = vrot.lane.b32.xlu0 %v8994_v31, %s8115_s16  ;;  %v6957_v31 = vunpack.i.h.bf16 %v6955_v6  ;;  %v1519_v54 = vsel %vm1500_vm5, %v1486_v12, %v6956_v51 }
 0x115   : > { %v2252_v0 = vrot.slane %v2077_v8, 1  ;;  %v2255_v7 = vrot.slane %v2079_v42, 1  ;;  %v6965_v57 = vpop.permute.xlu1 %6964  ;;  %v6952_v8 = vunpack.i.h.bf16 %v6950_v41  ;;  %v1452_v42 = vsel %vm1434_vm3, %v8049_v62, %v6932_v59 }
 0x116   : > { %v6960_v56 = vpop.permute.xlu0 %6959  ;;  %v1520_v23 = vsel %vm1500_vm5, %v1487_v4, %v6957_v31  ;;  %v1517_v6 = vsel %vm1500_vm5, %v1484_v45, %v6951_v38 }
 0x117   : > { %v2254_v24 = vsel %vm478_vm0, %v2252_v0, %v2253_v20  ;;  %v2256_v33 = vsel %vm478_vm0, %v2253_v20, %v2255_v7  ;;  %v1485_v0 = vsel %vm1467_vm4, %v1452_v42, %v6942_v28  ;;  %v6967_v20 = vunpack.i.h.bf16 %v6965_v57 }
 0x118   : > { %v7253_v58 = vpack.i.bf16 %v2256_v33, %v2254_v24  ;;  %v6966_v7 = vunpack.i.l.bf16 %v6965_v57  ;;  %v6962_v24 = vunpack.i.h.bf16 %v6960_v56  ;;  %v6961_v33 = vunpack.i.l.bf16 %v6960_v56 }
 0x119   : > { %v6975_v40 = vpop.permute.xlu1 %6974  ;;  %v1518_v41 = vsel %vm1500_vm5, %v1485_v0, %v6952_v8  ;;  %v1553_v28 = vsel %vm1533_vm6, %v1520_v23, %v6967_v20 }
 0x11a   : > { %7254 = vrot.lane.b32.xlu1 %v7253_v58, %s8117_s21  ;;  %v6970_v46 = vpop.permute.xlu0 %6969  ;;  %v6977_v58 = vunpack.i.h.bf16 %v6975_v40  ;;  %v6976_v27 = vunpack.i.l.bf16 %v6975_v40  ;;  %v1552_v57 = vsel %vm1533_vm6, %v1519_v54, %v6966_v7  ;;  %v1550_v56 = vsel %vm1533_vm6, %v1517_v6, %v6961_v33 }
 0x11b   : > { %v6972_v63 = vunpack.i.h.bf16 %v6970_v46  ;;  %v6971_v59 = vunpack.i.l.bf16 %v6970_v46  ;;  %v1551_v34 = vsel %vm1533_vm6, %v1518_v41, %v6962_v24 }
 0x11c   : > { %v1585_v40 = vsel %vm1566_vm7, %v1552_v57, %v6976_v27  ;;  %v1586_v46 = vsel %vm1566_vm7, %v1553_v28, %v6977_v58 }
 0x11d   : > { %v6985_v39 = vpop.permute.xlu1 %6984  ;;  %v1583_v38 = vsel %vm1566_vm7, %v1550_v56, %v6971_v59  ;;  %v1584_v62 = vsel %vm1566_vm7, %v1551_v34, %v6972_v63 }
 0x11e   : > { %v6980_v10 = vpop.permute.xlu0 %6979  ;;  %v6987_v21 = vunpack.i.h.bf16 %v6985_v39  ;;  %v6986_v18 = vunpack.i.l.bf16 %v6985_v39 }
 0x11f   : > { %v6982_v13 = vunpack.i.h.bf16 %v6980_v10  ;;  %v6981_v51 = vunpack.i.l.bf16 %v6980_v10 }
 0x120   : > { %v1618_v42 = vsel %vm1599_vm8, %v1585_v40, %v6986_v18  ;;  %v1619_v14 = vsel %vm1599_vm8, %v1586_v46, %v6987_v21 }
 0x121   : > { %v6995_v50 = vpop.permute.xlu1 %6994  ;;  %v1616_v45 = vsel %vm1599_vm8, %v1583_v38, %v6981_v51  ;;  %v1617_v0 = vsel %vm1599_vm8, %v1584_v62, %v6982_v13 }
 0x122   : > { %v6990_v31 = vpop.permute.xlu0 %6989  ;;  %v6997_v47 = vunpack.i.h.bf16 %v6995_v50  ;;  %v6996_v53 = vunpack.i.l.bf16 %v6995_v50 }
 0x123   : > { %v6992_v43 = vunpack.i.h.bf16 %v6990_v31  ;;  %v6991_v8 = vunpack.i.l.bf16 %v6990_v31 }
 0x124   : > { %v1651_v20 = vsel %vm1632_vm9, %v1618_v42, %v6996_v53  ;;  %v1652_v7 = vsel %vm1632_vm9, %v1619_v14, %v6997_v47  ;;  %v8051_v14 = vld [vmem:[%s8175_s29 + $0x110] sm:$0xff] }
 0x125   : > { %v7005_v22 = vpop.permute.xlu1 %7004  ;;  %v1649_v33 = vsel %vm1632_vm9, %v1616_v45, %v6991_v8  ;;  %v1650_v6 = vsel %vm1632_vm9, %v1617_v0, %v6992_v43  ;;  %v8053_v0 = vld [vmem:[%s8175_s29 + $0xf8] sm:$0xff] }
 0x126   : > { %v7007_v12 = vunpack.i.h.bf16 %v7005_v22  ;;  %v7006_v4 = vunpack.i.l.bf16 %v7005_v22  ;;  %v7000_v39 = vpop.permute.xlu0 %6999 }
 0x127   : > { %v7002_v10 = vunpack.i.h.bf16 %v7000_v39  ;;  %v7001_v54 = vunpack.i.l.bf16 %v7000_v39 }
 0x128   : > { %v1683_v23 = vsel %vm325_vm10, %v1651_v20, %v7006_v4  ;;  %v1684_v24 = vsel %vm325_vm10, %v1652_v7, %v7007_v12  ;;  %v8052_v12 = vld [vmem:[%s8175_s29 + $0x108] sm:$0xff]  ;;  %v8054_v7 = vld [vmem:[%s8175_s29 + $0xf0] sm:$0xff] }
 0x129   : > { %v7015_v41 = vpop.permute.xlu1 %7014  ;;  %v1681_v58 = vsel %vm325_vm10, %v1649_v33, %v7001_v54  ;;  %v1682_v27 = vsel %vm325_vm10, %v1650_v6, %v7002_v10  ;;  %v1706_v63 = vpack.c.bf16 %v1684_v24, %v1683_v23 }
 0x12a   : > { %v7010_v59 = vpop.permute.xlu0 %7009  ;;  %v1705_v21 = vpack.c.bf16 %v1682_v27, %v1681_v58  ;;  %v7017_v31 = vunpack.i.h.bf16 %v7015_v41  ;;  %v7016_v56 = vunpack.i.l.bf16 %v7015_v41 }
 0x12b   : > { %v7012_v34 = vunpack.i.h.bf16 %v7010_v59  ;;  %v7011_v47 = vunpack.i.l.bf16 %v7010_v59 }
 0x12c   : > { %6486 = vmatprep.mubr.msk.bf16.mxu1 %vm1734_vm11, %v1705_v21  ;;  %v1458_v22 = vsel %vm1434_vm3, %v8051_v14, %v7017_v31  ;;  %v1457_v4 = vsel %vm1434_vm3, %v8052_v12, %v7016_v56 }
 0x12d   : > { %6487 = vmatmul.mubr.msk.bf16.vlgmr.msra.gmra.mxu1 %vm1734_vm11, %v1706_v63  ;;  %v7025_v18 = vpop.permute.xlu1 %7024  ;;  %v1456_v20 = vsel %vm1434_vm3, %v8053_v0, %v7012_v34  ;;  %v1455_v10 = vsel %vm1434_vm3, %v8054_v7, %v7011_v47 }
 0x12e   : > { %v7020_v50 = vpop.permute.xlu0 %7019  ;;  %v7027_v53 = vunpack.i.h.bf16 %v7025_v18  ;;  %v7026_v40 = vunpack.i.l.bf16 %v7025_v18 }
 0x12f   : > { %v7022_v43 = vunpack.i.h.bf16 %v7020_v50  ;;  %v7021_v8 = vunpack.i.l.bf16 %v7020_v50 }
 0x130   : > { %v1490_v54 = vsel %vm1467_vm4, %v1457_v4, %v7026_v40  ;;  %v1491_v23 = vsel %vm1467_vm4, %v1458_v22, %v7027_v53 }
 0x131   : > { %v7035_v57 = vpop.permute.xlu1 %7034  ;;  %v1488_v33 = vsel %vm1467_vm4, %v1455_v10, %v7021_v8  ;;  %v1489_v6 = vsel %vm1467_vm4, %v1456_v20, %v7022_v43 }
 0x132   : > { %v7030_v28 = vpop.permute.xlu0 %7029  ;;  %v7037_v62 = vunpack.i.h.bf16 %v7035_v57  ;;  %v7036_v42 = vunpack.i.l.bf16 %v7035_v57 }
 0x133   : > { %v7032_v39 = vunpack.i.h.bf16 %v7030_v28  ;;  %v7031_v45 = vunpack.i.l.bf16 %v7030_v28 }
 0x134   : > { %v1523_v63 = vsel %vm1500_vm5, %v1490_v54, %v7036_v42  ;;  %v1524_v59 = vsel %vm1500_vm5, %v1491_v23, %v7037_v62 }
 0x135   : > { %v7045_v13 = vpop.permute.xlu1 %7044  ;;  %v1521_v50 = vsel %vm1500_vm5, %v1488_v33, %v7031_v45  ;;  %v1522_v57 = vsel %vm1500_vm5, %v1489_v6, %v7032_v39 }
 0x136   : > { %v7040_v51 = vpop.permute.xlu0 %7039  ;;  %v7047_v41 = vunpack.i.h.bf16 %v7045_v13  ;;  %v7046_v58 = vunpack.i.l.bf16 %v7045_v13 }
 0x137   : > { %v7042_v21 = vunpack.i.h.bf16 %v7040_v51  ;;  %v7041_v18 = vunpack.i.l.bf16 %v7040_v51 }
 0x138   : > { %v1556_v13 = vsel %vm1533_vm6, %v1523_v63, %v7046_v58  ;;  %v1557_v43 = vsel %vm1533_vm6, %v1524_v59, %v7047_v41 }
 0x139   : > { %v7055_v46 = vpop.permute.xlu1 %7054  ;;  %v1554_v51 = vsel %vm1533_vm6, %v1521_v50, %v7041_v18  ;;  %v1555_v14 = vsel %vm1533_vm6, %v1522_v57, %v7042_v21 }
 0x13a   : > { %v7050_v38 = vpop.permute.xlu0 %7049  ;;  %v7057_v28 = vunpack.i.h.bf16 %v7055_v46  ;;  %v7056_v31 = vunpack.i.l.bf16 %v7055_v46 }
 0x13b   : > { %v7052_v56 = vunpack.i.h.bf16 %v7050_v38  ;;  %v7051_v34 = vunpack.i.l.bf16 %v7050_v38 }
 0x13c   : > { %v1589_v46 = vsel %vm1566_vm7, %v1556_v13, %v7056_v31  ;;  %v1590_v38 = vsel %vm1566_vm7, %v1557_v43, %v7057_v28 }
 0x13d   : > { %v7065_v24 = vpop.permute.xlu1 %7064  ;;  %v1587_v45 = vsel %vm1566_vm7, %v1554_v51, %v7051_v34  ;;  %v1588_v0 = vsel %vm1566_vm7, %v1555_v14, %v7052_v56 }
 0x13e   : > { %v7060_v27 = vpop.permute.xlu0 %7059  ;;  %v7067_v47 = vunpack.i.h.bf16 %v7065_v24  ;;  %v7066_v53 = vunpack.i.l.bf16 %v7065_v24 }
 0x13f   : > { %v7062_v8 = vunpack.i.h.bf16 %v7060_v27  ;;  %v7061_v42 = vunpack.i.l.bf16 %v7060_v27 }
 0x140   : > { %v1622_v20 = vsel %vm1599_vm8, %v1589_v46, %v7066_v53  ;;  %v1623_v7 = vsel %vm1599_vm8, %v1590_v38, %v7067_v47 }
 0x141   : > { %v7075_v40 = vpop.permute.xlu1 %7074  ;;  %v1620_v54 = vsel %vm1599_vm8, %v1587_v45, %v7061_v42  ;;  %v1621_v23 = vsel %vm1599_vm8, %v1588_v0, %v7062_v8 }
 0x142   : > { %v7070_v62 = vpop.permute.xlu0 %7069  ;;  %v7077_v22 = vunpack.i.h.bf16 %v7075_v40  ;;  %v7076_v12 = vunpack.i.l.bf16 %v7075_v40 }
 0x143   : > { %v7072_v4 = vunpack.i.h.bf16 %v7070_v62  ;;  %v7071_v39 = vunpack.i.l.bf16 %v7070_v62 }
 0x144   : > { %v1655_v41 = vsel %vm1632_vm9, %v1622_v20, %v7076_v12  ;;  %v1656_v58 = vsel %vm1632_vm9, %v1623_v7, %v7077_v22  ;;  %v8055_v7 = vld [vmem:[%s8175_s29 + $0x140] sm:$0xff] }
 0x145   : > { %v7085_v10 = vpop.permute.xlu1 %7084  ;;  %v1653_v59 = vsel %vm1632_vm9, %v1620_v54, %v7071_v39  ;;  %v1654_v21 = vsel %vm1632_vm9, %v1621_v23, %v7072_v4  ;;  %v8056_v54 = vld [vmem:[%s8175_s29 + $0x138] sm:$0xff] }
 0x146   : > { %v7087_v24 = vunpack.i.h.bf16 %v7085_v10  ;;  %v7086_v33 = vunpack.i.l.bf16 %v7085_v10  ;;  %v7080_v6 = vpop.permute.xlu0 %7079 }
 0x147   : > { %v7082_v27 = vunpack.i.h.bf16 %v7080_v6  ;;  %v7081_v63 = vunpack.i.l.bf16 %v7080_v6  ;;  %v8057_v6 = vld [vmem:[%s8175_s29 + $0x128] sm:$0xff] }
 0x148   : > { %v1687_v18 = vsel %vm325_vm10, %v1655_v41, %v7086_v33  ;;  %v1688_v50 = vsel %vm325_vm10, %v1656_v58, %v7087_v24  ;;  %v8058_v58 = vld [vmem:[%s8175_s29 + $0x120] sm:$0xff] }
 0x149   : > { %v1685_v57 = vsel %vm325_vm10, %v1653_v59, %v7081_v63  ;;  %v1686_v28 = vsel %vm325_vm10, %v1654_v21, %v7082_v27  ;;  %v7095_v31 = vpop.permute.xlu1 %7094  ;;  %v1708_v56 = vpack.c.bf16 %v1688_v50, %v1687_v18 }
 0x14a   : > { %v7090_v34 = vpop.permute.xlu0 %7089  ;;  %v1707_v47 = vpack.c.bf16 %v1686_v28, %v1685_v57  ;;  %v7097_v62 = vunpack.i.h.bf16 %v7095_v31  ;;  %v7096_v51 = vunpack.i.l.bf16 %v7095_v31 }
 0x14b   : > { %v7092_v14 = vunpack.i.h.bf16 %v7090_v34  ;;  %v7091_v22 = vunpack.i.l.bf16 %v7090_v34 }
 0x14c   : > { %6490 = vmatprep.mubr.msk.bf16.mxu1 %vm1734_vm11, %v1707_v47  ;;  %v1462_v10 = vsel %vm1434_vm3, %v8055_v7, %v7097_v62  ;;  %v1461_v23 = vsel %vm1434_vm3, %v8056_v54, %v7096_v51 }
 0x14d   : > { %6491 = vmatmul.mubr.msk.bf16.gmra.mxu1 %vm1734_vm11, %v1708_v56  ;;  %v7105_v53 = vpop.permute.xlu1 %7104  ;;  %v1460_v41 = vsel %vm1434_vm3, %v8057_v6, %v7092_v14  ;;  %v1459_v27 = vsel %vm1434_vm3, %v8058_v58, %v7091_v22 }
 0x14e   : > { %v7100_v40 = vpop.permute.xlu0 %7099  ;;  %v7107_v12 = vunpack.i.h.bf16 %v7105_v53  ;;  %v7106_v46 = vunpack.i.l.bf16 %v7105_v53 }
 0x14f   : > { %v7102_v4 = vunpack.i.h.bf16 %v7100_v40  ;;  %v7101_v39 = vunpack.i.l.bf16 %v7100_v40 }
 0x150   : > { %v1494_v63 = vsel %vm1467_vm4, %v1461_v23, %v7106_v46  ;;  %v1495_v59 = vsel %vm1467_vm4, %v1462_v10, %v7107_v12 }
 0x151   : > { %v7115_v13 = vpop.permute.xlu1 %7114  ;;  %v1492_v18 = vsel %vm1467_vm4, %v1459_v27, %v7101_v39  ;;  %v1493_v50 = vsel %vm1467_vm4, %v1460_v41, %v7102_v4 }
 0x152   : > { %v7110_v43 = vpop.permute.xlu0 %7109  ;;  %v7117_v0 = vunpack.i.h.bf16 %v7115_v13  ;;  %v7116_v20 = vunpack.i.l.bf16 %v7115_v13 }
 0x153   : > { %v7112_v24 = vunpack.i.h.bf16 %v7110_v43  ;;  %v7111_v33 = vunpack.i.l.bf16 %v7110_v43 }
 0x154   : > { %v1527_v56 = vsel %vm1500_vm5, %v1494_v63, %v7116_v20  ;;  %v1528_v34 = vsel %vm1500_vm5, %v1495_v59, %v7117_v0 }
 0x155   : > { %v7125_v8 = vpop.permute.xlu1 %7124  ;;  %v1525_v40 = vsel %vm1500_vm5, %v1492_v18, %v7111_v33  ;;  %v1526_v13 = vsel %vm1500_vm5, %v1493_v50, %v7112_v24 }
 0x156   : > { %v7120_v42 = vpop.permute.xlu0 %7119  ;;  %v7127_v57 = vunpack.i.h.bf16 %v7125_v8  ;;  %v7126_v28 = vunpack.i.l.bf16 %v7125_v8 }
 0x157   : > { %v7122_v47 = vunpack.i.h.bf16 %v7120_v42  ;;  %v7121_v53 = vunpack.i.l.bf16 %v7120_v42 }
 0x158   : > { %v1560_v8 = vsel %vm1533_vm6, %v1527_v56, %v7126_v28  ;;  %v1561_v4 = vsel %vm1533_vm6, %v1528_v34, %v7127_v57  ;;  %v7981_v34 = vld [vmem:[%s12111_s3 + $0x78] sm:$0xff]  }
 0x159   : > { %v7135_v38 = vpop.permute.xlu1 %7134  ;;  %v1558_v42 = vsel %vm1533_vm6, %v1525_v40, %v7121_v53  ;;  %v1559_v7 = vsel %vm1533_vm6, %v1526_v13, %v7122_v47  ;;  %v7982_v47 = vld [vmem:[%s12111_s3 + $0x38] sm:$0xff]   ;;  %6090 = vmatprep.subr.bf16.mxu1 %v7981_v34 }
 0x15a   : > { %v7130_v45 = vpop.permute.xlu0 %7129  ;;  %v7137_v43 = vunpack.i.h.bf16 %v7135_v38  ;;  %v7136_v62 = vunpack.i.l.bf16 %v7135_v38  ;;  %6091 = vmatpush3.bf16.msra.mxu1 %v7982_v47  ;;  %v8061_v34 = vld [vmem:[%s8175_s29 + $0x158] sm:$0xff] }
 0x15b   : > { %v7132_v51 = vunpack.i.h.bf16 %v7130_v45  ;;  %v7131_v14 = vunpack.i.l.bf16 %v7130_v45 }
 0x15c   : > { %v1593_v38 = vsel %vm1566_vm7, %v1560_v8, %v7136_v62  ;;  %v1594_v45 = vsel %vm1566_vm7, %v1561_v4, %v7137_v43  ;;  %v7983_v8 = vld [vmem:[%s12111_s3 + $0x70] sm:$0xff]  }
 0x15d   : > { %v7145_v21 = vpop.permute.xlu1 %7144  ;;  %v1591_v33 = vsel %vm1566_vm7, %v1558_v42, %v7131_v14  ;;  %v1592_v6 = vsel %vm1566_vm7, %v1559_v7, %v7132_v51  ;;  %6092 = vmatprep.subr.bf16.mxu1 %v7983_v8  ;;  %v7984_v4 = vld [vmem:[%s12111_s3 + $0x30] sm:$0xff]   ;;  %v7986_v42 = vld [vmem:[%s12111_s3 + $0x28] sm:$0xff]  }
 0x15e   : > { %v7140_v31 = vpop.permute.xlu0 %7139  ;;  %v7147_v22 = vunpack.i.h.bf16 %v7145_v21  ;;  %v7146_v12 = vunpack.i.l.bf16 %v7145_v21  ;;  %6093 = vmatpush3.bf16.msra.mxu1 %v7984_v4  ;;  %v7991_v8 = vld [vmem:[%s12111_s3 + $0x50] sm:$0xff]  }
 0x15f   : > { %v7142_v39 = vunpack.i.h.bf16 %v7140_v31  ;;  %v7141_v20 = vunpack.i.l.bf16 %v7140_v31 }
 0x160   : > { %v1626_v41 = vsel %vm1599_vm8, %v1593_v38, %v7146_v12  ;;  %v1627_v58 = vsel %vm1599_vm8, %v1594_v45, %v7147_v22  ;;  %v7987_v38 = vld [vmem:[%s12111_s3 + $0x60] sm:$0xff]  }
 0x161   : > { %v7155_v46 = vpop.permute.xlu1 %7154  ;;  %v1624_v63 = vsel %vm1599_vm8, %v1591_v33, %v7141_v20  ;;  %v1625_v59 = vsel %vm1599_vm8, %v1592_v6, %v7142_v39 }
 0x162   : > { %v7150_v0 = vpop.permute.xlu0 %7149  ;;  %v7157_v10 = vunpack.i.h.bf16 %v7155_v46  ;;  %v7156_v54 = vunpack.i.l.bf16 %v7155_v46 }
 0x163   : > { %v7152_v23 = vunpack.i.h.bf16 %v7150_v0  ;;  %v7151_v24 = vunpack.i.l.bf16 %v7150_v0  ;;  %v7985_v0 = vld [vmem:[%s12111_s3 + $0x68] sm:$0xff]  }
 0x164   : > { %v1659_v57 = vsel %vm1632_vm9, %v1626_v41, %v7156_v54  ;;  %v1660_v28 = vsel %vm1632_vm9, %v1627_v58, %v7157_v10  ;;  %6094 = vmatprep.subr.bf16.mxu1 %v7985_v0 }
 0x165   : > { %v7165_v27 = vpop.permute.xlu1 %7164  ;;  %v1657_v53 = vsel %vm1632_vm9, %v1624_v63, %v7151_v24  ;;  %v1658_v40 = vsel %vm1632_vm9, %v1625_v59, %v7152_v23  ;;  %6095 = vmatpush3.bf16.msra.mxu1 %v7986_v42  ;;  %v7988_v24 = vld [vmem:[%s12111_s3 + $0x20] sm:$0xff]   ;;  %v8059_v63 = vld [vmem:[%s8175_s29 + $0x170] sm:$0xff] }
 0x166   : > { %v7167_v21 = vunpack.i.h.bf16 %v7165_v27  ;;  %v7166_v18 = vunpack.i.l.bf16 %v7165_v27  ;;  %v7160_v50 = vpop.permute.xlu0 %7159  ;;  %6096 = vmatprep.subr.bf16.mxu1 %v7987_v38 }
 0x167   : > { %v7162_v31 = vunpack.i.h.bf16 %v7160_v50  ;;  %v7161_v56 = vunpack.i.l.bf16 %v7160_v50 }
 0x168   : > { %v1691_v13 = vsel %vm325_vm10, %v1659_v57, %v7166_v18  ;;  %v1692_v43 = vsel %vm325_vm10, %v1660_v28, %v7167_v21  ;;  %v9390_v57 = vld [vmem:[%s12110_s2] ss:$0 sm:$0xff]  ;;  %v7989_v28 = vld [vmem:[%s12111_s3 + $0x58] sm:$0xff]  }
 0x169   : > { %v1689_v62 = vsel %vm325_vm10, %v1657_v53, %v7161_v56  ;;  %v1690_v51 = vsel %vm325_vm10, %v1658_v40, %v7162_v31  ;;  %v7175_v14 = vpop.permute.xlu1 %7174  ;;  %v1710_v22 = vpack.c.bf16 %v1692_v43, %v1691_v13  ;;  %6097 = vmatpush3.bf16.msra.mxu1 %v7988_v24  ;;  %v8060_v31 = vld [vmem:[%s8175_s29 + $0x168] sm:$0xff]  ;;  %v7990_v13 = vld [vmem:[%s12111_s3 + $0x18] sm:$0xff]   ;;  %v8062_v43 = vld [vmem:[%s8175_s29 + $0x150] sm:$0xff]  ;;  %s6070_s29 = sshll.u32 %s12365_s25, 8 }
 0x16a   : > { %v7170_v12 = vpop.permute.xlu0 %7169  ;;  %v1709_v46 = vpack.c.bf16 %v1690_v51, %v1689_v62  ;;  %v7177_v54 = vunpack.i.h.bf16 %v7175_v14  ;;  %v7176_v45 = vunpack.i.l.bf16 %v7175_v14  ;;  %6098 = vmatprep.subr.bf16.mxu1 %v7989_v28  ;;  %v7993_v24 = vld [vmem:[%s12111_s3 + $0x48] sm:$0xff]   ;;  %s12032_s10 = scalar_lea.vmem %s12115_s7, %s6070_s29 }
 0x16b   : > { %v7172_v23 = vunpack.i.h.bf16 %v7170_v12  ;;  %v7171_v33 = vunpack.i.l.bf16 %v7170_v12 }
 0x16c   : > { %6494 = vmatprep.mubr.msk.bf16.mxu1 %vm1734_vm11, %v1709_v46  ;;  %v1466_v59 = vsel %vm1434_vm3, %v8059_v63, %v7177_v54  ;;  %v1465_v56 = vsel %vm1434_vm3, %v8060_v31, %v7176_v45 }
 0x16d   : > { %6495 = vmatmul.mubr.msk.bf16.gmra.mxu1 %vm1734_vm11, %v1710_v22  ;;  %v7185_v39 = vpop.permute.xlu1 %7184  ;;  %v1464_v47 = vsel %vm1434_vm3, %v8061_v34, %v7172_v23  ;;  %v1463_v62 = vsel %vm1434_vm3, %v8062_v43, %v7171_v33 }
 0x16e   : > { %v7180_v20 = vpop.permute.xlu0 %7179  ;;  %v7187_v41 = vunpack.i.h.bf16 %v7185_v39  ;;  %v7186_v58 = vunpack.i.l.bf16 %v7185_v39  ;;  %6099 = vmatpush3.bf16.msra.mxu1 %v7990_v13 }
 0x16f   : > { %v7182_v21 = vunpack.i.h.bf16 %v7180_v20  ;;  %v7181_v18 = vunpack.i.l.bf16 %v7180_v20  ;;  %6100 = vmatprep.subr.bf16.mxu1 %v7991_v8 }
 0x170   : > { %v1498_v4 = vsel %vm1467_vm4, %v1465_v56, %v7186_v58  ;;  %v1499_v39 = vsel %vm1467_vm4, %v1466_v59, %v7187_v41 }
 0x171   : > { %v7195_v7 = vpop.permute.xlu1 %7194  ;;  %v1497_v54 = vsel %vm1467_vm4, %v1464_v47, %v7182_v21  ;;  %v7994_v47 = vld [vmem:[%s12111_s3 + $0x8] sm:$0xff]  }
 0x172   : > { %v7190_v10 = vpop.permute.xlu0 %7189  ;;  %v7196_v50 = vunpack.i.l.bf16 %v7195_v7  ;;  %v7197_v53 = vunpack.i.h.bf16 %v7195_v7  ;;  %v7992_v7 = vld [vmem:[%s12111_s3 + $0x10] sm:$0xff]  }
 0x173   : > { %v7191_v40 = vunpack.i.l.bf16 %v7190_v10  ;;  %v7192_v51 = vunpack.i.h.bf16 %v7190_v10  ;;  %v1496_v10 = vsel %vm1467_vm4, %v1463_v62, %v7181_v18  ;;  %6101 = vmatpush3.bf16.msra.mxu1 %v7992_v7 }
 0x174   : > { %v1531_v38 = vsel %vm1500_vm5, %v1498_v4, %v7196_v50  ;;  %v1532_v33 = vsel %vm1500_vm5, %v1499_v39, %v7197_v53  ;;  %6102 = vmatprep.subr.bf16.mxu1 %v7993_v24 }
 0x175   : > { %v7205_v6 = vpop.permute.xlu1 %7204  ;;  %v1530_v58 = vsel %vm1500_vm5, %v1497_v54, %v7192_v51 }
 0x176   : > { %v7200_v27 = vpop.permute.xlu0 %7199  ;;  %v7207_v14 = vunpack.i.h.bf16 %v7205_v6  ;;  %v7206_v22 = vunpack.i.l.bf16 %v7205_v6  ;;  %v1529_v6 = vsel %vm1500_vm5, %v1496_v10, %v7191_v40 }
 0x177   : > { %v7201_v20 = vunpack.i.l.bf16 %v7200_v27  ;;  %v7202_v45 = vunpack.i.h.bf16 %v7200_v27  ;;  %6103 = vmatpush3.bf16.msra.mxu1 %v7994_v47 }
 0x178   : > { %v1564_v63 = vsel %vm1533_vm6, %v1531_v38, %v7206_v22  ;;  %v1565_v59 = vsel %vm1533_vm6, %v1532_v33, %v7207_v14 }
 0x179   : > { %v6472_v12 = vpop.f32.mrf.mxu0  ;;  %v9404_v46 = vpop.permute.xlu1 %7214  ;;  %v1562_v50 = vsel %vm1533_vm6, %v1529_v6, %v7201_v20  ;;  %v1563_v53 = vsel %vm1533_vm6, %v1530_v58, %v7202_v45  ;;  %v7995_v45 = vld [vmem:[%s12111_s3 + $0x40] sm:$0xff]  }
 0x17a   : > { %v1830_v0 = vadd.f32 %v6472_v12, %v9390_v57  ;;  %v9412_v42 = vpop.permute.xlu0 %7209  ;;  %v7216_v31 = vunpack.i.l.bf16 %v9404_v46  ;;  %v7217_v40 = vunpack.i.h.bf16 %v9404_v46  ;;  %6104 = vmatprep.subr.bf16.mxu1 %v7995_v45 }
 0x17b   : > { %v1821_v23 = vpop.f32.mrf.mxu0  ;;  %v7212_v62 = vunpack.i.h.bf16 %v9412_v42  ;;  %v7211_v51 = vunpack.i.l.bf16 %v9412_v42 }
 0x17c   : > { %vm1950_vm14 = vcmp.gt.f32.partialorder %v1830_v0, 0.0  ;;  %v1982_v41 = vmul.f32 0.1, %v1830_v0  ;;  %v1822_v27 = vadd.f32 %v9390_v57, %v1821_v23  ;;  %v1597_v20 = vsel %vm1566_vm7, %v1564_v63, %v7216_v31 }
 0x17d   : > { %v6473_v21 = vpop.f32.mrf.mxu0  ;;  %v7225_v18 = vpop.permute.xlu1 %7224  ;;  %v1598_v23 = vsel %vm1566_vm7, %v1565_v59, %v7217_v40  ;;  %v1595_v24 = vsel %vm1566_vm7, %v1562_v50, %v7211_v51  ;;  %v1596_v58 = vsel %vm1566_vm7, %v1563_v53, %v7212_v62 }
 0x17e   : > { %v2014_v28 = vsel %vm1950_vm14, %v1830_v0, %v1982_v41  ;;  %v1833_v56 = vadd.f32 %v6473_v21, %v9390_v57  ;;  %v7220_v34 = vpop.permute.xlu0 %7219  ;;  %vm1948_vm15 = vcmp.gt.f32.partialorder %v1822_v27, 0.0  ;;  %v1980_v13 = vmul.f32 0.1, %v1822_v27  ;;  %v7996_v41 = vld [vmem:[%s12111_s3] sm:$0xff]  }
 0x17f   : > { %2047 = vst.msk [vmem:[#allocation2 + $0x31] sm:$0xff] %vm280_vm12, %v2014_v28  ;;  %v1824_v43 = vpop.f32.mrf.mxu0  ;;  %v7227_v12 = vunpack.i.h.bf16 %v7225_v18  ;;  %v7226_v8 = vunpack.i.l.bf16 %v7225_v18  ;;  %v7222_v0 = vunpack.i.h.bf16 %v7220_v34  ;;  %v7221_v7 = vunpack.i.l.bf16 %v7220_v34  ;;  %6105 = vmatpush3.bf16.msra.mxu1 %v7996_v41 }
 0x180   : > { %vm1951_vm2 = vcmp.gt.f32.partialorder %v1833_v56, 0.0  ;;  %v1983_v14 = vmul.f32 0.1, %v1833_v56  ;;  %v2012_v22 = vsel %vm1948_vm15, %v1822_v27, %v1980_v13  ;;  %v1825_v4 = vadd.f32 %v9390_v57, %v1824_v43 }
 0x181   : > { %v7235_v39 = vpop.permute.xlu1 %7234  ;;  %2045 = vst.msk [vmem:[#allocation2 + $0x19] sm:$0xff] %vm280_vm12, %v2012_v22  ;;  %v1630_v63 = vsel %vm1599_vm8, %v1597_v20, %v7226_v8  ;;  %v1631_v27 = vsel %vm1599_vm8, %v1598_v23, %v7227_v12  ;;  %v1628_v28 = vsel %vm1599_vm8, %v1595_v24, %v7221_v7  ;;  %v1629_v59 = vsel %vm1599_vm8, %v1596_v58, %v7222_v0 }
 0x182   : > { %v2015_v46 = vsel %vm1951_vm2, %v1833_v56, %v1983_v14  ;;  %v7230_v10 = vpop.permute.xlu0 %7229  ;;  %vm1949_vm3 = vcmp.gt.f32.partialorder %v1825_v4, 0.0  ;;  %v1981_v42 = vmul.f32 0.1, %v1825_v4  ;;  %v7237_v54 = vunpack.i.h.bf16 %v7235_v39 }
 0x183   : > { %2048 = vst.msk [vmem:[#allocation2 + $0x39] sm:$0xff] %vm280_vm12, %v2015_v46  ;;  %v7236_v38 = vunpack.i.l.bf16 %v7235_v39  ;;  %v7232_v33 = vunpack.i.h.bf16 %v7230_v10  ;;  %v7231_v6 = vunpack.i.l.bf16 %v7230_v10 }
 0x184   : > { %v2013_v21 = vsel %vm1949_vm3, %v1825_v4, %v1981_v42  ;;  %v1664_v47 = vsel %vm1632_vm9, %v1631_v27, %v7237_v54 }
 0x185   : > { %v7245_v18 = vpop.permute.xlu1 %7244  ;;  %2046 = vst.msk [vmem:[#allocation2 + $0x21] sm:$0xff] %vm280_vm12, %v2013_v21  ;;  %v1663_v34 = vsel %vm1632_vm9, %v1630_v63, %v7236_v38  ;;  %v1661_v13 = vsel %vm1632_vm9, %v1628_v28, %v7231_v6  ;;  %v1662_v43 = vsel %vm1632_vm9, %v1629_v59, %v7232_v33 }
 0x186   : > { %v7247_v50 = vunpack.i.h.bf16 %v7245_v18  ;;  %v7246_v31 = vunpack.i.l.bf16 %v7245_v18  ;;  %v7240_v56 = vpop.permute.xlu0 %7239  ;;  %v9479_v10 = vld [vmem:[#allocation2 + $0x30] sm:$0xff] }
 0x187   : > { %v7242_v53 = vunpack.i.h.bf16 %v7240_v56  ;;  %v7241_v40 = vunpack.i.l.bf16 %v7240_v56  ;;  %v2262_v6 = vrot.slane %v9479_v10, 1 }
 0x188   : > { %v1695_v62 = vsel %vm325_vm10, %v1663_v34, %v7246_v31  ;;  %v1696_v51 = vsel %vm325_vm10, %v1664_v47, %v7247_v50  ;;  %v9466_v4 = vld [vmem:[#allocation2 + $0x18] sm:$0xff] }
 0x189   : > { %v1693_v14 = vsel %vm325_vm10, %v1661_v13, %v7241_v40  ;;  %v1694_v22 = vsel %vm325_vm10, %v1662_v43, %v7242_v53  ;;  %v1712_v12 = vpack.c.bf16 %v1696_v51, %v1695_v62  ;;  %v2257_v7 = vrot.slane %v9466_v4, 1 }
 0x18a   : > { %v1711_v8 = vpack.c.bf16 %v1694_v22, %v1693_v14  ;;  %v9468_v39 = vld [vmem:[#allocation2 + $0x38] sm:$0xff]  ;;  %v9470_v20 = vld [vmem:[#allocation2 + $0x40] sm:$0xff] }
 0x18b   : > { %v2263_v42 = vrot.slane %v9468_v39, 1  ;;  %v2265_v23 = vrot.slane %v9470_v20, 1  ;;  %v7258_v58 = vpack.i.bf16 %v9468_v39, %v9479_v10 }
 0x18c   : > { %6498 = vmatprep.mubr.msk.bf16.mxu1 %vm1734_vm11, %v1711_v8  ;;  %v9474_v46 = vld [vmem:[#allocation2 + $0x20] sm:$0xff]  ;;  %v9476_v0 = vld [vmem:[#allocation2 + $0x28] sm:$0xff] }
 0x18d   : > { %6499 = vmatmul.mubr.msk.bf16.gmra.mxu1 %vm1734_vm11, %v1712_v12  ;;  %v7248_v54 = vpack.i.bf16 %v9474_v46, %v9466_v4  ;;  %v2258_v38 = vrot.slane %v9474_v46, 1  ;;  %v2260_v45 = vrot.slane %v9476_v0, 1  ;;  %v9500_v63 = vsel %vm478_vm0, %v2262_v6, %v2263_v42 }
 0x18e   : > { %v9503_v27 = vsel %vm478_vm0, %v2263_v42, %v2265_v23  ;;  %v2338_v44 = vrot.slane %v9474_v46, 2 }
 0x18f   : > { %7249 = vrot.lane.b32.xlu0 %v7248_v54, %s8117_s21  ;;  %v9489_v24 = vsel %vm478_vm0, %v2257_v7, %v2258_v38  ;;  %v9492_v33 = vsel %vm478_vm0, %v2258_v38, %v2260_v45  ;;  %v7273_v18 = vpack.i.bf16 %v9503_v27, %v9500_v63 }
 0x190   : > { %v7263_v41 = vpack.i.bf16 %v9492_v33, %v9489_v24 }
 0x192   : > { %7264 = vrot.lane.b32.xlu1 %v7263_v41, %s8117_s21 }
 0x193   : > { %7259 = vrot.lane.b32.xlu0 %v7258_v58, %s8117_s21 }
 0x195   : > { %v6476_v21 = vpop.f32.mrf.mxu0 }
 0x196   : > { %v1846_v28 = vadd.f32 %v6476_v21, %v9390_v57  ;;  %7274 = vrot.lane.b32.xlu1 %v7273_v18, %s8117_s21 }
 0x197   : > { %v1837_v59 = vpop.f32.mrf.mxu0 }
 0x198   : > { %vm1954_vm4 = vcmp.gt.f32.partialorder %v1846_v28, 0.0  ;;  %v1986_v50 = vmul.f32 0.1, %v1846_v28  ;;  %v1838_v31 = vadd.f32 %v9390_v57, %v1837_v59 }
 0x199   : > { %v6477_v56 = vpop.f32.mrf.mxu0 }
 0x19a   : > { %v2018_v34 = vsel %vm1954_vm4, %v1846_v28, %v1986_v50  ;;  %vm1952_vm5 = vcmp.gt.f32.partialorder %v1838_v31, 0.0  ;;  %v1984_v47 = vmul.f32 0.1, %v1838_v31  ;;  %v1849_v53 = vadd.f32 %v6477_v56, %v9390_v57 }
 0x19b   : > { %2051 = vst.msk [vmem:[#allocation2 + $0x61] sm:$0xff] %vm280_vm12, %v2018_v34  ;;  %v1840_v40 = vpop.f32.mrf.mxu0 }
 0x19c   : > { %v2016_v13 = vsel %vm1952_vm5, %v1838_v31, %v1984_v47  ;;  %vm1955_vm6 = vcmp.gt.f32.partialorder %v1849_v53, 0.0  ;;  %v1987_v43 = vmul.f32 0.1, %v1849_v53  ;;  %v1841_v62 = vadd.f32 %v9390_v57, %v1840_v40 }
 0x19d   : > { %2049 = vst.msk [vmem:[#allocation2 + $0x49] sm:$0xff] %vm280_vm12, %v2016_v13 }
 0x19e   : > { %v2019_v51 = vsel %vm1955_vm6, %v1849_v53, %v1987_v43  ;;  %vm1953_vm7 = vcmp.gt.f32.partialorder %v1841_v62, 0.0  ;;  %v1985_v14 = vmul.f32 0.1, %v1841_v62 }
 0x19f   : > { %2052 = vst.msk [vmem:[#allocation2 + $0x69] sm:$0xff] %vm280_vm12, %v2019_v51 }
 0x1a0   : > { %v2017_v22 = vsel %vm1953_vm7, %v1841_v62, %v1985_v14 }
 0x1a1   : > { %2050 = vst.msk [vmem:[#allocation2 + $0x51] sm:$0xff] %vm280_vm12, %v2017_v22 }
 0x1a2   : > { %v9529_v45 = vld [vmem:[#allocation2 + $0x60] sm:$0xff] }
 0x1a3   : > { %v2272_v59 = vrot.slane %v9529_v45, 1 }
 0x1a4   : > { %v9518_v12 = vld [vmem:[#allocation2 + $0x48] sm:$0xff] }
 0x1a5   : > { %v2267_v38 = vrot.slane %v9518_v12, 1 }
 0x1a6   : > { %v9520_v8 = vld [vmem:[#allocation2 + $0x68] sm:$0xff]  ;;  %v9522_v7 = vld [vmem:[#allocation2 + $0x70] sm:$0xff] }
 0x1a7   : > { %v2273_v23 = vrot.slane %v9520_v8, 1  ;;  %v2275_v21 = vrot.slane %v9522_v7, 1  ;;  %v7278_v31 = vpack.i.bf16 %v9520_v8, %v9529_v45 }
 0x1a8   : > { %v9524_v42 = vld [vmem:[#allocation2 + $0x50] sm:$0xff]  ;;  %v9526_v54 = vld [vmem:[#allocation2 + $0x58] sm:$0xff] }
 0x1a9   : > { %v7268_v6 = vpack.i.bf16 %v9524_v42, %v9518_v12  ;;  %v2268_v41 = vrot.slane %v9524_v42, 1  ;;  %v2270_v58 = vrot.slane %v9526_v54, 1  ;;  %v9550_v56 = vsel %vm478_vm0, %v2272_v59, %v2273_v23 }
 0x1aa   : > { %12234 = vst [vmem:[#allocation37_spill] sm:$0xff] %v9550_v56  ;;  %v9553_v34 = vsel %vm478_vm0, %v2273_v23, %v2275_v21 }
 0x1ab   : > { %7269 = vrot.lane.b32.xlu0 %v7268_v6, %s8117_s21  ;;  %v9539_v18 = vsel %vm478_vm0, %v2267_v38, %v2268_v41  ;;  %v9542_v28 = vsel %vm478_vm0, %v2268_v41, %v2270_v58  ;;  %12235 = vst [vmem:[#allocation38_spill] sm:$0xff] %v9553_v34  ;;  %v7293_v47 = vpack.i.bf16 %v9553_v34, %v9550_v56 }
 0x1ac   : > { %12233 = vst [vmem:[#allocation36_spill] sm:$0xff] %v9542_v28  ;;  %v7283_v50 = vpack.i.bf16 %v9542_v28, %v9539_v18 }
 0x1ae   : > { %7284 = vrot.lane.b32.xlu1 %v7283_v50, %s8117_s21 }
 0x1af   : > { %7279 = vrot.lane.b32.xlu0 %v7278_v31, %s8117_s21 }
 0x1b1   : > { %v6480_v53 = vpop.f32.mrf.mxu0 }
 0x1b2   : > { %v1862_v40 = vadd.f32 %v6480_v53, %v9390_v57  ;;  %7294 = vrot.lane.b32.xlu1 %v7293_v47, %s8117_s21 }
 0x1b3   : > { %v1853_v13 = vpop.f32.mrf.mxu0 }
 0x1b4   : > { %vm1958_vm8 = vcmp.gt.f32.partialorder %v1862_v40, 0.0  ;;  %v1990_v43 = vmul.f32 0.1, %v1862_v40  ;;  %v1854_v62 = vadd.f32 %v9390_v57, %v1853_v13 }
 0x1b5   : > { %v6481_v51 = vpop.f32.mrf.mxu0 }
 0x1b6   : > { %v2022_v14 = vsel %vm1958_vm8, %v1862_v40, %v1990_v43  ;;  %vm1956_vm9 = vcmp.gt.f32.partialorder %v1854_v62, 0.0  ;;  %v1988_v22 = vmul.f32 0.1, %v1854_v62  ;;  %v1865_v38 = vadd.f32 %v6481_v51, %v9390_v57 }
 0x1b7   : > { %2055 = vst.msk [vmem:[#allocation2 + $0x91] sm:$0xff] %vm280_vm12, %v2022_v14  ;;  %v1856_v23 = vpop.f32.mrf.mxu0 }
 0x1b8   : > { %v2020_v6 = vsel %vm1956_vm9, %v1854_v62, %v1988_v22  ;;  %vm1959_vm11 = vcmp.gt.f32.partialorder %v1865_v38, 0.0  ;;  %v1991_v41 = vmul.f32 0.1, %v1865_v38  ;;  %v1857_v58 = vadd.f32 %v9390_v57, %v1856_v23 }
 0x1b9   : > { %2053 = vst.msk [vmem:[#allocation2 + $0x79] sm:$0xff] %vm280_vm12, %v2020_v6 }
 0x1ba   : > { %v2023_v21 = vsel %vm1959_vm11, %v1865_v38, %v1991_v41  ;;  %vm1957_vm13 = vcmp.gt.f32.partialorder %v1857_v58, 0.0  ;;  %v1989_v59 = vmul.f32 0.1, %v1857_v58 }
 0x1bb   : > { %2056 = vst.msk [vmem:[#allocation2 + $0x99] sm:$0xff] %vm280_vm12, %v2023_v21 }
 0x1bc   : > { %v2021_v50 = vsel %vm1957_vm13, %v1857_v58, %v1989_v59 }
 0x1bd   : > { %2054 = vst.msk [vmem:[#allocation2 + $0x81] sm:$0xff] %vm280_vm12, %v2021_v50 }
 0x1be   : > { %v9579_v62 = vld [vmem:[#allocation2 + $0x90] sm:$0xff] }
 0x1bf   : > { %v2282_v58 = vrot.slane %v9579_v62, 1 }
 0x1c0   : > { %v9568_v31 = vld [vmem:[#allocation2 + $0x78] sm:$0xff] }
 0x1c1   : > { %v2277_v43 = vrot.slane %v9568_v31, 1 }
 0x1c2   : > { %v9570_v47 = vld [vmem:[#allocation2 + $0x98] sm:$0xff]  ;;  %v9572_v53 = vld [vmem:[#allocation2 + $0xa0] sm:$0xff] }
 0x1c3   : > { %v2283_v51 = vrot.slane %v9570_v47, 1  ;;  %v2285_v23 = vrot.slane %v9572_v53, 1  ;;  %v7298_v59 = vpack.i.bf16 %v9570_v47, %v9579_v62 }
 0x1c4   : > { %v9574_v40 = vld [vmem:[#allocation2 + $0x80] sm:$0xff]  ;;  %v9576_v13 = vld [vmem:[#allocation2 + $0x88] sm:$0xff] }
 0x1c5   : > { %v7288_v14 = vpack.i.bf16 %v9574_v40, %v9568_v31  ;;  %v2278_v22 = vrot.slane %v9574_v40, 1  ;;  %v2280_v38 = vrot.slane %v9576_v13, 1  ;;  %v9600_v50 = vsel %vm478_vm0, %v2282_v58, %v2283_v51 }
 0x1c6   : > { %12238 = vst [vmem:[#allocation41_spill] sm:$0xff] %v9600_v50  ;;  %v9603_v11 = vsel %vm478_vm0, %v2283_v51, %v2285_v23 }
 0x1c7   : > { %7289 = vrot.lane.b32.xlu0 %v7288_v14, %s8117_s21  ;;  %v9589_v6 = vsel %vm478_vm0, %v2277_v43, %v2278_v22  ;;  %v9592_v41 = vsel %vm478_vm0, %v2278_v22, %v2280_v38  ;;  %12239 = vst [vmem:[#allocation42_spill] sm:$0xff] %v9603_v11  ;;  %v7313_v43 = vpack.i.bf16 %v9603_v11, %v9600_v50  ;;  %v2340_v50 = vrot.slane %v9476_v0, 2 }
 0x1c8   : > { %12236 = vst [vmem:[#allocation39_spill] sm:$0xff] %v9589_v6  ;;  %12237 = vst [vmem:[#allocation40_spill] sm:$0xff] %v9592_v41  ;;  %v7303_v21 = vpack.i.bf16 %v9592_v41, %v9589_v6 }
 0x1ca   : > { %7304 = vrot.lane.b32.xlu1 %v7303_v21, %s8117_s21 }
 0x1cb   : > { %7299 = vrot.lane.b32.xlu0 %v7298_v59, %s8117_s21 }
 0x1cd   : > { %v6484_v14 = vpop.f32.mrf.mxu0 }
 0x1ce   : > { %v1878_v22 = vadd.f32 %v6484_v14, %v9390_v57  ;;  %7314 = vrot.lane.b32.xlu1 %v7313_v43, %s8117_s21 }
 0x1cf   : > { %v1869_v38 = vpop.f32.mrf.mxu0 }
 0x1d0   : > { %vm1962_vm14 = vcmp.gt.f32.partialorder %v1878_v22, 0.0  ;;  %v1994_v17 = vmul.f32 0.1, %v1878_v22  ;;  %v1870_v58 = vadd.f32 %v9390_v57, %v1869_v38 }
 0x1d1   : > { %v6485_v25 = vpop.f32.mrf.mxu0 }
 0x1d2   : > { %v2026_v51 = vsel %vm1962_vm14, %v1878_v22, %v1994_v17  ;;  %vm1960_vm15 = vcmp.gt.f32.partialorder %v1870_v58, 0.0  ;;  %v1992_v23 = vmul.f32 0.1, %v1870_v58  ;;  %v1881_v21 = vadd.f32 %v6485_v25, %v9390_v57 }
 0x1d3   : > { %2059 = vst.msk [vmem:[#allocation2 + $0xc1] sm:$0xff] %vm280_vm12, %v2026_v51  ;;  %v1872_v59 = vpop.f32.mrf.mxu0 }
 0x1d4   : > { %v2024_v52 = vsel %vm1960_vm15, %v1870_v58, %v1992_v23  ;;  %vm1963_vm2 = vcmp.gt.f32.partialorder %v1881_v21, 0.0  ;;  %v1995_v35 = vmul.f32 0.1, %v1881_v21  ;;  %v1873_v14 = vadd.f32 %v9390_v57, %v1872_v59 }
 0x1d5   : > { %2057 = vst.msk [vmem:[#allocation2 + $0xa9] sm:$0xff] %vm280_vm12, %v2024_v52 }
 0x1d6   : > { %v2027_v43 = vsel %vm1963_vm2, %v1881_v21, %v1995_v35  ;;  %vm1961_vm3 = vcmp.gt.f32.partialorder %v1873_v14, 0.0  ;;  %v1993_v2 = vmul.f32 0.1, %v1873_v14 }
 0x1d7   : > { %2060 = vst.msk [vmem:[#allocation2 + $0xc9] sm:$0xff] %vm280_vm12, %v2027_v43 }
 0x1d8   : > { %v2025_v17 = vsel %vm1961_vm3, %v1873_v14, %v1993_v2 }
 0x1d9   : > { %2058 = vst.msk [vmem:[#allocation2 + $0xb1] sm:$0xff] %vm280_vm12, %v2025_v17 }
 0x1da   : > { %v9629_v35 = vld [vmem:[#allocation2 + $0xc0] sm:$0xff] }
 0x1db   : > { %v2292_v1 = vrot.slane %v9629_v35, 1 }
 0x1dc   : > { %v9618_v22 = vld [vmem:[#allocation2 + $0xa8] sm:$0xff] }
 0x1dd   : > { %v2287_v52 = vrot.slane %v9618_v22, 1 }
 0x1de   : > { %v9620_v25 = vld [vmem:[#allocation2 + $0xc8] sm:$0xff]  ;;  %v9622_v38 = vld [vmem:[#allocation2 + $0xd0] sm:$0xff] }
 0x1df   : > { %v2293_v23 = vrot.slane %v9620_v25, 1  ;;  %v2295_v14 = vrot.slane %v9622_v38, 1  ;;  %v7318_v32 = vpack.i.bf16 %v9620_v25, %v9629_v35 }
 0x1e0   : > { %v9624_v58 = vld [vmem:[#allocation2 + $0xb0] sm:$0xff]  ;;  %v9626_v51 = vld [vmem:[#allocation2 + $0xb8] sm:$0xff] }
 0x1e1   : > { %v7308_v2 = vpack.i.bf16 %v9624_v58, %v9618_v22  ;;  %v2288_v21 = vrot.slane %v9624_v58, 1  ;;  %v2290_v59 = vrot.slane %v9626_v51, 1  ;;  %v9650_v5 = vsel %vm478_vm0, %v2292_v1, %v2293_v23 }
 0x1e2   : > { %12242 = vst [vmem:[#allocation45_spill] sm:$0xff] %v9650_v5  ;;  %v9653_v26 = vsel %vm478_vm0, %v2293_v23, %v2295_v14 }
 0x1e3   : > { %7309 = vrot.lane.b32.xlu0 %v7308_v2, %s8117_s21  ;;  %v9639_v43 = vsel %vm478_vm0, %v2287_v52, %v2288_v21  ;;  %v9642_v17 = vsel %vm478_vm0, %v2288_v21, %v2290_v59  ;;  %12243 = vst [vmem:[#allocation46_spill] sm:$0xff] %v9653_v26  ;;  %v7333_v52 = vpack.i.bf16 %v9653_v26, %v9650_v5  ;;  %v9663_v2 = vld [vmem:[%s12111_s3 + $0x118] sm:$0xff]  }
 0x1e4   : > { %12240 = vst [vmem:[#allocation43_spill] sm:$0xff] %v9639_v43  ;;  %12241 = vst [vmem:[#allocation44_spill] sm:$0xff] %v9642_v17  ;;  %v7323_v37 = vpack.i.bf16 %v9642_v17, %v9639_v43  ;;  %6502 = vmatprep.subr.bf16.mxu1 %v9663_v2 }
 0x1e6   : > { %7324 = vrot.lane.b32.xlu1 %v7323_v37, %s8117_s21 }
 0x1e7   : > { %7319 = vrot.lane.b32.xlu0 %v7318_v32, %s8117_s21 }
 0x1ea   : > { %7334 = vrot.lane.b32.xlu1 %v7333_v52, %s8117_s21 }
 0x1ed   : > { %v6488_v21 = vpop.f32.mrf.mxu1 }
 0x1ee   : > { %v1894_v1 = vadd.f32 %v6488_v21, %v9390_v57 }
 0x1ef   : > { %v1885_v23 = vpop.f32.mrf.mxu1 }
 0x1f0   : > { %vm1966_vm4 = vcmp.gt.f32.partialorder %v1894_v1, 0.0  ;;  %v1998_v37 = vmul.f32 0.1, %v1894_v1  ;;  %v1886_v32 = vadd.f32 %v9390_v57, %v1885_v23  ;;  %v7255_v23 = vpop.permute.xlu1 %7254 }
 0x1f1   : > { %v6489_v59 = vpop.f32.mrf.mxu1 }
 0x1f2   : > { %v2030_v14 = vsel %vm1966_vm4, %v1894_v1, %v1998_v37  ;;  %vm1964_vm5 = vcmp.gt.f32.partialorder %v1886_v32, 0.0  ;;  %v1996_v9 = vmul.f32 0.1, %v1886_v32  ;;  %v1897_v52 = vadd.f32 %v6489_v59, %v9390_v57  ;;  %v8063_v37 = vld [vmem:[#allocation2] sm:$0xff] }
 0x1f3   : > { %2063 = vst.msk [vmem:[#allocation2 + $0xf1] sm:$0xff] %vm280_vm12, %v2030_v14  ;;  %v1888_v3 = vpop.f32.mrf.mxu1  ;;  %v2332_v59 = vrot.slane %v8063_v37, 2  ;;  %v8064_v14 = vld [vmem:[#allocation2 + $0x8] sm:$0xff] }
 0x1f4   : > { %v2028_v29 = vsel %vm1964_vm5, %v1886_v32, %v1996_v9  ;;  %vm1967_vm6 = vcmp.gt.f32.partialorder %v1897_v52, 0.0  ;;  %v1999_v19 = vmul.f32 0.1, %v1897_v52  ;;  %v1889_v55 = vadd.f32 %v9390_v57, %v1888_v3 }
 0x1f5   : > { %2061 = vst.msk [vmem:[#allocation2 + $0xd9] sm:$0xff] %vm280_vm12, %v2028_v29  ;;  %v2333_v61 = vrot.slane %v8064_v14, 2  ;;  %v7257_v9 = vunpack.i.h.bf16 %v7255_v23  ;;  %v7256_v32 = vunpack.i.l.bf16 %v7255_v23  ;;  %v8065_v29 = vld [vmem:[#allocation2 + $0x10] sm:$0xff] }
 0x1f6   : > { %v2031_v21 = vsel %vm1967_vm6, %v1897_v52, %v1999_v19  ;;  %vm1965_vm7 = vcmp.gt.f32.partialorder %v1889_v55, 0.0  ;;  %v1997_v49 = vmul.f32 0.1, %v1889_v55  ;;  %v2335_v19 = vrot.slane %v8065_v29, 2 }
 0x1f7   : > { %2064 = vst.msk [vmem:[#allocation2 + $0xf9] sm:$0xff] %vm280_vm12, %v2031_v21  ;;  %v2806_v21 = vsel %vm280_vm12, %v8063_v37, %v7256_v32  ;;  %v2337_v32 = vrot.slane %v9466_v4, 2 }
 0x1f8   : > { %v2029_v1 = vsel %vm1965_vm7, %v1889_v55, %v1997_v49  ;;  %v2334_v49 = vsel %vm559_vm1, %v2332_v59, %v2333_v61  ;;  %v2807_v55 = vsel %vm280_vm12, %v8064_v14, %v7257_v9  ;;  %v2336_v37 = vsel %vm559_vm1, %v2333_v61, %v2335_v19 }
 0x1f9   : > { %2062 = vst.msk [vmem:[#allocation2 + $0xe1] sm:$0xff] %vm280_vm12, %v2029_v1  ;;  %v2906_v11 = vpack.c.bf16 %v2807_v55, %v2806_v21  ;;  %v9723_v0 = vsel %vm559_vm1, %v2337_v32, %v2338_v44 }
 0x1fa   : > { %v9680_v36 = vld [vmem:[#allocation2 + $0xf0] sm:$0xff] }
 0x1fb   : > { %v2302_v9 = vrot.slane %v9680_v36, 1 }
 0x1fc   : > { %v9674_v60 = vld [vmem:[#allocation2 + $0xd8] sm:$0xff] }
 0x1fd   : > { %v2297_v23 = vrot.slane %v9674_v60, 1 }
 0x1fe   : > { %v9676_v3 = vld [vmem:[#allocation2 + $0xf8] sm:$0xff]  ;;  %v9678_v52 = vld [vmem:[#allocation2 + $0x100] sm:$0xff] }
 0x1ff   : > { %v2303_v16 = vrot.slane %v9676_v3, 1  ;;  %v2305_v59 = vrot.slane %v9678_v52, 1  ;;  %v7338_v19 = vpack.i.bf16 %v9676_v3, %v9680_v36 }
 0x200   : > { %v9685_v1 = vld [vmem:[#allocation2 + $0xe0] sm:$0xff]  ;;  %v9687_v30 = vld [vmem:[#allocation2 + $0xe8] sm:$0xff] }
 0x201   : > { %v7328_v29 = vpack.i.bf16 %v9685_v1, %v9674_v60  ;;  %v2298_v15 = vrot.slane %v9685_v1, 1  ;;  %v2300_v48 = vrot.slane %v9687_v30, 1  ;;  %v7250_v14 = vpop.permute.xlu0 %7249 }
 0x202   : > { %v7252_v26 = vunpack.i.h.bf16 %v7250_v14  ;;  %v7251_v5 = vunpack.i.l.bf16 %v7250_v14 }
 0x203   : > { %7329 = vrot.lane.b32.xlu0 %v7328_v29, %s8117_s21  ;;  %v9702_v17 = vsel %vm478_vm0, %v2297_v23, %v2298_v15  ;;  %v9705_v43 = vsel %vm478_vm0, %v2298_v15, %v2300_v48  ;;  %v9715_v23 = vsel %vm478_vm0, %v2302_v9, %v2303_v16  ;;  %v9718_v15 = vsel %vm478_vm0, %v2303_v16, %v2305_v59 }
 0x204   : > { %12244 = vst [vmem:[#allocation47_spill] sm:$0xff] %v9702_v17  ;;  %12245 = vst [vmem:[#allocation48_spill] sm:$0xff] %v9705_v43  ;;  %v7343_v61 = vpack.i.bf16 %v9705_v43, %v9702_v17  ;;  %v7265_v41 = vpop.permute.xlu1 %7264  ;;  %v2838_v14 = vsel %vm280_vm12, %v2334_v49, %v7251_v5  ;;  %v2839_v29 = vsel %vm280_vm12, %v2336_v37, %v7252_v26  ;;  %v7998_v26 = vld [vmem:[%s12111_s3 + $0x110] sm:$0xff]  }
 0x205   : > { %12246 = vst [vmem:[#allocation49_spill] sm:$0xff] %v9715_v23  ;;  %12247 = vst [vmem:[#allocation50_spill] sm:$0xff] %v9718_v15  ;;  %v7260_v48 = vpop.permute.xlu0 %7259  ;;  %v2907_v55 = vpack.c.bf16 %v2839_v29, %v2838_v14  ;;  %v7267_v5 = vunpack.i.h.bf16 %v7265_v41  ;;  %v7266_v49 = vunpack.i.l.bf16 %v7265_v41  ;;  %v7353_v16 = vpack.i.bf16 %v9718_v15, %v9715_v23 }
 0x206   : > { %7344 = vrot.lane.b32.xlu1 %v7343_v61, %s8117_s21  ;;  %v7262_v21 = vunpack.i.h.bf16 %v7260_v48  ;;  %v7261_v43 = vunpack.i.l.bf16 %v7260_v48  ;;  %v9731_v59 = vsel %vm559_vm1, %v2338_v44, %v2340_v50 }
 0x207   : > { %7339 = vrot.lane.b32.xlu0 %v7338_v19, %s8117_s21  ;;  %3274 = vmatprep.mubr.bf16.mxu1 %v2907_v55  ;;  %v2808_v50 = vsel %vm280_vm12, %v9466_v4, %v7266_v49 }
 0x208   : > { %3275 = vmatmul.mubr.bf16.vlgmr.msra.gmra.mxu1 %v2906_v11  ;;  %v7275_v37 = vpop.permute.xlu1 %7274  ;;  %v2840_v9 = vsel %vm280_vm12, %v9723_v0, %v7261_v43  ;;  %v2841_v32 = vsel %vm280_vm12, %v9731_v59, %v7262_v21  ;;  %v2809_v43 = vsel %vm280_vm12, %v9474_v46, %v7267_v5 }
 0x209   : > { %v7277_v61 = vunpack.i.h.bf16 %v7275_v37  ;;  %v7276_v19 = vunpack.i.l.bf16 %v7275_v37  ;;  %v2912_v41 = vpack.c.bf16 %v2841_v32, %v2840_v9  ;;  %6503 = vmatpush3.bf16.msra.mxu1 %v9663_v2  ;;  %v2911_v55 = vpack.c.bf16 %v2809_v43, %v2808_v50 }
 0x20a   : > { %7354 = vrot.lane.b32.xlu1 %v7353_v16, %s8117_s21  ;;  %6504 = vmatprep.subr.bf16.mxu1 %v7998_v26  ;;  %v2348_v50 = vrot.slane %v9524_v42, 2 }
 0x20b   : > { %3282 = vmatprep.mubr.bf16.mxu1 %v2912_v41  ;;  %v2810_v44 = vsel %vm280_vm12, %v9479_v10, %v7276_v19  ;;  %v2811_v11 = vsel %vm280_vm12, %v9468_v39, %v7277_v61 }
 0x20c   : > { %v9747_v29 = vpack.c.bf16 %v2811_v11, %v2810_v44  ;;  %v2343_v44 = vrot.slane %v9468_v39, 2  ;;  %v2345_v11 = vrot.slane %v9470_v20, 2  ;;  %v2350_v20 = vrot.slane %v9526_v54, 2 }
 0x20d   : > { %v6492_v14 = vpop.f32.mrf.mxu1  ;;  %6505 = vmatpush3.bf16.msra.mxu1 %v7998_v26 }
 0x20e   : > { %v1910_v48 = vadd.f32 %v6492_v14, %v9390_v57  ;;  %3435 = vmatprep.mubr.bf16.mxu0 %v9747_v29  ;;  %v9773_v39 = vsel %vm559_vm1, %v2343_v44, %v2345_v11 }
 0x20f   : > { %v1901_v2 = vpop.f32.mrf.mxu1 }
 0x210   : > { %vm1970_vm8 = vcmp.gt.f32.partialorder %v1910_v48, 0.0  ;;  %v2002_v21 = vmul.f32 0.1, %v1910_v48  ;;  %v1902_v16 = vadd.f32 %v9390_v57, %v1901_v2  ;;  %3283 = vmatmul.mubr.bf16.gmra.mxu1 %v2911_v55 }
 0x211   : > { %v6493_v37 = vpop.f32.mrf.mxu1 }
 0x212   : > { %v2034_v4 = vsel %vm1970_vm8, %v1910_v48, %v2002_v21  ;;  %vm1968_vm9 = vcmp.gt.f32.partialorder %v1902_v16, 0.0  ;;  %v2000_v49 = vmul.f32 0.1, %v1902_v16  ;;  %v1913_v46 = vadd.f32 %v6493_v37, %v9390_v57 }
 0x213   : > { %2067 = vst.msk [vmem:[#allocation2 + $0x121] sm:$0xff] %vm280_vm12, %v2034_v4  ;;  %v1904_v5 = vpop.f32.mrf.mxu1  ;;  %v2342_v48 = vrot.slane %v9479_v10, 2  ;;  %vm333_vm8 = vcmask 253952  }
 0x214   : > { %v2032_v9 = vsel %vm1968_vm9, %v1902_v16, %v2000_v49  ;;  %vm1971_vm11 = vcmp.gt.f32.partialorder %v1913_v46, 0.0  ;;  %v2003_v26 = vmul.f32 0.1, %v1913_v46  ;;  %v1905_v32 = vadd.f32 %v9390_v57, %v1904_v5 }
 0x215   : > { %2065 = vst.msk [vmem:[#allocation2 + $0x109] sm:$0xff] %vm280_vm12, %v2032_v9  ;;  %v2347_v16 = vrot.slane %v9518_v12, 2  ;;  %v9770_v4 = vsel %vm559_vm1, %v2342_v48, %v2343_v44 }
 0x216   : > { %v2035_v61 = vsel %vm1971_vm11, %v1913_v46, %v2003_v26  ;;  %vm1969_vm13 = vcmp.gt.f32.partialorder %v1905_v32, 0.0  ;;  %v2001_v19 = vmul.f32 0.1, %v1905_v32 }
 0x217   : > { %2068 = vst.msk [vmem:[#allocation2 + $0x129] sm:$0xff] %vm280_vm12, %v2035_v61  ;;  %v9788_v61 = vsel %vm559_vm1, %v2347_v16, %v2348_v50  ;;  %v9798_v16 = vsel %vm559_vm1, %v2348_v50, %v2350_v20  ;;  %v7999_v50 = vld [vmem:[%s12111_s3 + $0x108] sm:$0xff]  }
 0x218   : > { %v2033_v41 = vsel %vm1969_vm13, %v1905_v32, %v2001_v19  ;;  %6506 = vmatprep.subr.bf16.mxu1 %v7999_v50 }
 0x219   : > { %2066 = vst.msk [vmem:[#allocation2 + $0x111] sm:$0xff] %vm280_vm12, %v2033_v41  ;;  %6507 = vmatpush3.bf16.msra.mxu1 %v7999_v50 }
 0x21a   : > { %v9785_v32 = vld [vmem:[#allocation2 + $0x120] sm:$0xff] }
 0x21c   : > { %v9761_v14 = vld [vmem:[#allocation2 + $0x108] sm:$0xff] }
 0x21d   : > { %v7270_v43 = vpop.permute.xlu0 %7269  ;;  %v2307_v26 = vrot.slane %v9761_v14, 1 }
 0x21e   : > { %v7272_v2 = vunpack.i.h.bf16 %v7270_v43  ;;  %v7271_v55 = vunpack.i.l.bf16 %v7270_v43  ;;  %v9764_v21 = vld [vmem:[#allocation2 + $0x128] sm:$0xff]  ;;  %v9767_v37 = vld [vmem:[#allocation2 + $0x130] sm:$0xff] }
 0x21f   : > { %v2313_v44 = vrot.slane %v9764_v21, 1  ;;  %v2315_v11 = vrot.slane %v9767_v37, 1 }
 0x220   : > { %v7285_v49 = vpop.permute.xlu1 %7284  ;;  %v9776_v46 = vld [vmem:[#allocation2 + $0x110] sm:$0xff]  ;;  %v2842_v10 = vsel %vm280_vm12, %v9770_v4, %v7271_v55  ;;  %v2843_v5 = vsel %vm280_vm12, %v9773_v39, %v7272_v2  ;;  %v9782_v9 = vld [vmem:[#allocation2 + $0x118] sm:$0xff] }
 0x221   : > { %v7280_v19 = vpop.permute.xlu0 %7279  ;;  %v7348_v54 = vpack.i.bf16 %v9776_v46, %v9761_v14  ;;  %v2916_v41 = vpack.c.bf16 %v2843_v5, %v2842_v10  ;;  %v2308_v2 = vrot.slane %v9776_v46, 1  ;;  %v2310_v55 = vrot.slane %v9782_v9, 1 }
 0x222   : > { %v7282_v43 = vunpack.i.h.bf16 %v7280_v19  ;;  %v7281_v48 = vunpack.i.l.bf16 %v7280_v19  ;;  %v7287_v15 = vunpack.i.h.bf16 %v7285_v49  ;;  %v7286_v23 = vunpack.i.l.bf16 %v7285_v49 }
 0x223   : > { %7349 = vrot.lane.b32.xlu0 %v7348_v54, %s8117_s21  ;;  %3290 = vmatprep.mubr.bf16.mxu1 %v2916_v41  ;;  %v2312_v10 = vrot.slane %v9785_v32, 1  ;;  %v9803_v5 = vsel %vm478_vm0, %v2307_v26, %v2308_v2  ;;  %v9806_v19 = vsel %vm478_vm0, %v2308_v2, %v2310_v55  ;;  %v9823_v41 = vsel %vm478_vm0, %v2313_v44, %v2315_v11 }
 0x224   : > { %3291 = vmatmul.mubr.bf16.gmra.mxu1 %v9747_v29  ;;  %12248 = vst [vmem:[#allocation51_spill] sm:$0xff] %v9803_v5  ;;  %12249 = vst [vmem:[#allocation52_spill] sm:$0xff] %v9806_v19  ;;  %v2844_v17 = vsel %vm280_vm12, %v9788_v61, %v7281_v48  ;;  %v2845_v49 = vsel %vm280_vm12, %v9798_v16, %v7282_v43  ;;  %v7363_v20 = vpack.i.bf16 %v9806_v19, %v9803_v5  ;;  %v8003_v19 = vld [vmem:[%s12111_s3 + $0xb0] sm:$0xff]  }
 0x225   : > { %v7358_v29 = vpack.i.bf16 %v9764_v21, %v9785_v32  ;;  %v2920_v26 = vpack.c.bf16 %v2845_v49, %v2844_v17  ;;  %v9820_v54 = vsel %vm478_vm0, %v2312_v10, %v2313_v44  ;;  %12251 = vst [vmem:[#allocation54_spill] sm:$0xff] %v9823_v41  ;;  %v2812_v43 = vsel %vm280_vm12, %v9518_v12, %v7286_v23 }
 0x226   : > { %12250 = vst [vmem:[#allocation53_spill] sm:$0xff] %v9820_v54  ;;  %7364 = vrot.lane.b32.xlu1 %v7363_v20, %s8117_s21  ;;  %v2813_v48 = vsel %vm280_vm12, %v9524_v42, %v7287_v15  ;;  %v7373_v17 = vpack.i.bf16 %v9823_v41, %v9820_v54  ;;  %v7295_v20 = vpop.permute.xlu1 %7294 }
 0x227   : > { %7359 = vrot.lane.b32.xlu0 %v7358_v29, %s8117_s21  ;;  %3298 = vmatprep.mubr.bf16.mxu1 %v2920_v26  ;;  %v9833_v2 = vpack.c.bf16 %v2813_v48, %v2812_v43  ;;  %v2353_v48 = vrot.slane %v9520_v8, 2 }
 0x22a   : > { %7374 = vrot.lane.b32.xlu1 %v7373_v17, %s8117_s21 }
 0x22c   : > { %3299 = vmatmul.mubr.bf16.gmra.mxu1 %v9833_v2 }
 0x22d   : > { %v6496_v44 = vpop.f32.mrf.mxu1 }
 0x22e   : > { %v1926_v11 = vadd.f32 %v6496_v44, %v9390_v57 }
 0x22f   : > { %v1917_v55 = vpop.f32.mrf.mxu1 }
 0x230   : > { %vm1974_vm14 = vcmp.gt.f32.partialorder %v1926_v11, 0.0  ;;  %v2006_v12 = vmul.f32 0.1, %v1926_v11  ;;  %v1918_v23 = vadd.f32 %v9390_v57, %v1917_v55  ;;  %v7297_v55 = vunpack.i.h.bf16 %v7295_v20 }
 0x231   : > { %v6497_v42 = vpop.f32.mrf.mxu1 }
 0x232   : > { %v2038_v15 = vsel %vm1974_vm14, %v1926_v11, %v2006_v12  ;;  %vm1972_vm15 = vcmp.gt.f32.partialorder %v1918_v23, 0.0  ;;  %v2004_v10 = vmul.f32 0.1, %v1918_v23  ;;  %v1929_v49 = vadd.f32 %v6497_v42, %v9390_v57 }
 0x233   : > { %2071 = vst.msk [vmem:[#allocation2 + $0x151] sm:$0xff] %vm280_vm12, %v2038_v15  ;;  %v1920_v50 = vpop.f32.mrf.mxu1  ;;  %v2355_v11 = vrot.slane %v9522_v7, 2  ;;  %v7296_v12 = vunpack.i.l.bf16 %v7295_v20  ;;  %v2815_v20 = vsel %vm280_vm12, %v9520_v8, %v7297_v55 }
 0x234   : > { %v2036_v29 = vsel %vm1972_vm15, %v1918_v23, %v2004_v10  ;;  %vm1975_vm2 = vcmp.gt.f32.partialorder %v1929_v49, 0.0  ;;  %v2007_v26 = vmul.f32 0.1, %v1929_v49  ;;  %v1921_v43 = vadd.f32 %v9390_v57, %v1920_v50 }
 0x235   : > { %2069 = vst.msk [vmem:[#allocation2 + $0x139] sm:$0xff] %vm280_vm12, %v2036_v29  ;;  %v2352_v23 = vrot.slane %v9529_v45, 2  ;;  %v2814_v7 = vsel %vm280_vm12, %v9529_v45, %v7296_v12  ;;  %v2358_v29 = vrot.slane %v9574_v40, 2 }
 0x236   : > { %v2039_v17 = vsel %vm1975_vm2, %v1929_v49, %v2007_v26  ;;  %vm1973_vm3 = vcmp.gt.f32.partialorder %v1921_v43, 0.0  ;;  %v2005_v44 = vmul.f32 0.1, %v1921_v43  ;;  %v9852_v49 = vsel %vm559_vm1, %v2353_v48, %v2355_v11 }
 0x237   : > { %2072 = vst.msk [vmem:[#allocation2 + $0x159] sm:$0xff] %vm280_vm12, %v2039_v17  ;;  %v9849_v50 = vsel %vm559_vm1, %v2352_v23, %v2353_v48  ;;  %12252 = vst [vmem:[#allocation55_spill] sm:$0xff] %v9852_v49  ;;  %v2360_v26 = vrot.slane %v9576_v13, 2  ;;  %v2357_v11 = vrot.slane %v9568_v31, 2  ;;  %v9865_v12 = vpack.c.bf16 %v2815_v20, %v2814_v7  ;;  %v8000_v13 = vld [vmem:[%s12111_s3 + $0xf8] sm:$0xff]   ;;  %v8002_v20 = vld [vmem:[%s12111_s3 + $0xf0] sm:$0xff]  }
 0x238   : > { %v2037_v42 = vsel %vm1973_vm3, %v1921_v43, %v2005_v44  ;;  %v8001_v7 = vld [vmem:[%s12111_s3 + $0xb8] sm:$0xff]   ;;  %6202 = vmatprep.subr.bf16.mxu0 %v8000_v13 }
 0x239   : > { %2070 = vst.msk [vmem:[#allocation2 + $0x141] sm:$0xff] %vm280_vm12, %v2037_v42  ;;  %v7290_v15 = vpop.permute.xlu0 %7289  ;;  %6203 = vmatpush3.bf16.msra.mxu0 %v8001_v7 }
 0x23a   : > { %v7292_v57 = vunpack.i.h.bf16 %v7290_v15  ;;  %v7291_v10 = vunpack.i.l.bf16 %v7290_v15  ;;  %v9900_v54 = vld [vmem:[#allocation2 + $0x150] sm:$0xff]  ;;  %6204 = vmatprep.subr.bf16.mxu0 %v8002_v20  ;;  %v8004_v20 = vld [vmem:[%s12111_s3 + $0xe8] sm:$0xff]  }
 0x23b   : > { %v2322_v34 = vrot.slane %v9900_v54, 1 }
 0x23c   : > { %v7305_v43 = vpop.permute.xlu1 %7304  ;;  %v2846_v17 = vsel %vm280_vm12, %v9849_v50, %v7291_v10  ;;  %v2847_v44 = vsel %vm280_vm12, %v9852_v49, %v7292_v57  ;;  %v9867_v8 = vld [vmem:[#allocation2 + $0x138] sm:$0xff]  ;;  %v9875_v57 = vsel %vm559_vm1, %v2357_v11, %v2358_v29 }
 0x23d   : > { %v7300_v42 = vpop.permute.xlu0 %7299  ;;  %v2924_v48 = vpack.c.bf16 %v2847_v44, %v2846_v17  ;;  %v7307_v15 = vunpack.i.h.bf16 %v7305_v43  ;;  %v7306_v10 = vunpack.i.l.bf16 %v7305_v43  ;;  %12253 = vst [vmem:[#allocation56_spill] sm:$0xff] %v9875_v57  ;;  %v9878_v17 = vsel %vm559_vm1, %v2358_v29, %v2360_v26  ;;  %6205 = vmatpush3.bf16.msra.mxu0 %v8003_v19 }
 0x23e   : > { %v7302_v23 = vunpack.i.h.bf16 %v7300_v42  ;;  %v7301_v45 = vunpack.i.l.bf16 %v7300_v42  ;;  %v9869_v55 = vld [vmem:[#allocation2 + $0x158] sm:$0xff]  ;;  %12254 = vst [vmem:[#allocation57_spill] sm:$0xff] %v9878_v17  ;;  %v9880_v44 = vld [vmem:[#allocation2 + $0x160] sm:$0xff]  ;;  %v2317_v41 = vrot.slane %v9867_v8, 1  ;;  %6206 = vmatprep.subr.bf16.mxu0 %v8004_v20 }
 0x23f   : > { %3306 = vmatprep.mubr.bf16.mxu1 %v2924_v48  ;;  %v2323_v5 = vrot.slane %v9869_v55, 1  ;;  %v2325_v13 = vrot.slane %v9880_v44, 1  ;;  %v2817_v7 = vsel %vm280_vm12, %v9574_v40, %v7307_v15  ;;  %v8005_v40 = vld [vmem:[%s12111_s3 + $0xa8] sm:$0xff]  }
 0x240   : > { %3307 = vmatmul.mubr.bf16.gmra.mxu1 %v9865_v12  ;;  %v9889_v43 = vld [vmem:[#allocation2 + $0x140] sm:$0xff]  ;;  %v2848_v42 = vsel %vm280_vm12, %v9875_v57, %v7301_v45  ;;  %v2849_v29 = vsel %vm280_vm12, %v9878_v17, %v7302_v23  ;;  %v9895_v26 = vld [vmem:[#allocation2 + $0x148] sm:$0xff] }
 0x241   : > { %v7368_v48 = vpack.i.bf16 %v9889_v43, %v9867_v8  ;;  %v2928_v11 = vpack.c.bf16 %v2849_v29, %v2848_v42  ;;  %v2318_v45 = vrot.slane %v9889_v43, 1  ;;  %v2320_v23 = vrot.slane %v9895_v26, 1  ;;  %6207 = vmatpush3.bf16.msra.mxu0 %v8005_v40 }
 0x242   : > { %v2816_v42 = vsel %vm280_vm12, %v9568_v31, %v7306_v10  ;;  %v7378_v31 = vpack.i.bf16 %v9869_v55, %v9900_v54  ;;  %v9934_v15 = vsel %vm478_vm0, %v2322_v34, %v2323_v5  ;;  %v9937_v10 = vsel %vm478_vm0, %v2323_v5, %v2325_v13  ;;  %v8066_v34 = vld [vmem:[%s12110_s2] ss:$0 sm:$0xff] }
 0x243   : > { %7369 = vrot.lane.b32.xlu0 %v7368_v48, %s8117_s21  ;;  %3314 = vmatprep.mubr.bf16.mxu1 %v2928_v11  ;;  %v9915_v29 = vsel %vm478_vm0, %v2317_v41, %v2318_v45  ;;  %v9918_v6 = vsel %vm478_vm0, %v2318_v45, %v2320_v23  ;;  %v9931_v41 = vpack.c.bf16 %v2817_v7, %v2816_v42  ;;  %v8006_v45 = vld [vmem:[%s12111_s3 + $0xe0] sm:$0xff]   ;;  %v7315_v7 = vpop.permute.xlu1 %7314  ;;  %v2363_v40 = vrot.slane %v9570_v47, 2 }
 0x244   : > { %12255 = vst [vmem:[#allocation58_spill] sm:$0xff] %v9915_v29  ;;  %12256 = vst [vmem:[#allocation59_spill] sm:$0xff] %v9918_v6  ;;  %v7383_v48 = vpack.i.bf16 %v9918_v6, %v9915_v29  ;;  %v7393_v19 = vpack.i.bf16 %v9937_v10, %v9934_v15  ;;  %v8007_v23 = vld [vmem:[%s12111_s3 + $0xa0] sm:$0xff]   ;;  %6208 = vmatprep.subr.bf16.mxu0 %v8006_v45  ;;  %v8010_v6 = vld [vmem:[%s12111_s3 + $0x98] sm:$0xff]   ;;  %v7316_v45 = vunpack.i.l.bf16 %v7315_v7 }
 0x245   : > { %12257 = vst [vmem:[#allocation60_spill] sm:$0xff] %v9931_v41  ;;  %12258 = vst [vmem:[#allocation61_spill] sm:$0xff] %v9934_v15  ;;  %v8008_v13 = vld [vmem:[%s12111_s3 + $0x100] sm:$0xff]   ;;  %6209 = vmatpush3.bf16.msra.mxu0 %v8007_v23  ;;  %v8009_v15 = vld [vmem:[%s12111_s3 + $0xd8] sm:$0xff]   ;;  %v2362_v23 = vrot.slane %v9579_v62, 2 }
 0x246   : > { %12259 = vst [vmem:[#allocation62_spill] sm:$0xff] %v9937_v10  ;;  %7384 = vrot.lane.b32.xlu1 %v7383_v48, %s8117_s21  ;;  %6508 = vmatprep.subr.bf16.mxu1 %v8008_v13 }
 0x247   : > { %7379 = vrot.lane.b32.xlu0 %v7378_v31, %s8117_s21  ;;  %6509 = vmatpush3.bf16.msra.mxu1 %v8008_v13 }
 0x248   : > { %3315 = vmatmul.mubr.bf16.gmra.mxu1 %v9931_v41  ;;  %6210 = vmatprep.subr.bf16.mxu0 %v8009_v15  ;;  %v9969_v41 = vsel %vm559_vm1, %v2362_v23, %v2363_v40  ;;  %v2818_v23 = vsel %vm280_vm12, %v9579_v62, %v7316_v45  ;;  %v8013_v62 = vld [vmem:[%s12111_s3 + $0xc8] sm:$0xff]  }
 0x249   : > { %12260 = vst [vmem:[#allocation63_spill] sm:$0xff] %v9969_v41  ;;  %6211 = vmatpush3.bf16.msra.mxu0 %v8010_v6  ;;  %v2368_v6 = vrot.slane %v9624_v58, 2 }
 0x24a   : > { %7394 = vrot.lane.b32.xlu1 %v7393_v19, %s8117_s21 }
 0x24d   : > { %v6500_v11 = vpop.f32.mrf.mxu1 }
 0x24e   : > { %v1942_v5 = vadd.f32 %v8066_v34, %v6500_v11 }
 0x24f   : > { %v1933_v42 = vpop.f32.mrf.mxu1 }
 0x250   : > { %vm1978_vm4 = vcmp.gt.f32.partialorder %v1942_v5, 0.0  ;;  %v2010_v20 = vmul.f32 0.1, %v1942_v5  ;;  %v1934_v48 = vadd.f32 %v8066_v34, %v1933_v42  ;;  %v7317_v42 = vunpack.i.h.bf16 %v7315_v7 }
 0x251   : > { %v6501_v31 = vpop.f32.mrf.mxu1 }
 0x252   : > { %v2042_v19 = vsel %vm1978_vm4, %v1942_v5, %v2010_v20  ;;  %vm1976_vm5 = vcmp.gt.f32.partialorder %v1934_v48, 0.0  ;;  %v2008_v11 = vmul.f32 0.1, %v1934_v48  ;;  %v1945_v10 = vadd.f32 %v8066_v34, %v6501_v31 }
 0x253   : > { %2075 = vst.msk [vmem:[#allocation2 + $0x181] sm:$0xff] %vm280_vm12, %v2042_v19  ;;  %v1936_v29 = vpop.f32.mrf.mxu1  ;;  %v2365_v5 = vrot.slane %v9572_v53, 2  ;;  %v8011_v53 = vld [vmem:[%s12111_s3 + $0xd0] sm:$0xff]  }
 0x254   : > { %v2040_v13 = vsel %vm1976_vm5, %v1934_v48, %v2008_v11  ;;  %vm1979_vm6 = vcmp.gt.f32.partialorder %v1945_v10, 0.0  ;;  %v2011_v20 = vmul.f32 0.1, %v1945_v10  ;;  %v1937_v31 = vadd.f32 %v8066_v34, %v1936_v29  ;;  %v8012_v29 = vld [vmem:[%s12111_s3 + $0x90] sm:$0xff]   ;;  %6212 = vmatprep.subr.bf16.mxu0 %v8011_v53 }
 0x255   : > { %2073 = vst.msk [vmem:[#allocation2 + $0x169] sm:$0xff] %vm280_vm12, %v2040_v13  ;;  %v7310_v56 = vpop.permute.xlu0 %7309  ;;  %v9979_v34 = vsel %vm559_vm1, %v2363_v40, %v2365_v5  ;;  %v2819_v13 = vsel %vm280_vm12, %v9570_v47, %v7317_v42  ;;  %6213 = vmatpush3.bf16.msra.mxu0 %v8012_v29  ;;  %v8014_v47 = vld [vmem:[%s12111_s3 + $0x88] sm:$0xff]  }
 0x256   : > { %v2043_v7 = vsel %vm1979_vm6, %v1945_v10, %v2011_v20  ;;  %vm1977_vm7 = vcmp.gt.f32.partialorder %v1937_v31, 0.0  ;;  %v2009_v19 = vmul.f32 0.1, %v1937_v31  ;;  %v7312_v28 = vunpack.i.h.bf16 %v7310_v56  ;;  %12261 = vst [vmem:[#allocation64_spill] sm:$0xff] %v9979_v34  ;;  %6214 = vmatprep.subr.bf16.mxu0 %v8013_v62 }
 0x257   : > { %2076 = vst.msk [vmem:[#allocation2 + $0x189] sm:$0xff] %vm280_vm12, %v2043_v7  ;;  %v7311_v15 = vunpack.i.l.bf16 %v7310_v56  ;;  %v2370_v10 = vrot.slane %v9626_v51, 2  ;;  %v2367_v51 = vrot.slane %v9618_v22, 2  ;;  %v9999_v42 = vpack.c.bf16 %v2819_v13, %v2818_v23 }
 0x258   : > { %v2041_v48 = vsel %vm1977_vm7, %v1937_v31, %v2009_v19  ;;  %v2851_v11 = vsel %vm280_vm12, %v9979_v34, %v7312_v28  ;;  %v7325_v56 = vpop.permute.xlu1 %7324 }
 0x259   : > { %2074 = vst.msk [vmem:[#allocation2 + $0x171] sm:$0xff] %vm280_vm12, %v2041_v48  ;;  %v7320_v40 = vpop.permute.xlu0 %7319  ;;  %v2850_v5 = vsel %vm280_vm12, %v9969_v41, %v7311_v15  ;;  %12262 = vst [vmem:[#allocation65_spill] sm:$0xff] %v9999_v42  ;;  %v10002_v45 = vsel %vm559_vm1, %v2367_v51, %v2368_v6  ;;  %v10005_v7 = vsel %vm559_vm1, %v2368_v6, %v2370_v10  ;;  %v7327_v19 = vunpack.i.h.bf16 %v7325_v56  ;;  %v8016_v6 = vld [vmem:[%s12111_s3 + $0x80] sm:$0xff]  }
 0x25a   : > { %v7322_v20 = vunpack.i.h.bf16 %v7320_v40  ;;  %v7321_v31 = vunpack.i.l.bf16 %v7320_v40  ;;  %v2932_v28 = vpack.c.bf16 %v2851_v11, %v2850_v5  ;;  %12263 = vst [vmem:[#allocation66_spill] sm:$0xff] %v10002_v45  ;;  %12264 = vst [vmem:[#allocation67_spill] sm:$0xff] %v10005_v7  ;;  %v7326_v53 = vunpack.i.l.bf16 %v7325_v56  ;;  %6215 = vmatpush3.bf16.msra.mxu0 %v8014_v47  ;;  %v8015_v11 = vld [vmem:[%s12111_s3 + $0xc0] sm:$0xff]  }
 0x25b   : > { %v10018_v10 = vld [vmem:[#allocation2 + $0x180] sm:$0xff]  ;;  %6216 = vmatprep.subr.bf16.mxu0 %v8015_v11 }
 0x25c   : > { %3322 = vmatprep.mubr.bf16.mxu1 %v2932_v28  ;;  %v2852_v29 = vsel %vm280_vm12, %v10002_v45, %v7321_v31  ;;  %v2853_v15 = vsel %vm280_vm12, %v10005_v7, %v7322_v20  ;;  %v10027_v5 = vld [vmem:[#allocation2 + $0x168] sm:$0xff]  ;;  %v2820_v20 = vsel %vm280_vm12, %v9618_v22, %v7326_v53  ;;  %v2821_v31 = vsel %vm280_vm12, %v9624_v58, %v7327_v19 }
 0x25d   : > { %3323 = vmatmul.mubr.bf16.gmra.mxu1 %v9999_v42  ;;  %v2936_v48 = vpack.c.bf16 %v2853_v15, %v2852_v29  ;;  %v2484_v29 = vrot.slane %v10018_v10, 2  ;;  %v10045_v22 = vpack.c.bf16 %v2821_v31, %v2820_v20  ;;  %v7413_v58 = vpack.i.bf16 %v9773_v39, %v9770_v4 }
 0x25e   : > { %v10020_v23 = vld [vmem:[#allocation2 + $0x188] sm:$0xff]  ;;  %v10022_v13 = vld [vmem:[#allocation2 + $0x190] sm:$0xff]  ;;  %6217 = vmatpush3.bf16.msra.mxu0 %v8016_v6  ;;  %v2327_v11 = vrot.slane %v10027_v5, 1  ;;  %v7398_v6 = vpack.i.bf16 %v9731_v59, %v9723_v0  ;;  %v2383_v59 = vrot.slane %v9676_v3, 2  ;;  %v2393_v31 = vrot.slane %v9764_v21, 2 }
 0x25f   : > { %3330 = vmatprep.mubr.bf16.mxu1 %v2936_v48  ;;  %v7403_v56 = vpack.i.bf16 %v10020_v23, %v10018_v10  ;;  %v2485_v40 = vrot.slane %v10020_v23, 2  ;;  %v2487_v62 = vrot.slane %v10022_v13, 2  ;;  %12265 = vst [vmem:[#allocation68_spill] sm:$0xff] %v10045_v22 }
 0x260   : > { %v10029_v51 = vld [vmem:[#allocation2 + $0x170] sm:$0xff]  ;;  %v10035_v28 = vld [vmem:[#allocation2 + $0x178] sm:$0xff] }
 0x261   : > { %7404 = vrot.lane.b32.xlu1 %v7403_v56, %s8117_s21  ;;  %v7388_v47 = vpack.i.bf16 %v10029_v51, %v10027_v5  ;;  %v2328_v15 = vrot.slane %v10029_v51, 1  ;;  %v2330_v48 = vrot.slane %v10035_v28, 1  ;;  %v10050_v19 = vsel %vm559_vm1, %v2484_v29, %v2485_v40 }
 0x262   : > { %v10053_v53 = vsel %vm559_vm1, %v2485_v40, %v2487_v62  ;;  %v7423_v40 = vpack.i.bf16 %v9852_v49, %v9849_v50  ;;  %v2373_v62 = vrot.slane %v9620_v25, 2  ;;  %v2372_v29 = vrot.slane %v9629_v35, 2 }
 0x263   : > { %7389 = vrot.lane.b32.xlu0 %v7388_v47, %s8117_s21  ;;  %v10061_v56 = vsel %vm478_vm0, %v2327_v11, %v2328_v15  ;;  %v10064_v20 = vsel %vm478_vm0, %v2328_v15, %v2330_v48  ;;  %v2375_v47 = vrot.slane %v9622_v38, 2  ;;  %v2385_v15 = vrot.slane %v9678_v52, 2 }
 0x264   : > { %12266 = vst [vmem:[#allocation69_spill] sm:$0xff] %v10061_v56  ;;  %12267 = vst [vmem:[#allocation70_spill] sm:$0xff] %v10064_v20  ;;  %v7408_v0 = vpack.i.bf16 %v10064_v20, %v10061_v56  ;;  %v7433_v48 = vpack.i.bf16 %v9979_v34, %v9969_v41  ;;  %v10084_v38 = vsel %vm559_vm1, %v2372_v29, %v2373_v62  ;;  %v2395_v29 = vrot.slane %v9767_v37, 2 }
 0x265   : > { %3331 = vmatmul.mubr.bf16.gmra.mxu1 %v10045_v22  ;;  %7414 = vrot.lane.b32.xlu1 %v7413_v58, %s8117_s21  ;;  %v2382_v58 = vrot.slane %v9680_v36, 2  ;;  %12268 = vst [vmem:[#allocation71_spill] sm:$0xff] %v10084_v38  ;;  %v10087_v11 = vsel %vm559_vm1, %v2373_v62, %v2375_v47  ;;  %v2380_v62 = vrot.slane %v9687_v30, 2  ;;  %v2392_v20 = vrot.slane %v9785_v32, 2 }
 0x266   : > { %12269 = vst [vmem:[#allocation72_spill] sm:$0xff] %v10087_v11  ;;  %v7443_v47 = vpack.i.bf16 %v10087_v11, %v10084_v38  ;;  %v2403_v34 = vrot.slane %v9869_v55, 2  ;;  %v2387_v41 = vrot.slane %v9761_v14, 2 }
 0x267   : > { %7399 = vrot.lane.b32.xlu0 %v7398_v6, %s8117_s21  ;;  %v7418_v6 = vpack.i.bf16 %v9798_v16, %v9788_v61  ;;  %v10093_v52 = vsel %vm559_vm1, %v2382_v58, %v2383_v59  ;;  %v7335_v58 = vpop.permute.xlu1 %7334 }
 0x268   : > { %v7337_v22 = vunpack.i.h.bf16 %v7335_v58  ;;  %v7336_v42 = vunpack.i.l.bf16 %v7335_v58 }
 0x269   : > { %7424 = vrot.lane.b32.xlu1 %v7423_v40, %s8117_s21  ;;  %v2378_v40 = vrot.slane %v9685_v1, 2 }
 0x26b   : > { %7409 = vrot.lane.b32.xlu0 %v7408_v0, %s8117_s21  ;;  %v10097_v0 = vsel %vm559_vm1, %v2383_v59, %v2385_v15  ;;  %v7428_v59 = vpack.i.bf16 %v9878_v17, %v9875_v57  ;;  %v10116_v15 = vsel %vm559_vm1, %v2392_v20, %v2393_v31  ;;  %v10122_v56 = vsel %vm559_vm1, %v2378_v40, %v2380_v62 }
 0x26c   : > { %v7453_v37 = vpack.i.bf16 %v10097_v0, %v10093_v52  ;;  %v2390_v62 = vrot.slane %v9782_v9, 2 }
 0x26d   : > { %7434 = vrot.lane.b32.xlu1 %v7433_v48, %s8117_s21  ;;  %v2377_v48 = vrot.slane %v9674_v60, 2 }
 0x26f   : > { %7419 = vrot.lane.b32.xlu0 %v7418_v6, %s8117_s21  ;;  %v10113_v30 = vsel %vm559_vm1, %v2377_v48, %v2378_v40  ;;  %v10119_v6 = vsel %vm559_vm1, %v2393_v31, %v2395_v29  ;;  %v2405_v48 = vrot.slane %v9880_v44, 2  ;;  %v7438_v31 = vpack.i.bf16 %v10005_v7, %v10002_v45 }
 0x270   : > { %v7448_v40 = vpack.i.bf16 %v10122_v56, %v10113_v30  ;;  %v2402_v29 = vrot.slane %v9900_v54, 2  ;;  %v7463_v44 = vpack.i.bf16 %v10119_v6, %v10116_v15  ;;  %v2823_v7 = vsel %vm280_vm12, %v9620_v25, %v7337_v22 }
 0x271   : > { %7444 = vrot.lane.b32.xlu1 %v7443_v47, %s8117_s21  ;;  %v2388_v47 = vrot.slane %v9776_v46, 2  ;;  %v10150_v9 = vsel %vm559_vm1, %v2403_v34, %v2405_v48  ;;  %v2400_v48 = vrot.slane %v9895_v26, 2 }
 0x272   : > { %v10147_v45 = vsel %vm559_vm1, %v2402_v29, %v2403_v34  ;;  %v2398_v34 = vrot.slane %v9889_v43, 2 }
 0x273   : > { %7429 = vrot.lane.b32.xlu0 %v7428_v59, %s8117_s21  ;;  %v10139_v17 = vsel %vm559_vm1, %v2387_v41, %v2388_v47  ;;  %v10160_v22 = vsel %vm559_vm1, %v2388_v47, %v2390_v62 }
 0x275   : > { %v7330_v20 = vpop.permute.xlu0 %7329  ;;  %7454 = vrot.lane.b32.xlu1 %v7453_v37, %s8117_s21  ;;  %v2822_v37 = vsel %vm280_vm12, %v9629_v35, %v7336_v42  ;;  %v2410_v35 = vrot.slane %v10035_v28, 2  ;;  %v2397_v28 = vrot.slane %v9867_v8, 2 }
 0x276   : > { %v7332_v58 = vunpack.i.h.bf16 %v7330_v20  ;;  %v7331_v59 = vunpack.i.l.bf16 %v7330_v20 }
 0x277   : > { %7439 = vrot.lane.b32.xlu0 %v7438_v31, %s8117_s21  ;;  %v2408_v31 = vrot.slane %v10029_v51, 2 }
 0x278   : > { %v7345_v20 = vpop.permute.xlu1 %7344  ;;  %v2854_v57 = vsel %vm280_vm12, %v10084_v38, %v7331_v59  ;;  %v2855_v41 = vsel %vm280_vm12, %v10087_v11, %v7332_v58  ;;  %v10164_v38 = vpack.c.bf16 %v2823_v7, %v2822_v37  ;;  %v2407_v58 = vrot.slane %v10027_v5, 2  ;;  %v10185_v37 = vld [vmem:[#allocation2 + $0x198] sm:$0xff] }
 0x279   : > { %v7340_v42 = vpop.permute.xlu0 %7339  ;;  %7464 = vrot.lane.b32.xlu1 %v7463_v44, %s8117_s21  ;;  %v2940_v25 = vpack.c.bf16 %v2855_v41, %v2854_v57  ;;  %v7347_v11 = vunpack.i.h.bf16 %v7345_v20  ;;  %v7346_v49 = vunpack.i.l.bf16 %v7345_v20  ;;  %v7473_v57 = vpack.i.bf16 %v10150_v9, %v10147_v45  ;;  %v10187_v20 = vld [vmem:[#allocation2 + $0x1a0] sm:$0xff]  ;;  %v10189_v41 = vld [vmem:[#allocation2 + $0x1a8] sm:$0xff] }
 0x27a   : > { %v7342_v29 = vunpack.i.h.bf16 %v7340_v42  ;;  %v7341_v59 = vunpack.i.l.bf16 %v7340_v42  ;;  %v10177_v47 = vsel %vm559_vm1, %v2407_v58, %v2408_v31  ;;  %v10180_v62 = vsel %vm559_vm1, %v2408_v31, %v2410_v35 }
 0x27b   : > { %7449 = vrot.lane.b32.xlu0 %v7448_v40, %s8117_s21  ;;  %3338 = vmatprep.mubr.bf16.mxu1 %v2940_v25  ;;  %v7458_v40 = vpack.i.bf16 %v10160_v22, %v10139_v17  ;;  %v10192_v42 = vsel %vm559_vm1, %v2397_v28, %v2398_v34  ;;  %v10195_v25 = vsel %vm559_vm1, %v2398_v34, %v2400_v48  ;;  %v2448_v31 = vrot.slane %v10020_v23, 1 }
 0x27c   : > { %3339 = vmatmul.mubr.bf16.gmra.mxu1 %v10164_v38  ;;  %v2856_v26 = vsel %vm280_vm12, %v10113_v30, %v7341_v59  ;;  %v2857_v7 = vsel %vm280_vm12, %v10122_v56, %v7342_v29  ;;  %v2450_v35 = vrot.slane %v10022_v13, 1  ;;  %v7483_v29 = vpack.i.bf16 %v10180_v62, %v10177_v47 }
 0x27d   : > { %7474 = vrot.lane.b32.xlu1 %v7473_v57, %s8117_s21  ;;  %v2944_v44 = vpack.c.bf16 %v2857_v7, %v2856_v26  ;;  %v2824_v59 = vsel %vm280_vm12, %v9674_v60, %v7346_v49  ;;  %v2825_v58 = vsel %vm280_vm12, %v9685_v1, %v7347_v11  ;;  %v2447_v57 = vrot.slane %v10018_v10, 1 }
 0x27e   : > { %v2492_v34 = vrot.slane %v10185_v37, 1  ;;  %v2493_v48 = vrot.slane %v10187_v20, 1  ;;  %v2495_v13 = vrot.slane %v10189_v41, 1  ;;  %v7468_v28 = vpack.i.bf16 %v10195_v25, %v10192_v42 }
 0x27f   : > { %7459 = vrot.lane.b32.xlu0 %v7458_v40, %s8117_s21  ;;  %3346 = vmatprep.mubr.bf16.mxu1 %v2944_v44  ;;  %v10213_v26 = vpack.c.bf16 %v2825_v58, %v2824_v59  ;;  %v10216_v60 = vsel %vm478_vm0, %v2447_v57, %v2448_v31  ;;  %v10219_v1 = vsel %vm478_vm0, %v2448_v31, %v2450_v35  ;;  %v7355_v31 = vpop.permute.xlu1 %7354 }
 0x280   : > { %12270 = vst [vmem:[#allocation73_spill] sm:$0xff] %v10219_v1  ;;  %v7493_v49 = vpack.i.bf16 %v10053_v53, %v10050_v19  ;;  %v2494_v11 = vsel %vm478_vm0, %v2492_v34, %v2493_v48  ;;  %v2496_v7 = vsel %vm478_vm0, %v2493_v48, %v2495_v13  ;;  %v7478_v40 = vpack.i.bf16 %v10219_v1, %v10216_v60 }
 0x281   : > { %7484 = vrot.lane.b32.xlu1 %v7483_v29, %s8117_s21  ;;  %v7488_v44 = vpack.i.bf16 %v2496_v7, %v2494_v11  ;;  %v7357_v35 = vunpack.i.h.bf16 %v7355_v31  ;;  %v7356_v29 = vunpack.i.l.bf16 %v7355_v31 }
 0x283   : > { %7469 = vrot.lane.b32.xlu0 %v7468_v28, %s8117_s21  ;;  %v2826_v34 = vsel %vm280_vm12, %v9680_v36, %v7356_v29  ;;  %v2827_v48 = vsel %vm280_vm12, %v9676_v3, %v7357_v35 }
 0x284   : > { %3347 = vmatmul.mubr.bf16.gmra.mxu1 %v10213_v26  ;;  %v10240_v31 = vpack.c.bf16 %v2827_v48, %v2826_v34 }
 0x285   : > { %7494 = vrot.lane.b32.xlu1 %v7493_v49, %s8117_s21 }
 0x287   : > { %7479 = vrot.lane.b32.xlu0 %v7478_v40, %s8117_s21 }
 0x28b   : > { %7489 = vrot.lane.b32.xlu0 %v7488_v44, %s8117_s21 }
 0x295   : > { %v7350_v59 = vpop.permute.xlu0 %7349 }
 0x296   : > { %v7352_v58 = vunpack.i.h.bf16 %v7350_v59  ;;  %v7351_v57 = vunpack.i.l.bf16 %v7350_v59 }
 0x298   : > { %v2858_v13 = vsel %vm280_vm12, %v10093_v52, %v7351_v57  ;;  %v2859_v28 = vsel %vm280_vm12, %v10097_v0, %v7352_v58  ;;  %v7365_v49 = vpop.permute.xlu1 %7364 }
 0x299   : > { %v7360_v11 = vpop.permute.xlu0 %7359  ;;  %v2948_v7 = vpack.c.bf16 %v2859_v28, %v2858_v13  ;;  %v7367_v59 = vunpack.i.h.bf16 %v7365_v49  ;;  %v7366_v1 = vunpack.i.l.bf16 %v7365_v49 }
 0x29a   : > { %v7362_v40 = vunpack.i.h.bf16 %v7360_v11  ;;  %v7361_v44 = vunpack.i.l.bf16 %v7360_v11 }
 0x29b   : > { %3354 = vmatprep.mubr.bf16.mxu1 %v2948_v7  ;;  %v2828_v29 = vsel %vm280_vm12, %v9761_v14, %v7366_v1  ;;  %v2829_v58 = vsel %vm280_vm12, %v9776_v46, %v7367_v59 }
 0x29c   : > { %3355 = vmatmul.mubr.bf16.gmra.mxu1 %v10240_v31  ;;  %v2860_v36 = vsel %vm280_vm12, %v10139_v17, %v7361_v44  ;;  %v2861_v3 = vsel %vm280_vm12, %v10160_v22, %v7362_v40  ;;  %v10251_v57 = vpack.c.bf16 %v2829_v58, %v2828_v29  ;;  %v7375_v34 = vpop.permute.xlu1 %7374 }
 0x29d   : > { %v2952_v35 = vpack.c.bf16 %v2861_v3, %v2860_v36  ;;  %v7377_v48 = vunpack.i.h.bf16 %v7375_v34  ;;  %v7376_v13 = vunpack.i.l.bf16 %v7375_v34 }
 0x29f   : > { %3362 = vmatprep.mubr.bf16.mxu1 %v2952_v35  ;;  %v2830_v7 = vsel %vm280_vm12, %v9785_v32, %v7376_v13  ;;  %v2831_v40 = vsel %vm280_vm12, %v9764_v21, %v7377_v48 }
 0x2a0   : > { %v10262_v35 = vpack.c.bf16 %v2831_v40, %v2830_v7 }
 0x2a4   : > { %3363 = vmatmul.mubr.bf16.gmra.mxu1 %v10251_v57 }
 0x2b5   : > { %v7370_v28 = vpop.permute.xlu0 %7369 }
 0x2b6   : > { %v7372_v49 = vunpack.i.h.bf16 %v7370_v28  ;;  %v7371_v11 = vunpack.i.l.bf16 %v7370_v28 }
 0x2b8   : > { %v2862_v14 = vsel %vm280_vm12, %v10116_v15, %v7371_v11  ;;  %v2863_v46 = vsel %vm280_vm12, %v10119_v6, %v7372_v49  ;;  %v7385_v1 = vpop.permute.xlu1 %7384 }
 0x2b9   : > { %v7380_v44 = vpop.permute.xlu0 %7379  ;;  %v2956_v59 = vpack.c.bf16 %v2863_v46, %v2862_v14  ;;  %v7387_v29 = vunpack.i.h.bf16 %v7385_v1  ;;  %v7386_v58 = vunpack.i.l.bf16 %v7385_v1 }
 0x2ba   : > { %v7382_v36 = vunpack.i.h.bf16 %v7380_v44  ;;  %v7381_v3 = vunpack.i.l.bf16 %v7380_v44 }
 0x2bb   : > { %3370 = vmatprep.mubr.bf16.mxu1 %v2956_v59  ;;  %v2832_v48 = vsel %vm280_vm12, %v9867_v8, %v7386_v58  ;;  %v2833_v13 = vsel %vm280_vm12, %v9889_v43, %v7387_v29 }
 0x2bc   : > { %3371 = vmatmul.mubr.bf16.gmra.mxu1 %v10262_v35  ;;  %v2864_v21 = vsel %vm280_vm12, %v10192_v42, %v7381_v3  ;;  %v2865_v32 = vsel %vm280_vm12, %v10195_v25, %v7382_v36  ;;  %v10273_v28 = vpack.c.bf16 %v2833_v13, %v2832_v48  ;;  %v7395_v14 = vpop.permute.xlu1 %7394 }
 0x2bd   : > { %v2960_v34 = vpack.c.bf16 %v2865_v32, %v2864_v21  ;;  %v7397_v8 = vunpack.i.h.bf16 %v7395_v14  ;;  %v7396_v36 = vunpack.i.l.bf16 %v7395_v14 }
 0x2bf   : > { %3378 = vmatprep.mubr.bf16.mxu1 %v2960_v34  ;;  %v2834_v48 = vsel %vm280_vm12, %v9900_v54, %v7396_v36  ;;  %v2835_v13 = vsel %vm280_vm12, %v9869_v55, %v7397_v8 }
 0x2c4   : > { %3379 = vmatmul.mubr.bf16.gmra.mxu1 %v10273_v28 }
 0x2c8   : > { %v6106_v49 = vpop.f32.mrf.mxu1 }
 0x2ca   : > { %v6107_v11 = vpop.f32.mrf.mxu1 }
 0x2cb   : > { %v10276_v7 = vadd.f32 %v6107_v11, %v6106_v49 }
 0x2cc   : > { %v10278_v40 = vpop.f32.mrf.mxu1 }
 0x2cd   : > { %12271 = vst [vmem:[#allocation74_spill] sm:$0xff] %v10276_v7  ;;  %v10296_v7 = vpack.c.bf16 %v2835_v13, %v2834_v48 }
 0x2ce   : > { %v10280_v46 = vpop.f32.mrf.mxu1 }
 0x2d0   : > { %v6112_v1 = vpop.f32.mrf.mxu1 }
 0x2d2   : > { %v6113_v44 = vpop.f32.mrf.mxu1 }
 0x2d3   : > { %v7405_v59 = vpop.permute.xlu1 %7404  ;;  %v10282_v3 = vadd.f32 %v6113_v44, %v6112_v1 }
 0x2d4   : > { %v7407_v43 = vunpack.i.h.bf16 %v7405_v59  ;;  %v7406_v29 = vunpack.i.l.bf16 %v7405_v59 }
 0x2d5   : > { %v7390_v58 = vpop.permute.xlu0 %7389 }
 0x2d6   : > { %v7392_v21 = vunpack.i.h.bf16 %v7390_v58  ;;  %v7391_v32 = vunpack.i.l.bf16 %v7390_v58  ;;  %v2868_v14 = vsel %vm280_vm12, %v10177_v47, %v7406_v29  ;;  %v2869_v1 = vsel %vm280_vm12, %v10180_v62, %v7407_v43 }
 0x2d7   : > { %v2968_v8 = vpack.c.bf16 %v2869_v1, %v2868_v14 }
 0x2d8   : > { %v2866_v34 = vsel %vm280_vm12, %v10147_v45, %v7391_v32  ;;  %v2867_v11 = vsel %vm280_vm12, %v10150_v9, %v7392_v21  ;;  %v7415_v32 = vpop.permute.xlu1 %7414  ;;  %v10303_v21 = vpop.f32.mrf.mxu1 }
 0x2d9   : > { %v7400_v49 = vpop.permute.xlu0 %7399  ;;  %v2964_v58 = vpack.c.bf16 %v2867_v11, %v2866_v34  ;;  %v7417_v43 = vunpack.i.h.bf16 %v7415_v32 }
 0x2da   : > { %v7402_v44 = vunpack.i.h.bf16 %v7400_v49  ;;  %v7401_v59 = vunpack.i.l.bf16 %v7400_v49  ;;  %v7416_v49 = vunpack.i.l.bf16 %v7415_v32  ;;  %v10312_v13 = vpop.f32.mrf.mxu1 }
 0x2db   : > { %3386 = vmatprep.mubr.bf16.mxu1 %v2964_v58  ;;  %v2873_v1 = vsel %vm280_vm12, %v9503_v27, %v7417_v43  ;;  %v12273_v43 = vld [vmem:[#allocation55_spill] sm:$0xff] }
 0x2dc   : > { %v2871_v54 = vsel %vm280_vm12, %v9492_v33, %v7402_v44  ;;  %v2870_v55 = vsel %vm280_vm12, %v9489_v24, %v7401_v59  ;;  %3387 = vmatmul.mubr.bf16.gmra.mxu1 %v10296_v7  ;;  %v2872_v14 = vsel %vm280_vm12, %v9500_v63, %v7416_v49  ;;  %v2919_v49 = vpack.c.bf16 %v12273_v43, %v9849_v50  ;;  %v12283_v43 = vld [vmem:[#allocation40_spill] sm:$0xff] }
 0x2dd   : > { %v2908_v36 = vpack.c.bf16 %v2871_v54, %v2870_v55  ;;  %v7410_v29 = vpop.permute.xlu0 %7409  ;;  %3394 = vmatprep.mubr.bf16.mxu1 %v2968_v8  ;;  %v2915_v8 = vpack.c.bf16 %v9798_v16, %v9788_v61  ;;  %v12276_v16 = vld [vmem:[#allocation38_spill] sm:$0xff] }
 0x2de   : > { %v7412_v34 = vunpack.i.h.bf16 %v7410_v29  ;;  %v7411_v11 = vunpack.i.l.bf16 %v7410_v29 }
 0x2df   : > { %3436 = vmatmul.mubr.bf16.vlgmr.msra.gmra.mxu0 %v2908_v36  ;;  %v7425_v36 = vpop.permute.xlu1 %7424 }
 0x2e0   : > { %3443 = vmatprep.mubr.bf16.mxu0 %v9833_v2  ;;  %v2836_v33 = vsel %vm280_vm12, %v10027_v5, %v7411_v11  ;;  %v2837_v24 = vsel %vm280_vm12, %v10029_v51, %v7412_v34  ;;  %v2910_v2 = vpack.c.bf16 %v9773_v39, %v9770_v4  ;;  %v2913_v5 = vpack.c.bf16 %v2873_v1, %v2872_v14  ;;  %v12272_v39 = vld [vmem:[#allocation36_spill] sm:$0xff]  ;;  %v12275_v14 = vld [vmem:[#allocation37_spill] sm:$0xff] }
 0x2e1   : > { %v10310_v48 = vpack.c.bf16 %v2837_v24, %v2836_v33  ;;  %v7420_v44 = vpop.permute.xlu0 %7419  ;;  %v7426_v11 = vunpack.i.l.bf16 %v7425_v36  ;;  %v12274_v24 = vld [vmem:[#allocation60_spill] sm:$0xff] }
 0x2e2   : > { %v7422_v58 = vunpack.i.h.bf16 %v7420_v44  ;;  %v7421_v51 = vunpack.i.l.bf16 %v7420_v44  ;;  %v12277_v44 = vld [vmem:[#allocation56_spill] sm:$0xff] }
 0x2e3   : > { %v2876_v61 = vsel %vm280_vm12, %v12275_v14, %v7426_v11  ;;  %v12285_v11 = vld [vmem:[#allocation67_spill] sm:$0xff]  ;;  %v12287_v14 = vld [vmem:[#allocation72_spill] sm:$0xff] }
 0x2e4   : > { %v6118_v59 = vpop.f32.mrf.mxu1  ;;  %3395 = vmatmul.mubr.bf16.gmra.mxu1 %v10310_v48  ;;  %v2874_v4 = vsel %vm280_vm12, %v9539_v18, %v7421_v51  ;;  %v2875_v55 = vsel %vm280_vm12, %v12272_v39, %v7422_v58  ;;  %v12280_v58 = vld [vmem:[#allocation64_spill] sm:$0xff] }
 0x2e5   : > { %6510 = vmatprep.mubr.msk.bf16.mxu1 %vm280_vm12, %v2910_v2  ;;  %v2917_v34 = vpack.c.bf16 %v2875_v55, %v2874_v4  ;;  %v7430_v50 = vpop.permute.xlu0 %7429  ;;  %v12281_v55 = vld [vmem:[#allocation65_spill] sm:$0xff] }
 0x2e6   : > { %v6119_v32 = vpop.f32.mrf.mxu1  ;;  %v7432_v4 = vunpack.i.h.bf16 %v7430_v50  ;;  %v7431_v39 = vunpack.i.l.bf16 %v7430_v50 }
 0x2e7   : > { %v10322_v54 = vadd.f32 %v6119_v32, %v6118_v59  ;;  %3444 = vmatmul.mubr.bf16.gmra.mxu0 %v2913_v5  ;;  %v12278_v59 = vld [vmem:[#allocation57_spill] sm:$0xff]  ;;  %v12279_v5 = vld [vmem:[#allocation63_spill] sm:$0xff] }
 0x2e8   : > { %v10324_v63 = vpop.f32.mrf.mxu1  ;;  %3451 = vmatprep.mubr.bf16.mxu0 %v9865_v12  ;;  %v7427_v12 = vunpack.i.h.bf16 %v7425_v36  ;;  %v2923_v2 = vpack.c.bf16 %v12278_v59, %v12277_v44  ;;  %v2927_v51 = vpack.c.bf16 %v12280_v58, %v12279_v5  ;;  %v12282_v36 = vld [vmem:[#allocation39_spill] sm:$0xff]  ;;  %v12289_v58 = vld [vmem:[#allocation41_spill] sm:$0xff] }
 0x2ea   : > { %v10327_v27 = vpop.f32.mrf.mxu1  ;;  %v2877_v1 = vsel %vm280_vm12, %v12276_v16, %v7427_v12  ;;  %v12284_v12 = vld [vmem:[#allocation66_spill] sm:$0xff] }
 0x2eb   : > { %v2921_v32 = vpack.c.bf16 %v2877_v1, %v2876_v61 }
 0x2ec   : > { %v6124_v29 = vpop.f32.mrf.mxu1  ;;  %6511 = vmatmul.mubr.msk.bf16.vlgmr.msra.gmra.mxu1 %vm280_vm12, %v2915_v8 }
 0x2ed   : > { %6514 = vmatprep.mubr.msk.bf16.mxu1 %vm280_vm12, %v2919_v49  ;;  %v2879_v49 = vsel %vm280_vm12, %v12283_v43, %v7432_v4  ;;  %v2943_v43 = vpack.c.bf16 %v10097_v0, %v10093_v52 }
 0x2ee   : > { %v6125_v33 = vpop.f32.mrf.mxu1 }
 0x2ef   : > { %v10339_v18 = vadd.f32 %v6125_v33, %v6124_v29  ;;  %3452 = vmatmul.mubr.bf16.gmra.mxu0 %v2917_v34  ;;  %v2878_v29 = vsel %vm280_vm12, %v12282_v36, %v7431_v39  ;;  %v7435_v34 = vpop.permute.xlu1 %7434  ;;  %v2931_v33 = vpack.c.bf16 %v12285_v11, %v12284_v12  ;;  %v7440_v39 = vpop.permute.xlu0 %7439  ;;  %v2939_v36 = vpack.c.bf16 %v10122_v56, %v10113_v30  ;;  %v12291_v56 = vld [vmem:[#allocation43_spill] sm:$0xff] }
 0x2f0   : > { %3459 = vmatprep.mubr.bf16.mxu0 %v12274_v24  ;;  %v10353_v8 = vpop.f32.mrf.mxu1  ;;  %v12286_v24 = vld [vmem:[#allocation71_spill] sm:$0xff]  ;;  %v2925_v16 = vpack.c.bf16 %v2879_v49, %v2878_v29  ;;  %v7437_v1 = vunpack.i.h.bf16 %v7435_v34  ;;  %v7436_v50 = vunpack.i.l.bf16 %v7435_v34  ;;  %v7442_v34 = vunpack.i.h.bf16 %v7440_v39 }
 0x2f1   : > { %v2935_v61 = vpack.c.bf16 %v12287_v14, %v12286_v24  ;;  %v7441_v12 = vunpack.i.l.bf16 %v7440_v39  ;;  %v2959_v39 = vpack.c.bf16 %v10150_v9, %v10147_v45  ;;  %v2498_v45 = vrot.slane %v10187_v20, 2 }
 0x2f2   : > { %v10364_v44 = vpop.f32.mrf.mxu1  ;;  %v2500_v9 = vrot.slane %v10189_v41, 2 }
 0x2f3   : > { %v2882_v30 = vsel %vm280_vm12, %v12291_v56, %v7441_v12  ;;  %v7445_v0 = vpop.permute.xlu1 %7444  ;;  %v12296_v12 = vld [vmem:[#allocation48_spill] sm:$0xff] }
 0x2f4   : > { %6515 = vmatmul.mubr.msk.bf16.gmra.mxu1 %vm280_vm12, %v2923_v2  ;;  %v12288_v2 = vld [vmem:[#allocation68_spill] sm:$0xff] }
 0x2f5   : > { %6518 = vmatprep.mubr.msk.bf16.mxu1 %vm280_vm12, %v2927_v51  ;;  %v2880_v51 = vsel %vm280_vm12, %v12289_v58, %v7436_v50 }
 0x2f7   : > { %3460 = vmatmul.mubr.bf16.gmra.mxu0 %v2921_v32  ;;  %v12290_v32 = vld [vmem:[#allocation42_spill] sm:$0xff] }
 0x2f8   : > { %3467 = vmatprep.mubr.bf16.mxu0 %v12281_v55  ;;  %v2881_v4 = vsel %vm280_vm12, %v12290_v32, %v7437_v1  ;;  %v2947_v1 = vpack.c.bf16 %v10160_v22, %v10139_v17  ;;  %v12293_v32 = vld [vmem:[#allocation45_spill] sm:$0xff]  ;;  %v12294_v22 = vld [vmem:[#allocation46_spill] sm:$0xff] }
 0x2f9   : > { %v2929_v49 = vpack.c.bf16 %v2881_v4, %v2880_v51 }
 0x2fc   : > { %6519 = vmatmul.mubr.msk.bf16.gmra.mxu1 %vm280_vm12, %v2931_v33 }
 0x2fd   : > { %6522 = vmatprep.mubr.msk.bf16.mxu1 %vm280_vm12, %v2935_v61  ;;  %v12292_v61 = vld [vmem:[#allocation44_spill] sm:$0xff] }
 0x2fe   : > { %v2883_v52 = vsel %vm280_vm12, %v12292_v61, %v7442_v34 }
 0x2ff   : > { %3468 = vmatmul.mubr.bf16.gmra.mxu0 %v2925_v16 }
 0x300   : > { %v6130_v59 = vpop.f32.mrf.mxu1  ;;  %3475 = vmatprep.mubr.bf16.mxu0 %v12288_v2  ;;  %v7447_v2 = vunpack.i.h.bf16 %v7445_v0 }
 0x302   : > { %v6131_v5 = vpop.f32.mrf.mxu1  ;;  %v2885_v4 = vsel %vm280_vm12, %v12294_v22, %v7447_v2 }
 0x303   : > { %v10372_v55 = vadd.f32 %v6131_v5, %v6130_v59  ;;  %v2951_v59 = vpack.c.bf16 %v10119_v6, %v10116_v15  ;;  %v7446_v5 = vunpack.i.l.bf16 %v7445_v0  ;;  %v7450_v15 = vpop.permute.xlu0 %7449  ;;  %v2955_v6 = vpack.c.bf16 %v10195_v25, %v10192_v42  ;;  %v7455_v25 = vpop.permute.xlu1 %7454 }
 0x304   : > { %v6133_v29 = vpop.f32.mrf.mxu1  ;;  %6523 = vmatmul.mubr.msk.bf16.gmra.mxu1 %vm280_vm12, %v2939_v36  ;;  %v7456_v56 = vunpack.i.l.bf16 %v7455_v25 }
 0x305   : > { %6526 = vmatprep.mubr.msk.bf16.mxu1 %vm280_vm12, %v2943_v43  ;;  %v2884_v17 = vsel %vm280_vm12, %v12293_v32, %v7446_v5  ;;  %v7451_v43 = vunpack.i.l.bf16 %v7450_v15 }
 0x306   : > { %v6134_v11 = vpop.f32.mrf.mxu1  ;;  %v2937_v36 = vpack.c.bf16 %v2885_v4, %v2884_v17 }
 0x307   : > { %v10380_v33 = vadd.f32 %v6134_v11, %v6133_v29  ;;  %3476 = vmatmul.mubr.bf16.gmra.mxu0 %v2929_v49  ;;  %v7452_v29 = vunpack.i.h.bf16 %v7450_v15  ;;  %v12295_v49 = vld [vmem:[#allocation47_spill] sm:$0xff]  ;;  %v2963_v11 = vpack.c.bf16 %v10180_v62, %v10177_v47 }
 0x308   : > { %v6136_v24 = vpop.f32.mrf.mxu1  ;;  %3483 = vmatprep.mubr.bf16.mxu0 %v10164_v38  ;;  %v2933_v38 = vpack.c.bf16 %v2883_v52, %v2882_v30  ;;  %v2886_v34 = vsel %vm280_vm12, %v12295_v49, %v7451_v43  ;;  %v12297_v30 = vpack.c.bf16 %v10053_v53, %v10050_v19  ;;  %v2501_v52 = vsel %vm559_vm1, %v2498_v45, %v2500_v9  ;;  %v7460_v53 = vpop.permute.xlu0 %7459  ;;  %v12300_v15 = vld [vmem:[#allocation51_spill] sm:$0xff] }
 0x309   : > { %v2887_v42 = vsel %vm280_vm12, %v12296_v12, %v7452_v29  ;;  %v7462_v32 = vunpack.i.h.bf16 %v7460_v53  ;;  %v7461_v17 = vunpack.i.l.bf16 %v7460_v53  ;;  %v7465_v29 = vpop.permute.xlu1 %7464 }
 0x30a   : > { %v6137_v14 = vpop.f32.mrf.mxu1  ;;  %v7466_v12 = vunpack.i.l.bf16 %v7465_v29 }
 0x30b   : > { %v10387_v16 = vadd.f32 %v6137_v14, %v6136_v24  ;;  %v7457_v14 = vunpack.i.h.bf16 %v7455_v25 }
 0x30c   : > { %v6139_v50 = vpop.f32.mrf.mxu1  ;;  %6527 = vmatmul.mubr.msk.bf16.gmra.mxu1 %vm280_vm12, %v2947_v1  ;;  %v12298_v1 = vld [vmem:[#allocation49_spill] sm:$0xff]  ;;  %v7470_v25 = vpop.permute.xlu0 %7469 }
 0x30d   : > { %6530 = vmatprep.mubr.msk.bf16.mxu1 %vm280_vm12, %v2951_v59  ;;  %v12299_v59 = vld [vmem:[#allocation50_spill] sm:$0xff] }
 0x30e   : > { %v6140_v58 = vpop.f32.mrf.mxu1  ;;  %v2889_v19 = vsel %vm280_vm12, %v12299_v59, %v7457_v14  ;;  %v12305_v14 = vld [vmem:[#allocation58_spill] sm:$0xff] }
 0x30f   : > { %v10395_v51 = vadd.f32 %v6140_v58, %v6139_v50  ;;  %3484 = vmatmul.mubr.bf16.gmra.mxu0 %v2933_v38  ;;  %v2888_v50 = vsel %vm280_vm12, %v12298_v1, %v7456_v56 }
 0x310   : > { %3491 = vmatprep.mubr.bf16.mxu0 %v10213_v26  ;;  %v2497_v26 = vrot.slane %v10185_v37, 2  ;;  %v2945_v58 = vpack.c.bf16 %v2889_v19, %v2888_v50  ;;  %v7480_v1 = vpop.permute.xlu0 %7479 }
 0x312   : > { %v2499_v61 = vsel %vm559_vm1, %v2497_v26, %v2498_v45  ;;  %v12303_v45 = vld [vmem:[#allocation54_spill] sm:$0xff] }
 0x313   : > { %v2971_v62 = vpack.c.bf16 %v2501_v52, %v2499_v61  ;;  %v7475_v52 = vpop.permute.xlu1 %7474 }
 0x314   : > { %6531 = vmatmul.mubr.msk.bf16.gmra.mxu1 %vm280_vm12, %v2955_v6  ;;  %v2890_v6 = vsel %vm280_vm12, %v12300_v15, %v7461_v17 }
 0x315   : > { %6534 = vmatprep.mubr.msk.bf16.mxu1 %vm280_vm12, %v2959_v39  ;;  %v12301_v39 = vld [vmem:[#allocation52_spill] sm:$0xff] }
 0x317   : > { %3492 = vmatmul.mubr.bf16.gmra.mxu0 %v2937_v36  ;;  %v2891_v36 = vsel %vm280_vm12, %v12301_v39, %v7462_v32 }
 0x318   : > { %3499 = vmatprep.mubr.bf16.mxu0 %v10240_v31  ;;  %v2941_v31 = vpack.c.bf16 %v2887_v42, %v2886_v34  ;;  %v2949_v49 = vpack.c.bf16 %v2891_v36, %v2890_v6  ;;  %v7467_v34 = vunpack.i.h.bf16 %v7465_v29  ;;  %v12302_v42 = vld [vmem:[#allocation53_spill] sm:$0xff] }
 0x31a   : > { %v2893_v9 = vsel %vm280_vm12, %v12303_v45, %v7467_v34  ;;  %v12307_v34 = vld [vmem:[#allocation61_spill] sm:$0xff]  ;;  %v7490_v45 = vpop.permute.xlu0 %7489 }
 0x31c   : > { %6535 = vmatmul.mubr.msk.bf16.gmra.mxu1 %vm280_vm12, %v2963_v11  ;;  %v12304_v11 = vmov 0.0  }
 0x31d   : > { %v6142_v24 = vpop.f32.mrf.mxu1  ;;  %6538 = vmatprep.mubr.msk.bf16.mxu1 %vm280_vm12, %v12297_v30  ;;  %334 = vst.msk [vmem:[#allocation3] sm:$0x1] %vm333_vm8, %v12304_v11  ;;  %352 = vst.msk [vmem:[#allocation3 + $0x11] sm:$0x1] %vm333_vm8, %v12304_v11  ;;  %v12306_v30 = vld [vmem:[#allocation59_spill] sm:$0xff] }
 0x31e   : > { %335 = vst.msk [vmem:[#allocation3 + $0x18] sm:$0x1] %vm333_vm8, %v12304_v11  ;;  %336 = vst.msk [vmem:[#allocation3 + $0x30] sm:$0x1] %vm333_vm8, %v12304_v11 }
 0x31f   : > { %v6143_v41 = vpop.f32.mrf.mxu1  ;;  %3500 = vmatmul.mubr.bf16.gmra.mxu0 %v2941_v31  ;;  %337 = vst.msk [vmem:[#allocation3 + $0x48] sm:$0x1] %vm333_vm8, %v12304_v11  ;;  %338 = vst.msk [vmem:[#allocation3 + $0x60] sm:$0x1] %vm333_vm8, %v12304_v11  ;;  %v7471_v31 = vunpack.i.l.bf16 %v7470_v25 }
 0x320   : > { %v10425_v0 = vadd.f32 %v6143_v41, %v6142_v24  ;;  %3507 = vmatprep.mubr.bf16.mxu0 %v10251_v57  ;;  %339 = vst.msk [vmem:[#allocation3 + $0x78] sm:$0x1] %vm333_vm8, %v12304_v11  ;;  %340 = vst.msk [vmem:[#allocation3 + $0x90] sm:$0x1] %vm333_vm8, %v12304_v11  ;;  %v7472_v24 = vunpack.i.h.bf16 %v7470_v25 }
 0x321   : > { %v6145_v47 = vpop.f32.mrf.mxu1  ;;  %341 = vst.msk [vmem:[#allocation3 + $0xa8] sm:$0x1] %vm333_vm8, %v12304_v11  ;;  %342 = vst.msk [vmem:[#allocation3 + $0xc0] sm:$0x1] %vm333_vm8, %v12304_v11  ;;  %v2894_v56 = vsel %vm280_vm12, %v12305_v14, %v7471_v31 }
 0x322   : > { %343 = vst.msk [vmem:[#allocation3 + $0xd8] sm:$0x1] %vm333_vm8, %v12304_v11  ;;  %344 = vst.msk [vmem:[#allocation3 + $0xf0] sm:$0x1] %vm333_vm8, %v12304_v11  ;;  %v2895_v61 = vsel %vm280_vm12, %v12306_v30, %v7472_v24  ;;  %v7492_v30 = vunpack.i.h.bf16 %v7490_v45 }
 0x323   : > { %v6146_v38 = vpop.f32.mrf.mxu1  ;;  %345 = vst.msk [vmem:[#allocation3 + $0x108] sm:$0x1] %vm333_vm8, %v12304_v11  ;;  %346 = vst.msk [vmem:[#allocation3 + $0x120] sm:$0x1] %vm333_vm8, %v12304_v11 }
 0x324   : > { %v10432_v2 = vadd.f32 %v6146_v38, %v6145_v47  ;;  %6539 = vmatmul.mubr.msk.bf16.gmra.mxu1 %vm280_vm12, %v2971_v62  ;;  %347 = vst.msk [vmem:[#allocation3 + $0x138] sm:$0x1] %vm333_vm8, %v12304_v11  ;;  %348 = vst.msk [vmem:[#allocation3 + $0x150] sm:$0x1] %vm333_vm8, %v12304_v11  ;;  %v3854_v41 = vld [vmem:[#allocation3] sm:$0xff]  ;;  %v3855_v47 = vld [vmem:[#allocation3 + $0x8] sm:$0xff]  ;;  %v2957_v38 = vpack.c.bf16 %v2895_v61, %v2894_v56  ;;  %v7491_v61 = vunpack.i.l.bf16 %v7490_v45 }
 0x325   : > { %v6148_v5 = vpop.f32.mrf.mxu1  ;;  %349 = vst.msk [vmem:[#allocation3 + $0x168] sm:$0x1] %vm333_vm8, %v12304_v11  ;;  %350 = vst.msk [vmem:[#allocation3 + $0x180] sm:$0x1] %vm333_vm8, %v12304_v11  ;;  %v3856_v62 = vld [vmem:[#allocation3 + $0x10] sm:$0xff]  ;;  %v3993_v59 = vrot.slane %v3854_v41, 1 }
 0x326   : > { %351 = vst.msk [vmem:[#allocation3 + $0x198] sm:$0x1] %vm333_vm8, %v12304_v11  ;;  %353 = vst.msk [vmem:[#allocation3 + $0x29] sm:$0x1] %vm333_vm8, %v12304_v11  ;;  %v3994_v19 = vrot.slane %v3855_v47, 1  ;;  %v3996_v53 = vrot.slane %v3856_v62, 1 }
 0x327   : > { %v6149_v22 = vpop.f32.mrf.mxu1  ;;  %3508 = vmatmul.mubr.bf16.gmra.mxu0 %v2945_v58  ;;  %354 = vst.msk [vmem:[#allocation3 + $0x41] sm:$0x1] %vm333_vm8, %v12304_v11  ;;  %355 = vst.msk [vmem:[#allocation3 + $0x59] sm:$0x1] %vm333_vm8, %v12304_v11  ;;  %v7476_v58 = vunpack.i.l.bf16 %v7475_v52  ;;  %v4073_v36 = vrot.slane %v3854_v41, 2  ;;  %v4074_v29 = vrot.slane %v3855_v47, 2 }
 0x328   : > { %v10435_v57 = vadd.f32 %v6149_v22, %v6148_v5  ;;  %3515 = vmatprep.mubr.bf16.mxu0 %v10262_v35  ;;  %v2892_v35 = vsel %vm280_vm12, %v12302_v42, %v7466_v12  ;;  %356 = vst.msk [vmem:[#allocation3 + $0x71] sm:$0x1] %vm333_vm8, %v12304_v11  ;;  %357 = vst.msk [vmem:[#allocation3 + $0x89] sm:$0x1] %vm333_vm8, %v12304_v11  ;;  %v7477_v5 = vunpack.i.h.bf16 %v7475_v52  ;;  %v7482_v22 = vunpack.i.h.bf16 %v7480_v1  ;;  %v12308_v42 = vld [vmem:[#allocation62_spill] sm:$0xff] }
 0x329   : > { %v6151_v4 = vpop.f32.mrf.mxu1  ;;  %358 = vst.msk [vmem:[#allocation3 + $0xa1] sm:$0x1] %vm333_vm8, %v12304_v11  ;;  %359 = vst.msk [vmem:[#allocation3 + $0xb9] sm:$0x1] %vm333_vm8, %v12304_v11  ;;  %v3997_v17 = vsel %vm478_vm0, %v3994_v19, %v3996_v53  ;;  %v2896_v12 = vsel %vm280_vm12, %v12307_v34, %v7476_v58  ;;  %v8017_v58 = vld [vmem:[%s12113_s5 + $0x88] sm:$0xff]  }
 0x32a   : > { %360 = vst.msk [vmem:[#allocation3 + $0xd1] sm:$0x1] %vm333_vm8, %v12304_v11  ;;  %361 = vst.msk [vmem:[#allocation3 + $0xe9] sm:$0x1] %vm333_vm8, %v12304_v11  ;;  %v2903_v24 = vsel %vm280_vm12, %v10020_v23, %v7482_v22  ;;  %v2905_v23 = vsel %vm280_vm12, %v10187_v20, %v7492_v30  ;;  %6542 = vmatprep.subr.bf16.mxu1 %v8017_v58 }
 0x32b   : > { %v6152_v43 = vpop.f32.mrf.mxu1  ;;  %362 = vst.msk [vmem:[#allocation3 + $0x101] sm:$0x1] %vm333_vm8, %v12304_v11  ;;  %363 = vst.msk [vmem:[#allocation3 + $0x119] sm:$0x1] %vm333_vm8, %v12304_v11  ;;  %6543 = vmatpush3.bf16.msra.mxu1 %v8017_v58 }
 0x32c   : > { %v10442_v26 = vadd.f32 %v6152_v43, %v6151_v4  ;;  %364 = vst.msk [vmem:[#allocation3 + $0x131] sm:$0x1] %vm333_vm8, %v12304_v11  ;;  %365 = vst.msk [vmem:[#allocation3 + $0x149] sm:$0x1] %vm333_vm8, %v12304_v11  ;;  %v7481_v4 = vunpack.i.l.bf16 %v7480_v1  ;;  %v4076_v43 = vrot.slane %v3856_v62, 2 }
 0x32d   : > { %366 = vst.msk [vmem:[#allocation3 + $0x161] sm:$0x1] %vm333_vm8, %v12304_v11  ;;  %367 = vst.msk [vmem:[#allocation3 + $0x179] sm:$0x1] %vm333_vm8, %v12304_v11 }
 0x32e   : > { %368 = vst.msk [vmem:[#allocation3 + $0x191] sm:$0x1] %vm333_vm8, %v12304_v11  ;;  %369 = vst.msk [vmem:[#allocation3 + $0x1a9] sm:$0x1] %vm333_vm8, %v12304_v11  ;;  %v4077_v25 = vsel %vm559_vm1, %v4074_v29, %v4076_v43  ;;  %v7485_v11 = vpop.permute.xlu1 %7484 }
 0x32f   : > { %3516 = vmatmul.mubr.bf16.gmra.mxu0 %v2949_v49  ;;  %v7487_v52 = vunpack.i.h.bf16 %v7485_v11  ;;  %v7486_v41 = vunpack.i.l.bf16 %v7485_v11 }
 0x330   : > { %3523 = vmatprep.mubr.bf16.mxu0 %v10273_v28  ;;  %v2953_v28 = vpack.c.bf16 %v2893_v9, %v2892_v35  ;;  %v2897_v35 = vsel %vm280_vm12, %v12308_v42, %v7477_v5  ;;  %v4075_v9 = vsel %vm559_vm1, %v4073_v36, %v4074_v29 }
 0x331   : > { %v7503_v31 = vpack.i.bf16 %v4077_v25, %v4075_v9  ;;  %v2961_v56 = vpack.c.bf16 %v2897_v35, %v2896_v12 }
 0x337   : > { %3524 = vmatmul.mubr.bf16.gmra.mxu0 %v2953_v28 }
 0x338   : > { %3531 = vmatprep.mubr.bf16.mxu0 %v10296_v7  ;;  %v3995_v7 = vsel %vm478_vm0, %v3993_v59, %v3994_v19  ;;  %v12309_v19 = vld [vmem:[#allocation69_spill] sm:$0xff] }
 0x339   : > { %v7498_v6 = vpack.i.bf16 %v3997_v17, %v3995_v7  ;;  %v2898_v53 = vsel %vm280_vm12, %v12309_v19, %v7486_v41  ;;  %v8021_v19 = vld [vmem:[%s12113_s5 + $0x70] sm:$0xff]  }
 0x33b   : > { %7499 = vrot.lane.b32.xlu0 %v7498_v6, %s8115_s16 }
 0x33c   : > { %v6154_v50 = vpop.f32.mrf.mxu1 }
 0x33e   : > { %v6155_v32 = vpop.f32.mrf.mxu1 }
 0x33f   : > { %v10528_v15 = vadd.f32 %v6155_v32, %v6154_v50  ;;  %3532 = vmatmul.mubr.bf16.gmra.mxu0 %v2957_v38  ;;  %7504 = vrot.lane.b32.xlu0 %v7503_v31, %s8117_s21  ;;  %v12310_v38 = vld [vmem:[#allocation70_spill] sm:$0xff]  ;;  %v7495_v32 = vpop.permute.xlu1 %7494 }
 0x340   : > { %v6157_v39 = vpop.f32.mrf.mxu1  ;;  %3539 = vmatprep.mubr.bf16.mxu0 %v10310_v48  ;;  %v2902_v48 = vsel %vm280_vm12, %v10018_v10, %v7481_v4  ;;  %v2904_v10 = vsel %vm280_vm12, %v10185_v37, %v7491_v61  ;;  %v2899_v5 = vsel %vm280_vm12, %v12310_v38, %v7487_v52  ;;  %v7497_v22 = vunpack.i.h.bf16 %v7495_v32  ;;  %v8018_v4 = vld [vmem:[%s12113_s5 + $0x80] sm:$0xff]   ;;  %v8019_v52 = vld [vmem:[%s12113_s5 + $0x78] sm:$0xff]  }
 0x341   : > { %v2966_v62 = vpack.c.bf16 %v2903_v24, %v2902_v48  ;;  %v2970_v17 = vpack.c.bf16 %v2905_v23, %v2904_v10  ;;  %v2965_v37 = vpack.c.bf16 %v2899_v5, %v2898_v53  ;;  %v7496_v20 = vunpack.i.l.bf16 %v7495_v32  ;;  %6544 = vmatprep.subr.bf16.mxu1 %v8018_v4  ;;  %6334 = vmatprep.subr.bf16.mxu0 %v8019_v52  ;;  %v8022_v53 = vld [vmem:[%s12113_s5 + $0x30] sm:$0xff]  }
 0x342   : > { %v6158_v49 = vpop.f32.mrf.mxu1  ;;  %6545 = vmatpush3.bf16.msra.mxu1 %v8018_v4  ;;  %v8023_v4 = vld [vmem:[%s12113_s5 + $0x68] sm:$0xff]  }
 0x343   : > { %v10538_v28 = vadd.f32 %v6158_v49, %v6157_v39  ;;  %v2900_v6 = vsel %vm280_vm12, %v10216_v60, %v7496_v20  ;;  %v12311_v39 = vld [vmem:[#allocation73_spill] sm:$0xff] }
 0x344   : > { %v6160_v14 = vpop.f32.mrf.mxu1  ;;  %v2901_v36 = vsel %vm280_vm12, %v12311_v39, %v7497_v22 }
 0x345   : > { %v2969_v29 = vpack.c.bf16 %v2901_v36, %v2900_v6 }
 0x346   : > { %v6161_v47 = vpop.f32.mrf.mxu1 }
 0x347   : > { %v10545_v1 = vadd.f32 %v6161_v47, %v6160_v14  ;;  %3540 = vmatmul.mubr.bf16.gmra.mxu0 %v2961_v56 }
 0x348   : > { %v6163_v50 = vpop.f32.mrf.mxu1  ;;  %3547 = vmatprep.mubr.bf16.mxu0 %v2966_v62 }
 0x34a   : > { %v6164_v59 = vpop.f32.mrf.mxu1 }
 0x34b   : > { %v10558_v7 = vadd.f32 %v6164_v59, %v6163_v50  ;;  %v8020_v50 = vld [vmem:[%s12113_s5 + $0x38] sm:$0xff]  }
 0x34c   : > { %6335 = vmatpush3.bf16.msra.mxu0 %v8020_v50 }
 0x34d   : > { %6336 = vmatprep.subr.bf16.mxu0 %v8021_v19 }
 0x34f   : > { %3548 = vmatmul.mubr.bf16.gmra.mxu0 %v2965_v37 }
 0x350   : > { %3555 = vmatprep.mubr.bf16.mxu0 %v2970_v17  ;;  %6337 = vmatpush3.bf16.msra.mxu0 %v8022_v53 }
 0x351   : > { %6338 = vmatprep.subr.bf16.mxu0 %v8023_v4 }
 0x357   : > { %3556 = vmatmul.mubr.bf16.gmra.mxu0 %v2969_v29  ;;  %v10605_v29 = vld [vmem:[%s12112_s4] ss:$0 sm:$0xff] }
 0x35c   : > { %v6166_v43 = vpop.f32.mrf.mxu1 }
 0x35e   : > { %v6167_v49 = vpop.f32.mrf.mxu1 }
 0x35f   : > { %v10567_v34 = vadd.f32 %v6167_v49, %v6166_v43 }
 0x360   : > { %v6169_v12 = vpop.f32.mrf.mxu1 }
 0x362   : > { %v6170_v42 = vpop.f32.mrf.mxu1 }
 0x363   : > { %v10569_v35 = vadd.f32 %v6170_v42, %v6169_v12  ;;  %v8024_v12 = vld [vmem:[%s12113_s5 + $0x28] sm:$0xff]  }
 0x364   : > { %v6172_v45 = vpop.f32.mrf.mxu1  ;;  %6339 = vmatpush3.bf16.msra.mxu0 %v8024_v12 }
 0x366   : > { %v6173_v9 = vpop.f32.mrf.mxu1 }
 0x367   : > { %v10571_v25 = vadd.f32 %v6173_v9, %v6172_v45 }
 0x368   : > { %v6175_v11 = vpop.f32.mrf.mxu1 }
 0x36a   : > { %v6176_v48 = vpop.f32.mrf.mxu1 }
 0x36b   : > { %v10573_v60 = vadd.f32 %v6176_v48, %v6175_v11  ;;  %v8025_v11 = vld [vmem:[%s12113_s5 + $0x60] sm:$0xff]   ;;  %v3285_v48 = vadd.f32 %v10282_v3, %v10605_v29 }
 0x36c   : > { %6340 = vmatprep.subr.bf16.mxu0 %v8025_v11  ;;  %v8026_v3 = vld [vmem:[%s12113_s5 + $0x20] sm:$0xff]  }
 0x36d   : > { %6341 = vmatpush3.bf16.msra.mxu0 %v8026_v3 }
 0x37c   : > { %v6178_v24 = vpop.f32.mrf.mxu1 }
 0x37e   : > { %v6179_v31 = vpop.f32.mrf.mxu1 }
 0x37f   : > { %v10575_v14 = vadd.f32 %v6179_v31, %v6178_v24  ;;  %v6117_v24 = vadd.f32 %v10312_v13, %v10303_v21 }
 0x380   : > { %v6181_v56 = vpop.f32.mrf.mxu1 }
 0x381   : > { %v3288_v53 = vadd.f32 %v6117_v24, %v10605_v29 }
 0x382   : > { %v6182_v30 = vpop.f32.mrf.mxu1 }
 0x383   : > { %v10577_v61 = vadd.f32 %v6182_v30, %v6181_v56  ;;  %v6111_v30 = vadd.f32 %v10280_v46, %v10278_v40 }
 0x384   : > { %v6184_v41 = vpop.f32.mrf.mxu1 }
 0x386   : > { %v6185_v47 = vpop.f32.mrf.mxu1 }
 0x387   : > { %v10582_v62 = vadd.f32 %v6185_v47, %v6184_v41  ;;  %v12312_v47 = vld [vmem:[#allocation74_spill] sm:$0xff] }
 0x388   : > { %v6187_v10 = vpop.f32.mrf.mxu1  ;;  %v3277_v50 = vadd.f32 %v12312_v47, %v10605_v29 }
 0x38a   : > { %v6188_v23 = vpop.f32.mrf.mxu1 }
 0x38b   : > { %v10587_v59 = vadd.f32 %v6188_v23, %v6187_v10 }
 0x39c   : > { %v6190_v38 = vpop.f32.mrf.mxu1 }
 0x39e   : > { %v6191_v5 = vpop.f32.mrf.mxu1 }
 0x39f   : > { %v6218_v58 = vpop.f32.mrf.mxu0  ;;  %v10595_v32 = vadd.f32 %v6191_v5, %v6190_v38  ;;  %v3280_v5 = vadd.f32 %v6111_v30, %v10605_v29 }
 0x3a0   : > { %v6193_v17 = vpop.f32.mrf.mxu1 }
 0x3a1   : > { %v6219_v37 = vpop.f32.mrf.mxu0 }
 0x3a2   : > { %v6194_v22 = vpop.f32.mrf.mxu1  ;;  %v6220_v31 = vadd.f32 %v6219_v37, %v6218_v58 }
 0x3a3   : > { %v6221_v20 = vpop.f32.mrf.mxu0  ;;  %v10600_v6 = vadd.f32 %v6194_v22, %v6193_v17 }
 0x3a4   : > { %v6196_v39 = vpop.f32.mrf.mxu1  ;;  %v3438_v46 = vadd.f32 %v6220_v31, %v3277_v50 }
 0x3a5   : > { %v6222_v36 = vpop.f32.mrf.mxu0 }
 0x3a6   : > { %v6197_v43 = vpop.f32.mrf.mxu1  ;;  %v6223_v19 = vadd.f32 %v6222_v36, %v6221_v20 }
 0x3a7   : > { %v6224_v49 = vpop.f32.mrf.mxu0  ;;  %v10610_v42 = vadd.f32 %v6197_v43, %v6196_v39  ;;  %v6123_v39 = vadd.f32 %v10327_v27, %v10324_v63 }
 0x3a8   : > { %v6199_v45 = vpop.f32.mrf.mxu1  ;;  %v3441_v43 = vadd.f32 %v6223_v19, %v3280_v5 }
 0x3a9   : > { %v6225_v9 = vpop.f32.mrf.mxu0  ;;  %v3296_v63 = vadd.f32 %v6123_v39, %v10605_v29 }
 0x3aa   : > { %v6226_v56 = vadd.f32 %v6225_v9, %v6224_v49  ;;  %v6200_v52 = vpop.f32.mrf.mxu1  ;;  %v3293_v9 = vadd.f32 %v10322_v54, %v10605_v29 }
 0x3ab   : > { %v6227_v41 = vpop.f32.mrf.mxu0  ;;  %v10623_v10 = vadd.f32 %v6200_v52, %v6199_v45 }
 0x3ac   : > { %v3446_v23 = vadd.f32 %v6226_v56, %v3285_v48  ;;  %v6512_v21 = vpop.f32.mrf.mxu1 }
 0x3ad   : > { %v6228_v13 = vpop.f32.mrf.mxu0 }
 0x3ae   : > { %v3607_v38 = vadd.f32 %v6512_v21, %v3446_v23  ;;  %v6229_v40 = vadd.f32 %v6228_v13, %v6227_v41  ;;  %v3598_v58 = vpop.f32.mrf.mxu1 }
 0x3af   : > { %v6230_v17 = vpop.f32.mrf.mxu0  ;;  %v3599_v22 = vadd.f32 %v3598_v58, %v3438_v46  ;;  %v3301_v46 = vadd.f32 %v10339_v18, %v10605_v29 }
 0x3b0   : > { %vm3727_vm9 = vcmp.gt.f32.partialorder %v3607_v38, 0.0  ;;  %v3759_v37 = vmul.f32 0.1, %v3607_v38  ;;  %v3449_v4 = vadd.f32 %v6229_v40, %v3288_v53  ;;  %v6513_v20 = vpop.f32.mrf.mxu1  ;;  %v6129_v53 = vadd.f32 %v10364_v44, %v10353_v8 }
 0x3b1   : > { %v6231_v36 = vpop.f32.mrf.mxu0  ;;  %vm3725_vm11 = vcmp.gt.f32.partialorder %v3599_v22, 0.0  ;;  %v3757_v12 = vmul.f32 0.1, %v3599_v22  ;;  %v3309_v8 = vadd.f32 %v10372_v55, %v10605_v29 }
 0x3b2   : > { %v3791_v49 = vsel %vm3727_vm9, %v3607_v38, %v3759_v37  ;;  %v3610_v45 = vadd.f32 %v6513_v20, %v3449_v4  ;;  %v6232_v11 = vadd.f32 %v6231_v36, %v6230_v17  ;;  %v3601_v48 = vpop.f32.mrf.mxu1  ;;  %v3304_v36 = vadd.f32 %v6129_v53, %v10605_v29 }
 0x3b3   : > { %3824 = vst.msk [vmem:[#allocation3 + $0x31] sm:$0xff] %vm325_vm10, %v3791_v49  ;;  %v6233_v24 = vpop.f32.mrf.mxu0  ;;  %v3789_v31 = vsel %vm3725_vm11, %v3599_v22, %v3757_v12  ;;  %v3602_v30 = vadd.f32 %v3601_v48, %v3441_v43  ;;  %v8027_v49 = vld [vmem:[%s12113_s5 + $0x58] sm:$0xff]  }
 0x3b4   : > { %vm3728_vm13 = vcmp.gt.f32.partialorder %v3610_v45, 0.0  ;;  %v3760_v56 = vmul.f32 0.1, %v3610_v45  ;;  %3822 = vst.msk [vmem:[#allocation3 + $0x19] sm:$0xff] %vm325_vm10, %v3789_v31  ;;  %v6516_v27 = vpop.f32.mrf.mxu1  ;;  %v3454_v41 = vadd.f32 %v6232_v11, %v3293_v9  ;;  %v8028_v12 = vld [vmem:[%s12113_s5 + $0x18] sm:$0xff]   ;;  %6342 = vmatprep.subr.bf16.mxu0 %v8027_v49 }
 0x3b5   : > { %v6234_v52 = vpop.f32.mrf.mxu0  ;;  %vm3726_vm14 = vcmp.gt.f32.partialorder %v3602_v30, 0.0  ;;  %v3758_v50 = vmul.f32 0.1, %v3602_v30  ;;  %6343 = vmatpush3.bf16.msra.mxu0 %v8028_v12 }
 0x3b6   : > { %v3792_v47 = vsel %vm3728_vm13, %v3610_v45, %v3760_v56  ;;  %v6235_v54 = vadd.f32 %v6234_v52, %v6233_v24  ;;  %v3614_v23 = vpop.f32.mrf.mxu1 }
 0x3b7   : > { %3825 = vst.msk [vmem:[#allocation3 + $0x39] sm:$0xff] %vm325_vm10, %v3792_v47  ;;  %v6236_v3 = vpop.f32.mrf.mxu0  ;;  %v3790_v19 = vsel %vm3726_vm14, %v3602_v30, %v3758_v50  ;;  %v3615_v21 = vadd.f32 %v3614_v23, %v3454_v41 }
 0x3b8   : > { %v3457_v13 = vadd.f32 %v6235_v54, %v3296_v63  ;;  %3823 = vst.msk [vmem:[#allocation3 + $0x21] sm:$0xff] %vm325_vm10, %v3790_v19  ;;  %v6517_v38 = vpop.f32.mrf.mxu1 }
 0x3b9   : > { %v6237_v40 = vpop.f32.mrf.mxu0  ;;  %vm3729_vm15 = vcmp.gt.f32.partialorder %v3615_v21, 0.0  ;;  %v3761_v5 = vmul.f32 0.1, %v3615_v21 }
 0x3ba   : > { %v6238_v58 = vadd.f32 %v6237_v40, %v6236_v3  ;;  %v10643_v17 = vld [vmem:[#allocation3 + $0x30] sm:$0xff]  ;;  %v3617_v37 = vpop.f32.mrf.mxu1 }
 0x3bb   : > { %v6239_v22 = vpop.f32.mrf.mxu0  ;;  %v3793_v4 = vsel %vm3729_vm15, %v3615_v21, %v3761_v5  ;;  %v3618_v20 = vadd.f32 %v3617_v37, %v3457_v13  ;;  %v4083_v43 = vrot.slane %v10643_v17, 2  ;;  %v4003_v63 = vrot.slane %v10643_v17, 1  ;;  %v10660_v50 = vld [vmem:[#allocation3 + $0x18] sm:$0xff] }
 0x3bc   : > { %v3462_v39 = vadd.f32 %v6238_v58, %v3301_v46  ;;  %3826 = vst.msk [vmem:[#allocation3 + $0x49] sm:$0xff] %vm325_vm10, %v3793_v4  ;;  %v10649_v44 = vpop.f32.mrf.mxu1 }
 0x3bd   : > { %v6240_v18 = vpop.f32.mrf.mxu0  ;;  %vm3730_vm2 = vcmp.gt.f32.partialorder %v3618_v20, 0.0  ;;  %v3762_v9 = vmul.f32 0.1, %v3618_v20 }
 0x3be   : > { %v3623_v45 = vadd.f32 %v6516_v27, %v3462_v39  ;;  %v6241_v11 = vadd.f32 %v6240_v18, %v6239_v22  ;;  %v3861_v55 = vld [vmem:[#allocation3 + $0x38] sm:$0xff]  ;;  %v3862_v48 = vld [vmem:[#allocation3 + $0x40] sm:$0xff]  ;;  %v3630_v23 = vpop.f32.mrf.mxu1 }
 0x3bf   : > { %v6242_v24 = vpop.f32.mrf.mxu0  ;;  %v7508_v31 = vpack.i.bf16 %v3861_v55, %v10643_v17  ;;  %v4084_v56 = vrot.slane %v3861_v55, 2  ;;  %v4086_v30 = vrot.slane %v3862_v48, 2  ;;  %v3794_v41 = vsel %vm3730_vm2, %v3618_v20, %v3762_v9  ;;  %v10662_v27 = vld [vmem:[#allocation3 + $0x20] sm:$0xff]  ;;  %v10664_v54 = vld [vmem:[#allocation3 + $0x28] sm:$0xff] }
 0x3c0   : > { %vm3731_vm3 = vcmp.gt.f32.partialorder %v3623_v45, 0.0  ;;  %v3763_v52 = vmul.f32 0.1, %v3623_v45  ;;  %v3465_v47 = vadd.f32 %v6241_v11, %v3304_v36  ;;  %3827 = vst.msk [vmem:[#allocation3 + $0x51] sm:$0xff] %vm325_vm10, %v3794_v41  ;;  %v7518_v19 = vpack.i.bf16 %v10662_v27, %v10660_v50  ;;  %v10689_v18 = vpop.f32.mrf.mxu1 }
 0x3c1   : > { %v6243_v3 = vpop.f32.mrf.mxu0  ;;  %7509 = vrot.lane.b32.xlu1 %v7508_v31, %s8117_s21  ;;  %v10671_v21 = vsel %vm559_vm1, %v4083_v43, %v4084_v56  ;;  %v10674_v13 = vsel %vm559_vm1, %v4084_v56, %v4086_v30  ;;  %v4079_v53 = vrot.slane %v10662_v27, 2  ;;  %v4081_v37 = vrot.slane %v10664_v54, 2 }
 0x3c2   : > { %v3795_v40 = vsel %vm3731_vm3, %v3623_v45, %v3763_v52  ;;  %v3626_v46 = vadd.f32 %v6517_v38, %v3465_v47  ;;  %v6244_v5 = vadd.f32 %v6243_v3, %v6242_v24  ;;  %v5014_v58 = vpack.c.bf16 %v10674_v13, %v10671_v21  ;;  %7519 = vrot.lane.b32.xlu0 %v7518_v19, %s8118_s9  ;;  %v8029_v38 = vld [vmem:[%s12113_s5 + $0x50] sm:$0xff]  }
 0x3c3   : > { %3828 = vst.msk [vmem:[#allocation3 + $0x61] sm:$0xff] %vm325_vm10, %v3795_v40  ;;  %v6245_v17 = vpop.f32.mrf.mxu0  ;;  %v4004_v22 = vrot.slane %v3861_v55, 1  ;;  %v4006_v4 = vrot.slane %v3862_v48, 1  ;;  %v3312_v36 = vadd.f32 %v10380_v33, %v10605_v29  ;;  %v10695_v49 = vsel %vm559_vm1, %v4079_v53, %v4081_v37  ;;  %v8030_v33 = vld [vmem:[%s12113_s5 + $0x10] sm:$0xff]   ;;  %v10708_v48 = vld [vmem:[#allocation3 + $0x48] sm:$0xff]  ;;  %6344 = vmatprep.subr.bf16.mxu0 %v8029_v38  ;;  %v8031_v37 = vld [vmem:[%s12113_s5 + $0x48] sm:$0xff]  }
 0x3c4   : > { %vm3732_vm4 = vcmp.gt.f32.partialorder %v3626_v46, 0.0  ;;  %v3764_v39 = vmul.f32 0.1, %v3626_v46  ;;  %v3470_v20 = vadd.f32 %v6244_v5, %v3309_v8  ;;  %6546 = vmatprep.mubr.msk.bf16.mxu1 %vm325_vm10, %v5014_v58  ;;  %v7543_v55 = vpack.i.bf16 %v10671_v21, %v10695_v49  ;;  %6345 = vmatpush3.bf16.msra.mxu0 %v8030_v33 }
 0x3c5   : > { %v6246_v43 = vpop.f32.mrf.mxu0  ;;  %7514 = vrot.lane.b32.xlu1 %v7508_v31, %s8118_s9  ;;  %v10698_v8 = vsel %vm478_vm0, %v4003_v63, %v4004_v22  ;;  %v10701_v12 = vsel %vm478_vm0, %v4004_v22, %v4006_v4  ;;  %v3317_v24 = vadd.f32 %v10387_v16, %v10605_v29  ;;  %v3320_v30 = vadd.f32 %v10395_v51, %v10605_v29  ;;  %v3633_v16 = vpop.f32.mrf.mxu1  ;;  %v8032_v22 = vld [vmem:[%s12113_s5 + $0x8] sm:$0xff]  }
 0x3c6   : > { %v3796_v45 = vsel %vm3732_vm4, %v3626_v46, %v3764_v39  ;;  %v3631_v9 = vadd.f32 %v3630_v23, %v3470_v20  ;;  %v6247_v11 = vadd.f32 %v6246_v43, %v6245_v17  ;;  %v7523_v56 = vpack.i.bf16 %v10701_v12, %v10698_v8  ;;  %7544 = vrot.lane.b32.xlu0 %v7543_v55, %s8115_s16 }
 0x3c7   : > { %3829 = vst.msk [vmem:[#allocation3 + $0x69] sm:$0xff] %vm325_vm10, %v3796_v45  ;;  %v6248_v31 = vpop.f32.mrf.mxu0  ;;  %v10718_v41 = vld [vmem:[#allocation3 + $0x50] sm:$0xff]  ;;  %v10720_v47 = vld [vmem:[#allocation3 + $0x58] sm:$0xff]  ;;  %v4088_v3 = vrot.slane %v10708_v48, 2  ;;  %v3999_v51 = vrot.slane %v10662_v27, 1  ;;  %v3998_v17 = vrot.slane %v10660_v50, 1  ;;  %6346 = vmatprep.subr.bf16.mxu0 %v8031_v37  ;;  %v7533_v55 = vpack.i.bf16 %v10674_v13, %v10671_v21 }
 0x3c8   : > { %vm3733_vm5 = vcmp.gt.f32.partialorder %v3631_v9, 0.0  ;;  %v3765_v63 = vmul.f32 0.1, %v3631_v9  ;;  %v3473_v52 = vadd.f32 %v6247_v11, %v3312_v36  ;;  %v4089_v19 = vrot.slane %v10718_v41, 2  ;;  %6347 = vmatpush3.bf16.msra.mxu0 %v8032_v22 }
 0x3c9   : > { %v6249_v23 = vpop.f32.mrf.mxu0  ;;  %7524 = vrot.lane.b32.xlu1 %v7523_v56, %s8118_s9  ;;  %v4091_v40 = vrot.slane %v10720_v47, 2  ;;  %v4078_v36 = vrot.slane %v10660_v50, 2  ;;  %v3325_v37 = vadd.f32 %v10425_v0, %v10605_v29  ;;  %v4009_v27 = vrot.slane %v10718_v41, 1 }
 0x3ca   : > { %v3797_v46 = vsel %vm3733_vm5, %v3631_v9, %v3765_v63  ;;  %v3634_v5 = vadd.f32 %v3633_v16, %v3473_v52  ;;  %v6250_v58 = vadd.f32 %v6249_v23, %v6248_v31  ;;  %v10736_v39 = vsel %vm559_vm1, %v4088_v3, %v4089_v19  ;;  %v3866_v38 = vld [vmem:[#allocation3 + $0x60] sm:$0xff]  ;;  %v10744_v9 = vpop.f32.mrf.mxu1  ;;  %v8033_v3 = vld [vmem:[%s12113_s5 + $0x40] sm:$0xff]  }
 0x3cb   : > { %3830 = vst.msk [vmem:[#allocation3 + $0x79] sm:$0xff] %vm325_vm10, %v3797_v46  ;;  %v6251_v4 = vpop.f32.mrf.mxu0  ;;  %v10739_v20 = vsel %vm559_vm1, %v4089_v19, %v4091_v40  ;;  %v10752_v31 = vsel %vm478_vm0, %v3998_v17, %v3999_v51  ;;  %v10757_v50 = vsel %vm559_vm1, %v4078_v36, %v4079_v53  ;;  %v4093_v23 = vrot.slane %v3866_v38, 2  ;;  %6348 = vmatprep.subr.bf16.mxu0 %v8033_v3 }
 0x3cc   : > { %vm3734_vm6 = vcmp.gt.f32.partialorder %v3634_v5, 0.0  ;;  %v3766_v43 = vmul.f32 0.1, %v3634_v5  ;;  %v3478_v33 = vadd.f32 %v6250_v58, %v3317_v24  ;;  %v5017_v45 = vpack.c.bf16 %v10739_v20, %v10736_v39  ;;  %v3646_v22 = vpop.f32.mrf.mxu1 }
 0x3cd   : > { %v6252_v11 = vpop.f32.mrf.mxu0  ;;  %7529 = vrot.lane.b32.xlu1 %v7523_v56, %s8115_s16  ;;  %v4001_v24 = vrot.slane %v10664_v54, 1  ;;  %v3328_v3 = vadd.f32 %v10432_v2, %v10605_v29 }
 0x3ce   : > { %v3798_v63 = vsel %vm3734_vm6, %v3634_v5, %v3766_v43  ;;  %v3639_v52 = vadd.f32 %v10649_v44, %v3478_v33  ;;  %v6253_v56 = vadd.f32 %v6252_v11, %v6251_v4  ;;  %6547 = vmatmul.mubr.msk.bf16.vlgmr.msra.gmra.mxu1 %vm325_vm10, %v5017_v45  ;;  %v3867_v21 = vld [vmem:[#allocation3 + $0x68] sm:$0xff]  ;;  %v3868_v16 = vld [vmem:[#allocation3 + $0x70] sm:$0xff]  ;;  %v4013_v33 = vrot.slane %v3866_v38, 1 }
 0x3cf   : > { %3831 = vst.msk [vmem:[#allocation3 + $0x81] sm:$0xff] %vm325_vm10, %v3798_v63  ;;  %v6254_v53 = vpop.f32.mrf.mxu0  ;;  %v10766_v19 = vpack.i.bf16 %v3867_v21, %v3866_v38  ;;  %v4094_v54 = vrot.slane %v3867_v21, 2  ;;  %v4096_v40 = vrot.slane %v3868_v16, 2  ;;  %v4014_v46 = vrot.slane %v3867_v21, 1  ;;  %v8034_v44 = vld [vmem:[%s12113_s5] sm:$0xff]  }
 0x3d0   : > { %vm3735_vm7 = vcmp.gt.f32.partialorder %v3639_v52, 0.0  ;;  %v3767_v5 = vmul.f32 0.1, %v3639_v52  ;;  %v3481_v58 = vadd.f32 %v6253_v56, %v3320_v30  ;;  %v4016_v17 = vrot.slane %v3868_v16, 1  ;;  %6349 = vmatpush3.bf16.msra.mxu0 %v8034_v44 }
 0x3d1   : > { %v6255_v4 = vpop.f32.mrf.mxu0  ;;  %7534 = vrot.lane.b32.xlu1 %v7533_v55, %s8117_s21  ;;  %7559 = vrot.lane.b32.xlu0 %v10766_v19, %s8117_s21  ;;  %v4095_v36 = vsel %vm559_vm1, %v4093_v23, %v4094_v54  ;;  %v4097_v43 = vsel %vm559_vm1, %v4094_v54, %v4096_v40  ;;  %v10782_v55 = vpack.i.bf16 %v10718_v41, %v10708_v48 }
 0x3d2   : > { %v3799_v45 = vsel %vm3735_vm7, %v3639_v52, %v3767_v5  ;;  %v3642_v30 = vadd.f32 %v10689_v18, %v3481_v58  ;;  %v6256_v11 = vadd.f32 %v6255_v4, %v6254_v53  ;;  %v5020_v63 = vpack.c.bf16 %v4097_v43, %v4095_v36  ;;  %v10798_v23 = vld [vmem:[#allocation3 + $0x78] sm:$0xff]  ;;  %v10802_v53 = vpop.f32.mrf.mxu1 }
 0x3d3   : > { %3832 = vst.msk [vmem:[#allocation3 + $0x91] sm:$0xff] %vm325_vm10, %v3799_v45  ;;  %v6257_v0 = vpop.f32.mrf.mxu0  ;;  %v7538_v56 = vpack.i.bf16 %v10757_v50, %v10752_v31  ;;  %v10787_v21 = vsel %vm478_vm0, %v4013_v33, %v4014_v46  ;;  %v10792_v18 = vsel %vm478_vm0, %v3999_v51, %v4001_v24  ;;  %v10796_v16 = vsel %vm478_vm0, %v4014_v46, %v4016_v17 }
 0x3d4   : > { %vm3736_vm8 = vcmp.gt.f32.partialorder %v3642_v30, 0.0  ;;  %v3768_v38 = vmul.f32 0.1, %v3642_v30  ;;  %v3486_v52 = vadd.f32 %v6256_v11, %v3325_v37  ;;  %6550 = vmatprep.mubr.msk.bf16.mxu1 %vm325_vm10, %v5020_v63  ;;  %v7548_v46 = vpack.i.bf16 %v10792_v18, %v10674_v13  ;;  %v3649_v45 = vpop.f32.mrf.mxu1 }
 0x3d5   : > { %v6258_v54 = vpop.f32.mrf.mxu0  ;;  %7569 = vrot.lane.b32.xlu0 %v10782_v55, %s8117_s21  ;;  %7539 = vrot.lane.b32.xlu1 %v7538_v56, %s8115_s16  ;;  %v10817_v58 = vpack.i.bf16 %v10796_v16, %v10787_v21  ;;  %v4098_v17 = vrot.slane %v10798_v23, 2  ;;  %v4011_v4 = vrot.slane %v10720_v47, 1  ;;  %v3333_v33 = vadd.f32 %v10435_v57, %v10605_v29 }
 0x3d6   : > { %v3800_v51 = vsel %vm3736_vm8, %v3642_v30, %v3768_v38  ;;  %v3647_v24 = vadd.f32 %v3646_v22, %v3486_v52  ;;  %v6259_v40 = vadd.f32 %v6258_v54, %v6257_v0  ;;  %v10810_v44 = vld [vmem:[#allocation3 + $0x80] sm:$0xff]  ;;  %v10812_v5 = vld [vmem:[#allocation3 + $0x88] sm:$0xff]  ;;  %v4008_v0 = vrot.slane %v10708_v48, 1 }
 0x3d7   : > { %3833 = vst.msk [vmem:[#allocation3 + $0x99] sm:$0xff] %vm325_vm10, %v3800_v51  ;;  %v6260_v2 = vpop.f32.mrf.mxu0  ;;  %v4099_v41 = vrot.slane %v10810_v44, 2  ;;  %v4101_v37 = vrot.slane %v10812_v5, 2  ;;  %v7553_v54 = vpack.i.bf16 %v10695_v49, %v10757_v50 }
 0x3d8   : > { %vm3737_vm9 = vcmp.gt.f32.partialorder %v3647_v24, 0.0  ;;  %v3769_v22 = vmul.f32 0.1, %v3647_v24  ;;  %v3489_v13 = vadd.f32 %v6259_v40, %v3328_v3  ;;  %v10838_v3 = vpack.i.bf16 %v4097_v43, %v4095_v36  ;;  %v10853_v43 = vpop.f32.mrf.mxu1 }
 0x3d9   : > { %v6261_v30 = vpop.f32.mrf.mxu0  ;;  %7579 = vrot.lane.b32.xlu0 %v10817_v58, %s8118_s9  ;;  %7549 = vrot.lane.b32.xlu1 %v7548_v46, %s8115_s16  ;;  %v10829_v11 = vsel %vm559_vm1, %v4098_v17, %v4099_v41  ;;  %v10832_v63 = vsel %vm559_vm1, %v4099_v41, %v4101_v37  ;;  %v10843_v51 = vsel %vm478_vm0, %v4008_v0, %v4009_v27 }
 0x3da   : > { %v3801_v56 = vsel %vm3737_vm9, %v3647_v24, %v3769_v22  ;;  %v3650_v47 = vadd.f32 %v3649_v45, %v3489_v13  ;;  %v6262_v38 = vadd.f32 %v6261_v30, %v6260_v2  ;;  %v5023_v57 = vpack.c.bf16 %v10832_v63, %v10829_v11  ;;  %v10849_v46 = vld [vmem:[#allocation3 + $0x90] sm:$0xff]  ;;  %v3662_v30 = vpop.f32.mrf.mxu1 }
 0x3db   : > { %3834 = vst.msk [vmem:[#allocation3 + $0xa9] sm:$0xff] %vm325_vm10, %v3801_v56  ;;  %v6263_v52 = vpop.f32.mrf.mxu0  ;;  %v10847_v24 = vsel %vm478_vm0, %v4009_v27, %v4011_v4  ;;  %v3336_v36 = vadd.f32 %v10442_v26, %v10605_v29  ;;  %v4103_v22 = vrot.slane %v10849_v46, 2  ;;  %v3341_v45 = vadd.f32 %v10528_v15, %v10605_v29 }
 0x3dc   : > { %vm3738_vm11 = vcmp.gt.f32.partialorder %v3650_v47, 0.0  ;;  %v3770_v40 = vmul.f32 0.1, %v3650_v47  ;;  %v3494_v48 = vadd.f32 %v6262_v38, %v3333_v33  ;;  %6551 = vmatmul.mubr.msk.bf16.gmra.mxu1 %vm325_vm10, %v5023_v57  ;;  %v10866_v26 = vpack.i.bf16 %v10847_v24, %v10843_v51 }
 0x3dd   : > { %v6264_v2 = vpop.f32.mrf.mxu0  ;;  %7584 = vrot.lane.b32.xlu0 %v10838_v3, %s8115_s16  ;;  %7554 = vrot.lane.b32.xlu1 %v7553_v54, %s8117_s21 }
 0x3de   : > { %v3802_v49 = vsel %vm3738_vm11, %v3650_v47, %v3770_v40  ;;  %v3655_v50 = vadd.f32 %v10744_v9, %v3494_v48  ;;  %v6265_v17 = vadd.f32 %v6264_v2, %v6263_v52  ;;  %v10859_v41 = vld [vmem:[#allocation3 + $0x98] sm:$0xff]  ;;  %v10861_v27 = vld [vmem:[#allocation3 + $0xa0] sm:$0xff]  ;;  %v10889_v40 = vpack.i.bf16 %v10739_v20, %v10736_v39  ;;  %v10896_v2 = vpop.f32.mrf.mxu1 }
 0x3df   : > { %3835 = vst.msk [vmem:[#allocation3 + $0xb1] sm:$0xff] %vm325_vm10, %v3802_v49  ;;  %v6266_v37 = vpop.f32.mrf.mxu0  ;;  %v4104_v13 = vrot.slane %v10859_v41, 2  ;;  %v4106_v4 = vrot.slane %v10861_v27, 2 }
 0x3e0   : > { %vm3739_vm13 = vcmp.gt.f32.partialorder %v3655_v50, 0.0  ;;  %v3771_v9 = vmul.f32 0.1, %v3655_v50  ;;  %v3497_v33 = vadd.f32 %v6265_v17, %v3336_v36  ;;  %v10904_v17 = vpack.i.bf16 %v10859_v41, %v10849_v46 }
 0x3e1   : > { %v6267_v0 = vpop.f32.mrf.mxu0  ;;  %7599 = vrot.lane.b32.xlu0 %v10866_v26, %s8118_s9  ;;  %7564 = vrot.lane.b32.xlu1 %v10766_v19, %s8118_s9  ;;  %v10878_v56 = vsel %vm559_vm1, %v4103_v22, %v4104_v13  ;;  %v10881_v47 = vsel %vm559_vm1, %v4104_v13, %v4106_v4 }
 0x3e2   : > { %v3803_v38 = vsel %vm3739_vm13, %v3655_v50, %v3771_v9  ;;  %v3658_v57 = vadd.f32 %v10802_v53, %v3497_v33  ;;  %v6268_v52 = vadd.f32 %v6267_v0, %v6266_v37  ;;  %v5026_v15 = vpack.c.bf16 %v10881_v47, %v10878_v56  ;;  %v10892_v36 = vld [vmem:[#allocation3 + $0xa8] sm:$0xff] }
 0x3e3   : > { %3836 = vst.msk [vmem:[#allocation3 + $0xc1] sm:$0xff] %vm325_vm10, %v3803_v38  ;;  %v6269_v54 = vpop.f32.mrf.mxu0  ;;  %v3344_v53 = vadd.f32 %v10538_v28, %v10605_v29  ;;  %v4108_v13 = vrot.slane %v10892_v36, 2  ;;  %v4024_v9 = vrot.slane %v10859_v41, 1  ;;  %v3349_v0 = vadd.f32 %v10545_v1, %v10605_v29  ;;  %v3665_v38 = vpop.f32.mrf.mxu1 }
 0x3e4   : > { %vm3740_vm14 = vcmp.gt.f32.partialorder %v3658_v57, 0.0  ;;  %v3772_v19 = vmul.f32 0.1, %v3658_v57  ;;  %v3502_v48 = vadd.f32 %v6268_v52, %v3341_v45  ;;  %6554 = vmatprep.mubr.msk.bf16.mxu1 %vm325_vm10, %v5026_v15  ;;  %v4023_v15 = vrot.slane %v10849_v46, 1 }
 0x3e5   : > { %v6270_v49 = vpop.f32.mrf.mxu0  ;;  %7604 = vrot.lane.b32.xlu0 %v10889_v40, %s8115_s16  ;;  %7574 = vrot.lane.b32.xlu1 %v10782_v55, %s8118_s9 }
 0x3e6   : > { %v3804_v39 = vsel %vm3740_vm14, %v3658_v57, %v3772_v19  ;;  %v3663_v20 = vadd.f32 %v3662_v30, %v3502_v48  ;;  %v6271_v50 = vadd.f32 %v6270_v49, %v6269_v54  ;;  %v10906_v37 = vld [vmem:[#allocation3 + $0xb0] sm:$0xff]  ;;  %v10908_v22 = vld [vmem:[#allocation3 + $0xb8] sm:$0xff]  ;;  %v4026_v30 = vrot.slane %v10861_v27, 1 }
 0x3e7   : > { %3837 = vst.msk [vmem:[#allocation3 + $0xc9] sm:$0xff] %vm325_vm10, %v3804_v39  ;;  %v6272_v28 = vpop.f32.mrf.mxu0  ;;  %v4109_v4 = vrot.slane %v10906_v37, 2  ;;  %v4111_v55 = vrot.slane %v10908_v22, 2 }
 0x3e8   : > { %vm3741_vm15 = vcmp.gt.f32.partialorder %v3663_v20, 0.0  ;;  %v3773_v33 = vmul.f32 0.1, %v3663_v20  ;;  %v3505_v45 = vadd.f32 %v6271_v50, %v3344_v53  ;;  %v10937_v53 = vsel %vm478_vm0, %v4023_v15, %v4024_v9 }
 0x3e9   : > { %v6273_v57 = vpop.f32.mrf.mxu0  ;;  %7619 = vrot.lane.b32.xlu0 %v10904_v17, %s8117_s21  ;;  %7589 = vrot.lane.b32.xlu1 %v10817_v58, %s8115_s16  ;;  %v10923_v52 = vsel %vm559_vm1, %v4108_v13, %v4109_v4  ;;  %v10926_v41 = vsel %vm559_vm1, %v4109_v4, %v4111_v55  ;;  %v10934_v58 = vpack.i.bf16 %v10810_v44, %v10798_v23  ;;  %v4019_v4 = vrot.slane %v10810_v44, 1 }
 0x3ea   : > { %v3805_v27 = vsel %vm3741_vm15, %v3663_v20, %v3773_v33  ;;  %v3666_v54 = vadd.f32 %v3665_v38, %v3505_v45  ;;  %v6274_v19 = vadd.f32 %v6273_v57, %v6272_v28  ;;  %v5029_v1 = vpack.c.bf16 %v10926_v41, %v10923_v52  ;;  %v10943_v20 = vld [vmem:[#allocation3 + $0xc0] sm:$0xff]  ;;  %v10947_v28 = vpop.f32.mrf.mxu1 }
 0x3eb   : > { %3838 = vst.msk [vmem:[#allocation3 + $0xd9] sm:$0xff] %vm325_vm10, %v3805_v27  ;;  %v6275_v48 = vpop.f32.mrf.mxu0  ;;  %v10941_v46 = vsel %vm478_vm0, %v4024_v9, %v4026_v30  ;;  %v3352_v50 = vadd.f32 %v10558_v7, %v10605_v29  ;;  %v4021_v7 = vrot.slane %v10812_v5, 1  ;;  %v3357_v27 = vadd.f32 %v10567_v34, %v10605_v29 }
 0x3ec   : > { %vm3742_vm2 = vcmp.gt.f32.partialorder %v3666_v54, 0.0  ;;  %v3774_v49 = vmul.f32 0.1, %v3666_v54  ;;  %v3510_v39 = vadd.f32 %v6274_v19, %v3349_v0  ;;  %6555 = vmatmul.mubr.msk.bf16.gmra.mxu1 %vm325_vm10, %v5029_v1  ;;  %v10963_v38 = vpack.i.bf16 %v10941_v46, %v10937_v53  ;;  %v3678_v5 = vpop.f32.mrf.mxu1 }
 0x3ed   : > { %v6276_v13 = vpop.f32.mrf.mxu0  ;;  %7629 = vrot.lane.b32.xlu0 %v10934_v58, %s8117_s21  ;;  %7594 = vrot.lane.b32.xlu1 %v10838_v3, %s8117_s21  ;;  %v4113_v3 = vrot.slane %v10943_v20, 2 }
 0x3ee   : > { %v3806_v55 = vsel %vm3742_vm2, %v3666_v54, %v3774_v49  ;;  %v3671_v9 = vadd.f32 %v10853_v43, %v3510_v39  ;;  %v6277_v33 = vadd.f32 %v6276_v13, %v6275_v48  ;;  %v10955_v45 = vld [vmem:[#allocation3 + $0xc8] sm:$0xff]  ;;  %v10957_v30 = vld [vmem:[#allocation3 + $0xd0] sm:$0xff]  ;;  %v4018_v48 = vrot.slane %v10798_v23, 1 }
 0x3ef   : > { %3839 = vst.msk [vmem:[#allocation3 + $0xe1] sm:$0xff] %vm325_vm10, %v3806_v55  ;;  %v6278_v0 = vpop.f32.mrf.mxu0  ;;  %v4114_v44 = vrot.slane %v10955_v45, 2  ;;  %v4116_v43 = vrot.slane %v10957_v30, 2 }
 0x3f0   : > { %vm3743_vm3 = vcmp.gt.f32.partialorder %v3671_v9, 0.0  ;;  %v3775_v57 = vmul.f32 0.1, %v3671_v9  ;;  %v3513_v15 = vadd.f32 %v6277_v33, %v3352_v50  ;;  %v10990_v55 = vsel %vm478_vm0, %v4018_v48, %v4019_v4 }
 0x3f1   : > { %v6279_v54 = vpop.f32.mrf.mxu0  ;;  %7639 = vrot.lane.b32.xlu0 %v10963_v38, %s8118_s9  ;;  %7609 = vrot.lane.b32.xlu1 %v10866_v26, %s8115_s16  ;;  %v10975_v19 = vsel %vm559_vm1, %v4113_v3, %v4114_v44  ;;  %v10978_v1 = vsel %vm559_vm1, %v4114_v44, %v4116_v43  ;;  %v10987_v26 = vpack.i.bf16 %v10881_v47, %v10878_v56  ;;  %v11000_v3 = vpop.f32.mrf.mxu1 }
 0x3f2   : > { %v3807_v49 = vsel %vm3743_vm3, %v3671_v9, %v3775_v57  ;;  %v3674_v39 = vadd.f32 %v10896_v2, %v3513_v15  ;;  %v6280_v34 = vadd.f32 %v6279_v54, %v6278_v0  ;;  %v5032_v50 = vpack.c.bf16 %v10978_v1, %v10975_v19  ;;  %v10996_v9 = vld [vmem:[#allocation3 + $0xd8] sm:$0xff] }
 0x3f3   : > { %3840 = vst.msk [vmem:[#allocation3 + $0xf1] sm:$0xff] %vm325_vm10, %v3807_v49  ;;  %v6281_v13 = vpop.f32.mrf.mxu0  ;;  %v10993_v33 = vsel %vm478_vm0, %v4019_v4, %v4021_v7  ;;  %v3360_v0 = vadd.f32 %v10569_v35, %v10605_v29  ;;  %v4118_v15 = vrot.slane %v10996_v9, 2  ;;  %v3365_v48 = vadd.f32 %v10571_v25, %v10605_v29  ;;  %v3681_v49 = vpop.f32.mrf.mxu1 }
 0x3f4   : > { %vm3744_vm4 = vcmp.gt.f32.partialorder %v3674_v39, 0.0  ;;  %v3776_v23 = vmul.f32 0.1, %v3674_v39  ;;  %v3518_v2 = vadd.f32 %v6280_v34, %v3357_v27  ;;  %6558 = vmatprep.mubr.msk.bf16.mxu1 %vm325_vm10, %v5032_v50  ;;  %v11008_v44 = vpack.i.bf16 %v10993_v33, %v10990_v55 }
 0x3f5   : > { %v6282_v56 = vpop.f32.mrf.mxu0  ;;  %7644 = vrot.lane.b32.xlu0 %v10987_v26, %s8115_s16  ;;  %7614 = vrot.lane.b32.xlu1 %v10889_v40, %s8117_s21  ;;  %v11029_v25 = vpack.i.bf16 %v10832_v63, %v10829_v11 }
 0x3f6   : > { %v3808_v47 = vsel %vm3744_vm4, %v3674_v39, %v3776_v23  ;;  %v3679_v4 = vadd.f32 %v3678_v5, %v3518_v2  ;;  %v6283_v7 = vadd.f32 %v6282_v56, %v6281_v13  ;;  %v11010_v43 = vld [vmem:[#allocation3 + $0xe0] sm:$0xff]  ;;  %v11012_v57 = vld [vmem:[#allocation3 + $0xe8] sm:$0xff] }
 0x3f7   : > { %3841 = vst.msk [vmem:[#allocation3 + $0xf9] sm:$0xff] %vm325_vm10, %v3808_v47  ;;  %v6284_v35 = vpop.f32.mrf.mxu0  ;;  %v4119_v27 = vrot.slane %v11010_v43, 2  ;;  %v4121_v40 = vrot.slane %v11012_v57, 2 }
 0x3f8   : > { %vm3745_vm5 = vcmp.gt.f32.partialorder %v3679_v4, 0.0  ;;  %v3777_v5 = vmul.f32 0.1, %v3679_v4  ;;  %v3521_v54 = vadd.f32 %v6283_v7, %v3360_v0 }
 0x3f9   : > { %v6285_v39 = vpop.f32.mrf.mxu0  ;;  %7659 = vrot.lane.b32.xlu0 %v11008_v44, %s8118_s9  ;;  %7624 = vrot.lane.b32.xlu1 %v10904_v17, %s8118_s9  ;;  %v4120_v34 = vsel %vm559_vm1, %v4118_v15, %v4119_v27  ;;  %v4122_v50 = vsel %vm559_vm1, %v4119_v27, %v4121_v40  ;;  %v11036_v15 = vpop.f32.mrf.mxu1 }
 0x3fa   : > { %v3809_v13 = vsel %vm3745_vm5, %v3679_v4, %v3777_v5  ;;  %v3682_v23 = vadd.f32 %v3681_v49, %v3521_v54  ;;  %v6286_v2 = vadd.f32 %v6285_v39, %v6284_v35  ;;  %v5035_v56 = vpack.c.bf16 %v4122_v50, %v4120_v34  ;;  %v11032_v17 = vld [vmem:[#allocation3 + $0xf0] sm:$0xff] }
 0x3fb   : > { %3842 = vst.msk [vmem:[#allocation3 + $0x109] sm:$0xff] %vm325_vm10, %v3809_v13  ;;  %v6287_v0 = vpop.f32.mrf.mxu0  ;;  %v3368_v4 = vadd.f32 %v10573_v60, %v10605_v29  ;;  %v11042_v11 = vpack.i.bf16 %v4122_v50, %v4120_v34  ;;  %v11047_v5 = vpack.i.bf16 %v10955_v45, %v10943_v20  ;;  %v4123_v49 = vrot.slane %v11032_v17, 2 }
 0x3fc   : > { %vm3746_vm6 = vcmp.gt.f32.partialorder %v3682_v23, 0.0  ;;  %v3778_v47 = vmul.f32 0.1, %v3682_v23  ;;  %v3526_v7 = vadd.f32 %v6286_v2, %v3365_v48  ;;  %6559 = vmatmul.mubr.msk.bf16.gmra.mxu1 %vm325_vm10, %v5035_v56  ;;  %v4036_v13 = vrot.slane %v10957_v30, 1  ;;  %v3694_v2 = vpop.f32.mrf.mxu1 }
 0x3fd   : > { %v6288_v35 = vpop.f32.mrf.mxu0  ;;  %7664 = vrot.lane.b32.xlu0 %v11029_v25, %s8115_s16  ;;  %7634 = vrot.lane.b32.xlu1 %v10934_v58, %s8118_s9  ;;  %vm4883_vm5 = vcmask 785408  }
 0x3fe   : > { %v3810_v63 = vsel %vm3746_vm6, %v3682_v23, %v3778_v47  ;;  %v3687_v27 = vadd.f32 %v10947_v28, %v3526_v7  ;;  %v6289_v40 = vadd.f32 %v6288_v35, %v6287_v0  ;;  %v11049_v60 = vld [vmem:[#allocation3 + $0xf8] sm:$0xff]  ;;  %v11051_v54 = vld [vmem:[#allocation3 + $0x100] sm:$0xff]  ;;  %v4034_v28 = vrot.slane %v10955_v45, 1 }
 0x3ff   : > { %3843 = vst.msk [vmem:[#allocation3 + $0x111] sm:$0xff] %vm325_vm10, %v3810_v63  ;;  %v6290_v48 = vpop.f32.mrf.mxu0  ;;  %v4124_v58 = vrot.slane %v11049_v60, 2  ;;  %v4126_v39 = vrot.slane %v11051_v54, 2  ;;  %v3373_v23 = vadd.f32 %v10575_v14, %v10605_v29  ;;  %v4033_v47 = vrot.slane %v10943_v20, 1 }
 0x400   : > { %vm3747_vm7 = vcmp.gt.f32.partialorder %v3687_v27, 0.0  ;;  %v3779_v34 = vmul.f32 0.1, %v3687_v27  ;;  %v3529_v50 = vadd.f32 %v6289_v40, %v3368_v4 }
 0x401   : > { %v6291_v56 = vpop.f32.mrf.mxu0  ;;  %7679 = vrot.lane.b32.xlu0 %v11047_v5, %s8117_s21  ;;  %7649 = vrot.lane.b32.xlu1 %v10963_v38, %s8115_s16  ;;  %v11066_v0 = vsel %vm559_vm1, %v4123_v49, %v4124_v58  ;;  %v11069_v45 = vsel %vm559_vm1, %v4124_v58, %v4126_v39  ;;  %v11078_v38 = vpack.i.bf16 %v10906_v37, %v10892_v36  ;;  %v11091_v49 = vpop.f32.mrf.mxu1  ;;  %v4029_v39 = vrot.slane %v10906_v37, 1 }
 0x402   : > { %v3811_v30 = vsel %vm3747_vm7, %v3687_v27, %v3779_v34  ;;  %v3690_v7 = vadd.f32 %v11000_v3, %v3529_v50  ;;  %v6292_v14 = vadd.f32 %v6291_v56, %v6290_v48  ;;  %v5038_v4 = vpack.c.bf16 %v11069_v45, %v11066_v0  ;;  %v11087_v27 = vld [vmem:[#allocation3 + $0x108] sm:$0xff] }
 0x403   : > { %3844 = vst.msk [vmem:[#allocation3 + $0x121] sm:$0xff] %vm325_vm10, %v3811_v30  ;;  %v6293_v35 = vpop.f32.mrf.mxu0  ;;  %v11081_v63 = vsel %vm478_vm0, %v4033_v47, %v4034_v28  ;;  %v11085_v3 = vsel %vm478_vm0, %v4034_v28, %v4036_v13  ;;  %v3376_v48 = vadd.f32 %v10577_v61, %v10605_v29  ;;  %v4031_v61 = vrot.slane %v10908_v22, 1  ;;  %v11114_v22 = vld [vmem:[%s12112_s4] ss:$0 sm:$0xff] }
 0x404   : > { %12313 = vst [vmem:[#allocation36_spill] sm:$0xff] %v11081_v63  ;;  %vm3748_vm8 = vcmp.gt.f32.partialorder %v3690_v7, 0.0  ;;  %v3780_v40 = vmul.f32 0.1, %v3690_v7  ;;  %v3534_v20 = vadd.f32 %v6292_v14, %v3373_v23  ;;  %6562 = vmatprep.mubr.msk.bf16.mxu1 %vm325_vm10, %v5038_v4  ;;  %12314 = vst [vmem:[#allocation55_spill] sm:$0xff] %v11085_v3  ;;  %v11106_v56 = vpack.i.bf16 %v11085_v3, %v11081_v63  ;;  %v3697_v14 = vpop.f32.mrf.mxu1 }
 0x405   : > { %v6294_v58 = vpop.f32.mrf.mxu0  ;;  %7689 = vrot.lane.b32.xlu0 %v11078_v38, %s8117_s21  ;;  %7654 = vrot.lane.b32.xlu1 %v10987_v26, %s8117_s21  ;;  %v4128_v26 = vrot.slane %v11087_v27, 2  ;;  %v11128_v63 = vpack.i.bf16 %v10978_v1, %v10975_v19 }
 0x406   : > { %v3812_v34 = vsel %vm3748_vm8, %v3690_v7, %v3780_v40  ;;  %v3695_v50 = vadd.f32 %v3694_v2, %v3534_v20  ;;  %v6295_v28 = vadd.f32 %v6294_v58, %v6293_v35  ;;  %v11098_v13 = vld [vmem:[#allocation3 + $0x110] sm:$0xff]  ;;  %v11100_v23 = vld [vmem:[#allocation3 + $0x118] sm:$0xff]  ;;  %v3381_v7 = vadd.f32 %v11114_v22, %v10582_v62 }
 0x407   : > { %3845 = vst.msk [vmem:[#allocation3 + $0x129] sm:$0xff] %vm325_vm10, %v3812_v34  ;;  %v6296_v29 = vpop.f32.mrf.mxu0  ;;  %v4129_v37 = vrot.slane %v11098_v13, 2  ;;  %v4131_v2 = vrot.slane %v11100_v23, 2  ;;  %v4028_v20 = vrot.slane %v10892_v36, 1 }
 0x408   : > { %vm3749_vm9 = vcmp.gt.f32.partialorder %v3695_v50, 0.0  ;;  %v3781_v47 = vmul.f32 0.1, %v3695_v50  ;;  %v3537_v30 = vadd.f32 %v6295_v28, %v3376_v48 }
 0x409   : > { %v6297_v4 = vpop.f32.mrf.mxu0  ;;  %7699 = vrot.lane.b32.xlu0 %v11106_v56, %s8118_s9  ;;  %7669 = vrot.lane.b32.xlu1 %v11008_v44, %s8115_s16  ;;  %v4130_v35 = vsel %vm559_vm1, %v4128_v26, %v4129_v37  ;;  %v4132_v40 = vsel %vm559_vm1, %v4129_v37, %v4131_v2  ;;  %v11131_v3 = vsel %vm478_vm0, %v4028_v20, %v4029_v39  ;;  %v11136_v26 = vpop.f32.mrf.mxu1 }
 0x40a   : > { %v3813_v48 = vsel %vm3749_vm9, %v3695_v50, %v3781_v47  ;;  %v3698_v58 = vadd.f32 %v3697_v14, %v3537_v30  ;;  %v6298_v34 = vadd.f32 %v6297_v4, %v6296_v29  ;;  %v5041_v28 = vpack.c.bf16 %v4132_v40, %v4130_v35  ;;  %v11139_v29 = vld [vmem:[#allocation3 + $0x120] sm:$0xff] }
 0x40b   : > { %3846 = vst.msk [vmem:[#allocation3 + $0x139] sm:$0xff] %vm325_vm10, %v3813_v48  ;;  %v6299_v62 = vpop.f32.mrf.mxu0  ;;  %v11134_v44 = vsel %vm478_vm0, %v4029_v39, %v4031_v61  ;;  %v3384_v37 = vadd.f32 %v11114_v22, %v10587_v59  ;;  %v11147_v1 = vpack.i.bf16 %v4132_v40, %v4130_v35  ;;  %v4133_v14 = vrot.slane %v11139_v29, 2  ;;  %v3710_v35 = vpop.f32.mrf.mxu1 }
 0x40c   : > { %vm3750_vm11 = vcmp.gt.f32.partialorder %v3698_v58, 0.0  ;;  %v3782_v36 = vmul.f32 0.1, %v3698_v58  ;;  %v3542_v50 = vadd.f32 %v6298_v34, %v3381_v7  ;;  %6563 = vmatmul.mubr.msk.bf16.gmra.mxu1 %vm325_vm10, %v5041_v28  ;;  %v11152_v47 = vpack.i.bf16 %v11134_v44, %v11131_v3 }
 0x40d   : > { %v6300_v19 = vpop.f32.mrf.mxu0  ;;  %7704 = vrot.lane.b32.xlu0 %v11128_v63, %s8115_s16  ;;  %7674 = vrot.lane.b32.xlu1 %v11029_v25, %s8117_s21  ;;  %v3389_v20 = vadd.f32 %v11114_v22, %v10595_v32 }
 0x40e   : > { %v3814_v39 = vsel %vm3750_vm11, %v3698_v58, %v3782_v36  ;;  %v3703_v61 = vadd.f32 %v11036_v15, %v3542_v50  ;;  %v6301_v2 = vadd.f32 %v6300_v19, %v6299_v62  ;;  %v11154_v30 = vld [vmem:[#allocation3 + $0x128] sm:$0xff]  ;;  %v11156_v59 = vld [vmem:[#allocation3 + $0x130] sm:$0xff] }
 0x40f   : > { %3847 = vst.msk [vmem:[#allocation3 + $0x141] sm:$0xff] %vm325_vm10, %v3814_v39  ;;  %v6302_v7 = vpop.f32.mrf.mxu0  ;;  %v4134_v25 = vrot.slane %v11154_v30, 2  ;;  %v4136_v4 = vrot.slane %v11156_v59, 2 }
 0x410   : > { %vm3751_vm13 = vcmp.gt.f32.partialorder %v3703_v61, 0.0  ;;  %v3783_v15 = vmul.f32 0.1, %v3703_v61  ;;  %v3545_v40 = vadd.f32 %v6301_v2, %v3384_v37  ;;  %v11180_v37 = vpack.i.bf16 %v10926_v41, %v10923_v52 }
 0x411   : > { %v6303_v48 = vpop.f32.mrf.mxu0  ;;  %7719 = vrot.lane.b32.xlu0 %v11152_v47, %s8118_s9  ;;  %7684 = vrot.lane.b32.xlu1 %v11047_v5, %s8118_s9  ;;  %v11169_v58 = vsel %vm559_vm1, %v4133_v14, %v4134_v25  ;;  %v11172_v34 = vsel %vm559_vm1, %v4134_v25, %v4136_v4  ;;  %v11182_v5 = vpop.f32.mrf.mxu1  ;;  %v11195_v14 = vpack.i.bf16 %v11049_v60, %v11032_v17 }
 0x412   : > { %v3815_v28 = vsel %vm3751_vm13, %v3703_v61, %v3783_v15  ;;  %v3706_v62 = vadd.f32 %v11091_v49, %v3545_v40  ;;  %v6304_v36 = vadd.f32 %v6303_v48, %v6302_v7  ;;  %v5044_v32 = vpack.c.bf16 %v11172_v34, %v11169_v58  ;;  %v11185_v61 = vld [vmem:[#allocation3 + $0x138] sm:$0xff] }
 0x413   : > { %3848 = vst.msk [vmem:[#allocation3 + $0x151] sm:$0xff] %vm325_vm10, %v3815_v28  ;;  %v6305_v50 = vpop.f32.mrf.mxu0  ;;  %v3392_v49 = vadd.f32 %v11114_v22, %v10600_v6  ;;  %v3713_v15 = vpop.f32.mrf.mxu1  ;;  %v4138_v40 = vrot.slane %v11185_v61, 2 }
 0x414   : > { %vm3752_vm14 = vcmp.gt.f32.partialorder %v3706_v62, 0.0  ;;  %v3784_v19 = vmul.f32 0.1, %v3706_v62  ;;  %6566 = vmatprep.mubr.msk.bf16.mxu1 %vm325_vm10, %v5044_v32  ;;  %v3550_v39 = vadd.f32 %v6304_v36, %v3389_v20  ;;  %v3397_v36 = vadd.f32 %v11114_v22, %v10610_v42 }
 0x415   : > { %v6306_v2 = vpop.f32.mrf.mxu0  ;;  %7724 = vrot.lane.b32.xlu0 %v11180_v37, %s8115_s16  ;;  %7694 = vrot.lane.b32.xlu1 %v11078_v38, %s8118_s9 }
 0x416   : > { %v3816_v52 = vsel %vm3752_vm14, %v3706_v62, %v3784_v19  ;;  %v6307_v41 = vadd.f32 %v6306_v2, %v6305_v50  ;;  %v3711_v7 = vadd.f32 %v3710_v35, %v3550_v39  ;;  %v11197_v25 = vld [vmem:[#allocation3 + $0x140] sm:$0xff]  ;;  %v11199_v4 = vld [vmem:[#allocation3 + $0x148] sm:$0xff]  ;;  %v4044_v35 = vrot.slane %v11049_v60, 1 }
 0x417   : > { %3849 = vst.msk [vmem:[#allocation3 + $0x159] sm:$0xff] %vm325_vm10, %v3816_v52  ;;  %v6308_v6 = vpop.f32.mrf.mxu0  ;;  %v4139_v20 = vrot.slane %v11197_v25, 2  ;;  %v4141_v38 = vrot.slane %v11199_v4, 2  ;;  %v4046_v62 = vrot.slane %v11051_v54, 1  ;;  %v4043_v60 = vrot.slane %v11032_v17, 1 }
 0x418   : > { %vm3753_vm15 = vcmp.gt.f32.partialorder %v3711_v7, 0.0  ;;  %v3785_v48 = vmul.f32 0.1, %v3711_v7  ;;  %v3553_v28 = vadd.f32 %v6307_v41, %v3392_v49  ;;  %v11219_v52 = vpack.i.bf16 %v11010_v43, %v10996_v9 }
 0x419   : > { %v6309_v32 = vpop.f32.mrf.mxu0  ;;  %7739 = vrot.lane.b32.xlu0 %v11195_v14, %s8117_s21  ;;  %7709 = vrot.lane.b32.xlu1 %v11106_v56, %s8115_s16  ;;  %v4140_v50 = vsel %vm559_vm1, %v4138_v40, %v4139_v20  ;;  %v4142_v19 = vsel %vm559_vm1, %v4139_v20, %v4141_v38  ;;  %v11222_v41 = vsel %vm478_vm0, %v4043_v60, %v4044_v35  ;;  %v4039_v38 = vrot.slane %v11010_v43, 1 }
 0x41a   : > { %v3817_v39 = vsel %vm3753_vm15, %v3711_v7, %v3785_v48  ;;  %v6310_v49 = vadd.f32 %v6309_v32, %v6308_v6  ;;  %v3714_v2 = vadd.f32 %v3713_v15, %v3553_v28  ;;  %v5047_v54 = vpack.c.bf16 %v4142_v19, %v4140_v50  ;;  %12315 = vst [vmem:[#allocation60_spill] sm:$0xff] %v11222_v41  ;;  %v11230_v7 = vld [vmem:[#allocation3 + $0x150] sm:$0xff] }
 0x41b   : > { %3850 = vst.msk [vmem:[#allocation3 + $0x169] sm:$0xff] %vm325_vm10, %v3817_v39  ;;  %v6311_v42 = vpop.f32.mrf.mxu0  ;;  %v11224_v56 = vpack.i.bf16 %v4142_v19, %v4140_v50  ;;  %v11228_v17 = vsel %vm478_vm0, %v4044_v35, %v4046_v62  ;;  %v3400_v6 = vadd.f32 %v11114_v22, %v10623_v10  ;;  %v4041_v32 = vrot.slane %v11012_v57, 1 }
 0x41c   : > { %v3558_v40 = vadd.f32 %v6310_v49, %v3397_v36  ;;  %vm3754_vm2 = vcmp.gt.f32.partialorder %v3714_v2, 0.0  ;;  %v3786_v20 = vmul.f32 0.1, %v3714_v2  ;;  %6567 = vmatmul.mubr.msk.bf16.gmra.mxu1 %vm325_vm10, %v5047_v54  ;;  %12316 = vst [vmem:[#allocation37_spill] sm:$0xff] %v11228_v17  ;;  %v7758_v10 = vpack.i.bf16 %v11228_v17, %v11222_v41 }
 0x41d   : > { %v6312_v15 = vpop.f32.mrf.mxu0  ;;  %7749 = vrot.lane.b32.xlu0 %v11219_v52, %s8117_s21  ;;  %7714 = vrot.lane.b32.xlu1 %v11128_v63, %s8117_s21  ;;  %v4143_v22 = vrot.slane %v11230_v7, 2  ;;  %v4038_v60 = vrot.slane %v10996_v9, 1  ;;  %v7763_v54 = vpack.i.bf16 %v11069_v45, %v11066_v0  ;;  %v4059_v17 = vrot.slane %v11197_v25, 1 }
 0x41e   : > { %v3719_v48 = vadd.f32 %v11136_v26, %v3558_v40  ;;  %v3818_v28 = vsel %vm3754_vm2, %v3714_v2, %v3786_v20  ;;  %v6313_v36 = vadd.f32 %v6312_v15, %v6311_v42  ;;  %v11240_v35 = vld [vmem:[#allocation3 + $0x158] sm:$0xff]  ;;  %v11242_v62 = vld [vmem:[#allocation3 + $0x160] sm:$0xff] }
 0x41f   : > { %3851 = vst.msk [vmem:[#allocation3 + $0x171] sm:$0xff] %vm325_vm10, %v3818_v28  ;;  %v4144_v63 = vrot.slane %v11240_v35, 2  ;;  %v4146_v43 = vrot.slane %v11242_v62, 2  ;;  %v11262_v42 = vsel %vm478_vm0, %v4038_v60, %v4039_v38  ;;  %v4054_v60 = vrot.slane %v11154_v30, 1 }
 0x420   : > { %vm3755_vm3 = vcmp.gt.f32.partialorder %v3719_v48, 0.0  ;;  %v3787_v26 = vmul.f32 0.1, %v3719_v48  ;;  %v3561_v50 = vadd.f32 %v6313_v36, %v3400_v6  ;;  %12317 = vst [vmem:[#allocation38_spill] sm:$0xff] %v11262_v42 }
 0x421   : > { %7759 = vrot.lane.b32.xlu0 %v7758_v10, %s8118_s9  ;;  %7729 = vrot.lane.b32.xlu1 %v11152_v47, %s8115_s16  ;;  %v4145_v57 = vsel %vm559_vm1, %v4143_v22, %v4144_v63  ;;  %v4147_v19 = vsel %vm559_vm1, %v4144_v63, %v4146_v43  ;;  %v11265_v47 = vsel %vm478_vm0, %v4039_v38, %v4041_v32  ;;  %v7500_v63 = vpop.permute.xlu0 %7499 }
 0x422   : > { %v3819_v39 = vsel %vm3755_vm3, %v3719_v48, %v3787_v26  ;;  %v3722_v49 = vadd.f32 %v11182_v5, %v3561_v50  ;;  %v5050_v2 = vpack.c.bf16 %v4147_v19, %v4145_v57  ;;  %v11268_v9 = vld [vmem:[#allocation3 + $0x168] sm:$0xff]  ;;  %v11273_v5 = vpack.i.bf16 %v4147_v19, %v4145_v57 }
 0x423   : > { %3852 = vst.msk [vmem:[#allocation3 + $0x181] sm:$0xff] %vm325_vm10, %v3819_v39  ;;  %v7778_v45 = vpack.i.bf16 %v11265_v47, %v11262_v42  ;;  %v4148_v15 = vrot.slane %v11268_v9, 2  ;;  %v7798_v26 = vpack.i.bf16 %v11154_v30, %v11139_v29  ;;  %v4056_v39 = vrot.slane %v11156_v59, 1  ;;  %v8069_v59 = vld [vmem:[#allocation3 + $0x8] sm:$0xff] }
 0x424   : > { %vm3756_vm4 = vcmp.gt.f32.partialorder %v3722_v49, 0.0  ;;  %v3788_v40 = vmul.f32 0.1, %v3722_v49  ;;  %6570 = vmatprep.mubr.msk.bf16.mxu1 %vm325_vm10, %v5050_v2  ;;  %v4053_v30 = vrot.slane %v11139_v29, 1 }
 0x425   : > { %7764 = vrot.lane.b32.xlu0 %v7763_v54, %s8115_s16  ;;  %7734 = vrot.lane.b32.xlu1 %v11180_v37, %s8117_s21 }
 0x426   : > { %v3820_v0 = vsel %vm3756_vm4, %v3722_v49, %v3788_v40  ;;  %v11277_v20 = vld [vmem:[#allocation3 + $0x170] sm:$0xff]  ;;  %v11279_v6 = vld [vmem:[#allocation3 + $0x178] sm:$0xff] }
 0x427   : > { %3853 = vst.msk [vmem:[#allocation3 + $0x189] sm:$0xff] %vm325_vm10, %v3820_v0  ;;  %v4149_v38 = vrot.slane %v11277_v20, 2  ;;  %v4151_v48 = vrot.slane %v11279_v6, 2  ;;  %v7505_v0 = vpop.permute.xlu0 %7504 }
 0x429   : > { %7779 = vrot.lane.b32.xlu0 %v7778_v45, %s8118_s9  ;;  %7744 = vrot.lane.b32.xlu1 %v11195_v14, %s8118_s9  ;;  %v4150_v37 = vsel %vm559_vm1, %v4148_v15, %v4149_v38  ;;  %v4152_v28 = vsel %vm559_vm1, %v4149_v38, %v4151_v48  ;;  %v11333_v38 = vsel %vm478_vm0, %v4053_v30, %v4054_v60 }
 0x42a   : > { %v5053_v36 = vpack.c.bf16 %v4152_v28, %v4150_v37  ;;  %v11290_v32 = vpack.i.bf16 %v4152_v28, %v4150_v37  ;;  %v11293_v22 = vld [vmem:[#allocation3 + $0x180] sm:$0xff]  ;;  %12318 = vst [vmem:[#allocation56_spill] sm:$0xff] %v11333_v38  ;;  %v11336_v48 = vsel %vm478_vm0, %v4054_v60, %v4056_v39  ;;  %v4049_v28 = vrot.slane %v11098_v13, 1 }
 0x42b   : > { %v4193_v50 = vrot.slane %v11293_v22, 2  ;;  %12319 = vst [vmem:[#allocation57_spill] sm:$0xff] %v11336_v48  ;;  %v7818_v37 = vpack.i.bf16 %v11336_v48, %v11333_v38  ;;  %v4064_v48 = vrot.slane %v11240_v35, 1 }
 0x42c   : > { %6571 = vmatmul.mubr.msk.bf16.gmra.mxu1 %vm325_vm10, %v5053_v36  ;;  %v4051_v36 = vrot.slane %v11100_v23, 1 }
 0x42d   : > { %7784 = vrot.lane.b32.xlu0 %v11042_v11, %s8115_s16  ;;  %7754 = vrot.lane.b32.xlu1 %v11219_v52, %s8118_s9 }
 0x42e   : > { %v11299_v43 = vld [vmem:[#allocation3 + $0x188] sm:$0xff]  ;;  %v11301_v14 = vld [vmem:[#allocation3 + $0x190] sm:$0xff]  ;;  %v11355_v39 = vsel %vm478_vm0, %v4049_v28, %v4051_v36 }
 0x42f   : > { %v4194_v57 = vrot.slane %v11299_v43, 2  ;;  %v4196_v19 = vrot.slane %v11301_v14, 2  ;;  %v11312_v52 = vpack.i.bf16 %v11299_v43, %v11293_v22  ;;  %12321 = vst [vmem:[#allocation64_spill] sm:$0xff] %v11355_v39 }
 0x431   : > { %7799 = vrot.lane.b32.xlu0 %v7798_v26, %s8117_s21  ;;  %7769 = vrot.lane.b32.xlu1 %v7758_v10, %s8115_s16  ;;  %v11317_v49 = vsel %vm559_vm1, %v4193_v50, %v4194_v57  ;;  %v11320_v2 = vsel %vm559_vm1, %v4194_v57, %v4196_v19  ;;  %v7808_v10 = vpack.i.bf16 %v11098_v13, %v11087_v27  ;;  %v4048_v57 = vrot.slane %v11087_v27, 1 }
 0x432   : > { %v5056_v40 = vpack.c.bf16 %v11320_v2, %v11317_v49  ;;  %v7501_v13 = vunpack.i.l.bf16 %v7500_v63 }
 0x433   : > { %v11327_v15 = vpop.permute.xlu1 %7509  ;;  %v11352_v60 = vsel %vm478_vm0, %v4048_v57, %v4049_v28  ;;  %v7507_v57 = vunpack.i.h.bf16 %v7505_v0 }
 0x434   : > { %6574 = vmatprep.mubr.msk.bf16.mxu1 %vm325_vm10, %v5056_v40  ;;  %v7520_v50 = vpop.permute.xlu0 %7519  ;;  %12320 = vst [vmem:[#allocation63_spill] sm:$0xff] %v11352_v60  ;;  %v11366_v27 = vpack.i.bf16 %v11355_v39, %v11352_v60  ;;  %v8068_v40 = vld [vmem:[#allocation3] sm:$0xff]  ;;  %v7512_v60 = vunpack.i.h.bf16 %v11327_v15  ;;  %v4063_v39 = vrot.slane %v11230_v7, 1 }
 0x435   : > { %7809 = vrot.lane.b32.xlu0 %v7808_v10, %s8117_s21  ;;  %7774 = vrot.lane.b32.xlu1 %v7763_v54, %s8117_s21  ;;  %v7823_v54 = vpack.i.bf16 %v11172_v34, %v11169_v58  ;;  %v7502_v58 = vunpack.i.h.bf16 %v7500_v63  ;;  %v7506_v34 = vunpack.i.l.bf16 %v7505_v0  ;;  %v4819_v30 = vsel %vm325_vm10, %v8068_v40, %v7501_v13 }
 0x436   : > { %v11388_v0 = vpack.i.bf16 %v11240_v35, %v11230_v7  ;;  %v11414_v42 = vsel %vm478_vm0, %v4063_v39, %v4064_v48 }
 0x437   : > { %v11340_v29 = vpop.permute.xlu1 %7514  ;;  %v4851_v63 = vsel %vm280_vm12, %v4819_v30, %v7506_v34 }
 0x438   : > { %v11360_v23 = vpop.permute.xlu0 %7544 }
 0x439   : > { %7819 = vrot.lane.b32.xlu0 %v7818_v37, %s8118_s9  ;;  %7789 = vrot.lane.b32.xlu1 %v7778_v45, %s8115_s16 }
 0x43b   : > { %v7525_v19 = vpop.permute.xlu1 %7524 }
 0x43d   : > { %7824 = vrot.lane.b32.xlu0 %v7823_v54, %s8115_s16  ;;  %7794 = vrot.lane.b32.xlu1 %v11042_v11, %s8117_s21  ;;  %v7546_v11 = vunpack.i.l.bf16 %v11360_v23 }
 0x43f   : > { %v11362_v45 = vpop.permute.xlu1 %7529  ;;  %v4917_v13 = vsel %vm325_vm10, %v10792_v18, %v7546_v11  ;;  %v7511_v18 = vunpack.i.l.bf16 %v11327_v15  ;;  %v7527_v11 = vunpack.i.h.bf16 %v7525_v19 }
 0x441   : > { %7839 = vrot.lane.b32.xlu0 %v11366_v27, %s8118_s9  ;;  %7804 = vrot.lane.b32.xlu1 %v7798_v26, %s8118_s9  ;;  %v4820_v26 = vsel %vm325_vm10, %v8069_v59, %v7502_v58  ;;  %v7522_v59 = vunpack.i.h.bf16 %v7520_v50  ;;  %v7521_v58 = vunpack.i.l.bf16 %v7520_v50  ;;  %v4949_v50 = vsel %vm280_vm12, %v4917_v13, %v7512_v60 }
 0x442   : > { %v4852_v30 = vsel %vm280_vm12, %v4820_v26, %v7507_v57  ;;  %v7526_v57 = vunpack.i.l.bf16 %v7525_v19 }
 0x443   : > { %v11373_v28 = vpop.permute.xlu1 %7534  ;;  %v11375_v36 = vpop.permute.xlu0 %7559 }
 0x445   : > { %7844 = vrot.lane.b32.xlu0 %v11147_v1, %s8115_s16  ;;  %7814 = vrot.lane.b32.xlu1 %v7808_v10, %s8118_s9  ;;  %v4066_v10 = vrot.slane %v11242_v62, 1  ;;  %v11402_v62 = vpack.i.bf16 %v11197_v25, %v11185_v61 }
 0x447   : > { %v11384_v40 = vpop.permute.xlu0 %7569  ;;  %v7540_v38 = vpop.permute.xlu1 %7539  ;;  %v11417_v60 = vsel %vm478_vm0, %v4064_v48, %v4066_v10  ;;  %v7547_v10 = vunpack.i.h.bf16 %v11360_v23 }
 0x448   : > { %v7542_v34 = vunpack.i.h.bf16 %v7540_v38  ;;  %v7541_v7 = vunpack.i.l.bf16 %v7540_v38  ;;  %v11429_v38 = vpack.i.bf16 %v11417_v60, %v11414_v42 }
 0x449   : > { %7859 = vrot.lane.b32.xlu0 %v11388_v0, %s8117_s21  ;;  %7829 = vrot.lane.b32.xlu1 %v7818_v37, %s8115_s16  ;;  %v4061_v37 = vrot.slane %v11199_v4, 1  ;;  %v4981_v4 = vsel %vm4883_vm5, %v4949_v50, %v7527_v11  ;;  %v8070_v11 = vld [vmem:[#allocation3 + $0x18] sm:$0xff] }
 0x44a   : > { %v4916_v35 = vsel %vm325_vm10, %v10752_v31, %v7542_v34  ;;  %v4885_v31 = vsel %vm4883_vm5, %v4852_v30, %v7522_v59  ;;  %v4884_v34 = vsel %vm4883_vm5, %v4851_v63, %v7521_v58  ;;  %v4058_v63 = vrot.slane %v11185_v61, 1 }
 0x44b   : > { %v11406_v26 = vpop.permute.xlu0 %7579  ;;  %v7550_v15 = vpop.permute.xlu1 %7549  ;;  %v4948_v41 = vsel %vm280_vm12, %v4916_v35, %v7511_v18  ;;  %v5012_v39 = vpack.c.bf16 %v4885_v31, %v4884_v34  ;;  %v7571_v18 = vunpack.i.l.bf16 %v11384_v40  ;;  %v4821_v61 = vsel %vm325_vm10, %v8070_v11, %v7541_v7  ;;  %v8071_v35 = vld [vmem:[#allocation3 + $0x20] sm:$0xff] }
 0x44c   : > { %v7552_v19 = vunpack.i.h.bf16 %v7550_v15  ;;  %v4980_v25 = vsel %vm4883_vm5, %v4948_v41, %v7526_v57  ;;  %v7551_v13 = vunpack.i.l.bf16 %v7550_v15  ;;  %v11433_v41 = vsel %vm478_vm0, %v4058_v63, %v4059_v17 }
 0x44d   : > { %7869 = vrot.lane.b32.xlu0 %v11402_v62, %s8117_s21  ;;  %7834 = vrot.lane.b32.xlu1 %v7823_v54, %s8117_s21  ;;  %v5013_v59 = vpack.c.bf16 %v4981_v4, %v4980_v25  ;;  %v11441_v23 = vsel %vm478_vm0, %v4059_v17, %v4061_v37  ;;  %v7517_v34 = vunpack.i.h.bf16 %v11340_v29  ;;  %v7516_v7 = vunpack.i.l.bf16 %v11340_v29 }
 0x44e   : > { %v4822_v50 = vsel %vm325_vm10, %v8071_v35, %v7552_v19  ;;  %v4919_v57 = vsel %vm325_vm10, %v10701_v12, %v7551_v13  ;;  %v7532_v19 = vunpack.i.h.bf16 %v11362_v45  ;;  %v7572_v25 = vunpack.i.h.bf16 %v11384_v40 }
 0x44f   : > { %v11425_v58 = vpop.permute.xlu0 %7584  ;;  %v7555_v48 = vpop.permute.xlu1 %7554  ;;  %5254 = vmatprep.mubr.bf16.mxu0 %v5013_v59  ;;  %v4918_v12 = vsel %vm325_vm10, %v10698_v8, %v7547_v10  ;;  %v7531_v40 = vunpack.i.l.bf16 %v11362_v45  ;;  %v7893_v8 = vpack.i.bf16 %v11441_v23, %v11433_v41  ;;  %v8072_v10 = vld [vmem:[#allocation3 + $0x38] sm:$0xff]  ;;  %v7536_v45 = vunpack.i.l.bf16 %v11373_v28 }
 0x450   : > { %v7557_v30 = vunpack.i.h.bf16 %v7555_v48  ;;  %v7556_v54 = vunpack.i.l.bf16 %v7555_v48  ;;  %5255 = vmatmul.mubr.bf16.vlgmr.msra.gmra.mxu0 %v5012_v39  ;;  %v4950_v13 = vsel %vm280_vm12, %v4918_v12, %v7571_v18  ;;  %v4951_v59 = vsel %vm280_vm12, %v4919_v57, %v7572_v25 }
 0x451   : > { %7879 = vrot.lane.b32.xlu0 %v11429_v38, %s8118_s9  ;;  %7849 = vrot.lane.b32.xlu1 %v11366_v27, %s8115_s16  ;;  %v7562_v57 = vunpack.i.h.bf16 %v11375_v36 }
 0x452   : > { %v4853_v15 = vsel %vm280_vm12, %v4821_v61, %v7556_v54  ;;  %v4854_v31 = vsel %vm280_vm12, %v4822_v50, %v7557_v30  ;;  %v4824_v30 = vsel %vm325_vm10, %v8072_v10, %v7532_v19  ;;  %v7537_v54 = vunpack.i.h.bf16 %v11373_v28 }
 0x453   : > { %v7600_v17 = vpop.permute.xlu0 %7599  ;;  %v11453_v37 = vpop.permute.xlu1 %7564  ;;  %v4886_v29 = vsel %vm4883_vm5, %v4853_v15, %v7516_v7  ;;  %v4887_v63 = vsel %vm4883_vm5, %v4854_v31, %v7517_v34  ;;  %v7561_v15 = vunpack.i.l.bf16 %v11375_v36  ;;  %v8073_v7 = vld [vmem:[#allocation3 + $0x30] sm:$0xff]  ;;  %v7582_v36 = vunpack.i.h.bf16 %v11406_v26 }
 0x454   : > { %v7602_v4 = vunpack.i.h.bf16 %v7600_v17  ;;  %v7601_v27 = vunpack.i.l.bf16 %v7600_v17  ;;  %v4823_v19 = vsel %vm325_vm10, %v8073_v7, %v7531_v40  ;;  %v7581_v17 = vunpack.i.l.bf16 %v11406_v26 }
 0x455   : > { %7884 = vrot.lane.b32.xlu0 %v11273_v5, %s8115_s16  ;;  %7854 = vrot.lane.b32.xlu1 %v11147_v1, %s8117_s21  ;;  %v5015_v1 = vpack.c.bf16 %v4887_v63, %v4886_v29  ;;  %v4157_v10 = vrot.slane %v11299_v43, 1  ;;  %v4071_v43 = vrot.slane %v11279_v6, 1 }
 0x456   : > { %v4982_v39 = vsel %vm4883_vm5, %v4950_v13, %v7601_v27  ;;  %v4983_v48 = vsel %vm4883_vm5, %v4951_v59, %v7602_v4 }
 0x457   : > { %v7605_v18 = vpop.permute.xlu0 %7604  ;;  %v7575_v11 = vpop.permute.xlu1 %7574  ;;  %v5016_v61 = vpack.c.bf16 %v4983_v48, %v4982_v39 }
 0x458   : > { %v7607_v35 = vunpack.i.h.bf16 %v7605_v18  ;;  %v7606_v50 = vunpack.i.l.bf16 %v7605_v18  ;;  %v7577_v31 = vunpack.i.h.bf16 %v7575_v11  ;;  %v7576_v34 = vunpack.i.l.bf16 %v7575_v11 }
 0x459   : > { %7894 = vrot.lane.b32.xlu0 %v7893_v8, %s8118_s9  ;;  %5262 = vmatprep.mubr.bf16.mxu0 %v5016_v61  ;;  %v11517_v61 = vpack.i.bf16 %v11277_v20, %v11268_v9 }
 0x45a   : > { %v4921_v25 = vsel %vm325_vm10, %v10847_v24, %v7607_v35  ;;  %v4920_v28 = vsel %vm325_vm10, %v10843_v51, %v7606_v50  ;;  %7864 = vrot.lane.b32.xlu1 %v11388_v0, %s8118_s9  ;;  %5263 = vmatmul.mubr.bf16.gmra.mxu0 %v5015_v1  ;;  %v4855_v24 = vsel %vm280_vm12, %v4823_v19, %v7536_v45  ;;  %v11522_v45 = vld [vmem:[#allocation3 + $0x1a0] sm:$0xff]  ;;  %v4068_v35 = vrot.slane %v11268_v9, 1 }
 0x45b   : > { %v11485_v12 = vpop.permute.xlu0 %7619  ;;  %v11487_v4 = vpop.permute.xlu1 %7589  ;;  %v4952_v27 = vsel %vm280_vm12, %v4920_v28, %v7561_v15  ;;  %v4953_v13 = vsel %vm280_vm12, %v4921_v25, %v7562_v57  ;;  %v4856_v51 = vsel %vm280_vm12, %v4824_v30, %v7537_v54  ;;  %v4888_v26 = vsel %vm4883_vm5, %v4855_v24, %v7576_v34  ;;  %v11549_v25 = vld [vmem:[#allocation3 + $0x1a8] sm:$0xff]  ;;  %v8074_v24 = vld [vmem:[#allocation3 + $0x50] sm:$0xff] }
 0x45c   : > { %v4984_v0 = vsel %vm4883_vm5, %v4952_v27, %v7581_v17  ;;  %v4985_v59 = vsel %vm4883_vm5, %v4953_v13, %v7582_v36  ;;  %v4889_v29 = vsel %vm4883_vm5, %v4856_v51, %v7577_v31  ;;  %v4159_v30 = vrot.slane %v11301_v14, 1  ;;  %v11520_v14 = vld [vmem:[#allocation3 + $0x198] sm:$0xff] }
 0x45d   : > { %7899 = vrot.lane.b32.xlu0 %v11224_v56, %s8115_s16  ;;  %v5019_v63 = vpack.c.bf16 %v4985_v59, %v4984_v0  ;;  %v5018_v48 = vpack.c.bf16 %v4889_v29, %v4888_v26  ;;  %v4069_v54 = vrot.slane %v11277_v20, 1  ;;  %v4202_v6 = vrot.slane %v11522_v45, 1  ;;  %v8075_v0 = vld [vmem:[#allocation3 + $0x48] sm:$0xff] }
 0x45e   : > { %7874 = vrot.lane.b32.xlu1 %v11402_v62, %s8118_s9  ;;  %v4156_v62 = vrot.slane %v11293_v22, 1  ;;  %v11528_v22 = vsel %vm478_vm0, %v4157_v10, %v4159_v30  ;;  %v4207_v57 = vrot.slane %v11522_v45, 2  ;;  %v4201_v15 = vrot.slane %v11520_v14, 1 }
 0x45f   : > { %v11501_v40 = vpop.permute.xlu0 %7629  ;;  %v11503_v39 = vpop.permute.xlu1 %7594  ;;  %5270 = vmatprep.mubr.bf16.mxu0 %v5019_v63  ;;  %v11535_v20 = vsel %vm478_vm0, %v4068_v35, %v4069_v54  ;;  %v7587_v31 = vunpack.i.h.bf16 %v11425_v58  ;;  %v7586_v9 = vunpack.i.l.bf16 %v11425_v58  ;;  %v4206_v17 = vrot.slane %v11520_v14, 2 }
 0x460   : > { %v4209_v27 = vrot.slane %v11549_v25, 2  ;;  %v7632_v13 = vunpack.i.h.bf16 %v11501_v40  ;;  %v7631_v58 = vunpack.i.l.bf16 %v11501_v40  ;;  %v7566_v30 = vunpack.i.l.bf16 %v11453_v37 }
 0x461   : > { %7919 = vrot.lane.b32.xlu0 %v11312_v52, %s8117_s21  ;;  %v4923_v40 = vsel %vm325_vm10, %v10796_v16, %v7587_v31  ;;  %v7591_v31 = vunpack.i.l.bf16 %v11487_v4 }
 0x462   : > { %7889 = vrot.lane.b32.xlu1 %v11429_v38, %s8115_s16  ;;  %5271 = vmatmul.mubr.bf16.gmra.mxu0 %v5018_v48  ;;  %v11525_v38 = vsel %vm478_vm0, %v4156_v62, %v4157_v10  ;;  %v4922_v48 = vsel %vm325_vm10, %v10787_v21, %v7586_v9  ;;  %v7567_v10 = vunpack.i.h.bf16 %v11453_v37  ;;  %v4955_v21 = vsel %vm280_vm12, %v4923_v40, %v7632_v13 }
 0x463   : > { %v11513_v18 = vpop.permute.xlu0 %7639  ;;  %v7610_v11 = vpop.permute.xlu1 %7609  ;;  %v7933_v19 = vpack.i.bf16 %v11528_v22, %v11525_v38  ;;  %v4954_v16 = vsel %vm280_vm12, %v4922_v48, %v7631_v58  ;;  %v4208_v58 = vsel %vm559_vm1, %v4206_v17, %v4207_v57  ;;  %v8077_v48 = vld [vmem:[#allocation3 + $0x60] sm:$0xff] }
 0x464   : > { %v7612_v50 = vunpack.i.h.bf16 %v7610_v11  ;;  %v7611_v1 = vunpack.i.l.bf16 %v7610_v11  ;;  %v7592_v11 = vunpack.i.h.bf16 %v11487_v4  ;;  %v4827_v17 = vsel %vm325_vm10, %v8077_v48, %v7591_v31 }
 0x465   : > { %7924 = vrot.lane.b32.xlu0 %v11517_v61, %s8117_s21 }
 0x466   : > { %7904 = vrot.lane.b32.xlu1 %v7893_v8, %s8115_s16  ;;  %v11547_v8 = vsel %vm478_vm0, %v4069_v54, %v4071_v43  ;;  %v4826_v51 = vsel %vm325_vm10, %v8074_v24, %v7612_v50  ;;  %v4825_v59 = vsel %vm325_vm10, %v8075_v0, %v7611_v1  ;;  %v7622_v54 = vunpack.i.h.bf16 %v11485_v12 }
 0x467   : > { %v11542_v34 = vpop.permute.xlu0 %7644  ;;  %v7615_v7 = vpop.permute.xlu1 %7614  ;;  %v11562_v26 = vpack.i.bf16 %v11547_v8, %v11535_v20  ;;  %v7621_v1 = vunpack.i.l.bf16 %v11485_v12  ;;  %v4210_v24 = vsel %vm559_vm1, %v4207_v57, %v4209_v27  ;;  %v7596_v12 = vunpack.i.l.bf16 %v11503_v39 }
 0x468   : > { %v7617_v28 = vunpack.i.h.bf16 %v7615_v7  ;;  %v7616_v36 = vunpack.i.l.bf16 %v7615_v7  ;;  %v5059_v40 = vpack.c.bf16 %v4210_v24, %v4208_v58  ;;  %v4204_v27 = vrot.slane %v11549_v25, 1  ;;  %v8078_v24 = vld [vmem:[#allocation3 + $0x80] sm:$0xff] }
 0x469   : > { %7934 = vrot.lane.b32.xlu0 %v7933_v19, %s8118_s9  ;;  %v7597_v19 = vunpack.i.h.bf16 %v11503_v39 }
 0x46a   : > { %7909 = vrot.lane.b32.xlu1 %v11224_v56, %s8117_s21  ;;  %v4857_v29 = vsel %vm280_vm12, %v4825_v59, %v7616_v36  ;;  %v4858_v63 = vsel %vm280_vm12, %v4826_v51, %v7617_v28  ;;  %v8076_v59 = vld [vmem:[#allocation3 + $0x68] sm:$0xff]  ;;  %6575 = vmatmul.mubr.msk.bf16.gmra.mxu1 %vm325_vm10, %v5059_v40 }
 0x46b   : > { %v7660_v62 = vpop.permute.xlu0 %7659  ;;  %v11572_v56 = vpop.permute.xlu1 %7624  ;;  %v4890_v50 = vsel %vm4883_vm5, %v4857_v29, %v7566_v30  ;;  %v4891_v37 = vsel %vm4883_vm5, %v4858_v63, %v7567_v10  ;;  %v7642_v10 = vunpack.i.h.bf16 %v11513_v18  ;;  %v7641_v30 = vunpack.i.l.bf16 %v11513_v18 }
 0x46c   : > { %v7662_v43 = vunpack.i.h.bf16 %v7660_v62  ;;  %v7661_v35 = vunpack.i.l.bf16 %v7660_v62  ;;  %v5021_v0 = vpack.c.bf16 %v4891_v37, %v4890_v50  ;;  %v12322_v18 = vpack.i.bf16 %v11320_v2, %v11317_v49 }
 0x46d   : > { %7939 = vrot.lane.b32.xlu0 %v11562_v26, %s8118_s9  ;;  %v4203_v37 = vsel %vm478_vm0, %v4201_v15, %v4202_v6  ;;  %v4205_v49 = vsel %vm478_vm0, %v4202_v6, %v4204_v27  ;;  %vm5864_vm0 = vcmask 15360  }
 0x46e   : > { %7914 = vrot.lane.b32.xlu1 %v11273_v5, %s8117_s21  ;;  %v4986_v9 = vsel %vm4883_vm5, %v4954_v16, %v7661_v35  ;;  %v4987_v7 = vsel %vm4883_vm5, %v4955_v21, %v7662_v43  ;;  %v4828_v5 = vsel %vm325_vm10, %v8076_v59, %v7592_v11  ;;  %v7627_v59 = vunpack.i.h.bf16 %v11572_v56 }
 0x46f   : > { %v7665_v28 = vpop.permute.xlu0 %7664  ;;  %v7635_v36 = vpop.permute.xlu1 %7634  ;;  %v5022_v13 = vpack.c.bf16 %v4987_v7, %v4986_v9  ;;  %v4860_v25 = vsel %vm280_vm12, %v4828_v5, %v7597_v19  ;;  %v7958_v9 = vpack.i.bf16 %v4205_v49, %v4203_v37  ;;  %v7647_v19 = vunpack.i.h.bf16 %v11542_v34  ;;  %v8080_v37 = vld [vmem:[#allocation3 + $0x98] sm:$0xff] }
 0x470   : > { %v7667_v51 = vunpack.i.h.bf16 %v7665_v28  ;;  %v7666_v4 = vunpack.i.l.bf16 %v7665_v28  ;;  %v7637_v29 = vunpack.i.h.bf16 %v7635_v36  ;;  %v7636_v63 = vunpack.i.l.bf16 %v7635_v36 }
 0x471   : > { %7944 = vrot.lane.b32.xlu0 %v11290_v32, %s8115_s16  ;;  %5278 = vmatprep.mubr.bf16.mxu0 %v5022_v13  ;;  %v7646_v28 = vunpack.i.l.bf16 %v11542_v34  ;;  %v7626_v5 = vunpack.i.l.bf16 %v11572_v56 }
 0x472   : > { %v4925_v57 = vsel %vm325_vm10, %v10993_v33, %v7667_v51  ;;  %v4924_v39 = vsel %vm325_vm10, %v10990_v55, %v7666_v4  ;;  %7929 = vrot.lane.b32.xlu1 %v11517_v61, %s8118_s9  ;;  %5279 = vmatmul.mubr.bf16.gmra.mxu0 %v5021_v0  ;;  %v7953_v55 = vpack.i.bf16 %v11522_v45, %v11520_v14  ;;  %v8079_v51 = vld [vmem:[#allocation3 + $0x78] sm:$0xff] }
 0x473   : > { %v11605_v62 = vpop.permute.xlu0 %7679  ;;  %v11607_v11 = vpop.permute.xlu1 %7649  ;;  %v4956_v43 = vsel %vm280_vm12, %v4924_v39, %v7621_v1  ;;  %v4957_v33 = vsel %vm280_vm12, %v4925_v57, %v7622_v54  ;;  %v4859_v61 = vsel %vm280_vm12, %v4827_v17, %v7596_v12  ;;  %v4893_v21 = vsel %vm4883_vm5, %v4860_v25, %v7637_v29 }
 0x474   : > { %v4988_v35 = vsel %vm4883_vm5, %v4956_v43, %v7641_v30  ;;  %v4989_v16 = vsel %vm4883_vm5, %v4957_v33, %v7642_v10  ;;  %v4892_v54 = vsel %vm4883_vm5, %v4859_v61, %v7636_v63  ;;  %v4927_v63 = vsel %vm325_vm10, %v10941_v46, %v7647_v19 }
 0x475   : > { %7949 = vrot.lane.b32.xlu0 %v12322_v18, %s8115_s16  ;;  %v5025_v50 = vpack.c.bf16 %v4989_v16, %v4988_v35  ;;  %v5024_v31 = vpack.c.bf16 %v4893_v21, %v4892_v54  ;;  %v4926_v40 = vsel %vm325_vm10, %v10937_v53, %v7646_v28  ;;  %v7652_v56 = vunpack.i.h.bf16 %v11607_v11 }
 0x476   : > { %7964 = vrot.lane.b32.xlu1 %v11562_v26, %s8115_s16  ;;  %v7651_v30 = vunpack.i.l.bf16 %v11607_v11  ;;  %v7682_v54 = vunpack.i.h.bf16 %v11605_v62  ;;  %v7681_v21 = vunpack.i.l.bf16 %v11605_v62 }
 0x477   : > { %v7690_v2 = vpop.permute.xlu0 %7689  ;;  %v11634_v1 = vpop.permute.xlu1 %7654  ;;  %5286 = vmatprep.mubr.bf16.mxu0 %v5025_v50  ;;  %v4832_v49 = vsel %vm325_vm10, %v8080_v37, %v7652_v56 }
 0x478   : > { %v7692_v13 = vunpack.i.h.bf16 %v7690_v2  ;;  %v7691_v58 = vunpack.i.l.bf16 %v7690_v2  ;;  %v7657_v53 = vunpack.i.h.bf16 %v11634_v1  ;;  %v7656_v25 = vunpack.i.l.bf16 %v11634_v1  ;;  %v8081_v2 = vld [vmem:[#allocation3 + $0x90] sm:$0xff] }
 0x479   : > { %7954 = vrot.lane.b32.xlu0 %v7953_v55, %s8117_s21 }
 0x47a   : > { %7969 = vrot.lane.b32.xlu1 %v11290_v32, %s8117_s21  ;;  %5287 = vmatmul.mubr.bf16.gmra.mxu0 %v5024_v31  ;;  %v4958_v57 = vsel %vm280_vm12, %v4926_v40, %v7691_v58  ;;  %v4959_v39 = vsel %vm280_vm12, %v4927_v63, %v7692_v13  ;;  %v4831_v31 = vsel %vm325_vm10, %v8081_v2, %v7651_v30 }
 0x47b   : > { %v11639_v26 = vpop.permute.xlu0 %7699  ;;  %v7670_v14 = vpop.permute.xlu1 %7669  ;;  %v4863_v28 = vsel %vm280_vm12, %v4831_v31, %v7656_v25  ;;  %v12324_v25 = vld [vmem:[#allocation36_spill] sm:$0xff] }
 0x47c   : > { %v7672_v15 = vunpack.i.h.bf16 %v7670_v14  ;;  %v7671_v7 = vunpack.i.l.bf16 %v7670_v14  ;;  %v7702_v14 = vunpack.i.h.bf16 %v11639_v26  ;;  %v7701_v62 = vunpack.i.l.bf16 %v11639_v26 }
 0x47d   : > { %7959 = vrot.lane.b32.xlu0 %v7958_v9, %s8118_s9 }
 0x47e   : > { %7974 = vrot.lane.b32.xlu1 %v11312_v52, %s8118_s9  ;;  %v4830_v12 = vsel %vm325_vm10, %v8078_v24, %v7672_v15  ;;  %v4829_v4 = vsel %vm325_vm10, %v8079_v51, %v7671_v7 }
 0x47f   : > { %v11644_v45 = vpop.permute.xlu0 %7704  ;;  %v7675_v6 = vpop.permute.xlu1 %7674 }
 0x480   : > { %v7677_v36 = vunpack.i.h.bf16 %v7675_v6  ;;  %v7676_v32 = vunpack.i.l.bf16 %v7675_v6  ;;  %v7706_v63 = vunpack.i.l.bf16 %v11644_v45 }
 0x482   : > { %v4861_v0 = vsel %vm280_vm12, %v4829_v4, %v7676_v32  ;;  %v4862_v52 = vsel %vm280_vm12, %v4830_v12, %v7677_v36 }
 0x483   : > { %v7720_v29 = vpop.permute.xlu0 %7719  ;;  %v11654_v34 = vpop.permute.xlu1 %7684  ;;  %v4894_v27 = vsel %vm4883_vm5, %v4861_v0, %v7626_v5  ;;  %v4895_v10 = vsel %vm4883_vm5, %v4862_v52, %v7627_v59 }
 0x484   : > { %v7722_v48 = vunpack.i.h.bf16 %v7720_v29  ;;  %v7721_v17 = vunpack.i.l.bf16 %v7720_v29  ;;  %v5027_v16 = vpack.c.bf16 %v4895_v10, %v4894_v27  ;;  %v7707_v29 = vunpack.i.h.bf16 %v11644_v45  ;;  %v8083_v10 = vld [vmem:[#allocation3 + $0xa8] sm:$0xff] }
 0x486   : > { %v4990_v43 = vsel %vm4883_vm5, %v4958_v57, %v7721_v17  ;;  %v4991_v46 = vsel %vm4883_vm5, %v4959_v39, %v7722_v48  ;;  %v8082_v39 = vld [vmem:[#allocation3 + $0xb0] sm:$0xff] }
 0x487   : > { %v7725_v33 = vpop.permute.xlu0 %7724  ;;  %v7695_v55 = vpop.permute.xlu1 %7694  ;;  %v5028_v61 = vpack.c.bf16 %v4991_v46, %v4990_v43  ;;  %v7687_v46 = vunpack.i.h.bf16 %v11654_v34 }
 0x488   : > { %v7727_v18 = vunpack.i.h.bf16 %v7725_v33  ;;  %v7726_v35 = vunpack.i.l.bf16 %v7725_v33  ;;  %v7697_v50 = vunpack.i.h.bf16 %v7695_v55  ;;  %v7696_v11 = vunpack.i.l.bf16 %v7695_v55  ;;  %v12323_v55 = vld [vmem:[#allocation55_spill] sm:$0xff] }
 0x489   : > { %5294 = vmatprep.mubr.bf16.mxu0 %v5028_v61  ;;  %v4931_v61 = vsel %vm325_vm10, %v12323_v55, %v7707_v29 }
 0x48a   : > { %v4929_v9 = vsel %vm325_vm10, %v11134_v44, %v7727_v18  ;;  %v4928_v1 = vsel %vm325_vm10, %v11131_v3, %v7726_v35  ;;  %5295 = vmatmul.mubr.bf16.gmra.mxu0 %v5027_v16  ;;  %v4864_v44 = vsel %vm280_vm12, %v4832_v49, %v7657_v53  ;;  %v4896_v32 = vsel %vm4883_vm5, %v4863_v28, %v7696_v11 }
 0x48b   : > { %v11680_v15 = vpop.permute.xlu0 %7739  ;;  %v11682_v7 = vpop.permute.xlu1 %7709  ;;  %v4960_v6 = vsel %vm280_vm12, %v4928_v1, %v7681_v21  ;;  %v4961_v19 = vsel %vm280_vm12, %v4929_v9, %v7682_v54  ;;  %v4897_v26 = vsel %vm4883_vm5, %v4864_v44, %v7697_v50  ;;  %v7686_v53 = vunpack.i.l.bf16 %v11654_v34 }
 0x48c   : > { %v4992_v36 = vsel %vm4883_vm5, %v4960_v6, %v7701_v62  ;;  %v4993_v3 = vsel %vm4883_vm5, %v4961_v19, %v7702_v14  ;;  %v5030_v12 = vpack.c.bf16 %v4897_v26, %v4896_v32  ;;  %v4930_v18 = vsel %vm325_vm10, %v12324_v25, %v7706_v63  ;;  %v8084_v32 = vld [vmem:[#allocation3 + $0xc8] sm:$0xff] }
 0x48d   : > { %v5031_v13 = vpack.c.bf16 %v4993_v3, %v4992_v36  ;;  %v7712_v34 = vunpack.i.h.bf16 %v11682_v7  ;;  %v7711_v37 = vunpack.i.l.bf16 %v11682_v7  ;;  %v7742_v44 = vunpack.i.h.bf16 %v11680_v15 }
 0x48e   : > { %v7741_v36 = vunpack.i.l.bf16 %v11680_v15 }
 0x48f   : > { %v7750_v58 = vpop.permute.xlu0 %7749  ;;  %v11692_v24 = vpop.permute.xlu1 %7714  ;;  %5302 = vmatprep.mubr.bf16.mxu0 %v5031_v13  ;;  %v4836_v26 = vsel %vm325_vm10, %v8084_v32, %v7712_v34  ;;  %v8085_v13 = vld [vmem:[#allocation3 + $0xc0] sm:$0xff] }
 0x490   : > { %v7752_v17 = vunpack.i.h.bf16 %v7750_v58  ;;  %v7751_v57 = vunpack.i.l.bf16 %v7750_v58  ;;  %v7717_v31 = vunpack.i.h.bf16 %v11692_v24  ;;  %v7716_v62 = vunpack.i.l.bf16 %v11692_v24  ;;  %v12325_v24 = vld [vmem:[#allocation38_spill] sm:$0xff] }
 0x491   : > { %v4835_v58 = vsel %vm325_vm10, %v8085_v13, %v7711_v37 }
 0x492   : > { %5303 = vmatmul.mubr.bf16.gmra.mxu0 %v5030_v12  ;;  %v4962_v54 = vsel %vm280_vm12, %v4930_v18, %v7751_v57  ;;  %v4963_v21 = vsel %vm280_vm12, %v4931_v61, %v7752_v17 }
 0x493   : > { %v11694_v51 = vpop.permute.xlu0 %7759  ;;  %v7730_v4 = vpop.permute.xlu1 %7729 }
 0x494   : > { %v7732_v0 = vunpack.i.h.bf16 %v7730_v4  ;;  %v7731_v52 = vunpack.i.l.bf16 %v7730_v4  ;;  %v7761_v15 = vunpack.i.l.bf16 %v11694_v51 }
 0x496   : > { %v4834_v27 = vsel %vm325_vm10, %v8082_v39, %v7732_v0  ;;  %v4833_v56 = vsel %vm325_vm10, %v8083_v10, %v7731_v52  ;;  %v7762_v0 = vunpack.i.h.bf16 %v11694_v51 }
 0x497   : > { %v11696_v59 = vpop.permute.xlu0 %7764  ;;  %v7735_v5 = vpop.permute.xlu1 %7734 }
 0x498   : > { %v7737_v40 = vunpack.i.h.bf16 %v7735_v5  ;;  %v7736_v48 = vunpack.i.l.bf16 %v7735_v5  ;;  %v7767_v61 = vunpack.i.h.bf16 %v11696_v59  ;;  %v7766_v25 = vunpack.i.l.bf16 %v11696_v59 }
 0x49a   : > { %v4865_v30 = vsel %vm280_vm12, %v4833_v56, %v7736_v48  ;;  %v4866_v43 = vsel %vm280_vm12, %v4834_v27, %v7737_v40  ;;  %v4867_v40 = vsel %vm280_vm12, %v4835_v58, %v7716_v62  ;;  %v12327_v62 = vld [vmem:[#allocation60_spill] sm:$0xff] }
 0x49b   : > { %v7780_v33 = vpop.permute.xlu0 %7779  ;;  %v11706_v45 = vpop.permute.xlu1 %7744  ;;  %v4898_v50 = vsel %vm4883_vm5, %v4865_v30, %v7686_v53  ;;  %v4899_v11 = vsel %vm4883_vm5, %v4866_v43, %v7687_v46 }
 0x49c   : > { %v7782_v35 = vunpack.i.h.bf16 %v7780_v33  ;;  %v7781_v16 = vunpack.i.l.bf16 %v7780_v33  ;;  %v5033_v28 = vpack.c.bf16 %v4899_v11, %v4898_v50  ;;  %v8087_v11 = vld [vmem:[#allocation3 + $0xd8] sm:$0xff] }
 0x49e   : > { %v4994_v49 = vsel %vm4883_vm5, %v4962_v54, %v7781_v16  ;;  %v4995_v2 = vsel %vm4883_vm5, %v4963_v21, %v7782_v35  ;;  %v8086_v21 = vld [vmem:[#allocation3 + $0xe0] sm:$0xff] }
 0x49f   : > { %v7785_v9 = vpop.permute.xlu0 %7784  ;;  %v7755_v1 = vpop.permute.xlu1 %7754  ;;  %v5034_v14 = vpack.c.bf16 %v4995_v2, %v4994_v49  ;;  %v7747_v2 = vunpack.i.h.bf16 %v11706_v45 }
 0x4a0   : > { %v7787_v6 = vunpack.i.h.bf16 %v7785_v9  ;;  %v7786_v19 = vunpack.i.l.bf16 %v7785_v9  ;;  %v7757_v3 = vunpack.i.h.bf16 %v7755_v1  ;;  %v7756_v7 = vunpack.i.l.bf16 %v7755_v1  ;;  %v12326_v1 = vld [vmem:[#allocation37_spill] sm:$0xff] }
 0x4a1   : > { %5310 = vmatprep.mubr.bf16.mxu0 %v5034_v14  ;;  %v4935_v14 = vsel %vm325_vm10, %v12326_v1, %v7767_v61 }
 0x4a2   : > { %v4933_v12 = vsel %vm325_vm10, %v11265_v47, %v7787_v6  ;;  %v4932_v4 = vsel %vm325_vm10, %v12325_v24, %v7786_v19  ;;  %5311 = vmatmul.mubr.bf16.gmra.mxu0 %v5033_v28  ;;  %v4868_v47 = vsel %vm280_vm12, %v4836_v26, %v7717_v31  ;;  %v4900_v48 = vsel %vm4883_vm5, %v4867_v40, %v7756_v7 }
 0x4a3   : > { %v11732_v52 = vpop.permute.xlu0 %7799  ;;  %v11734_v5 = vpop.permute.xlu1 %7769  ;;  %v4964_v29 = vsel %vm280_vm12, %v4932_v4, %v7741_v36  ;;  %v4965_v63 = vsel %vm280_vm12, %v4933_v12, %v7742_v44  ;;  %v4901_v17 = vsel %vm4883_vm5, %v4868_v47, %v7757_v3  ;;  %v7746_v31 = vunpack.i.l.bf16 %v11706_v45 }
 0x4a4   : > { %v4996_v57 = vsel %vm4883_vm5, %v4964_v29, %v7761_v15  ;;  %v4997_v51 = vsel %vm4883_vm5, %v4965_v63, %v7762_v0  ;;  %v5036_v56 = vpack.c.bf16 %v4901_v17, %v4900_v48  ;;  %v4934_v6 = vsel %vm325_vm10, %v12327_v62, %v7766_v25  ;;  %v8088_v17 = vld [vmem:[#allocation3 + $0xf8] sm:$0xff] }
 0x4a5   : > { %v5037_v39 = vpack.c.bf16 %v4997_v51, %v4996_v57  ;;  %v7772_v45 = vunpack.i.h.bf16 %v11734_v5  ;;  %v7771_v32 = vunpack.i.l.bf16 %v11734_v5  ;;  %v7802_v40 = vunpack.i.h.bf16 %v11732_v52  ;;  %v8089_v51 = vld [vmem:[#allocation3 + $0xf0] sm:$0xff] }
 0x4a6   : > { %v7801_v47 = vunpack.i.l.bf16 %v11732_v52 }
 0x4a7   : > { %v7810_v27 = vpop.permute.xlu0 %7809  ;;  %v11744_v10 = vpop.permute.xlu1 %7774  ;;  %5318 = vmatprep.mubr.bf16.mxu0 %v5037_v39  ;;  %v4840_v57 = vsel %vm325_vm10, %v8088_v17, %v7772_v45  ;;  %v4839_v39 = vsel %vm325_vm10, %v8089_v51, %v7771_v32  ;;  %v8091_v45 = vld [vmem:[#allocation3 + $0x108] sm:$0xff] }
 0x4a8   : > { %v7812_v16 = vunpack.i.h.bf16 %v7810_v27  ;;  %v7811_v54 = vunpack.i.l.bf16 %v7810_v27  ;;  %v7777_v58 = vunpack.i.h.bf16 %v11744_v10  ;;  %v7776_v0 = vunpack.i.l.bf16 %v11744_v10  ;;  %v12328_v27 = vld [vmem:[#allocation64_spill] sm:$0xff]  ;;  %v12329_v10 = vld [vmem:[#allocation63_spill] sm:$0xff] }
 0x4aa   : > { %5319 = vmatmul.mubr.bf16.gmra.mxu0 %v5036_v56  ;;  %v4966_v44 = vsel %vm280_vm12, %v4934_v6, %v7811_v54  ;;  %v4967_v36 = vsel %vm280_vm12, %v4935_v14, %v7812_v16 }
 0x4ab   : > { %v11746_v30 = vpop.permute.xlu0 %7819  ;;  %v7790_v43 = vpop.permute.xlu1 %7789 }
 0x4ac   : > { %v7792_v46 = vunpack.i.h.bf16 %v7790_v43  ;;  %v7791_v53 = vunpack.i.l.bf16 %v7790_v43  ;;  %v7821_v52 = vunpack.i.l.bf16 %v11746_v30 }
 0x4ae   : > { %v4838_v50 = vsel %vm325_vm10, %v8086_v21, %v7792_v46  ;;  %v4837_v34 = vsel %vm325_vm10, %v8087_v11, %v7791_v53  ;;  %v7822_v46 = vunpack.i.h.bf16 %v11746_v30 }
 0x4af   : > { %v11748_v33 = vpop.permute.xlu0 %7824  ;;  %v7795_v55 = vpop.permute.xlu1 %7794 }
 0x4b0   : > { %v7797_v18 = vunpack.i.h.bf16 %v7795_v55  ;;  %v7796_v35 = vunpack.i.l.bf16 %v7795_v55  ;;  %v7827_v14 = vunpack.i.h.bf16 %v11748_v33  ;;  %v7826_v62 = vunpack.i.l.bf16 %v11748_v33 }
 0x4b2   : > { %v4869_v37 = vsel %vm280_vm12, %v4837_v34, %v7796_v35  ;;  %v4870_v49 = vsel %vm280_vm12, %v4838_v50, %v7797_v18  ;;  %v4871_v18 = vsel %vm280_vm12, %v4839_v39, %v7776_v0  ;;  %v4872_v35 = vsel %vm280_vm12, %v4840_v57, %v7777_v58  ;;  %v12331_v0 = vld [vmem:[#allocation56_spill] sm:$0xff] }
 0x4b3   : > { %v7840_v9 = vpop.permute.xlu0 %7839  ;;  %v11758_v59 = vpop.permute.xlu1 %7804  ;;  %v4902_v3 = vsel %vm4883_vm5, %v4869_v37, %v7746_v31  ;;  %v4903_v7 = vsel %vm4883_vm5, %v4870_v49, %v7747_v2 }
 0x4b4   : > { %v7842_v19 = vunpack.i.h.bf16 %v7840_v9  ;;  %v7841_v28 = vunpack.i.l.bf16 %v7840_v9  ;;  %v5039_v63 = vpack.c.bf16 %v4903_v7, %v4902_v3  ;;  %v8090_v3 = vld [vmem:[#allocation3 + $0x110] sm:$0xff] }
 0x4b6   : > { %v4998_v26 = vsel %vm4883_vm5, %v4966_v44, %v7841_v28  ;;  %v4999_v13 = vsel %vm4883_vm5, %v4967_v36, %v7842_v19 }
 0x4b7   : > { %v7845_v12 = vpop.permute.xlu0 %7844  ;;  %v7815_v24 = vpop.permute.xlu1 %7814  ;;  %v5040_v4 = vpack.c.bf16 %v4999_v13, %v4998_v26  ;;  %v7807_v26 = vunpack.i.h.bf16 %v11758_v59  ;;  %v7806_v13 = vunpack.i.l.bf16 %v11758_v59 }
 0x4b8   : > { %v7847_v15 = vunpack.i.h.bf16 %v7845_v12  ;;  %v7846_v29 = vunpack.i.l.bf16 %v7845_v12  ;;  %v7817_v48 = vunpack.i.h.bf16 %v7815_v24  ;;  %v7816_v5 = vunpack.i.l.bf16 %v7815_v24  ;;  %v12330_v24 = vld [vmem:[#allocation57_spill] sm:$0xff] }
 0x4b9   : > { %5326 = vmatprep.mubr.bf16.mxu0 %v5040_v4  ;;  %v4939_v4 = vsel %vm325_vm10, %v12330_v24, %v7827_v14 }
 0x4ba   : > { %v4937_v56 = vsel %vm325_vm10, %v12328_v27, %v7847_v15  ;;  %v4936_v43 = vsel %vm325_vm10, %v12329_v10, %v7846_v29  ;;  %5327 = vmatmul.mubr.bf16.gmra.mxu0 %v5039_v63  ;;  %v4904_v16 = vsel %vm4883_vm5, %v4871_v18, %v7816_v5  ;;  %v4905_v54 = vsel %vm4883_vm5, %v4872_v35, %v7817_v48 }
 0x4bb   : > { %v11784_v53 = vpop.permute.xlu0 %7859  ;;  %v11786_v55 = vpop.permute.xlu1 %7829  ;;  %v4968_v61 = vsel %vm280_vm12, %v4936_v43, %v7801_v47  ;;  %v4969_v25 = vsel %vm280_vm12, %v4937_v56, %v7802_v40  ;;  %v5042_v37 = vpack.c.bf16 %v4905_v54, %v4904_v16  ;;  %v4938_v15 = vsel %vm325_vm10, %v12331_v0, %v7826_v62  ;;  %v8094_v0 = vld [vmem:[#allocation3 + $0x140] sm:$0xff] }
 0x4bc   : > { %v5000_v21 = vsel %vm4883_vm5, %v4968_v61, %v7821_v52  ;;  %v5001_v30 = vsel %vm4883_vm5, %v4969_v25, %v7822_v46  ;;  %v7832_v17 = vunpack.i.h.bf16 %v11786_v55  ;;  %v7831_v39 = vunpack.i.l.bf16 %v11786_v55 }
 0x4bd   : > { %v5043_v50 = vpack.c.bf16 %v5001_v30, %v5000_v21  ;;  %v7862_v18 = vunpack.i.h.bf16 %v11784_v53  ;;  %v7861_v35 = vunpack.i.l.bf16 %v11784_v53  ;;  %v8092_v21 = vld [vmem:[#allocation3 + $0x128] sm:$0xff] }
 0x4be   : > { %v4844_v55 = vsel %vm325_vm10, %v8092_v21, %v7832_v17 }
 0x4bf   : > { %v7870_v11 = vpop.permute.xlu0 %7869  ;;  %v11796_v34 = vpop.permute.xlu1 %7834  ;;  %5334 = vmatprep.mubr.bf16.mxu0 %v5043_v50 }
 0x4c0   : > { %v7872_v19 = vunpack.i.h.bf16 %v7870_v11  ;;  %v7871_v28 = vunpack.i.l.bf16 %v7870_v11  ;;  %v7837_v27 = vunpack.i.h.bf16 %v11796_v34  ;;  %v7836_v43 = vunpack.i.l.bf16 %v11796_v34  ;;  %v8093_v34 = vld [vmem:[#allocation3 + $0x120] sm:$0xff] }
 0x4c2   : > { %5335 = vmatmul.mubr.bf16.gmra.mxu0 %v5042_v37  ;;  %v4970_v47 = vsel %vm280_vm12, %v4938_v15, %v7871_v28  ;;  %v4971_v48 = vsel %vm280_vm12, %v4939_v4, %v7872_v19  ;;  %v4843_v37 = vsel %vm325_vm10, %v8093_v34, %v7831_v39  ;;  %v4876_v62 = vsel %vm280_vm12, %v4844_v55, %v7837_v27 }
 0x4c3   : > { %v11798_v49 = vpop.permute.xlu0 %7879  ;;  %v7850_v2 = vpop.permute.xlu1 %7849  ;;  %v4875_v14 = vsel %vm280_vm12, %v4843_v37, %v7836_v43  ;;  %v8096_v37 = vld [vmem:[#allocation3 + $0x158] sm:$0xff] }
 0x4c4   : > { %v7852_v31 = vunpack.i.h.bf16 %v7850_v2  ;;  %v7851_v9 = vunpack.i.l.bf16 %v7850_v2  ;;  %v7881_v30 = vunpack.i.l.bf16 %v11798_v49  ;;  %v7882_v53 = vunpack.i.h.bf16 %v11798_v49 }
 0x4c6   : > { %v4842_v7 = vsel %vm325_vm10, %v8090_v3, %v7852_v31  ;;  %v4841_v32 = vsel %vm325_vm10, %v8091_v45, %v7851_v9 }
 0x4c7   : > { %v11800_v1 = vpop.permute.xlu0 %7884  ;;  %v7855_v6 = vpop.permute.xlu1 %7854 }
 0x4c8   : > { %v7857_v44 = vunpack.i.h.bf16 %v7855_v6  ;;  %v7856_v36 = vunpack.i.l.bf16 %v7855_v6 }
 0x4ca   : > { %v4873_v58 = vsel %vm280_vm12, %v4841_v32, %v7856_v36  ;;  %v4874_v12 = vsel %vm280_vm12, %v4842_v7, %v7857_v44 }
 0x4cb   : > { %v7895_v33 = vpop.permute.xlu0 %7894  ;;  %v4906_v59 = vsel %vm4883_vm5, %v4873_v58, %v7806_v13  ;;  %v4907_v5 = vsel %vm4883_vm5, %v4874_v12, %v7807_v26  ;;  %v7887_v26 = vunpack.i.h.bf16 %v11800_v1  ;;  %v7886_v13 = vunpack.i.l.bf16 %v11800_v1 }
 0x4cc   : > { %v7897_v29 = vunpack.i.h.bf16 %v7895_v33  ;;  %v7896_v63 = vunpack.i.l.bf16 %v7895_v33  ;;  %v11814_v40 = vpop.permute.xlu1 %7864  ;;  %v5045_v25 = vpack.c.bf16 %v4907_v5, %v4906_v59 }
 0x4cd   : > { %v4943_v17 = vsel %vm325_vm10, %v11417_v60, %v7887_v26 }
 0x4ce   : > { %v5002_v57 = vsel %vm4883_vm5, %v4970_v47, %v7896_v63  ;;  %v5003_v51 = vsel %vm4883_vm5, %v4971_v48, %v7897_v29  ;;  %v8095_v29 = vld [vmem:[#allocation3 + $0x138] sm:$0xff]  ;;  %v7867_v47 = vunpack.i.h.bf16 %v11814_v40  ;;  %v7866_v48 = vunpack.i.l.bf16 %v11814_v40 }
 0x4cf   : > { %v7900_v56 = vpop.permute.xlu0 %7899  ;;  %v5046_v10 = vpack.c.bf16 %v5003_v51, %v5002_v57  ;;  %v4942_v57 = vsel %vm325_vm10, %v11414_v42, %v7886_v13 }
 0x4d0   : > { %v7902_v46 = vunpack.i.h.bf16 %v7900_v56  ;;  %v7901_v52 = vunpack.i.l.bf16 %v7900_v56  ;;  %v7875_v61 = vpop.permute.xlu1 %7874 }
 0x4d1   : > { %v7877_v16 = vunpack.i.h.bf16 %v7875_v61  ;;  %v7876_v54 = vunpack.i.l.bf16 %v7875_v61  ;;  %5342 = vmatprep.mubr.bf16.mxu0 %v5046_v10 }
 0x4d2   : > { %v4941_v50 = vsel %vm325_vm10, %v11441_v23, %v7902_v46  ;;  %v4940_v11 = vsel %vm325_vm10, %v11433_v41, %v7901_v52  ;;  %5343 = vmatmul.mubr.bf16.gmra.mxu0 %v5045_v25 }
 0x4d3   : > { %v11836_v2 = vpop.permute.xlu0 %7919  ;;  %v4972_v31 = vsel %vm280_vm12, %v4940_v11, %v7861_v35  ;;  %v4973_v9 = vsel %vm280_vm12, %v4941_v50, %v7862_v18  ;;  %v4908_v6 = vsel %vm4883_vm5, %v4875_v14, %v7876_v54  ;;  %v4909_v19 = vsel %vm4883_vm5, %v4876_v62, %v7877_v16  ;;  %v8097_v62 = vld [vmem:[#allocation3 + $0x150] sm:$0xff] }
 0x4d4   : > { %v11842_v23 = vpop.permute.xlu1 %7889  ;;  %v5004_v41 = vsel %vm4883_vm5, %v4972_v31, %v7881_v30  ;;  %v5005_v49 = vsel %vm4883_vm5, %v4973_v9, %v7882_v53  ;;  %v5048_v36 = vpack.c.bf16 %v4909_v19, %v4908_v6  ;;  %v7922_v30 = vunpack.i.h.bf16 %v11836_v2 }
 0x4d5   : > { %v5049_v28 = vpack.c.bf16 %v5005_v49, %v5004_v41  ;;  %v7892_v46 = vunpack.i.h.bf16 %v11842_v23  ;;  %v7891_v61 = vunpack.i.l.bf16 %v11842_v23  ;;  %v7921_v50 = vunpack.i.l.bf16 %v11836_v2 }
 0x4d7   : > { %v7925_v44 = vpop.permute.xlu0 %7924  ;;  %5350 = vmatprep.mubr.bf16.mxu0 %v5049_v28  ;;  %v4848_v53 = vsel %vm325_vm10, %v8096_v37, %v7892_v46  ;;  %v4847_v23 = vsel %vm325_vm10, %v8097_v62, %v7891_v61 }
 0x4d8   : > { %v7905_v3 = vpop.permute.xlu1 %7904  ;;  %v7927_v12 = vunpack.i.h.bf16 %v7925_v44  ;;  %v7926_v33 = vunpack.i.l.bf16 %v7925_v44 }
 0x4d9   : > { %v7907_v7 = vunpack.i.h.bf16 %v7905_v3  ;;  %v7906_v45 = vunpack.i.l.bf16 %v7905_v3 }
 0x4da   : > { %5351 = vmatmul.mubr.bf16.gmra.mxu0 %v5048_v36  ;;  %v4974_v56 = vsel %vm280_vm12, %v4942_v57, %v7926_v33  ;;  %v4975_v10 = vsel %vm280_vm12, %v4943_v17, %v7927_v12 }
 0x4db   : > { %v11848_v32 = vpop.permute.xlu0 %7934  ;;  %v4846_v15 = vsel %vm325_vm10, %v8094_v0, %v7907_v7  ;;  %v4845_v63 = vsel %vm325_vm10, %v8095_v29, %v7906_v45 }
 0x4dc   : > { %v7910_v58 = vpop.permute.xlu1 %7909  ;;  %v7936_v31 = vunpack.i.l.bf16 %v11848_v32  ;;  %v7937_v2 = vunpack.i.h.bf16 %v11848_v32 }
 0x4dd   : > { %v7912_v24 = vunpack.i.h.bf16 %v7910_v58  ;;  %v7911_v4 = vunpack.i.l.bf16 %v7910_v58 }
 0x4df   : > { %v4877_v59 = vsel %vm280_vm12, %v4845_v63, %v7911_v4  ;;  %v4878_v5 = vsel %vm280_vm12, %v4846_v15, %v7912_v24  ;;  %v7940_v1 = vpop.permute.xlu0 %7939 }
 0x4e0   : > { %v7942_v51 = vunpack.i.h.bf16 %v7940_v1  ;;  %v7941_v39 = vunpack.i.l.bf16 %v7940_v1  ;;  %v7915_v27 = vpop.permute.xlu1 %7914  ;;  %v4910_v40 = vsel %vm4883_vm5, %v4877_v59, %v7866_v48  ;;  %v4911_v43 = vsel %vm4883_vm5, %v4878_v5, %v7867_v47  ;;  %v8098_v48 = vld [vmem:[#allocation3 + $0x170] sm:$0xff]  ;;  %v8099_v5 = vld [vmem:[#allocation3 + $0x168] sm:$0xff] }
 0x4e1   : > { %v7917_v42 = vunpack.i.h.bf16 %v7915_v27  ;;  %v7916_v35 = vunpack.i.l.bf16 %v7915_v27  ;;  %v5051_v55 = vpack.c.bf16 %v4911_v43, %v4910_v40 }
 0x4e2   : > { %v5006_v52 = vsel %vm4883_vm5, %v4974_v56, %v7941_v39  ;;  %v5007_v60 = vsel %vm4883_vm5, %v4975_v10, %v7942_v51 }
 0x4e3   : > { %v7945_v25 = vpop.permute.xlu0 %7944  ;;  %v5052_v18 = vpack.c.bf16 %v5007_v60, %v5006_v52  ;;  %v4879_v49 = vsel %vm280_vm12, %v4847_v23, %v7916_v35  ;;  %v4880_v28 = vsel %vm280_vm12, %v4848_v53, %v7917_v42  ;;  %v6548_v42 = vpop.f32.mrf.mxu1  ;;  %v11905_v35 = vld [vmem:[%s12114_s6] ss:$0 sm:$0xff] }
 0x4e4   : > { %v7947_v16 = vunpack.i.h.bf16 %v7945_v25  ;;  %v7946_v54 = vunpack.i.l.bf16 %v7945_v25  ;;  %v7930_v21 = vpop.permute.xlu1 %7929 }
 0x4e5   : > { %v7932_v11 = vunpack.i.h.bf16 %v7930_v21  ;;  %v7931_v34 = vunpack.i.l.bf16 %v7930_v21  ;;  %5358 = vmatprep.mubr.bf16.mxu0 %v5052_v18  ;;  %v5417_v18 = vpop.f32.mrf.mxu1 }
 0x4e6   : > { %v4945_v9 = vsel %vm325_vm10, %v11547_v8, %v7947_v16  ;;  %v4944_v14 = vsel %vm325_vm10, %v11535_v20, %v7946_v54  ;;  %5359 = vmatmul.mubr.bf16.gmra.mxu0 %v5051_v55 }
 0x4e7   : > { %v7950_v41 = vpop.permute.xlu0 %7949  ;;  %v4976_v6 = vsel %vm280_vm12, %v4944_v14, %v7921_v50  ;;  %v4977_v19 = vsel %vm280_vm12, %v4945_v9, %v7922_v30  ;;  %v4912_v20 = vsel %vm4883_vm5, %v4879_v49, %v7931_v34  ;;  %v4913_v36 = vsel %vm4883_vm5, %v4880_v28, %v7932_v11  ;;  %v6549_v30 = vpop.f32.mrf.mxu1 }
 0x4e8   : > { %v7965_v44 = vpop.permute.xlu1 %7964  ;;  %v5008_v8 = vsel %vm4883_vm5, %v4976_v6, %v7936_v31  ;;  %v5009_v3 = vsel %vm4883_vm5, %v4977_v19, %v7937_v2  ;;  %v7952_v45 = vunpack.i.h.bf16 %v7950_v41  ;;  %v7951_v32 = vunpack.i.l.bf16 %v7950_v41 }
 0x4e9   : > { %v5055_v7 = vpack.c.bf16 %v5009_v3, %v5008_v8  ;;  %v5054_v13 = vpack.c.bf16 %v4913_v36, %v4912_v20  ;;  %v7967_v58 = vunpack.i.h.bf16 %v7965_v44  ;;  %v7966_v12 = vunpack.i.l.bf16 %v7965_v44  ;;  %v5420_v31 = vpop.f32.mrf.mxu1 }
 0x4ea   : > { %v4947_v29 = vsel %vm325_vm10, %v11528_v22, %v7952_v45  ;;  %v4946_v63 = vsel %vm325_vm10, %v11525_v38, %v7951_v32 }
 0x4eb   : > { %v7955_v26 = vpop.permute.xlu0 %7954  ;;  %5366 = vmatprep.mubr.bf16.mxu0 %v5055_v7  ;;  %v4850_v59 = vsel %vm325_vm10, %v8098_v48, %v7967_v58  ;;  %v4849_v1 = vsel %vm325_vm10, %v8099_v5, %v7966_v12  ;;  %v6552_v41 = vpop.f32.mrf.mxu1 }
 0x4ec   : > { %v7970_v33 = vpop.permute.xlu1 %7969  ;;  %v7957_v24 = vunpack.i.h.bf16 %v7955_v26  ;;  %v7956_v4 = vunpack.i.l.bf16 %v7955_v26 }
 0x4ed   : > { %v7972_v0 = vunpack.i.h.bf16 %v7970_v33  ;;  %v7971_v15 = vunpack.i.l.bf16 %v7970_v33  ;;  %v5433_v8 = vpop.f32.mrf.mxu1 }
 0x4ee   : > { %5367 = vmatmul.mubr.bf16.gmra.mxu0 %v5054_v13  ;;  %v4978_v39 = vsel %vm280_vm12, %v4946_v63, %v7956_v4  ;;  %v4979_v27 = vsel %vm280_vm12, %v4947_v29, %v7957_v24 }
 0x4ef   : > { %v7960_v47 = vpop.permute.xlu0 %7959  ;;  %v4881_v22 = vsel %vm280_vm12, %v4849_v1, %v7971_v15  ;;  %v4882_v38 = vsel %vm280_vm12, %v4850_v59, %v7972_v0  ;;  %v6553_v32 = vpop.f32.mrf.mxu1 }
 0x4f0   : > { %v7962_v17 = vunpack.i.h.bf16 %v7960_v47  ;;  %v7961_v57 = vunpack.i.l.bf16 %v7960_v47  ;;  %v7975_v51 = vpop.permute.xlu1 %7974 }
 0x4f1   : > { %v7977_v56 = vunpack.i.h.bf16 %v7975_v51  ;;  %v7976_v10 = vunpack.i.l.bf16 %v7975_v51  ;;  %v5436_v33 = vpop.f32.mrf.mxu1 }
 0x4f2   : > { %v5010_v40 = vsel %vm4883_vm5, %v4978_v39, %v7961_v57  ;;  %v5011_v43 = vsel %vm4883_vm5, %v4979_v27, %v7962_v17 }
 0x4f3   : > { %v4914_v46 = vsel %vm4883_vm5, %v4881_v22, %v7976_v10  ;;  %v4915_v52 = vsel %vm4883_vm5, %v4882_v38, %v7977_v56  ;;  %v5058_v60 = vpack.c.bf16 %v5011_v43, %v5010_v40  ;;  %v6556_v47 = vpop.f32.mrf.mxu1 }
 0x4f4   : > { %v5057_v61 = vpack.c.bf16 %v4915_v52, %v4914_v46 }
 0x4f5   : > { %5374 = vmatprep.mubr.bf16.mxu0 %v5058_v60  ;;  %v5449_v57 = vpop.f32.mrf.mxu1 }
 0x4f6   : > { %5375 = vmatmul.mubr.bf16.gmra.mxu0 %v5057_v61 }
 0x4f7   : > { %v6557_v22 = vpop.f32.mrf.mxu1 }
 0x4f9   : > { %v5452_v52 = vpop.f32.mrf.mxu1 }
 0x510   : > { %v6350_v25 = vpop.f32.mrf.mxu0 }
 0x512   : > { %v6351_v16 = vpop.f32.mrf.mxu0 }
 0x513   : > { %v6352_v54 = vadd.f32 %v6351_v16, %v6350_v25 }
 0x514   : > { %v6353_v21 = vpop.f32.mrf.mxu0 }
 0x515   : > { %v5257_v55 = vadd.f32 %v6352_v54, %v11905_v35  ;;  %v6560_v54 = vpop.f32.mrf.mxu1 }
 0x516   : > { %v6354_v50 = vpop.f32.mrf.mxu0 }
 0x517   : > { %v5418_v11 = vadd.f32 %v5417_v18, %v5257_v55  ;;  %v6355_v34 = vadd.f32 %v6354_v50, %v6353_v21 }
 0x519   : > { %v5260_v37 = vadd.f32 %v6355_v34, %v11905_v35  ;;  %5608 = vrot.lane.b32.xlu0 %v5418_v11, %s8119_s28  ;;  %v5465_v34 = vpop.f32.mrf.mxu1 }
 0x51a   : > { %v6356_v53 = vpop.f32.mrf.mxu0 }
 0x51b   : > { %v5421_v9 = vadd.f32 %v5420_v31, %v5260_v37 }
 0x51c   : > { %v6357_v14 = vpop.f32.mrf.mxu0 }
 0x51d   : > { %v6358_v62 = vadd.f32 %v6357_v14, %v6356_v53  ;;  %5610 = vrot.lane.b32.xlu1 %v5421_v9, %s8119_s28 }
 0x51e   : > { %v6359_v23 = vpop.f32.mrf.mxu0 }
 0x51f   : > { %v5265_v2 = vadd.f32 %v6358_v62, %v11905_v35  ;;  %v6561_v62 = vpop.f32.mrf.mxu1 }
 0x520   : > { %v6360_v6 = vpop.f32.mrf.mxu0 }
 0x521   : > { %v5426_v19 = vadd.f32 %v6548_v42, %v5265_v2  ;;  %v6361_v49 = vadd.f32 %v6360_v6, %v6359_v23 }
 0x522   : > { %v6362_v28 = vpop.f32.mrf.mxu0 }
 0x523   : > { %v5268_v44 = vadd.f32 %v6361_v49, %v11905_v35  ;;  %5612 = vrot.lane.b32.xlu0 %v5426_v19, %s8119_s28  ;;  %v5468_v19 = vpop.f32.mrf.mxu1 }
 0x524   : > { %v6363_v20 = vpop.f32.mrf.mxu0 }
 0x525   : > { %v5429_v36 = vadd.f32 %v6549_v30, %v5268_v44  ;;  %v6364_v3 = vadd.f32 %v6363_v20, %v6362_v28 }
 0x526   : > { %v6365_v7 = vpop.f32.mrf.mxu0 }
 0x527   : > { %v5273_v45 = vadd.f32 %v6364_v3, %v11905_v35  ;;  %5614 = vrot.lane.b32.xlu1 %v5429_v36, %s8119_s28  ;;  %v6564_v3 = vpop.f32.mrf.mxu1 }
 0x528   : > { %v6366_v26 = vpop.f32.mrf.mxu0 }
 0x529   : > { %v5434_v13 = vadd.f32 %v5433_v8, %v5273_v45  ;;  %v6367_v58 = vadd.f32 %v6366_v26, %v6365_v7 }
 0x52b   : > { %v5276_v12 = vadd.f32 %v6367_v58, %v11905_v35  ;;  %5616 = vrot.lane.b32.xlu0 %v5434_v13, %s8119_s28  ;;  %v5481_v58 = vpop.f32.mrf.mxu1 }
 0x52d   : > { %v5437_v24 = vadd.f32 %v5436_v33, %v5276_v12 }
 0x52f   : > { %5618 = vrot.lane.b32.xlu1 %v5437_v24, %s8119_s28 }
 0x532   : > { %v6368_v4 = vpop.f32.mrf.mxu0 }
 0x534   : > { %v6369_v0 = vpop.f32.mrf.mxu0 }
 0x535   : > { %v6370_v15 = vadd.f32 %v6369_v0, %v6368_v4 }
 0x536   : > { %v6371_v29 = vpop.f32.mrf.mxu0 }
 0x537   : > { %v5281_v63 = vadd.f32 %v6370_v15, %v11905_v35  ;;  %v6565_v15 = vpop.f32.mrf.mxu1 }
 0x538   : > { %v6372_v48 = vpop.f32.mrf.mxu0 }
 0x539   : > { %v5442_v59 = vadd.f32 %v6552_v41, %v5281_v63  ;;  %v6373_v5 = vadd.f32 %v6372_v48, %v6371_v29 }
 0x53a   : > { %v6374_v1 = vpop.f32.mrf.mxu0 }
 0x53b   : > { %v5284_v17 = vadd.f32 %v6373_v5, %v11905_v35  ;;  %5620 = vrot.lane.b32.xlu0 %v5442_v59, %s8119_s28  ;;  %v5484_v59 = vpop.f32.mrf.mxu1 }
 0x53c   : > { %v6375_v51 = vpop.f32.mrf.mxu0 }
 0x53d   : > { %v5445_v39 = vadd.f32 %v6553_v32, %v5284_v17  ;;  %v6376_v27 = vadd.f32 %v6375_v51, %v6374_v1 }
 0x53e   : > { %v6377_v56 = vpop.f32.mrf.mxu0 }
 0x53f   : > { %v5289_v10 = vadd.f32 %v6376_v27, %v11905_v35  ;;  %5622 = vrot.lane.b32.xlu1 %v5445_v39, %s8119_s28  ;;  %v6568_v27 = vpop.f32.mrf.mxu1 }
 0x540   : > { %v6378_v38 = vpop.f32.mrf.mxu0 }
 0x541   : > { %v5450_v40 = vadd.f32 %v5449_v57, %v5289_v10  ;;  %v6379_v43 = vadd.f32 %v6378_v38, %v6377_v56 }
 0x543   : > { %v5292_v46 = vadd.f32 %v6379_v43, %v11905_v35  ;;  %5624 = vrot.lane.b32.xlu0 %v5450_v40, %s8119_s28  ;;  %v5497_v43 = vpop.f32.mrf.mxu1 }
 0x545   : > { %v5453_v60 = vadd.f32 %v5452_v52, %v5292_v46 }
 0x547   : > { %5626 = vrot.lane.b32.xlu1 %v5453_v60, %s8119_s28 }
 0x54a   : > { %v6380_v61 = vpop.f32.mrf.mxu0 }
 0x54c   : > { %v6381_v42 = vpop.f32.mrf.mxu0 }
 0x54d   : > { %v6382_v25 = vadd.f32 %v6381_v42, %v6380_v61 }
 0x54e   : > { %v6383_v18 = vpop.f32.mrf.mxu0 }
 0x54f   : > { %v5297_v16 = vadd.f32 %v6382_v25, %v11905_v35  ;;  %v6569_v25 = vpop.f32.mrf.mxu1 }
 0x550   : > { %v6384_v21 = vpop.f32.mrf.mxu0 }
 0x551   : > { %v5458_v55 = vadd.f32 %v6556_v47, %v5297_v16  ;;  %v6385_v30 = vadd.f32 %v6384_v21, %v6383_v18 }
 0x552   : > { %v6386_v50 = vpop.f32.mrf.mxu0 }
 0x553   : > { %v5300_v11 = vadd.f32 %v6385_v30, %v11905_v35  ;;  %5628 = vrot.lane.b32.xlu0 %v5458_v55, %s8119_s28  ;;  %v5500_v55 = vpop.f32.mrf.mxu1 }
 0x554   : > { %v6387_v37 = vpop.f32.mrf.mxu0 }
 0x555   : > { %v5461_v53 = vadd.f32 %v6557_v22, %v5300_v11  ;;  %v6388_v31 = vadd.f32 %v6387_v37, %v6386_v50 }
 0x556   : > { %v6389_v9 = vpop.f32.mrf.mxu0 }
 0x557   : > { %v5305_v14 = vadd.f32 %v6388_v31, %v11905_v35  ;;  %5630 = vrot.lane.b32.xlu1 %v5461_v53, %s8119_s28  ;;  %v6572_v31 = vpop.f32.mrf.mxu1 }
 0x558   : > { %v6390_v23 = vpop.f32.mrf.mxu0 }
 0x559   : > { %v5466_v2 = vadd.f32 %v5465_v34, %v5305_v14  ;;  %v6391_v41 = vadd.f32 %v6390_v23, %v6389_v9 }
 0x55b   : > { %v5308_v6 = vadd.f32 %v6391_v41, %v11905_v35  ;;  %5632 = vrot.lane.b32.xlu0 %v5466_v2, %s8119_s28  ;;  %v5513_v41 = vpop.f32.mrf.mxu1 }
 0x55d   : > { %v5469_v49 = vadd.f32 %v5468_v19, %v5308_v6 }
 0x55f   : > { %5634 = vrot.lane.b32.xlu1 %v5469_v49, %s8119_s28 }
 0x562   : > { %v6392_v28 = vpop.f32.mrf.mxu0 }
 0x564   : > { %v6393_v44 = vpop.f32.mrf.mxu0 }
 0x565   : > { %v6394_v8 = vadd.f32 %v6393_v44, %v6392_v28 }
 0x566   : > { %v6395_v20 = vpop.f32.mrf.mxu0 }
 0x567   : > { %v5313_v36 = vadd.f32 %v6394_v8, %v11905_v35  ;;  %v6573_v8 = vpop.f32.mrf.mxu1 }
 0x568   : > { %v6396_v7 = vpop.f32.mrf.mxu0 }
 0x569   : > { %v5474_v45 = vadd.f32 %v6560_v54, %v5313_v36  ;;  %v6397_v32 = vadd.f32 %v6396_v7, %v6395_v20 }
 0x56a   : > { %v6398_v26 = vpop.f32.mrf.mxu0 }
 0x56b   : > { %v5316_v13 = vadd.f32 %v6397_v32, %v11905_v35  ;;  %5636 = vrot.lane.b32.xlu0 %v5474_v45, %s8119_s28  ;;  %v5516_v45 = vpop.f32.mrf.mxu1 }
 0x56c   : > { %v6399_v12 = vpop.f32.mrf.mxu0 }
 0x56d   : > { %v5477_v33 = vadd.f32 %v6561_v62, %v5316_v13  ;;  %v6400_v24 = vadd.f32 %v6399_v12, %v6398_v26 }
 0x56e   : > { %v6401_v4 = vpop.f32.mrf.mxu0 }
 0x56f   : > { %v5321_v0 = vadd.f32 %v6400_v24, %v11905_v35  ;;  %5638 = vrot.lane.b32.xlu1 %v5477_v33, %s8119_s28 }
 0x570   : > { %v6402_v29 = vpop.f32.mrf.mxu0 }
 0x571   : > { %v5482_v63 = vadd.f32 %v5481_v58, %v5321_v0  ;;  %v6403_v47 = vadd.f32 %v6402_v29, %v6401_v4  ;;  %v6576_v4 = vpop.f32.mrf.mxu1 }
 0x573   : > { %v5324_v48 = vadd.f32 %v6403_v47, %v11905_v35  ;;  %5640 = vrot.lane.b32.xlu0 %v5482_v63, %s8119_s28  ;;  %v5529_v47 = vpop.f32.mrf.mxu1 }
 0x575   : > { %v5485_v5 = vadd.f32 %v5484_v59, %v5324_v48 }
 0x577   : > { %5642 = vrot.lane.b32.xlu1 %v5485_v5, %s8119_s28 }
 0x57a   : > { %v6404_v1 = vpop.f32.mrf.mxu0 }
 0x57c   : > { %v6405_v17 = vpop.f32.mrf.mxu0 }
 0x57d   : > { %v6406_v57 = vadd.f32 %v6405_v17, %v6404_v1 }
 0x57e   : > { %v6407_v51 = vpop.f32.mrf.mxu0 }
 0x57f   : > { %v5329_v39 = vadd.f32 %v6406_v57, %v11905_v35  ;;  %v6577_v57 = vpop.f32.mrf.mxu1 }
 0x580   : > { %v6408_v56 = vpop.f32.mrf.mxu0 }
 0x581   : > { %v5490_v10 = vadd.f32 %v6564_v3, %v5329_v39  ;;  %v6409_v22 = vadd.f32 %v6408_v56, %v6407_v51 }
 0x582   : > { %v6410_v38 = vpop.f32.mrf.mxu0 }
 0x583   : > { %v5332_v40 = vadd.f32 %v6409_v22, %v11905_v35  ;;  %5644 = vrot.lane.b32.xlu0 %v5490_v10, %s8119_s28 }
 0x584   : > { %v6411_v46 = vpop.f32.mrf.mxu0 }
 0x585   : > { %v5493_v52 = vadd.f32 %v6565_v15, %v5332_v40  ;;  %v6412_v60 = vadd.f32 %v6411_v46, %v6410_v38  ;;  %v5532_v38 = vpop.f32.mrf.mxu1 }
 0x586   : > { %v6413_v61 = vpop.f32.mrf.mxu0 }
 0x587   : > { %v5337_v42 = vadd.f32 %v6412_v60, %v11905_v35  ;;  %5646 = vrot.lane.b32.xlu1 %v5493_v52, %s8119_s28 }
 0x588   : > { %v6414_v18 = vpop.f32.mrf.mxu0 }
 0x589   : > { %v5498_v16 = vadd.f32 %v5497_v43, %v5337_v42  ;;  %v6415_v54 = vadd.f32 %v6414_v18, %v6413_v61  ;;  %v12332_v43 = vld [vmem:[#allocation8_spill] sm:$0xff] }
 0x58b   : > { %v5340_v21 = vadd.f32 %v6415_v54, %v11905_v35  ;;  %5648 = vrot.lane.b32.xlu0 %v5498_v16, %s8119_s28  ;;  %v5609_v56 = vpop.permute.xlu0 %5608  ;;  %v12333_v16 = vld [vmem:[#allocation9_spill] sm:$0xff] }
 0x58c   : > { %v5704_v46 = vadd.f32 %v5609_v56, %v12332_v43 }
 0x58d   : > { %v5501_v30 = vadd.f32 %v5500_v55, %v5340_v21 }
 0x58f   : > { %5650 = vrot.lane.b32.xlu1 %v5501_v30, %s8119_s28  ;;  %v5611_v61 = vpop.permute.xlu1 %5610 }
 0x590   : > { %v5705_v54 = vadd.f32 %v5611_v61, %v12333_v16  ;;  %v12353_v16 = vld [vmem:[#allocation25_spill] sm:$0xff] }
 0x592   : > { %v6416_v50 = vpop.f32.mrf.mxu0 }
 0x594   : > { %v6417_v11 = vpop.f32.mrf.mxu0 }
 0x595   : > { %v6418_v34 = vadd.f32 %v6417_v11, %v6416_v50  ;;  %v5613_v30 = vpop.permute.xlu0 %5612  ;;  %v12334_v11 = vld [vmem:[#allocation4_spill] sm:$0xff] }
 0x596   : > { %v6419_v37 = vpop.f32.mrf.mxu0 }
 0x597   : > { %v5345_v53 = vadd.f32 %v6418_v34, %v11905_v35  ;;  %v5706_v34 = vadd.f32 %v5613_v30, %v12334_v11  ;;  %v12355_v11 = vld [vmem:[#allocation27_spill] sm:$0xff] }
 0x598   : > { %v6420_v9 = vpop.f32.mrf.mxu0 }
 0x599   : > { %v5506_v14 = vadd.f32 %v6568_v27, %v5345_v53  ;;  %v6421_v62 = vadd.f32 %v6420_v9, %v6419_v37  ;;  %v5615_v53 = vpop.permute.xlu1 %5614  ;;  %v12335_v9 = vld [vmem:[#allocation5_spill] sm:$0xff] }
 0x59a   : > { %v6422_v23 = vpop.f32.mrf.mxu0 }
 0x59b   : > { %v5348_v2 = vadd.f32 %v6421_v62, %v11905_v35  ;;  %5652 = vrot.lane.b32.xlu0 %v5506_v14, %s8119_s28  ;;  %v5707_v14 = vadd.f32 %v5615_v53, %v12335_v9  ;;  %v12336_v62 = vld [vmem:[#allocation6_spill] sm:$0xff]  ;;  %v12356_v53 = vld [vmem:[#allocation28_spill] sm:$0xff] }
 0x59c   : > { %v6423_v6 = vpop.f32.mrf.mxu0 }
 0x59d   : > { %v5509_v19 = vadd.f32 %v6569_v25, %v5348_v2  ;;  %v6424_v49 = vadd.f32 %v6423_v6, %v6422_v23 }
 0x59e   : > { %v6425_v28 = vpop.f32.mrf.mxu0 }
 0x59f   : > { %v5353_v44 = vadd.f32 %v6424_v49, %v11905_v35  ;;  %5654 = vrot.lane.b32.xlu1 %v5509_v19, %s8119_s28  ;;  %v12338_v19 = vld [vmem:[#allocation12_spill] sm:$0xff] }
 0x5a0   : > { %v6426_v20 = vpop.f32.mrf.mxu0 }
 0x5a1   : > { %v5514_v36 = vadd.f32 %v5513_v41, %v5353_v44  ;;  %v6427_v3 = vadd.f32 %v6426_v20, %v6425_v28  ;;  %v5619_v2 = vpop.permute.xlu1 %5618 }
 0x5a3   : > { %v5356_v7 = vadd.f32 %v6427_v3, %v11905_v35  ;;  %5656 = vrot.lane.b32.xlu0 %v5514_v36, %s8119_s28  ;;  %v12340_v36 = vld [vmem:[#allocation10_spill] sm:$0xff] }
 0x5a5   : > { %v5517_v32 = vadd.f32 %v5516_v45, %v5356_v7 }
 0x5a6   : > { %v6428_v26 = vpop.f32.mrf.mxu0 }
 0x5a7   : > { %5658 = vrot.lane.b32.xlu1 %v5517_v32, %s8119_s28  ;;  %v12341_v32 = vld [vmem:[#allocation11_spill] sm:$0xff] }
 0x5a8   : > { %v6429_v13 = vpop.f32.mrf.mxu0 }
 0x5a9   : > { %v6430_v58 = vadd.f32 %v6429_v13, %v6428_v26  ;;  %v12342_v13 = vld [vmem:[#allocation16_spill] sm:$0xff] }
 0x5aa   : > { %v6431_v12 = vpop.f32.mrf.mxu0 }
 0x5ab   : > { %v5361_v33 = vadd.f32 %v6430_v58, %v11905_v35 }
 0x5ac   : > { %v6432_v24 = vpop.f32.mrf.mxu0 }
 0x5ad   : > { %v5522_v0 = vadd.f32 %v6572_v31, %v5361_v33  ;;  %v6433_v15 = vadd.f32 %v6432_v24, %v6431_v12  ;;  %v5617_v31 = vpop.permute.xlu0 %5616  ;;  %v12343_v24 = vld [vmem:[#allocation17_spill] sm:$0xff] }
 0x5ae   : > { %v6434_v29 = vpop.f32.mrf.mxu0  ;;  %v5708_v23 = vadd.f32 %v5617_v31, %v12336_v62 }
 0x5af   : > { %v5364_v63 = vadd.f32 %v6433_v15, %v11905_v35  ;;  %5660 = vrot.lane.b32.xlu0 %v5522_v0, %s8119_s28  ;;  %v12344_v0 = vld [vmem:[#allocation14_spill] sm:$0xff] }
 0x5b0   : > { %v6435_v48 = vpop.f32.mrf.mxu0 }
 0x5b1   : > { %v5525_v59 = vadd.f32 %v6573_v8, %v5364_v63  ;;  %v6436_v5 = vadd.f32 %v6435_v48, %v6434_v29  ;;  %v5621_v41 = vpop.permute.xlu0 %5620  ;;  %v5623_v28 = vpop.permute.xlu1 %5622  ;;  %v12339_v8 = vld [vmem:[#allocation13_spill] sm:$0xff]  ;;  %v12345_v63 = vld [vmem:[#allocation15_spill] sm:$0xff] }
 0x5b2   : > { %v6437_v1 = vpop.f32.mrf.mxu0  ;;  %v5710_v49 = vadd.f32 %v5621_v41, %v12338_v19  ;;  %v5711_v20 = vadd.f32 %v5623_v28, %v12339_v8  ;;  %v12360_v28 = vld [vmem:[#allocation32_spill] sm:$0xff] }
 0x5b3   : > { %v5369_v17 = vadd.f32 %v6436_v5, %v11905_v35  ;;  %5662 = vrot.lane.b32.xlu1 %v5525_v59, %s8119_s28  ;;  %v12346_v59 = vld [vmem:[#allocation18_spill] sm:$0xff] }
 0x5b4   : > { %v6438_v51 = vpop.f32.mrf.mxu0 }
 0x5b5   : > { %v5530_v39 = vadd.f32 %v5529_v47, %v5369_v17  ;;  %v6439_v27 = vadd.f32 %v6438_v51, %v6437_v1  ;;  %v5625_v44 = vpop.permute.xlu0 %5624  ;;  %v12347_v17 = vld [vmem:[#allocation19_spill] sm:$0xff] }
 0x5b6   : > { %v6440_v10 = vpop.f32.mrf.mxu0  ;;  %v5712_v3 = vadd.f32 %v5625_v44, %v12340_v36  ;;  %v12361_v36 = vld [vmem:[#allocation33_spill] sm:$0xff] }
 0x5b7   : > { %v5372_v22 = vadd.f32 %v6439_v27, %v11905_v35  ;;  %5664 = vrot.lane.b32.xlu0 %v5530_v39, %s8119_s28  ;;  %v12348_v39 = vld [vmem:[#allocation20_spill] sm:$0xff] }
 0x5b8   : > { %v6441_v40 = vpop.f32.mrf.mxu0 }
 0x5b9   : > { %v5533_v52 = vadd.f32 %v5532_v38, %v5372_v22  ;;  %v6442_v60 = vadd.f32 %v6441_v40, %v6440_v10  ;;  %v5627_v7 = vpop.permute.xlu1 %5626  ;;  %v12349_v10 = vld [vmem:[#allocation21_spill] sm:$0xff]  ;;  %v12350_v40 = vld [vmem:[#allocation22_spill] sm:$0xff] }
 0x5ba   : > { %v6443_v42 = vpop.f32.mrf.mxu0  ;;  %v5713_v26 = vadd.f32 %v5627_v7, %v12341_v32  ;;  %v12362_v32 = vld [vmem:[#allocation34_spill] sm:$0xff] }
 0x5bb   : > { %v5377_v25 = vadd.f32 %v6442_v60, %v11905_v35  ;;  %5666 = vrot.lane.b32.xlu1 %v5533_v52, %s8119_s28  ;;  %5768 = vrot.lane.b32.xlu0 %v5704_v46, %s8120_s30  ;;  %v12351_v52 = vld [vmem:[#allocation23_spill] sm:$0xff] }
 0x5bc   : > { %v6444_v18 = vpop.f32.mrf.mxu0 }
 0x5bd   : > { %v5538_v21 = vadd.f32 %v6576_v4, %v5377_v25  ;;  %v6445_v55 = vadd.f32 %v6444_v18, %v6443_v42  ;;  %v12352_v42 = vld [vmem:[#allocation24_spill] sm:$0xff] }
 0x5bf   : > { %v5380_v50 = vadd.f32 %v6445_v55, %v11905_v35  ;;  %5770 = vrot.lane.b32.xlu1 %v5705_v54, %s8120_s30  ;;  %5668 = vrot.lane.b32.xlu0 %v5538_v21, %s8119_s28  ;;  %v12337_v35 = vld [vmem:[#allocation7_spill] sm:$0xff]  ;;  %v12354_v55 = vld [vmem:[#allocation26_spill] sm:$0xff] }
 0x5c0   : > { %v5709_v6 = vadd.f32 %v5619_v2, %v12337_v35  ;;  %v12358_v2 = vld [vmem:[#allocation30_spill] sm:$0xff] }
 0x5c1   : > { %v5541_v37 = vadd.f32 %v6577_v57, %v5380_v50 }
 0x5c3   : > { %5670 = vrot.lane.b32.xlu1 %v5541_v37, %s8119_s28  ;;  %5772 = vrot.lane.b32.xlu0 %v5706_v34, %s8120_s30 }
 0x5c5   : > { %v5629_v45 = vpop.permute.xlu0 %5628 }
 0x5c6   : > { %v5714_v58 = vadd.f32 %v5629_v45, %v12342_v13 }
 0x5c7   : > { %5774 = vrot.lane.b32.xlu1 %v5707_v14, %s8120_s30  ;;  %5776 = vrot.lane.b32.xlu0 %v5708_v23, %s8120_s30  ;;  %v12357_v14 = vld [vmem:[#allocation29_spill] sm:$0xff] }
 0x5c9   : > { %v5631_v12 = vpop.permute.xlu1 %5630 }
 0x5ca   : > { %v5715_v4 = vadd.f32 %v5631_v12, %v12343_v24  ;;  %v12363_v12 = vld [vmem:[#allocation35_spill] sm:$0xff] }
 0x5cb   : > { %5778 = vrot.lane.b32.xlu1 %v5709_v6, %s8120_s30  ;;  %5780 = vrot.lane.b32.xlu0 %v5710_v49, %s8120_s30  ;;  %v12359_v6 = vld [vmem:[#allocation31_spill] sm:$0xff] }
 0x5cd   : > { %v5633_v33 = vpop.permute.xlu0 %5632 }
 0x5ce   : > { %v5716_v15 = vadd.f32 %v5633_v33, %v12344_v0 }
 0x5cf   : > { %5782 = vrot.lane.b32.xlu1 %v5711_v20, %s8120_s30  ;;  %5784 = vrot.lane.b32.xlu0 %v5712_v3, %s8120_s30 }
 0x5d1   : > { %v5635_v29 = vpop.permute.xlu1 %5634 }
 0x5d2   : > { %v5717_v47 = vadd.f32 %v5635_v29, %v12345_v63 }
 0x5d3   : > { %5786 = vrot.lane.b32.xlu1 %v5713_v26, %s8120_s30  ;;  %5788 = vrot.lane.b32.xlu0 %v5714_v58, %s8120_s30 }
 0x5d7   : > { %5790 = vrot.lane.b32.xlu1 %v5715_v4, %s8120_s30  ;;  %5792 = vrot.lane.b32.xlu0 %v5716_v15, %s8120_s30 }
 0x5db   : > { %5794 = vrot.lane.b32.xlu1 %v5717_v47, %s8120_s30 }
 0x5dd   : > { %v5637_v48 = vpop.permute.xlu0 %5636 }
 0x5de   : > { %v5718_v5 = vadd.f32 %v5637_v48, %v12346_v59 }
 0x5e0   : > { %5796 = vrot.lane.b32.xlu0 %v5718_v5, %s8120_s30 }
 0x5e1   : > { %v5639_v1 = vpop.permute.xlu1 %5638 }
 0x5e2   : > { %v5719_v57 = vadd.f32 %v5639_v1, %v12347_v17 }
 0x5e4   : > { %5798 = vrot.lane.b32.xlu1 %v5719_v57, %s8120_s30 }
 0x5e5   : > { %v5641_v51 = vpop.permute.xlu0 %5640 }
 0x5e6   : > { %v5720_v27 = vadd.f32 %v5641_v51, %v12348_v39 }
 0x5e8   : > { %5800 = vrot.lane.b32.xlu0 %v5720_v27, %s8120_s30 }
 0x5e9   : > { %v5643_v56 = vpop.permute.xlu1 %5642 }
 0x5ea   : > { %v5721_v22 = vadd.f32 %v5643_v56, %v12349_v10 }
 0x5ec   : > { %5802 = vrot.lane.b32.xlu1 %v5721_v22, %s8120_s30 }
 0x5f5   : > { %v5645_v38 = vpop.permute.xlu0 %5644 }
 0x5f6   : > { %v5722_v43 = vadd.f32 %v5645_v38, %v12350_v40 }
 0x5f8   : > { %5804 = vrot.lane.b32.xlu0 %v5722_v43, %s8120_s30 }
 0x5f9   : > { %v5647_v46 = vpop.permute.xlu1 %5646 }
 0x5fa   : > { %v5723_v60 = vadd.f32 %v5647_v46, %v12351_v52 }
 0x5fc   : > { %5806 = vrot.lane.b32.xlu1 %v5723_v60, %s8120_s30 }
 0x5fd   : > { %v5649_v61 = vpop.permute.xlu0 %5648 }
 0x5fe   : > { %v5724_v25 = vadd.f32 %v5649_v61, %v12352_v42 }
 0x600   : > { %5808 = vrot.lane.b32.xlu0 %v5724_v25, %s8120_s30 }
 0x601   : > { %v5651_v18 = vpop.permute.xlu1 %5650 }
 0x602   : > { %v5725_v54 = vadd.f32 %v5651_v18, %v12353_v16 }
 0x604   : > { %5810 = vrot.lane.b32.xlu1 %v5725_v54, %s8120_s30 }
 0x60d   : > { %v5653_v21 = vpop.permute.xlu0 %5652 }
 0x60e   : > { %v5726_v30 = vadd.f32 %v5653_v21, %v12354_v55 }
 0x610   : > { %5812 = vrot.lane.b32.xlu0 %v5726_v30, %s8120_s30 }
 0x611   : > { %v5655_v50 = vpop.permute.xlu1 %5654 }
 0x612   : > { %v5727_v34 = vadd.f32 %v5655_v50, %v12355_v11 }
 0x614   : > { %5814 = vrot.lane.b32.xlu1 %v5727_v34, %s8120_s30 }
 0x615   : > { %v5657_v37 = vpop.permute.xlu0 %5656 }
 0x616   : > { %v5728_v31 = vadd.f32 %v5657_v37, %v12356_v53 }
 0x618   : > { %5816 = vrot.lane.b32.xlu0 %v5728_v31, %s8120_s30 }
 0x619   : > { %v5659_v9 = vpop.permute.xlu1 %5658 }
 0x61a   : > { %v5729_v62 = vadd.f32 %v5659_v9, %v12357_v14 }
 0x61c   : > { %5818 = vrot.lane.b32.xlu1 %v5729_v62, %s8120_s30 }
 0x621   : > { %v5661_v23 = vpop.permute.xlu0 %5660 }
 0x622   : > { %v5730_v41 = vadd.f32 %v5661_v23, %v12358_v2 }
 0x624   : > { %5820 = vrot.lane.b32.xlu0 %v5730_v41, %s8120_s30 }
 0x625   : > { %v5663_v35 = vpop.permute.xlu1 %5662 }
 0x626   : > { %v5731_v19 = vadd.f32 %v5663_v35, %v12359_v6 }
 0x628   : > { %5822 = vrot.lane.b32.xlu1 %v5731_v19, %s8120_s30 }
 0x629   : > { %v5665_v49 = vpop.permute.xlu0 %5664 }
 0x62a   : > { %v5732_v44 = vadd.f32 %v5665_v49, %v12360_v28 }
 0x62c   : > { %5824 = vrot.lane.b32.xlu0 %v5732_v44, %s8120_s30 }
 0x62d   : > { %v5667_v8 = vpop.permute.xlu1 %5666  ;;  %v5769_v20 = vpop.permute.xlu0 %5768 }
 0x62e   : > { %v5733_v3 = vadd.f32 %v5667_v8, %v12361_v36  ;;  %5865 = vst.msk [vmem:[%s12032_s10] sm:$0xff] %vm5864_vm0, %v5769_v20 }
 0x630   : > { %5826 = vrot.lane.b32.xlu1 %v5733_v3, %s8120_s30 }
 0x631   : > { %v5771_v7 = vpop.permute.xlu1 %5770  ;;  %v5669_v45 = vpop.permute.xlu0 %5668 }
 0x632   : > { %5866 = vst.msk [vmem:[%s12032_s10 + $0x8] sm:$0xff] %vm5864_vm0, %v5771_v7  ;;  %v5734_v26 = vadd.f32 %v5669_v45, %v12362_v32 }
 0x634   : > { %5828 = vrot.lane.b32.xlu0 %v5734_v26, %s8120_s30 }
 0x635   : > { %v5671_v13 = vpop.permute.xlu1 %5670  ;;  %v5773_v58 = vpop.permute.xlu0 %5772 }
 0x636   : > { %v5735_v33 = vadd.f32 %v5671_v13, %v12363_v12  ;;  %5867 = vst.msk [vmem:[%s12032_s10 + $0x10] sm:$0xff] %vm5864_vm0, %v5773_v58 }
 0x638   : > { %5830 = vrot.lane.b32.xlu1 %v5735_v33, %s8120_s30 }
 0x639   : > { %v5775_v24 = vpop.permute.xlu1 %5774  ;;  %v5777_v4 = vpop.permute.xlu0 %5776 }
 0x63a   : > { %5868 = vst.msk [vmem:[%s12032_s10 + $0x18] sm:$0xff] %vm5864_vm0, %v5775_v24  ;;  %5869 = vst.msk [vmem:[%s12032_s10 + $0x20] sm:$0xff] %vm5864_vm0, %v5777_v4 }
 0x63d   : > { %v5779_v0 = vpop.permute.xlu1 %5778  ;;  %v5781_v15 = vpop.permute.xlu0 %5780 }
 0x63e   : > { %5870 = vst.msk [vmem:[%s12032_s10 + $0x28] sm:$0xff] %vm5864_vm0, %v5779_v0  ;;  %5871 = vst.msk [vmem:[%s12032_s10 + $0x30] sm:$0xff] %vm5864_vm0, %v5781_v15 }
 0x641   : > { %v5783_v29 = vpop.permute.xlu1 %5782  ;;  %v5785_v63 = vpop.permute.xlu0 %5784 }
 0x642   : > { %5872 = vst.msk [vmem:[%s12032_s10 + $0x38] sm:$0xff] %vm5864_vm0, %v5783_v29  ;;  %5873 = vst.msk [vmem:[%s12032_s10 + $0x40] sm:$0xff] %vm5864_vm0, %v5785_v63 }
 0x645   : > { %v5787_v47 = vpop.permute.xlu1 %5786  ;;  %v5789_v48 = vpop.permute.xlu0 %5788 }
 0x646   : > { %5874 = vst.msk [vmem:[%s12032_s10 + $0x48] sm:$0xff] %vm5864_vm0, %v5787_v47  ;;  %5875 = vst.msk [vmem:[%s12032_s10 + $0x50] sm:$0xff] %vm5864_vm0, %v5789_v48 }
 0x649   : > { %v5791_v59 = vpop.permute.xlu1 %5790  ;;  %v5793_v5 = vpop.permute.xlu0 %5792 }
 0x64a   : > { %5876 = vst.msk [vmem:[%s12032_s10 + $0x58] sm:$0xff] %vm5864_vm0, %v5791_v59  ;;  %5877 = vst.msk [vmem:[%s12032_s10 + $0x60] sm:$0xff] %vm5864_vm0, %v5793_v5 }
 0x64d   : > { %v5795_v1 = vpop.permute.xlu1 %5794 }
 0x64e   : > { %5878 = vst.msk [vmem:[%s12032_s10 + $0x68] sm:$0xff] %vm5864_vm0, %v5795_v1 }
 0x652   : > { %v5797_v17 = vpop.permute.xlu0 %5796 }
 0x653   : > { %5879 = vst.msk [vmem:[%s12032_s10 + $0x70] sm:$0xff] %vm5864_vm0, %v5797_v17 }
 0x656   : > { %v5799_v57 = vpop.permute.xlu1 %5798 }
 0x657   : > { %5880 = vst.msk [vmem:[%s12032_s10 + $0x78] sm:$0xff] %vm5864_vm0, %v5799_v57 }
 0x65a   : > { %v5801_v51 = vpop.permute.xlu0 %5800 }
 0x65b   : > { %5881 = vst.msk [vmem:[%s12032_s10 + $0x80] sm:$0xff] %vm5864_vm0, %v5801_v51 }
 0x65e   : > { %v5803_v39 = vpop.permute.xlu1 %5802 }
 0x65f   : > { %5882 = vst.msk [vmem:[%s12032_s10 + $0x88] sm:$0xff] %vm5864_vm0, %v5803_v39 }
 0x66a   : > { %v5805_v27 = vpop.permute.xlu0 %5804 }
 0x66b   : > { %5883 = vst.msk [vmem:[%s12032_s10 + $0x90] sm:$0xff] %vm5864_vm0, %v5805_v27 }
 0x66e   : > { %v5807_v56 = vpop.permute.xlu1 %5806 }
 0x66f   : > { %5884 = vst.msk [vmem:[%s12032_s10 + $0x98] sm:$0xff] %vm5864_vm0, %v5807_v56 }
 0x672   : > { %v5809_v10 = vpop.permute.xlu0 %5808 }
 0x673   : > { %5885 = vst.msk [vmem:[%s12032_s10 + $0xa0] sm:$0xff] %vm5864_vm0, %v5809_v10 }
 0x676   : > { %v5811_v22 = vpop.permute.xlu1 %5810 }
 0x677   : > { %5886 = vst.msk [vmem:[%s12032_s10 + $0xa8] sm:$0xff] %vm5864_vm0, %v5811_v22 }
 0x682   : > { %v5813_v38 = vpop.permute.xlu0 %5812 }
 0x683   : > { %5887 = vst.msk [vmem:[%s12032_s10 + $0xb0] sm:$0xff] %vm5864_vm0, %v5813_v38 }
 0x686   : > { %v5815_v40 = vpop.permute.xlu1 %5814 }
 0x687   : > { %5888 = vst.msk [vmem:[%s12032_s10 + $0xb8] sm:$0xff] %vm5864_vm0, %v5815_v40 }
 0x68a   : > { %v5817_v43 = vpop.permute.xlu0 %5816 }
 0x68b   : > { %5889 = vst.msk [vmem:[%s12032_s10 + $0xc0] sm:$0xff] %vm5864_vm0, %v5817_v43 }
 0x68e   : > { %v5819_v46 = vpop.permute.xlu1 %5818 }
 0x68f   : > { %5890 = vst.msk [vmem:[%s12032_s10 + $0xc8] sm:$0xff] %vm5864_vm0, %v5819_v46 }
 0x696   : > { %v5821_v52 = vpop.permute.xlu0 %5820 }
 0x697   : > { %5891 = vst.msk [vmem:[%s12032_s10 + $0xd0] sm:$0xff] %vm5864_vm0, %v5821_v52 }
 0x69a   : > { %v5823_v60 = vpop.permute.xlu1 %5822 }
 0x69b   : > { %5892 = vst.msk [vmem:[%s12032_s10 + $0xd8] sm:$0xff] %vm5864_vm0, %v5823_v60 }
 0x69e   : > { %v5825_v61 = vpop.permute.xlu0 %5824 }
 0x69f   : > { %5893 = vst.msk [vmem:[%s12032_s10 + $0xe0] sm:$0xff] %vm5864_vm0, %v5825_v61 }
 0x6a2   : > { %v5827_v42 = vpop.permute.xlu1 %5826 }
 0x6a3   : > { %5894 = vst.msk [vmem:[%s12032_s10 + $0xe8] sm:$0xff] %vm5864_vm0, %v5827_v42 }
 0x6a6   : > { %v5829_v25 = vpop.permute.xlu0 %5828 }
 0x6a7   : > { %5895 = vst.msk [vmem:[%s12032_s10 + $0xf0] sm:$0xff] %vm5864_vm0, %v5829_v25 }
 0x6aa   : > { %v5831_v18 = vpop.permute.xlu1 %5830 }
 0x6ab   : > { %5896 = vst.msk [vmem:[%s12032_s10 + $0xf8] sm:$0xff] %vm5864_vm0, %v5831_v18 }
 0x6ac PF: > { %s17_s24 = sadd.s32 1, %s8106_s24  }
 0x6ad   : > { %p14_p4 = scmp.ge.s32.totalorder %s17_s24, 4  }
 0x6af   :  { %16 = sbr.rel (!%p14_p4) target bundleno = 1 (0x1), region = 82 }

</bundles_post_ra>
